<compile_context>
chip_gen: v7x
topology: tpu7x:2x2x1
jax: 0.10.0
libtpu: 0.0.40
codegen_flags: <defaults>
</compile_context>

<pallas_src>
import functools

import numpy as np
import jax
import jax.numpy as jnp
from jax import lax
from jax.experimental import pallas as pl
from jax.experimental.pallas import tpu as pltpu


# ----------------------------- static geometry --------------------------------

def _conv_out(n):                         # kernel 4, stride 2, VALID
    return (n - 4) // 2 + 1


def _layer_dims(height, width, n_layers):
    """Per layer: (ho, wo, hp, wp, s_in, m).

    The layer consumes a flattened "cell grid" X2 of s_in = hp*wp rows
    (hp = ho+1, wp = wo+1, 4*Cin channels; space-to-depth by 2 of its input)
    and produces m = ho*wp - 1 flattened output rows s = i*wp + j.
    Rows with j == wo are over-computed garbage and are never consumed.
    """
    dims = []
    h, w = height, width
    for _ in range(n_layers):
        ho, wo = _conv_out(h), _conv_out(w)
        hp, wp = ho + 1, wo + 1
        dims.append((ho, wo, hp, wp, hp * wp, ho * wp - 1))
        h, w = ho, wo
    return dims


def _space_to_depth_input(x_nchw, hp, wp, dtype):
    """(N, C, H, W) -> (N, hp*wp, 4*C) with
       out[n, a*wp + b, (2*di + dj)*C + c] = x[n, c, 2a+di, 2b+dj]."""
    n, c, _, _ = x_nchw.shape
    xc = x_nchw[:, :, :2 * hp, :2 * wp]
    xc = xc.reshape(n, c, hp, 2, wp, 2)
    xc = xc.transpose(0, 2, 4, 3, 5, 1)           # (N, hp, wp, di, dj, C)
    return xc.reshape(n, hp * wp, 4 * c).astype(dtype)


def _merge_weight(w_oihw, dtype):
    """(Cout, Cin, 4, 4) -> (16*Cin, Cout): rows ordered by
       [tap (p,q) block][cell position (di,dj) block][cin],
       matching the in-kernel lane-concatenated operand."""
    co, ci, _, _ = w_oihw.shape
    w = w_oihw.reshape(co, ci, 2, 2, 2, 2)        # (co, ci, p, di, q, dj)
    w = w.transpose(2, 4, 3, 5, 1, 0)             # (p, q, di, dj, ci, co)
    return w.reshape(16 * ci, co).astype(dtype)


def _selection_matrices(wp_in, m_in, hp_out, wp_out, dtype):
    """Constant 0/1 matrices G[t], t = 2*di+dj, of shape (hp_out*wp_out, m_in):
       G[t, a*wp_out + b, (2a+di)*wp_in + (2b+dj)] = 1.
       concat_t(G[t] @ Y) is exactly the space-to-depth-by-2 regrouping of the
       layer output Y (rows s = i*wp_in + j), done as exact MXU matmuls."""
    g = np.zeros((4, hp_out * wp_out, m_in), dtype=np.float32)
    for di in range(2):
        for dj in range(2):
            t = 2 * di + dj
            for a in range(hp_out):
                for b in range(wp_out):
                    src = (2 * a + di) * wp_in + (2 * b + dj)
                    g[t, a * wp_out + b, src] = 1.0
    return jnp.asarray(g, dtype=dtype)


# ------------------------------ fused kernel ----------------------------------

def _encoder_kernel(x_ref,
                    w1_ref, w2_ref, w3_ref, w4_ref,
                    b1_ref, b2_ref, b3_ref, b4_ref,
                    g1_ref, g2_ref, g3_ref,
                    o_ref, *, wpm, compute_dtype):
    """Whole 4-layer encoder for one frame, entirely in VMEM.

    x_ref : (1, s_in1, 4*Cin1) f32   space-to-depth'd input frame
    wN_ref: (16*CinN, CoutN)         merged conv weights (compute dtype)
    bN_ref: (1, CoutN) f32           biases
    gN_ref: (4, s_in_{N+1}, m_N)     0/1 inter-layer selection matrices
    o_ref : (1, m_last, Cout_last) f32
    wpm   : static tuple of (wp, m) per layer
    """
    cdt = compute_dtype

    def conv(x2, w_ref, b_ref, wp, m):
        # k=4/s=2 conv as ONE matmul with K = 16*Cin: lane-concat of the four
        # shifted (p,q) tap views of the space-to-depth'd input.
        xcat = jnp.concatenate(
            [x2[off:off + m, :] for off in (0, 1, wp, wp + 1)], axis=-1)
        y = jnp.dot(xcat.astype(cdt), w_ref[...],
                    preferred_element_type=jnp.float32)
        return jnp.maximum(y + b_ref[...], 0.0)           # (m, Cout) f32

    def regroup(y, g_ref):
        # space-to-depth by 2 of the layer output via exact 0/1 selection
        # matmuls (one 1.0 per row -> values reproduced exactly).
        yc = y.astype(cdt)          # inter-layer quantization (matches reference)
        parts = [
            jnp.dot(g_ref[t], yc, preferred_element_type=jnp.float32)
            for t in range(4)
        ]
        return jnp.concatenate(parts, axis=-1)            # (s_in_next, 4*Cout) f32

    w_refs = (w1_ref, w2_ref, w3_ref, w4_ref)
    b_refs = (b1_ref, b2_ref, b3_ref, b4_ref)
    g_refs = (g1_ref, g2_ref, g3_ref)

    x = x_ref[0]
    y = None
    for li, (wp, m) in enumerate(wpm):
        y = conv(x, w_refs[li], b_refs[li], wp, m)
        if li < len(g_refs):
            x = regroup(y, g_refs[li])
    o_ref[0] = y.astype(o_ref.dtype)


# --------------------------- full encoder forward ------------------------------

def variational_encoder_forward(obs, params, *, compute_dtype=jnp.bfloat16):
    """obs: (B, S, 3, H, W) float32 -> (B, S, latent) float32.

    Matches nn.Sequential(Flatten(0,1), [Conv2d(k=4,s=2)+ReLU] x4, Flatten()).
    """
    B, S, C, H, W = obs.shape
    N = B * S
    n_layers = len(params)
    assert n_layers == 4
    dims = _layer_dims(H, W, n_layers)

    # One wrapper-side relayout: space-to-depth by 2 of the raw NCHW input.
    _, _, hp1, wp1, s1, _ = dims[0]
    x2 = _space_to_depth_input(obs.reshape(N, C, H, W), hp1, wp1, jnp.float32)

    # VMEM-resident constants: merged weights, biases, selection matrices.
    wms = [_merge_weight(w, compute_dtype) for (w, _) in params]
    bss = [b.reshape(1, -1).astype(jnp.float32) for (_, b) in params]
    gs = []
    for li in range(n_layers - 1):
        wp_in, m_in = dims[li][3], dims[li][5]
        hp_out, wp_out = dims[li + 1][2], dims[li + 1][3]
        gs.append(_selection_matrices(wp_in, m_in, hp_out, wp_out, compute_dtype))

    ho_l, wo_l, _, wp_l, _, m_l = dims[-1]
    c_last = params[-1][0].shape[0]
    wpm = tuple((d[3], d[5]) for d in dims)

    # Advisory cost estimate.
    itm = jnp.dtype(compute_dtype).itemsize
    conv_macs = sum(d[5] * wm.shape[0] * wm.shape[1] for d, wm in zip(dims, wms))
    sel_macs = sum(int(g.size) * wm.shape[1] for g, wm in zip(gs, wms[:-1]))
    cost = pl.CostEstimate(
        flops=2 * N * (conv_macs + sel_macs),
        transcendentals=0,
        bytes_accessed=(int(x2.size) * 4
                        + sum(int(w.size) for w in wms) * itm
                        + sum(int(g.size) for g in gs) * itm
                        + sum(int(b.size) for b in bss) * 4
                        + N * m_l * c_last * 4))

    in_specs = [pl.BlockSpec((1, s1, 4 * C), lambda n: (n, 0, 0))]
    in_specs += [pl.BlockSpec(w.shape, lambda n: (0, 0)) for w in wms]
    in_specs += [pl.BlockSpec(b.shape, lambda n: (0, 0)) for b in bss]
    in_specs += [pl.BlockSpec(g.shape, lambda n: (0, 0, 0)) for g in gs]

    out = pl.pallas_call(
        functools.partial(_encoder_kernel, wpm=wpm, compute_dtype=compute_dtype),
        out_shape=jax.ShapeDtypeStruct((N, m_l, c_last), jnp.float32),
        grid=(N,),
        in_specs=in_specs,
        out_specs=pl.BlockSpec((1, m_l, c_last), lambda n: (n, 0, 0)),
        compiler_params=pltpu.CompilerParams(
            dimension_semantics=("parallel",),
            vmem_limit_bytes=32 * 1024 * 1024),
        cost_estimate=cost,
    )(x2, *wms, *bss, *gs)

    # Flatten exactly like nn.Flatten() applied to (N, Cout, Ho, Wo).
    if ho_l == 1 and wo_l == 1:
        latent = out[:, 0, :]
    else:
        pad = ho_l * wp_l - m_l
        y = jnp.pad(out, ((0, 0), (0, pad), (0, 0)))
        y = y.reshape(N, ho_l, wp_l, c_last)[:, :, :wo_l, :]
        latent = y.transpose(0, 3, 1, 2).reshape(N, c_last * ho_l * wo_l)
    return latent.reshape(B, S, -1)


# ------------------------------ reference (JAX) --------------------------------

def reference_forward(obs, params, *, compute_dtype=jnp.float32):
    """Pure-JAX reference.  With compute_dtype=bfloat16 it mirrors the kernel's
    precision (bf16 operands, f32 accumulation, bf16 inter-layer activations)."""
    B, S, C, H, W = obs.shape
    x = obs.reshape(B * S, C, H, W)
    n_layers = len(params)
    for li, (w, b) in enumerate(params):
        y = lax.conv_general_dilated(
            x.astype(compute_dtype), w.astype(compute_dtype),
            window_strides=(2, 2), padding="VALID",
            dimension_numbers=("NCHW", "OIHW", "NCHW"),
            preferred_element_type=jnp.float32)
        y = jnp.maximum(y + b.reshape(1, -1, 1, 1), 0.0)
        x = y if li == n_layers - 1 else y.astype(compute_dtype)
    return x.reshape(B, S, -1)


# ----------------------------------- main --------------------------------------

if __name__ == "__main__":
    key = jax.random.PRNGKey(0)

    # H=W=48 -> spatial 23 -> 10 -> 4 -> 1; latent = 256.
    B, S, H, W = 2, 3, 48, 48
    key, k_obs = jax.random.split(key)
    obs = jax.random.normal(k_obs, (B, S, 3, H, W), dtype=jnp.float32)

    # Conv2d shapes from the module's __init__ (deterministic init).
    conv_shapes = [(32, 3, 4, 4), (64, 32, 4, 4), (128, 64, 4, 4), (256, 128, 4, 4)]
    params = []
    for shape in conv_shapes:
        key, kw, kb = jax.random.split(key, 3)
        fan_in = shape[1] * shape[2] * shape[3]
        w = jax.random.normal(kw, shape, dtype=jnp.float32) * (2.0 / fan_in) ** 0.5
        b = jax.random.normal(kb, (shape[0],), dtype=jnp.float32) * 0.01
        params.append((w, b))

    # --- exact-arithmetic check (f32 operands) against the module semantics ----
    fwd_f32 = jax.jit(functools.partial(variational_encoder_forward,
                                        params=params, compute_dtype=jnp.float32))
    out_f32 = jax.block_until_ready(fwd_f32(obs))
    ref_f32 = reference_forward(obs, params, compute_dtype=jnp.float32)
    assert out_f32.shape == (B, S, 256), out_f32.shape
    assert jnp.allclose(out_f32, ref_f32, rtol=1e-3, atol=2e-3), \
        float(jnp.max(jnp.abs(out_f32 - ref_f32)))

    # --- default bf16 MXU path vs a precision-matched reference ----------------
    fwd_bf16 = jax.jit(functools.partial(variational_encoder_forward,
                                         params=params, compute_dtype=jnp.bfloat16))
    out_bf16 = jax.block_until_ready(fwd_bf16(obs))
    ref_bf16 = reference_forward(obs, params, compute_dtype=jnp.bfloat16)
    assert out_bf16.shape == (B, S, 256), out_bf16.shape
    assert jnp.allclose(out_bf16, ref_bf16, rtol=2e-2, atol=2e-2), \
        float(jnp.max(jnp.abs(out_bf16 - ref_bf16)))

    print("KERNEL_OK")
</pallas_src>

<mosaic_0001>
module attributes {stable_mosaic.version = 11 : i64} {
  func.func @_encoder_kernel(%arg0: i32, %arg1: memref<1x576x12xf32, #tpu.memory_space<vmem>>, %arg2: memref<48x32xf32, #tpu.memory_space<vmem>>, %arg3: memref<512x64xf32, #tpu.memory_space<vmem>>, %arg4: memref<1024x128xf32, #tpu.memory_space<vmem>>, %arg5: memref<2048x256xf32, #tpu.memory_space<vmem>>, %arg6: memref<1x32xf32, #tpu.memory_space<vmem>>, %arg7: memref<1x64xf32, #tpu.memory_space<vmem>>, %arg8: memref<1x128xf32, #tpu.memory_space<vmem>>, %arg9: memref<1x256xf32, #tpu.memory_space<vmem>>, %arg10: memref<4x121x551xf32, #tpu.memory_space<vmem>>, %arg11: memref<4x25x109xf32, #tpu.memory_space<vmem>>, %arg12: memref<4x4x19xf32, #tpu.memory_space<vmem>>, %arg13: memref<1x1x256xf32, #tpu.memory_space<vmem>>) attributes {dimension_semantics = [#tpu.dimension_semantics<parallel>], iteration_bounds = array<i64: 6>, scalar_prefetch = 0 : i64, scratch_operands = 0 : i64, tpu.core_type = #tpu.core_type<tc>, window_params = [{transform_indices = @transform_0, window_bounds = array<i64: 1, 576, 12>}, {pipeline_mode = #tpu.pipeline_mode<synchronous>, transform_indices = @transform_1, window_bounds = array<i64: 48, 32>}, {pipeline_mode = #tpu.pipeline_mode<synchronous>, transform_indices = @transform_2, window_bounds = array<i64: 512, 64>}, {pipeline_mode = #tpu.pipeline_mode<synchronous>, transform_indices = @transform_3, window_bounds = array<i64: 1024, 128>}, {pipeline_mode = #tpu.pipeline_mode<synchronous>, transform_indices = @transform_4, window_bounds = array<i64: 2048, 256>}, {pipeline_mode = #tpu.pipeline_mode<synchronous>, transform_indices = @transform_5, window_bounds = array<i64: 1, 32>}, {pipeline_mode = #tpu.pipeline_mode<synchronous>, transform_indices = @transform_6, window_bounds = array<i64: 1, 64>}, {pipeline_mode = #tpu.pipeline_mode<synchronous>, transform_indices = @transform_7, window_bounds = array<i64: 1, 128>}, {pipeline_mode = #tpu.pipeline_mode<synchronous>, transform_indices = @transform_8, window_bounds = array<i64: 1, 256>}, {pipeline_mode = #tpu.pipeline_mode<synchronous>, transform_indices = @transform_9, window_bounds = array<i64: 4, 121, 551>}, {pipeline_mode = #tpu.pipeline_mode<synchronous>, transform_indices = @transform_10, window_bounds = array<i64: 4, 25, 109>}, {pipeline_mode = #tpu.pipeline_mode<synchronous>, transform_indices = @transform_11, window_bounds = array<i64: 4, 4, 19>}, {transform_indices = @transform_12, window_bounds = array<i64: 1, 1, 256>}]} {
    %c0 = arith.constant 0 : index
    %c0_0 = arith.constant 0 : index
    %c0_1 = arith.constant 0 : index
    %0 = vector.load %arg1[%c0, %c0_0, %c0_1] : memref<1x576x12xf32, #tpu.memory_space<vmem>>, vector<1x576x12xf32>
    %1 = vector.shape_cast %0 : vector<1x576x12xf32> to vector<576x12xf32>
    %2 = vector.extract_strided_slice %1 {offsets = [0, 0], sizes = [551, 12], strides = [1, 1]} : vector<576x12xf32> to vector<551x12xf32>
    %3 = vector.extract_strided_slice %1 {offsets = [1, 0], sizes = [551, 12], strides = [1, 1]} : vector<576x12xf32> to vector<551x12xf32>
    %4 = vector.extract_strided_slice %1 {offsets = [24, 0], sizes = [551, 12], strides = [1, 1]} : vector<576x12xf32> to vector<551x12xf32>
    %5 = vector.extract_strided_slice %1 {offsets = [25, 0], sizes = [551, 12], strides = [1, 1]} : vector<576x12xf32> to vector<551x12xf32>
    %6 = tpu.concatenate %2, %3, %4, %5 in 1 : vector<551x12xf32>, vector<551x12xf32>, vector<551x12xf32>, vector<551x12xf32> -> vector<551x48xf32>
    %c0_2 = arith.constant 0 : index
    %c0_3 = arith.constant 0 : index
    %7 = vector.load %arg2[%c0_2, %c0_3] : memref<48x32xf32, #tpu.memory_space<vmem>>, vector<48x32xf32>
    %cst = arith.constant dense<0.000000e+00> : vector<551x32xf32>
    %8 = tpu.matmul %6, %7, %cst {dimension_numbers = #tpu.dot_dimension_numbers<[1], [0], [0], [1], [0, 0, 1, 1], [], []>} : vector<551x48xf32>, vector<48x32xf32>, vector<551x32xf32> -> vector<551x32xf32>
    %c0_4 = arith.constant 0 : index
    %c0_5 = arith.constant 0 : index
    %9 = vector.load %arg6[%c0_4, %c0_5] : memref<1x32xf32, #tpu.memory_space<vmem>>, vector<1x32xf32>
    %10 = vector.broadcast %9 : vector<1x32xf32> to vector<551x32xf32>
    %11 = arith.addf %8, %10 : vector<551x32xf32>
    %cst_6 = arith.constant 0.000000e+00 : f32
    %12 = vector.broadcast %cst_6 : f32 to vector<551x32xf32>
    %13 = arith.maximumf %11, %12 : vector<551x32xf32>
    %c0_7 = arith.constant 0 : index
    %c0_8 = arith.constant 0 : index
    %c0_9 = arith.constant 0 : index
    %14 = vector.load %arg10[%c0_7, %c0_8, %c0_9] : memref<4x121x551xf32, #tpu.memory_space<vmem>>, vector<1x121x551xf32>
    %15 = vector.shape_cast %14 : vector<1x121x551xf32> to vector<121x551xf32>
    %cst_10 = arith.constant dense<0.000000e+00> : vector<121x32xf32>
    %16 = tpu.matmul %15, %13, %cst_10 {dimension_numbers = #tpu.dot_dimension_numbers<[1], [0], [0], [1], [0, 0, 1, 1], [], []>} : vector<121x551xf32>, vector<551x32xf32>, vector<121x32xf32> -> vector<121x32xf32>
    %c1 = arith.constant 1 : index
    %c0_11 = arith.constant 0 : index
    %c0_12 = arith.constant 0 : index
    %17 = vector.load %arg10[%c1, %c0_11, %c0_12] : memref<4x121x551xf32, #tpu.memory_space<vmem>>, vector<1x121x551xf32>
    %18 = vector.shape_cast %17 : vector<1x121x551xf32> to vector<121x551xf32>
    %cst_13 = arith.constant dense<0.000000e+00> : vector<121x32xf32>
    %19 = tpu.matmul %18, %13, %cst_13 {dimension_numbers = #tpu.dot_dimension_numbers<[1], [0], [0], [1], [0, 0, 1, 1], [], []>} : vector<121x551xf32>, vector<551x32xf32>, vector<121x32xf32> -> vector<121x32xf32>
    %c2 = arith.constant 2 : index
    %c0_14 = arith.constant 0 : index
    %c0_15 = arith.constant 0 : index
    %20 = vector.load %arg10[%c2, %c0_14, %c0_15] : memref<4x121x551xf32, #tpu.memory_space<vmem>>, vector<1x121x551xf32>
    %21 = vector.shape_cast %20 : vector<1x121x551xf32> to vector<121x551xf32>
    %cst_16 = arith.constant dense<0.000000e+00> : vector<121x32xf32>
    %22 = tpu.matmul %21, %13, %cst_16 {dimension_numbers = #tpu.dot_dimension_numbers<[1], [0], [0], [1], [0, 0, 1, 1], [], []>} : vector<121x551xf32>, vector<551x32xf32>, vector<121x32xf32> -> vector<121x32xf32>
    %c3 = arith.constant 3 : index
    %c0_17 = arith.constant 0 : index
    %c0_18 = arith.constant 0 : index
    %23 = vector.load %arg10[%c3, %c0_17, %c0_18] : memref<4x121x551xf32, #tpu.memory_space<vmem>>, vector<1x121x551xf32>
    %24 = vector.shape_cast %23 : vector<1x121x551xf32> to vector<121x551xf32>
    %cst_19 = arith.constant dense<0.000000e+00> : vector<121x32xf32>
    %25 = tpu.matmul %24, %13, %cst_19 {dimension_numbers = #tpu.dot_dimension_numbers<[1], [0], [0], [1], [0, 0, 1, 1], [], []>} : vector<121x551xf32>, vector<551x32xf32>, vector<121x32xf32> -> vector<121x32xf32>
    %26 = tpu.concatenate %16, %19, %22, %25 in 1 : vector<121x32xf32>, vector<121x32xf32>, vector<121x32xf32>, vector<121x32xf32> -> vector<121x128xf32>
    %27 = vector.extract_strided_slice %26 {offsets = [0, 0], sizes = [109, 128], strides = [1, 1]} : vector<121x128xf32> to vector<109x128xf32>
    %28 = vector.extract_strided_slice %26 {offsets = [1, 0], sizes = [109, 128], strides = [1, 1]} : vector<121x128xf32> to vector<109x128xf32>
    %29 = vector.extract_strided_slice %26 {offsets = [11, 0], sizes = [109, 128], strides = [1, 1]} : vector<121x128xf32> to vector<109x128xf32>
    %30 = vector.extract_strided_slice %26 {offsets = [12, 0], sizes = [109, 128], strides = [1, 1]} : vector<121x128xf32> to vector<109x128xf32>
    %31 = tpu.concatenate %27, %28, %29, %30 in 1 : vector<109x128xf32>, vector<109x128xf32>, vector<109x128xf32>, vector<109x128xf32> -> vector<109x512xf32>
    %c0_20 = arith.constant 0 : index
    %c0_21 = arith.constant 0 : index
    %32 = vector.load %arg3[%c0_20, %c0_21] : memref<512x64xf32, #tpu.memory_space<vmem>>, vector<512x64xf32>
    %cst_22 = arith.constant dense<0.000000e+00> : vector<109x64xf32>
    %33 = tpu.matmul %31, %32, %cst_22 {dimension_numbers = #tpu.dot_dimension_numbers<[1], [0], [0], [1], [0, 0, 1, 1], [], []>} : vector<109x512xf32>, vector<512x64xf32>, vector<109x64xf32> -> vector<109x64xf32>
    %c0_23 = arith.constant 0 : index
    %c0_24 = arith.constant 0 : index
    %34 = vector.load %arg7[%c0_23, %c0_24] : memref<1x64xf32, #tpu.memory_space<vmem>>, vector<1x64xf32>
    %35 = vector.broadcast %34 : vector<1x64xf32> to vector<109x64xf32>
    %36 = arith.addf %33, %35 : vector<109x64xf32>
    %cst_25 = arith.constant 0.000000e+00 : f32
    %37 = vector.broadcast %cst_25 : f32 to vector<109x64xf32>
    %38 = arith.maximumf %36, %37 : vector<109x64xf32>
    %c0_26 = arith.constant 0 : index
    %c0_27 = arith.constant 0 : index
    %c0_28 = arith.constant 0 : index
    %39 = vector.load %arg11[%c0_26, %c0_27, %c0_28] : memref<4x25x109xf32, #tpu.memory_space<vmem>>, vector<1x25x109xf32>
    %40 = vector.shape_cast %39 : vector<1x25x109xf32> to vector<25x109xf32>
    %cst_29 = arith.constant dense<0.000000e+00> : vector<25x64xf32>
    %41 = tpu.matmul %40, %38, %cst_29 {dimension_numbers = #tpu.dot_dimension_numbers<[1], [0], [0], [1], [0, 0, 1, 1], [], []>} : vector<25x109xf32>, vector<109x64xf32>, vector<25x64xf32> -> vector<25x64xf32>
    %c1_30 = arith.constant 1 : index
    %c0_31 = arith.constant 0 : index
    %c0_32 = arith.constant 0 : index
    %42 = vector.load %arg11[%c1_30, %c0_31, %c0_32] : memref<4x25x109xf32, #tpu.memory_space<vmem>>, vector<1x25x109xf32>
    %43 = vector.shape_cast %42 : vector<1x25x109xf32> to vector<25x109xf32>
    %cst_33 = arith.constant dense<0.000000e+00> : vector<25x64xf32>
    %44 = tpu.matmul %43, %38, %cst_33 {dimension_numbers = #tpu.dot_dimension_numbers<[1], [0], [0], [1], [0, 0, 1, 1], [], []>} : vector<25x109xf32>, vector<109x64xf32>, vector<25x64xf32> -> vector<25x64xf32>
    %c2_34 = arith.constant 2 : index
    %c0_35 = arith.constant 0 : index
    %c0_36 = arith.constant 0 : index
    %45 = vector.load %arg11[%c2_34, %c0_35, %c0_36] : memref<4x25x109xf32, #tpu.memory_space<vmem>>, vector<1x25x109xf32>
    %46 = vector.shape_cast %45 : vector<1x25x109xf32> to vector<25x109xf32>
    %cst_37 = arith.constant dense<0.000000e+00> : vector<25x64xf32>
    %47 = tpu.matmul %46, %38, %cst_37 {dimension_numbers = #tpu.dot_dimension_numbers<[1], [0], [0], [1], [0, 0, 1, 1], [], []>} : vector<25x109xf32>, vector<109x64xf32>, vector<25x64xf32> -> vector<25x64xf32>
    %c3_38 = arith.constant 3 : index
    %c0_39 = arith.constant 0 : index
    %c0_40 = arith.constant 0 : index
    %48 = vector.load %arg11[%c3_38, %c0_39, %c0_40] : memref<4x25x109xf32, #tpu.memory_space<vmem>>, vector<1x25x109xf32>
    %49 = vector.shape_cast %48 : vector<1x25x109xf32> to vector<25x109xf32>
    %cst_41 = arith.constant dense<0.000000e+00> : vector<25x64xf32>
    %50 = tpu.matmul %49, %38, %cst_41 {dimension_numbers = #tpu.dot_dimension_numbers<[1], [0], [0], [1], [0, 0, 1, 1], [], []>} : vector<25x109xf32>, vector<109x64xf32>, vector<25x64xf32> -> vector<25x64xf32>
    %51 = tpu.concatenate %41, %44, %47, %50 in 1 : vector<25x64xf32>, vector<25x64xf32>, vector<25x64xf32>, vector<25x64xf32> -> vector<25x256xf32>
    %52 = vector.extract_strided_slice %51 {offsets = [0, 0], sizes = [19, 256], strides = [1, 1]} : vector<25x256xf32> to vector<19x256xf32>
    %53 = vector.extract_strided_slice %51 {offsets = [1, 0], sizes = [19, 256], strides = [1, 1]} : vector<25x256xf32> to vector<19x256xf32>
    %54 = vector.extract_strided_slice %51 {offsets = [5, 0], sizes = [19, 256], strides = [1, 1]} : vector<25x256xf32> to vector<19x256xf32>
    %55 = vector.extract_strided_slice %51 {offsets = [6, 0], sizes = [19, 256], strides = [1, 1]} : vector<25x256xf32> to vector<19x256xf32>
    %56 = tpu.concatenate %52, %53, %54, %55 in 1 : vector<19x256xf32>, vector<19x256xf32>, vector<19x256xf32>, vector<19x256xf32> -> vector<19x1024xf32>
    %c0_42 = arith.constant 0 : index
    %c0_43 = arith.constant 0 : index
    %57 = vector.load %arg4[%c0_42, %c0_43] : memref<1024x128xf32, #tpu.memory_space<vmem>>, vector<1024x128xf32>
    %cst_44 = arith.constant dense<0.000000e+00> : vector<19x128xf32>
    %58 = tpu.matmul %56, %57, %cst_44 {dimension_numbers = #tpu.dot_dimension_numbers<[1], [0], [0], [1], [0, 0, 1, 1], [], []>} : vector<19x1024xf32>, vector<1024x128xf32>, vector<19x128xf32> -> vector<19x128xf32>
    %c0_45 = arith.constant 0 : index
    %c0_46 = arith.constant 0 : index
    %59 = vector.load %arg8[%c0_45, %c0_46] : memref<1x128xf32, #tpu.memory_space<vmem>>, vector<1x128xf32>
    %60 = vector.broadcast %59 : vector<1x128xf32> to vector<19x128xf32>
    %61 = arith.addf %58, %60 : vector<19x128xf32>
    %cst_47 = arith.constant 0.000000e+00 : f32
    %62 = vector.broadcast %cst_47 : f32 to vector<19x128xf32>
    %63 = arith.maximumf %61, %62 : vector<19x128xf32>
    %c0_48 = arith.constant 0 : index
    %c0_49 = arith.constant 0 : index
    %c0_50 = arith.constant 0 : index
    %64 = vector.load %arg12[%c0_48, %c0_49, %c0_50] : memref<4x4x19xf32, #tpu.memory_space<vmem>>, vector<1x4x19xf32>
    %65 = vector.shape_cast %64 : vector<1x4x19xf32> to vector<4x19xf32>
    %cst_51 = arith.constant dense<0.000000e+00> : vector<4x128xf32>
    %66 = tpu.matmul %65, %63, %cst_51 {dimension_numbers = #tpu.dot_dimension_numbers<[1], [0], [0], [1], [0, 0, 1, 1], [], []>} : vector<4x19xf32>, vector<19x128xf32>, vector<4x128xf32> -> vector<4x128xf32>
    %c1_52 = arith.constant 1 : index
    %c0_53 = arith.constant 0 : index
    %c0_54 = arith.constant 0 : index
    %67 = vector.load %arg12[%c1_52, %c0_53, %c0_54] : memref<4x4x19xf32, #tpu.memory_space<vmem>>, vector<1x4x19xf32>
    %68 = vector.shape_cast %67 : vector<1x4x19xf32> to vector<4x19xf32>
    %cst_55 = arith.constant dense<0.000000e+00> : vector<4x128xf32>
    %69 = tpu.matmul %68, %63, %cst_55 {dimension_numbers = #tpu.dot_dimension_numbers<[1], [0], [0], [1], [0, 0, 1, 1], [], []>} : vector<4x19xf32>, vector<19x128xf32>, vector<4x128xf32> -> vector<4x128xf32>
    %c2_56 = arith.constant 2 : index
    %c0_57 = arith.constant 0 : index
    %c0_58 = arith.constant 0 : index
    %70 = vector.load %arg12[%c2_56, %c0_57, %c0_58] : memref<4x4x19xf32, #tpu.memory_space<vmem>>, vector<1x4x19xf32>
    %71 = vector.shape_cast %70 : vector<1x4x19xf32> to vector<4x19xf32>
    %cst_59 = arith.constant dense<0.000000e+00> : vector<4x128xf32>
    %72 = tpu.matmul %71, %63, %cst_59 {dimension_numbers = #tpu.dot_dimension_numbers<[1], [0], [0], [1], [0, 0, 1, 1], [], []>} : vector<4x19xf32>, vector<19x128xf32>, vector<4x128xf32> -> vector<4x128xf32>
    %c3_60 = arith.constant 3 : index
    %c0_61 = arith.constant 0 : index
    %c0_62 = arith.constant 0 : index
    %73 = vector.load %arg12[%c3_60, %c0_61, %c0_62] : memref<4x4x19xf32, #tpu.memory_space<vmem>>, vector<1x4x19xf32>
    %74 = vector.shape_cast %73 : vector<1x4x19xf32> to vector<4x19xf32>
    %cst_63 = arith.constant dense<0.000000e+00> : vector<4x128xf32>
    %75 = tpu.matmul %74, %63, %cst_63 {dimension_numbers = #tpu.dot_dimension_numbers<[1], [0], [0], [1], [0, 0, 1, 1], [], []>} : vector<4x19xf32>, vector<19x128xf32>, vector<4x128xf32> -> vector<4x128xf32>
    %76 = tpu.concatenate %66, %69, %72, %75 in 1 : vector<4x128xf32>, vector<4x128xf32>, vector<4x128xf32>, vector<4x128xf32> -> vector<4x512xf32>
    %77 = vector.extract_strided_slice %76 {offsets = [0, 0], sizes = [1, 512], strides = [1, 1]} : vector<4x512xf32> to vector<1x512xf32>
    %78 = vector.extract_strided_slice %76 {offsets = [1, 0], sizes = [1, 512], strides = [1, 1]} : vector<4x512xf32> to vector<1x512xf32>
    %79 = vector.extract_strided_slice %76 {offsets = [2, 0], sizes = [1, 512], strides = [1, 1]} : vector<4x512xf32> to vector<1x512xf32>
    %80 = vector.extract_strided_slice %76 {offsets = [3, 0], sizes = [1, 512], strides = [1, 1]} : vector<4x512xf32> to vector<1x512xf32>
    %81 = tpu.concatenate %77, %78, %79, %80 in 1 : vector<1x512xf32>, vector<1x512xf32>, vector<1x512xf32>, vector<1x512xf32> -> vector<1x2048xf32>
    %c0_64 = arith.constant 0 : index
    %c0_65 = arith.constant 0 : index
    %82 = vector.load %arg5[%c0_64, %c0_65] : memref<2048x256xf32, #tpu.memory_space<vmem>>, vector<2048x256xf32>
    %cst_66 = arith.constant dense<0.000000e+00> : vector<1x256xf32>
    %83 = tpu.matmul %81, %82, %cst_66 {dimension_numbers = #tpu.dot_dimension_numbers<[1], [0], [0], [1], [0, 0, 1, 1], [], []>} : vector<1x2048xf32>, vector<2048x256xf32>, vector<1x256xf32> -> vector<1x256xf32>
    %c0_67 = arith.constant 0 : index
    %c0_68 = arith.constant 0 : index
    %84 = vector.load %arg9[%c0_67, %c0_68] : memref<1x256xf32, #tpu.memory_space<vmem>>, vector<1x256xf32>
    %85 = arith.addf %83, %84 : vector<1x256xf32>
    %cst_69 = arith.constant 0.000000e+00 : f32
    %86 = vector.broadcast %cst_69 : f32 to vector<1x256xf32>
    %87 = arith.maximumf %85, %86 : vector<1x256xf32>
    %c0_70 = arith.constant 0 : index
    %c0_71 = arith.constant 0 : index
    %c0_72 = arith.constant 0 : index
    %88 = vector.load %arg13[%c0_70, %c0_71, %c0_72] : memref<1x1x256xf32, #tpu.memory_space<vmem>>, vector<1x1x256xf32>
    %89 = vector.shape_cast %88 : vector<1x1x256xf32> to vector<1x256xf32>
    %90 = vector.shape_cast %87 : vector<1x256xf32> to vector<1x1x256xf32>
    tpu.vector_store %arg13[%c0_70, %c0_71, %c0_72], %90 {strides = array<i32>} : memref<1x1x256xf32, #tpu.memory_space<vmem>>, vector<1x1x256xf32>,
    return
  }
  func.func @transform_0(%arg0: i32) -> (i32, i32, i32) {
    %c0_i32 = arith.constant 0 : i32
    %c0_i32_0 = arith.constant 0 : i32
    %c0_i32_1 = arith.constant 0 : i32
    return %arg0, %c0_i32, %c0_i32_0 : i32, i32, i32
  }
  func.func @transform_1(%arg0: i32) -> (i32, i32) {
    %c0_i32 = arith.constant 0 : i32
    %c0_i32_0 = arith.constant 0 : i32
    %c0_i32_1 = arith.constant 0 : i32
    return %c0_i32, %c0_i32_0 : i32, i32
  }
  func.func @transform_2(%arg0: i32) -> (i32, i32) {
    %c0_i32 = arith.constant 0 : i32
    %c0_i32_0 = arith.constant 0 : i32
    %c0_i32_1 = arith.constant 0 : i32
    return %c0_i32, %c0_i32_0 : i32, i32
  }
  func.func @transform_3(%arg0: i32) -> (i32, i32) {
    %c0_i32 = arith.constant 0 : i32
    %c0_i32_0 = arith.constant 0 : i32
    %c0_i32_1 = arith.constant 0 : i32
    return %c0_i32, %c0_i32_0 : i32, i32
  }
  func.func @transform_4(%arg0: i32) -> (i32, i32) {
    %c0_i32 = arith.constant 0 : i32
    %c0_i32_0 = arith.constant 0 : i32
    %c0_i32_1 = arith.constant 0 : i32
    return %c0_i32, %c0_i32_0 : i32, i32
  }
  func.func @transform_5(%arg0: i32) -> (i32, i32) {
    %c0_i32 = arith.constant 0 : i32
    %c0_i32_0 = arith.constant 0 : i32
    %c0_i32_1 = arith.constant 0 : i32
    return %c0_i32, %c0_i32_0 : i32, i32
  }
  func.func @transform_6(%arg0: i32) -> (i32, i32) {
    %c0_i32 = arith.constant 0 : i32
    %c0_i32_0 = arith.constant 0 : i32
    %c0_i32_1 = arith.constant 0 : i32
    return %c0_i32, %c0_i32_0 : i32, i32
  }
  func.func @transform_7(%arg0: i32) -> (i32, i32) {
    %c0_i32 = arith.constant 0 : i32
    %c0_i32_0 = arith.constant 0 : i32
    %c0_i32_1 = arith.constant 0 : i32
    return %c0_i32, %c0_i32_0 : i32, i32
  }
  func.func @transform_8(%arg0: i32) -> (i32, i32) {
    %c0_i32 = arith.constant 0 : i32
    %c0_i32_0 = arith.constant 0 : i32
    %c0_i32_1 = arith.constant 0 : i32
    return %c0_i32, %c0_i32_0 : i32, i32
  }
  func.func @transform_9(%arg0: i32) -> (i32, i32, i32) {
    %c0_i32 = arith.constant 0 : i32
    %c0_i32_0 = arith.constant 0 : i32
    %c0_i32_1 = arith.constant 0 : i32
    %c0_i32_2 = arith.constant 0 : i32
    return %c0_i32, %c0_i32_0, %c0_i32_1 : i32, i32, i32
  }
  func.func @transform_10(%arg0: i32) -> (i32, i32, i32) {
    %c0_i32 = arith.constant 0 : i32
    %c0_i32_0 = arith.constant 0 : i32
    %c0_i32_1 = arith.constant 0 : i32
    %c0_i32_2 = arith.constant 0 : i32
    return %c0_i32, %c0_i32_0, %c0_i32_1 : i32, i32, i32
  }
  func.func @transform_11(%arg0: i32) -> (i32, i32, i32) {
    %c0_i32 = arith.constant 0 : i32
    %c0_i32_0 = arith.constant 0 : i32
    %c0_i32_1 = arith.constant 0 : i32
    %c0_i32_2 = arith.constant 0 : i32
    return %c0_i32, %c0_i32_0, %c0_i32_1 : i32, i32, i32
  }
  func.func @transform_12(%arg0: i32) -> (i32, i32, i32) {
    %c0_i32 = arith.constant 0 : i32
    %c0_i32_0 = arith.constant 0 : i32
    %c0_i32_1 = arith.constant 0 : i32
    return %arg0, %c0_i32, %c0_i32_0 : i32, i32, i32
  }
}

</mosaic_0001>

<bundles_post_ra>
// kernel: squeeze.1
= control target key start
LH: loop header
LB: loop body
LE: loop exit
PB: predicated region body
PF: predicated region fallthrough
CT: control target
= control target key end

     0   :  { %s69_s0 = inlined_call_operand.vmem [shape: f32[6,256], index: 0, kind: input, shape index: {}]   ;;  %s70_s1 = inlined_call_operand.vmem [shape: f32[2,3,256], index: 1, kind: output, shape index: {}]  }
   0x1   :  { %v2_v0 = vld [vmem:[%s69_s0] sm:$0x3f]   ;;  %v37_v1 = vld [vmem:[%s69_s0 + $0x8] sm:$0x3f]  }
   0x2   :  { %3 = vst [vmem:[#allocation0] sm:$0x7] %v2_v0   ;;  %5 = vst [vmem:[#allocation0 + $0xd] sm:$0x38] %v2_v0  }
   0x3   :  { %9 = vst [vmem:[#allocation0 + $0x8] sm:$0x7] %v37_v1   ;;  %11 = vst [vmem:[#allocation0 + $0x15] sm:$0x38] %v37_v1  }
   0x9   :  { %v15_v2 = vld [vmem:[#allocation0] sm:$0xf]  ;;  %v24_v4 = vld [vmem:[#allocation0 + $0x10] sm:$0xf] }
   0xa   :  { %v19_v3 = vld [vmem:[#allocation0 + $0x8] sm:$0xf]  ;;  %17 = vst [vmem:[%s70_s1] sm:$0xf] %v15_v2  ;;  %39 = vst [vmem:[%s70_s1 + $0x8] sm:$0xf] %v24_v4 }
   0xb   :  { %38 = vst [vmem:[%s70_s1 + $0x4] sm:$0xf] %v19_v3  ;;  %v30_v5 = vld [vmem:[#allocation0 + $0x18] sm:$0xf] }
   0xc   :  { %40 = vst [vmem:[%s70_s1 + $0xc] sm:$0xf] %v30_v5 }

// kernel: variational_encoder_forward.1
= control target key start
LH: loop header
LB: loop body
LE: loop exit
PB: predicated region body
PF: predicated region fallthrough
CT: control target
= control target key end

     0   :  { %s11246_s21 = smov 0   ;;  %s16938_s0 = inlined_call_operand.vmem [shape: f32[6,576,12], index: 0, kind: input, shape index: {}]   ;;  %s16939_s1 = inlined_call_operand.vmem [shape: f32[48,32], index: 1, kind: input, shape index: {}]   ;;  %s16940_s2 = inlined_call_operand.vmem [shape: f32[512,64], index: 2, kind: input, shape index: {}]   ;;  %s16941_s3 = inlined_call_operand.vmem [shape: f32[1024,128], index: 3, kind: input, shape index: {}]   ;;  %s16942_s4 = inlined_call_operand.vmem [shape: f32[2048,256], index: 4, kind: input, shape index: {}]   ;;  %s16943_s5 = inlined_call_operand.vmem [shape: f32[1,32], index: 5, kind: input, shape index: {}]   ;;  %s16944_s6 = inlined_call_operand.vmem [shape: f32[1,64], index: 6, kind: input, shape index: {}]   ;;  %s16945_s7 = inlined_call_operand.vmem [shape: f32[1,128], index: 7, kind: input, shape index: {}]   ;;  %s16946_s8 = inlined_call_operand.vmem [shape: f32[1,256], index: 8, kind: input, shape index: {}]   ;;  %s16947_s9 = inlined_call_operand.vmem [shape: f32[4,121,551], index: 9, kind: input, shape index: {}]   ;;  %s16948_s10 = inlined_call_operand.vmem [shape: f32[4,25,109], index: 10, kind: input, shape index: {}]   ;;  %s16949_s11 = inlined_call_operand.vmem [shape: f32[4,4,19], index: 11, kind: input, shape index: {}]   ;;  %s16950_s12 = inlined_call_operand.vmem [shape: f32[6,1,256], index: 12, kind: output, shape index: {}]  }
   0x1 LB: > { %s7703_s22 = sadd.s32 4294967295, %s11168_s21   ;;  %p7707_p0 = scmp.ge.s32.totalorder %s11168_s21, 1  ;;  %s11168_s21 = sphi %s11246_s21, %s22_s21  }
   0x2   : > { %p362_p1 = scmp.lt.s32.totalorder %s11168_s21, 7 }
   0x4   : > { %p363_p2 = pnand %p7707_p0, %p362_p1 }
   0x6   : > { %366 = sbr.rel (%p363_p2) target bundleno = 3226 (0xc9a), region = 68 }
   0xd   : > { %p403_p3 = scmp.lt.s32.totalorder %s7703_s22, 5  ;;  %v1531_v0 = vld [vmem:[%s16939_s1] sm:$0xff]  ;;  %v1532_v1 = vld [vmem:[%s16939_s1 + $0x8] sm:$0xff]  ;;  %v16953_v2 = vmov 0.0|0.0   ;;  %v1533_v4 = vld [vmem:[%s16939_s1 + $0x10] sm:$0xff]  ;;  %vm11171_vm0 = vmmov 0  }
   0xe   : > { %10994 = vmatprep.subr.bf16.mxu1 %v16953_v2  ;;  %v9862_v3 = vpack.c.bf16 %v1532_v1, %v1531_v0  ;;  %v1534_v5 = vld [vmem:[%s16939_s1 + $0x18] sm:$0xff]  ;;  %9861 = vmatprep.subr.bf16.mxu0 %v16953_v2  ;;  %v1535_v7 = vld [vmem:[%s16939_s1 + $0x20] sm:$0xff]  ;;  %v1536_v8 = vld [vmem:[%s16939_s1 + $0x28] sm:$0xff]  ;;  %v16951_v9 = vmov 0.0   ;;  %vm553_vm1 = vcmask 1046528   ;;  %s11173_s23 = smov 24  }
   0xf   : > { %s17031_s22 = smov (!%p403_p3, %s7703_s22), 5  ;;  %v9865_v6 = vpack.c.bf16 %v1534_v5, %v1533_v4  ;;  %9355 = vmatprep.mubr.msk.f32.mxu1 %vm11171_vm0, %v16951_v9  ;;  %9346 = vmatprep.mubr.msk.f32.mxu0 %vm11171_vm0, %v16951_v9  ;;  %v9868_v18 = vpack.c.bf16 %v1536_v8, %v1535_v7  ;;  %s11174_s24 = smov 36   ;;  %vm1321_vm2 = vcmask 97280   ;;  %vm1391_vm3 = vcmask 195584  }
  0x10   : > { %10997 = vmatpush3.bf16.msra.mxu1 %v9862_v3  ;;  %9863 = vmatpush3.bf16.msra.mxu0 %v9862_v3  ;;  %s11016_s13 = smul.u32 576, %s17031_s22  ;;  %s11175_s25 = smov 12   ;;  %vm1461_vm4 = vcmask 293888   ;;  %vm1544_vm5 = vcmask 392192   ;;  %vm2311_vm6 = vcmask 318464   ;;  %vm4682_vm7 = vcmask 261120  }
  0x11   : > { %10995 = vmatprep.subr.bf16.mxu1 %v16953_v2  ;;  %9864 = vmatprep.subr.bf16.mxu0 %v16953_v2  ;;  %s11176_s30 = smov 32   ;;  %s11178_s16 = smov 96   ;;  %vm4699_vm8 = vcmask 523264   ;;  %vm4716_vm9 = vcmask 785408   ;;  %vm4832_vm10 = vcmask 1043456   ;;  %vm4789_vm11 = vcmask 1044480  }
  0x12   : > { %s11286_s20 = scalar_lea.vmem %s16938_s0, %s11016_s13  ;;  %s11177_s13 = smov 64   ;;  %vm5235_vm12 = vcmask 891904   ;;  %vm11179_vm13 = vmmov 1   ;;  %vm5704_vm15 = vcmask 1042432  }
  0x13   : > { %v11289_v10 = vld [vmem:[%s11286_s20 + $0x30] sm:$0xff]  ;;  %v11292_v11 = vld [vmem:[%s11286_s20 + $0x38] sm:$0xff]  ;;  %v11295_v12 = vld [vmem:[%s11286_s20 + $0x20] sm:$0xff]  ;;  %s7709_s26 = sshll.u32 %s17031_s22, 1 }
  0x14   : > { %10998 = vmatpush3.bf16.msra.mxu1 %v9865_v6  ;;  %9866 = vmatpush3.bf16.msra.mxu0 %v9865_v6  ;;  %v565_v13 = vrot.slane %v11289_v10, 1  ;;  %v567_v14 = vrot.slane %v11292_v11, 1  ;;  %v11302_v15 = vld [vmem:[%s11286_s20 + $0x28] sm:$0xff]  ;;  %v561_v16 = vrot.slane %v11295_v12, 1  ;;  %v11306_v17 = vld [vmem:[%s11286_s20 + $0x18] sm:$0xff]  ;;  %v11312_v21 = vld [vmem:[%s11286_s20 + $0x40] sm:$0xff]  ;;  %s411_s29 = scalar_lea.vmem %s16950_s12, %s7709_s26 }
  0x15   : > { %907 = vrot.lane.b32.xlu0 %v11289_v10, %s11173_s23  ;;  %10996 = vmatprep.subr.bf16.mxu1 %v16953_v2  ;;  %v563_v19 = vrot.slane %v11302_v15, 1  ;;  %v559_v20 = vrot.slane %v11306_v17, 1  ;;  %v569_v24 = vrot.slane %v11312_v21, 1  ;;  %v11329_v26 = vld [vmem:[%s11286_s20 + $0x48] sm:$0xff]  ;;  %v11345_v31 = vld [vmem:[%s11286_s20 + $0x50] sm:$0xff]  ;;  %v11352_v33 = vld [vmem:[%s11286_s20 + $0x58] sm:$0xff] }
  0x16   : > { %9867 = vmatprep.subr.bf16.mxu0 %v16953_v2  ;;  %v568_v22 = vsel %vm553_vm1, %v565_v13, %v567_v14  ;;  %v571_v29 = vrot.slane %v11329_v26, 1  ;;  %v573_v32 = vrot.slane %v11345_v31, 1  ;;  %v575_v35 = vrot.slane %v11352_v33, 1  ;;  %v11363_v37 = vld [vmem:[%s11286_s20 + $0x60] sm:$0xff]  ;;  %v11370_v39 = vld [vmem:[%s11286_s20 + $0x68] sm:$0xff]  ;;  %v11381_v43 = vld [vmem:[%s11286_s20 + $0x70] sm:$0xff] }
  0x17   : > { %1120 = vrot.lane.b32.xlu1 %v568_v22, %s11174_s24  ;;  %v11320_v23 = vsel %vm553_vm1, %v561_v16, %v563_v19  ;;  %v11326_v25 = vsel %vm553_vm1, %v559_v20, %v561_v16  ;;  %v570_v27 = vsel %vm553_vm1, %v567_v14, %v569_v24  ;;  %v11337_v28 = vsel %vm553_vm1, %v563_v19, %v565_v13  ;;  %v11388_v45 = vld [vmem:[%s11286_s20 + $0x78] sm:$0xff]  ;;  %v11399_v49 = vld [vmem:[%s11286_s20 + $0x80] sm:$0xff]  ;;  %v11406_v51 = vld [vmem:[%s11286_s20 + $0x88] sm:$0xff] }
  0x18   : > { %10999 = vmatpush3.bf16.msra.mxu1 %v9868_v18  ;;  %9869 = vmatpush3.bf16.msra.mxu0 %v9868_v18  ;;  %v572_v30 = vsel %vm553_vm1, %v569_v24, %v571_v29  ;;  %v574_v34 = vsel %vm553_vm1, %v571_v29, %v573_v32  ;;  %v576_v36 = vsel %vm553_vm1, %v573_v32, %v575_v35  ;;  %v577_v38 = vrot.slane %v11363_v37, 1  ;;  %v11417_v55 = vld [vmem:[%s11286_s20 + $0x90] sm:$0xff]  ;;  %v11424_v57 = vld [vmem:[%s11286_s20 + $0x98] sm:$0xff]  ;;  %v11435_v61 = vld [vmem:[%s11286_s20 + $0xa0] sm:$0xff] }
  0x19   : > { %909 = vrot.lane.b32.xlu0 %v11292_v11, %s11173_s23  ;;  %v579_v41 = vrot.slane %v11370_v39, 1  ;;  %v581_v44 = vrot.slane %v11381_v43, 1  ;;  %v583_v47 = vrot.slane %v11388_v45, 1  ;;  %v585_v50 = vrot.slane %v11399_v49, 1  ;;  %v11442_v63 = vld [vmem:[%s11286_s20 + $0xa8] sm:$0xff]  ;;  %v11453_v4 = vld [vmem:[%s11286_s20 + $0xb0] sm:$0xff]  ;;  %vm14707_vm14 = vmpackc.low %vm4789_vm11, %vm11179_vm13 }
  0x1a   : > { %v578_v40 = vsel %vm553_vm1, %v575_v35, %v577_v38  ;;  %v587_v53 = vrot.slane %v11406_v51, 1  ;;  %v589_v56 = vrot.slane %v11417_v55, 1  ;;  %v591_v59 = vrot.slane %v11424_v57, 1  ;;  %v11460_v6 = vld [vmem:[%s11286_s20 + $0xb8] sm:$0xff]  ;;  %v11471_v14 = vld [vmem:[%s11286_s20 + $0xc0] sm:$0xff]  ;;  %v11478_v18 = vld [vmem:[%s11286_s20 + $0xc8] sm:$0xff] }
  0x1b   : > { %699 = vrot.lane.b32.xlu1 %v11320_v23, %s11175_s25  ;;  %v580_v42 = vsel %vm553_vm1, %v577_v38, %v579_v41  ;;  %v582_v46 = vsel %vm553_vm1, %v579_v41, %v581_v44  ;;  %v584_v48 = vsel %vm553_vm1, %v581_v44, %v583_v47  ;;  %v586_v52 = vsel %vm553_vm1, %v583_v47, %v585_v50  ;;  %v11496_v32 = vld [vmem:[%s11286_s20 + $0xd8] sm:$0xff] }
  0x1c   : > { %v588_v54 = vsel %vm553_vm1, %v585_v50, %v587_v53  ;;  %v590_v58 = vsel %vm553_vm1, %v587_v53, %v589_v56  ;;  %v592_v60 = vsel %vm553_vm1, %v589_v56, %v591_v59  ;;  %v593_v62 = vrot.slane %v11435_v61, 1  ;;  %v11521_v56 = vld [vmem:[%s11286_s20 + $0xe8] sm:$0xff] }
  0x1d   : > { %697 = vrot.lane.b32.xlu0 %v11326_v25, %s11175_s25  ;;  %v595_v1 = vrot.slane %v11442_v63, 1  ;;  %v597_v5 = vrot.slane %v11453_v4, 1  ;;  %v599_v8 = vrot.slane %v11460_v6, 1  ;;  %v601_v16 = vrot.slane %v11471_v14, 1 }
  0x1e   : > { %v594_v0 = vsel %vm553_vm1, %v591_v59, %v593_v62 }
  0x1f   : > { %1122 = vrot.lane.b32.xlu1 %v570_v27, %s11174_s24  ;;  %v596_v3 = vsel %vm553_vm1, %v593_v62, %v595_v1  ;;  %v598_v7 = vsel %vm553_vm1, %v595_v1, %v597_v5  ;;  %v600_v13 = vsel %vm553_vm1, %v597_v5, %v599_v8  ;;  %v602_v19 = vsel %vm553_vm1, %v599_v8, %v601_v16 }
  0x20   : > { %v611_v1 = vrot.slane %v11521_v56, 1 }
  0x21   : > { %701 = vrot.lane.b32.xlu0 %v11337_v28, %s11175_s25 }
  0x23   : > { %911 = vrot.lane.b32.xlu1 %v11312_v21, %s11173_s23 }
  0x25   : > { %1124 = vrot.lane.b32.xlu0 %v572_v30, %s11174_s24 }
  0x27   : > { %703 = vrot.lane.b32.xlu1 %v568_v22, %s11175_s25  ;;  %v603_v22 = vrot.slane %v11478_v18, 1 }
  0x29   : > { %913 = vrot.lane.b32.xlu0 %v11329_v26, %s11173_s23  ;;  %v604_v24 = vsel %vm553_vm1, %v601_v16, %v603_v22  ;;  %v11543_v16 = vld [vmem:[%s11286_s20 + $0xf0] sm:$0xff] }
  0x2b   : > { %1126 = vrot.lane.b32.xlu1 %v574_v34, %s11174_s24 }
  0x2d   : > { %705 = vrot.lane.b32.xlu0 %v570_v27, %s11175_s25  ;;  %v11489_v27 = vld [vmem:[%s11286_s20 + $0xd0] sm:$0xff] }
  0x2e   : > { %v605_v29 = vrot.slane %v11489_v27, 1 }
  0x2f   : > { %915 = vrot.lane.b32.xlu1 %v11345_v31, %s11173_s23 }
  0x31   : > { %1128 = vrot.lane.b32.xlu0 %v576_v36, %s11174_s24 }
  0x33   : > { %707 = vrot.lane.b32.xlu1 %v572_v30, %s11175_s25 }
  0x35   : > { %917 = vrot.lane.b32.xlu0 %v11352_v33, %s11173_s23 }
  0x37   : > { %1130 = vrot.lane.b32.xlu1 %v578_v40, %s11174_s24 }
  0x39   : > { %709 = vrot.lane.b32.xlu0 %v574_v34, %s11175_s25  ;;  %v606_v34 = vsel %vm553_vm1, %v603_v22, %v605_v29 }
  0x3b   : > { %919 = vrot.lane.b32.xlu1 %v11363_v37, %s11173_s23 }
  0x3d   : > { %1132 = vrot.lane.b32.xlu0 %v580_v42, %s11174_s24 }
  0x3f   : > { %711 = vrot.lane.b32.xlu1 %v576_v36, %s11175_s25  ;;  %v607_v36 = vrot.slane %v11496_v32, 1 }
  0x41   : > { %921 = vrot.lane.b32.xlu0 %v11370_v39, %s11173_s23  ;;  %v608_v41 = vsel %vm553_vm1, %v605_v29, %v607_v36 }
  0x43   : > { %1134 = vrot.lane.b32.xlu1 %v582_v46, %s11174_s24 }
  0x45   : > { %713 = vrot.lane.b32.xlu0 %v578_v40, %s11175_s25 }
  0x47   : > { %923 = vrot.lane.b32.xlu1 %v11381_v43, %s11173_s23 }
  0x49   : > { %1136 = vrot.lane.b32.xlu0 %v584_v48, %s11174_s24 }
  0x4b   : > { %715 = vrot.lane.b32.xlu1 %v580_v42, %s11175_s25  ;;  %v11507_v42 = vld [vmem:[%s11286_s20 + $0xe0] sm:$0xff] }
  0x4d   : > { %925 = vrot.lane.b32.xlu0 %v11388_v45, %s11173_s23 }
  0x4f   : > { %1138 = vrot.lane.b32.xlu1 %v586_v52, %s11174_s24 }
  0x51   : > { %717 = vrot.lane.b32.xlu0 %v582_v46, %s11175_s25 }
  0x53   : > { %927 = vrot.lane.b32.xlu1 %v11399_v49, %s11173_s23 }
  0x55   : > { %1140 = vrot.lane.b32.xlu0 %v588_v54, %s11174_s24 }
  0x57   : > { %719 = vrot.lane.b32.xlu1 %v584_v48, %s11175_s25  ;;  %v609_v48 = vrot.slane %v11507_v42, 1 }
  0x59   : > { %929 = vrot.lane.b32.xlu0 %v11406_v51, %s11173_s23 }
  0x5b   : > { %1142 = vrot.lane.b32.xlu1 %v590_v58, %s11174_s24 }
  0x5d   : > { %721 = vrot.lane.b32.xlu0 %v586_v52, %s11175_s25 }
  0x5f   : > { %931 = vrot.lane.b32.xlu1 %v11417_v55, %s11173_s23 }
  0x61   : > { %1144 = vrot.lane.b32.xlu0 %v592_v60, %s11174_s24 }
  0x63   : > { %723 = vrot.lane.b32.xlu1 %v588_v54, %s11175_s25 }
  0x65   : > { %933 = vrot.lane.b32.xlu0 %v11424_v57, %s11173_s23 }
  0x67   : > { %1146 = vrot.lane.b32.xlu1 %v594_v0, %s11174_s24 }
  0x69   : > { %725 = vrot.lane.b32.xlu0 %v590_v58, %s11175_s25 }
  0x6b   : > { %935 = vrot.lane.b32.xlu1 %v11435_v61, %s11173_s23 }
  0x6d   : > { %1148 = vrot.lane.b32.xlu0 %v596_v3, %s11174_s24 }
  0x6f   : > { %727 = vrot.lane.b32.xlu1 %v592_v60, %s11175_s25  ;;  %v610_v60 = vsel %vm553_vm1, %v607_v36, %v609_v48 }
  0x71   : > { %937 = vrot.lane.b32.xlu0 %v11442_v63, %s11173_s23 }
  0x73   : > { %1150 = vrot.lane.b32.xlu1 %v598_v7, %s11174_s24 }
  0x75   : > { %729 = vrot.lane.b32.xlu0 %v594_v0, %s11175_s25 }
  0x77   : > { %939 = vrot.lane.b32.xlu1 %v11453_v4, %s11173_s23 }
  0x79   : > { %1152 = vrot.lane.b32.xlu0 %v600_v13, %s11174_s24 }
  0x7b   : > { %731 = vrot.lane.b32.xlu1 %v596_v3, %s11175_s25 }
  0x7d   : > { %941 = vrot.lane.b32.xlu0 %v11460_v6, %s11173_s23 }
  0x7f   : > { %1154 = vrot.lane.b32.xlu1 %v602_v19, %s11174_s24 }
  0x81   : > { %733 = vrot.lane.b32.xlu0 %v598_v7, %s11175_s25 }
  0x83   : > { %943 = vrot.lane.b32.xlu1 %v11471_v14, %s11173_s23 }
  0x85   : > { %1156 = vrot.lane.b32.xlu0 %v604_v24, %s11174_s24 }
  0x87   : > { %v908_v30 = vpop.permute.xlu0 %907  ;;  %735 = vrot.lane.b32.xlu1 %v600_v13, %s11175_s25  ;;  %v612_v13 = vsel %vm553_vm1, %v609_v48, %v611_v1 }
  0x89   : > { %945 = vrot.lane.b32.xlu0 %v11478_v18, %s11173_s23  ;;  %v1121_v35 = vpop.permute.xlu1 %1120 }
  0x8b   : > { %v910_v38 = vpop.permute.xlu0 %909  ;;  %1158 = vrot.lane.b32.xlu1 %v606_v34, %s11174_s24 }
  0x8d   : > { %737 = vrot.lane.b32.xlu0 %v602_v19, %s11175_s25  ;;  %v700_v40 = vpop.permute.xlu1 %699 }
  0x8e   : > { %v1326_v50 = vsel %vm1321_vm2, %v11295_v12, %v700_v40 }
  0x8f   : > { %v698_v44 = vpop.permute.xlu0 %697  ;;  %947 = vrot.lane.b32.xlu1 %v11489_v27, %s11173_s23  ;;  %v1396_v59 = vsel %vm1391_vm3, %v1326_v50, %v910_v38  ;;  %v11578_v50 = vld [vmem:[%s11286_s20 + $0x100] sm:$0xff] }
  0x90   : > { %v1325_v46 = vsel %vm1321_vm2, %v11306_v17, %v698_v44 }
  0x91   : > { %v1395_v47 = vsel %vm1391_vm3, %v1325_v46, %v908_v30  ;;  %1160 = vrot.lane.b32.xlu0 %v608_v41, %s11174_s24  ;;  %v1123_v52 = vpop.permute.xlu1 %1122 }
  0x92   : > { %v1465_v53 = vsel %vm1461_vm4, %v1395_v47, %v1121_v35  ;;  %v1466_v62 = vsel %vm1461_vm4, %v1396_v59, %v1123_v52 }
  0x93   : > { %9356 = vmatmul.mubr.msk.f32.vlgmr.msra.gmra.mrb[0].mxu1 %vm1544_vm5, %v1465_v53  ;;  %v702_v54 = vpop.permute.xlu0 %701  ;;  %739 = vrot.lane.b32.xlu1 %v604_v24, %s11175_s25  ;;  %v613_v24 = vrot.slane %v11543_v16, 1 }
  0x94   : > { %v1327_v58 = vsel %vm1321_vm2, %v11302_v15, %v702_v54  ;;  %9358 = vmatprep.mubr.msk.f32.mxu1 %vm11171_vm0, %v16951_v9  ;;  %v617_v54 = vrot.slane %v11578_v50, 1 }
  0x95   : > { %949 = vrot.lane.b32.xlu0 %v11496_v32, %s11173_s23  ;;  %v912_v0 = vpop.permute.xlu1 %911  ;;  %v614_v38 = vsel %vm553_vm1, %v611_v1, %v613_v24 }
  0x96   : > { %v1397_v3 = vsel %vm1391_vm3, %v1327_v58, %v912_v0  ;;  %v11589_v0 = vld [vmem:[%s11286_s20 + $0x108] sm:$0xff] }
  0x97   : > { %9359 = vmatmul.mubr.msk.f32.gmra.mrb[2].mxu1 %vm1544_vm5, %v1466_v62  ;;  %v1125_v5 = vpop.permute.xlu0 %1124  ;;  %1162 = vrot.lane.b32.xlu1 %v610_v60, %s11174_s24 }
  0x98   : > { %9361 = vmatprep.mubr.msk.f32.mxu1 %vm11171_vm0, %v16951_v9  ;;  %v1467_v7 = vsel %vm1461_vm4, %v1397_v3, %v1125_v5  ;;  %v619_v5 = vrot.slane %v11589_v0, 1 }
  0x99   : > { %741 = vrot.lane.b32.xlu0 %v606_v34, %s11175_s25  ;;  %v704_v8 = vpop.permute.xlu1 %703 }
  0x9a   : > { %v1328_v19 = vsel %vm1321_vm2, %v11289_v10, %v704_v8  ;;  %v11557_v10 = vld [vmem:[%s11286_s20 + $0xf8] sm:$0xff] }
  0x9b   : > { %9362 = vmatmul.mubr.msk.f32.gmra.mrb[4].mxu1 %vm1544_vm5, %v1467_v7  ;;  %v914_v22 = vpop.permute.xlu0 %913  ;;  %951 = vrot.lane.b32.xlu1 %v11507_v42, %s11173_s23  ;;  %v615_v44 = vrot.slane %v11557_v10, 1 }
  0x9c   : > { %9364 = vmatprep.mubr.msk.f32.mxu1 %vm11171_vm0, %v16951_v9  ;;  %v1398_v29 = vsel %vm1391_vm3, %v1328_v19, %v914_v22  ;;  %v620_v19 = vsel %vm553_vm1, %v617_v54, %v619_v5  ;;  %v11610_v22 = vld [vmem:[%s11286_s20 + $0x110] sm:$0xff] }
  0x9d   : > { %1164 = vrot.lane.b32.xlu0 %v612_v13, %s11174_s24  ;;  %v1127_v30 = vpop.permute.xlu1 %1126  ;;  %v616_v48 = vsel %vm553_vm1, %v613_v24, %v615_v44 }
  0x9e   : > { %v1468_v34 = vsel %vm1461_vm4, %v1398_v29, %v1127_v30  ;;  %v621_v30 = vrot.slane %v11610_v22, 1 }
  0x9f   : > { %v706_v35 = vpop.permute.xlu0 %705  ;;  %743 = vrot.lane.b32.xlu1 %v608_v41, %s11175_s25  ;;  %9365 = vmatmul.mubr.msk.f32.gmra.mrb[6].mxu1 %vm1544_vm5, %v1468_v34 }
  0xa0   : > { %v1329_v36 = vsel %vm1321_vm2, %v11292_v11, %v706_v35  ;;  %9367 = vmatprep.mubr.msk.f32.mxu1 %vm11171_vm0, %v16951_v9 }
  0xa1   : > { %953 = vrot.lane.b32.xlu0 %v11521_v56, %s11173_s23  ;;  %v916_v40 = vpop.permute.xlu1 %915 }
  0xa2   : > { %v1399_v46 = vsel %vm1391_vm3, %v1329_v36, %v916_v40  ;;  %v11621_v40 = vld [vmem:[%s11286_s20 + $0x118] sm:$0xff] }
  0xa3   : > { %v1129_v47 = vpop.permute.xlu0 %1128  ;;  %1166 = vrot.lane.b32.xlu1 %v614_v38, %s11174_s24 }
  0xa4   : > { %v1469_v11 = vsel %vm1461_vm4, %v1399_v46, %v1129_v47  ;;  %v623_v47 = vrot.slane %v11621_v40, 1 }
  0xa5   : > { %745 = vrot.lane.b32.xlu0 %v610_v60, %s11175_s25  ;;  %9368 = vmatmul.mubr.msk.f32.gmra.mrb[8].mxu1 %vm1544_vm5, %v1469_v11  ;;  %v708_v41 = vpop.permute.xlu1 %707 }
  0xa6   : > { %9370 = vmatprep.mubr.msk.f32.mxu1 %vm11171_vm0, %v16951_v9  ;;  %v1330_v52 = vsel %vm1321_vm2, %v11312_v21, %v708_v41  ;;  %v618_v21 = vsel %vm553_vm1, %v615_v44, %v617_v54 }
  0xa7   : > { %v918_v53 = vpop.permute.xlu0 %917  ;;  %955 = vrot.lane.b32.xlu1 %v11543_v16, %s11173_s23 }
  0xa8   : > { %v1400_v58 = vsel %vm1391_vm3, %v1330_v52, %v918_v53  ;;  %v624_v52 = vsel %vm553_vm1, %v621_v30, %v623_v47  ;;  %v11642_v53 = vld [vmem:[%s11286_s20 + $0x120] sm:$0xff] }
  0xa9   : > { %1168 = vrot.lane.b32.xlu0 %v616_v48, %s11174_s24  ;;  %v1131_v59 = vpop.permute.xlu1 %1130 }
  0xaa   : > { %v1470_v60 = vsel %vm1461_vm4, %v1400_v58, %v1131_v59  ;;  %v625_v59 = vrot.slane %v11642_v53, 1 }
  0xab   : > { %v710_v62 = vpop.permute.xlu0 %709  ;;  %747 = vrot.lane.b32.xlu1 %v612_v13, %s11175_s25  ;;  %9371 = vmatmul.mubr.msk.f32.gmra.mrb[10].mxu1 %vm1544_vm5, %v1470_v60 }
  0xac   : > { %v1331_v1 = vsel %vm1321_vm2, %v11329_v26, %v710_v62  ;;  %9373 = vmatprep.mubr.msk.f32.mxu1 %vm11171_vm0, %v16951_v9 }
  0xad   : > { %957 = vrot.lane.b32.xlu0 %v11557_v10, %s11173_s23  ;;  %v920_v3 = vpop.permute.xlu1 %919 }
  0xae   : > { %v1401_v7 = vsel %vm1391_vm3, %v1331_v1, %v920_v3  ;;  %v11653_v3 = vld [vmem:[%s11286_s20 + $0x128] sm:$0xff] }
  0xaf   : > { %v1133_v8 = vpop.permute.xlu0 %1132  ;;  %1170 = vrot.lane.b32.xlu1 %v618_v21, %s11174_s24 }
  0xb0   : > { %v1471_v26 = vsel %vm1461_vm4, %v1401_v7, %v1133_v8  ;;  %v627_v8 = vrot.slane %v11653_v3, 1 }
  0xb1   : > { %749 = vrot.lane.b32.xlu0 %v614_v38, %s11175_s25  ;;  %9374 = vmatmul.mubr.msk.f32.gmra.mrb[12].mxu1 %vm1544_vm5, %v1471_v26  ;;  %v712_v13 = vpop.permute.xlu1 %711 }
  0xb2   : > { %9376 = vmatprep.mubr.msk.f32.mxu1 %vm11171_vm0, %v16951_v9  ;;  %v1332_v24 = vsel %vm1321_vm2, %v11345_v31, %v712_v13  ;;  %v622_v31 = vsel %vm553_vm1, %v619_v5, %v621_v30 }
  0xb3   : > { %v922_v29 = vpop.permute.xlu0 %921  ;;  %959 = vrot.lane.b32.xlu1 %v11578_v50, %s11173_s23 }
  0xb4   : > { %v1402_v34 = vsel %vm1391_vm3, %v1332_v24, %v922_v29  ;;  %v628_v24 = vsel %vm553_vm1, %v625_v59, %v627_v8  ;;  %v11674_v29 = vld [vmem:[%s11286_s20 + $0x130] sm:$0xff] }
  0xb5   : > { %1172 = vrot.lane.b32.xlu0 %v620_v19, %s11174_s24  ;;  %v1135_v35 = vpop.permute.xlu1 %1134 }
  0xb6   : > { %v1472_v36 = vsel %vm1461_vm4, %v1402_v34, %v1135_v35  ;;  %v629_v35 = vrot.slane %v11674_v29, 1 }
  0xb7   : > { %v714_v38 = vpop.permute.xlu0 %713  ;;  %751 = vrot.lane.b32.xlu1 %v616_v48, %s11175_s25  ;;  %9377 = vmatmul.mubr.msk.f32.gmra.mrb[14].mxu1 %vm1544_vm5, %v1472_v36 }
  0xb8   : > { %v1333_v44 = vsel %vm1321_vm2, %v11352_v33, %v714_v38  ;;  %9379 = vmatprep.mubr.msk.f32.mxu1 %vm11171_vm0, %v16951_v9 }
  0xb9   : > { %961 = vrot.lane.b32.xlu0 %v11589_v0, %s11173_s23  ;;  %v924_v46 = vpop.permute.xlu1 %923 }
  0xba   : > { %v1403_v11 = vsel %vm1391_vm3, %v1333_v44, %v924_v46  ;;  %v11685_v46 = vld [vmem:[%s11286_s20 + $0x138] sm:$0xff] }
  0xbb   : > { %v1137_v41 = vpop.permute.xlu0 %1136  ;;  %1174 = vrot.lane.b32.xlu1 %v622_v31, %s11174_s24 }
  0xbc   : > { %v1473_v33 = vsel %vm1461_vm4, %v1403_v11, %v1137_v41  ;;  %v631_v41 = vrot.slane %v11685_v46, 1 }
  0xbd   : > { %753 = vrot.lane.b32.xlu0 %v618_v21, %s11175_s25  ;;  %9380 = vmatmul.mubr.msk.f32.gmra.mrb[16].mxu1 %vm1544_vm5, %v1473_v33  ;;  %v716_v48 = vpop.permute.xlu1 %715 }
  0xbe   : > { %9382 = vmatprep.mubr.msk.f32.mxu1 %vm11171_vm0, %v16951_v9  ;;  %v1334_v54 = vsel %vm1321_vm2, %v11363_v37, %v716_v48  ;;  %v626_v37 = vsel %vm553_vm1, %v623_v47, %v625_v59 }
  0xbf   : > { %v926_v58 = vpop.permute.xlu0 %925  ;;  %963 = vrot.lane.b32.xlu1 %v11610_v22, %s11173_s23 }
  0xc0   : > { %v1404_v60 = vsel %vm1391_vm3, %v1334_v54, %v926_v58  ;;  %v632_v54 = vsel %vm553_vm1, %v629_v35, %v631_v41  ;;  %v11706_v58 = vld [vmem:[%s11286_s20 + $0x140] sm:$0xff] }
  0xc1   : > { %1176 = vrot.lane.b32.xlu0 %v624_v52, %s11174_s24  ;;  %v1139_v62 = vpop.permute.xlu1 %1138 }
  0xc2   : > { %v1474_v1 = vsel %vm1461_vm4, %v1404_v60, %v1139_v62  ;;  %v633_v62 = vrot.slane %v11706_v58, 1 }
  0xc3   : > { %v718_v21 = vpop.permute.xlu0 %717  ;;  %755 = vrot.lane.b32.xlu1 %v620_v19, %s11175_s25  ;;  %9383 = vmatmul.mubr.msk.f32.gmra.mrb[18].mxu1 %vm1544_vm5, %v1474_v1 }
  0xc4   : > { %v1335_v5 = vsel %vm1321_vm2, %v11370_v39, %v718_v21  ;;  %9385 = vmatprep.mubr.msk.f32.mxu1 %vm11171_vm0, %v16951_v9 }
  0xc5   : > { %965 = vrot.lane.b32.xlu0 %v11621_v40, %s11173_s23  ;;  %v928_v7 = vpop.permute.xlu1 %927 }
  0xc6   : > { %v1405_v26 = vsel %vm1391_vm3, %v1335_v5, %v928_v7  ;;  %v11717_v7 = vld [vmem:[%s11286_s20 + $0x148] sm:$0xff] }
  0xc7   : > { %v1141_v13 = vpop.permute.xlu0 %1140  ;;  %1178 = vrot.lane.b32.xlu1 %v626_v37, %s11174_s24 }
  0xc8   : > { %v1475_v39 = vsel %vm1461_vm4, %v1405_v26, %v1141_v13  ;;  %v635_v13 = vrot.slane %v11717_v7, 1 }
  0xc9   : > { %757 = vrot.lane.b32.xlu0 %v622_v31, %s11175_s25  ;;  %9386 = vmatmul.mubr.msk.f32.gmra.mrb[20].mxu1 %vm1544_vm5, %v1475_v39  ;;  %v720_v19 = vpop.permute.xlu1 %719 }
  0xca   : > { %9388 = vmatprep.mubr.msk.f32.mxu1 %vm11171_vm0, %v16951_v9  ;;  %v1336_v30 = vsel %vm1321_vm2, %v11381_v43, %v720_v19  ;;  %v630_v43 = vsel %vm553_vm1, %v627_v8, %v629_v35 }
  0xcb   : > { %v930_v34 = vpop.permute.xlu0 %929  ;;  %967 = vrot.lane.b32.xlu1 %v11642_v53, %s11173_s23 }
  0xcc   : > { %v1406_v36 = vsel %vm1391_vm3, %v1336_v30, %v930_v34  ;;  %v636_v30 = vsel %vm553_vm1, %v633_v62, %v635_v13  ;;  %v11738_v34 = vld [vmem:[%s11286_s20 + $0x150] sm:$0xff] }
  0xcd   : > { %1180 = vrot.lane.b32.xlu0 %v628_v24, %s11174_s24  ;;  %v1143_v38 = vpop.permute.xlu1 %1142 }
  0xce   : > { %v1476_v44 = vsel %vm1461_vm4, %v1406_v36, %v1143_v38  ;;  %v637_v38 = vrot.slane %v11738_v34, 1 }
  0xcf   : > { %v722_v31 = vpop.permute.xlu0 %721  ;;  %759 = vrot.lane.b32.xlu1 %v624_v52, %s11175_s25  ;;  %9389 = vmatmul.mubr.msk.f32.gmra.mrb[22].mxu1 %vm1544_vm5, %v1476_v44 }
  0xd0   : > { %v1337_v47 = vsel %vm1321_vm2, %v11388_v45, %v722_v31  ;;  %9391 = vmatprep.mubr.msk.f32.mxu1 %vm11171_vm0, %v16951_v9 }
  0xd1   : > { %969 = vrot.lane.b32.xlu0 %v11653_v3, %s11173_s23  ;;  %v932_v11 = vpop.permute.xlu1 %931 }
  0xd2   : > { %v1407_v33 = vsel %vm1391_vm3, %v1337_v47, %v932_v11  ;;  %v11748_v47 = vld [vmem:[%s11286_s20] sm:$0xff] }
  0xd3   : > { %v1145_v48 = vpop.permute.xlu0 %1144  ;;  %1182 = vrot.lane.b32.xlu1 %v630_v43, %s11174_s24 }
  0xd4   : > { %v1477_v45 = vsel %vm1461_vm4, %v1407_v33, %v1145_v48  ;;  %v11761_v33 = vsel %vm553_vm1, %v635_v13, %v637_v38  ;;  %v554_v48 = vrot.slane %v11748_v47, 1  ;;  %v11790_v13 = vld [vmem:[%s11286_s20 + $0x10] sm:$0xff] }
  0xd5   : > { %761 = vrot.lane.b32.xlu0 %v626_v37, %s11175_s25  ;;  %9392 = vmatmul.mubr.msk.f32.gmra.mrb[24].mxu1 %vm1544_vm5, %v1477_v45  ;;  %v724_v52 = vpop.permute.xlu1 %723 }
  0xd6   : > { %9394 = vmatprep.mubr.msk.f32.mxu1 %vm11171_vm0, %v16951_v9  ;;  %v1338_v59 = vsel %vm1321_vm2, %v11399_v49, %v724_v52  ;;  %v634_v49 = vsel %vm553_vm1, %v631_v41, %v633_v62 }
  0xd7   : > { %v934_v60 = vpop.permute.xlu0 %933  ;;  %971 = vrot.lane.b32.xlu1 %v11674_v29, %s11173_s23 }
  0xd8   : > { %v1408_v1 = vsel %vm1391_vm3, %v1338_v59, %v934_v60 }
  0xd9   : > { %1184 = vrot.lane.b32.xlu0 %v632_v54, %s11174_s24  ;;  %v1147_v21 = vpop.permute.xlu1 %1146 }
  0xda   : > { %v1478_v5 = vsel %vm1461_vm4, %v1408_v1, %v1147_v21 }
  0xdb   : > { %v726_v37 = vpop.permute.xlu0 %725  ;;  %763 = vrot.lane.b32.xlu1 %v628_v24, %s11175_s25  ;;  %9395 = vmatmul.mubr.msk.f32.gmra.mrb[26].mxu1 %vm1544_vm5, %v1478_v5 }
  0xdc   : > { %v1339_v8 = vsel %vm1321_vm2, %v11406_v51, %v726_v37  ;;  %9397 = vmatprep.mubr.msk.f32.mxu1 %vm11171_vm0, %v16951_v9 }
  0xdd   : > { %973 = vrot.lane.b32.xlu0 %v11685_v46, %s11173_s23  ;;  %v936_v26 = vpop.permute.xlu1 %935 }
  0xde   : > { %v1409_v39 = vsel %vm1391_vm3, %v1339_v8, %v936_v26 }
  0xdf   : > { %v1149_v19 = vpop.permute.xlu0 %1148  ;;  %1186 = vrot.lane.b32.xlu1 %v634_v49, %s11174_s24 }
  0xe0   : > { %v1479_v51 = vsel %vm1461_vm4, %v1409_v39, %v1149_v19 }
  0xe1   : > { %765 = vrot.lane.b32.xlu0 %v630_v43, %s11175_s25  ;;  %9398 = vmatmul.mubr.msk.f32.gmra.mrb[28].mxu1 %vm1544_vm5, %v1479_v51  ;;  %v728_v24 = vpop.permute.xlu1 %727  ;;  %v11751_v43 = vld [vmem:[%s11286_s20 + $0x8] sm:$0xff]  ;;  %v557_v51 = vrot.slane %v11790_v13, 1 }
  0xe2   : > { %9400 = vmatprep.mubr.msk.f32.mxu1 %vm11171_vm0, %v16951_v9  ;;  %v1340_v35 = vsel %vm1321_vm2, %v11417_v55, %v728_v24  ;;  %v555_v45 = vrot.slane %v11751_v43, 1 }
  0xe3   : > { %v938_v36 = vpop.permute.xlu0 %937  ;;  %975 = vrot.lane.b32.xlu1 %v11706_v58, %s11173_s23 }
  0xe4   : > { %v1410_v44 = vsel %vm1391_vm3, %v1340_v35, %v938_v36  ;;  %v556_v62 = vsel %vm553_vm1, %v554_v48, %v555_v45 }
  0xe5   : > { %1188 = vrot.lane.b32.xlu0 %v636_v30, %s11174_s24  ;;  %v1151_v31 = vpop.permute.xlu1 %1150 }
  0xe6   : > { %v1480_v11 = vsel %vm1461_vm4, %v1410_v44, %v1151_v31  ;;  %v558_v44 = vsel %vm553_vm1, %v555_v45, %v557_v51 }
  0xe7   : > { %v730_v41 = vpop.permute.xlu0 %729  ;;  %767 = vrot.lane.b32.xlu1 %v632_v54, %s11175_s25  ;;  %9401 = vmatmul.mubr.msk.f32.gmra.mrb[30].mxu1 %vm1544_vm5, %v1480_v11  ;;  %v11769_v54 = vld [vmem:[%s11286_s20 + $0x158] sm:$0xff] }
  0xe8   : > { %v1341_v55 = vsel %vm1321_vm2, %v11424_v57, %v730_v41  ;;  %9403 = vmatprep.mubr.msk.f32.mxu1 %vm11171_vm0, %v16951_v9  ;;  %v639_v21 = vrot.slane %v11769_v54, 1 }
  0xe9   : > { %977 = vrot.lane.b32.xlu0 %v11717_v7, %s11173_s23  ;;  %v940_v52 = vpop.permute.xlu1 %939 }
  0xea   : > { %v1411_v57 = vsel %vm1391_vm3, %v1341_v55, %v940_v52  ;;  %v11787_v26 = vsel %vm553_vm1, %v637_v38, %v639_v21  ;;  %v11805_v38 = vld [vmem:[%s11286_s20 + $0x160] sm:$0xff] }
  0xeb   : > { %v1153_v59 = vpop.permute.xlu0 %1152  ;;  %1190 = vrot.lane.b32.xlu1 %v11761_v33, %s11174_s24  ;;  %v641_v11 = vrot.slane %v11805_v38, 1 }
  0xec   : > { %v1481_v60 = vsel %vm1461_vm4, %v1411_v57, %v1153_v59 }
  0xed   : > { %769 = vrot.lane.b32.xlu0 %v634_v49, %s11175_s25  ;;  %9404 = vmatmul.mubr.msk.f32.gmra.mrb[32].mxu1 %vm1544_vm5, %v1481_v60  ;;  %v732_v1 = vpop.permute.xlu1 %731  ;;  %v642_v48 = vsel %vm553_vm1, %v639_v21, %v641_v11 }
  0xee   : > { %9406 = vmatprep.mubr.msk.f32.mxu1 %vm11171_vm0, %v16951_v9  ;;  %v1342_v5 = vsel %vm1321_vm2, %v11435_v61, %v732_v1 }
  0xef   : > { %v942_v37 = vpop.permute.xlu0 %941  ;;  %691 = vrot.lane.b32.xlu1 %v556_v62, %s11175_s25  ;;  %v11834_v62 = vld [vmem:[%s11286_s20 + $0x168] sm:$0xff] }
  0xf0   : > { %v1412_v8 = vsel %vm1391_vm3, %v1342_v5, %v942_v37  ;;  %v643_v21 = vrot.slane %v11834_v62, 1 }
  0xf1   : > { %979 = vrot.lane.b32.xlu0 %v11738_v34, %s11173_s23  ;;  %v1155_v49 = vpop.permute.xlu1 %1154 }
  0xf2   : > { %v1482_v39 = vsel %vm1461_vm4, %v1412_v8, %v1155_v49  ;;  %v11857_v49 = vld [vmem:[%s11286_s20 + $0x170] sm:$0xff] }
  0xf3   : > { %v734_v19 = vpop.permute.xlu0 %733  ;;  %9407 = vmatmul.mubr.msk.f32.gmra.mrb[34].mxu1 %vm1544_vm5, %v1482_v39  ;;  %901 = vrot.lane.b32.xlu1 %v11306_v17, %s11173_s23 }
  0xf4   : > { %v1343_v61 = vsel %vm1321_vm2, %v11442_v63, %v734_v19  ;;  %9409 = vmatprep.mubr.msk.f32.mxu1 %vm11171_vm0, %v16951_v9  ;;  %v645_v19 = vrot.slane %v11857_v49, 1 }
  0xf5   : > { %1192 = vrot.lane.b32.xlu0 %v11787_v26, %s11174_s24  ;;  %v944_v24 = vpop.permute.xlu1 %943 }
  0xf6   : > { %v1413_v35 = vsel %vm1391_vm3, %v1343_v61, %v944_v24 }
  0xf7   : > { %v1157_v36 = vpop.permute.xlu0 %1156  ;;  %1114 = vrot.lane.b32.xlu1 %v11326_v25, %s11174_s24 }
  0xf8   : > { %v1483_v63 = vsel %vm1461_vm4, %v1413_v35, %v1157_v36  ;;  %v11879_v35 = vld [vmem:[%s11286_s20 + $0x178] sm:$0xff] }
  0xf9   : > { %9410 = vmatmul.mubr.msk.f32.gmra.mrb[36].mxu1 %vm1544_vm5, %v1483_v63  ;;  %771 = vrot.lane.b32.xlu0 %v636_v30, %s11175_s25  ;;  %v736_v31 = vpop.permute.xlu1 %735 }
  0xfa   : > { %9412 = vmatprep.mubr.msk.f32.mxu1 %vm11171_vm0, %v16951_v9  ;;  %v1344_v41 = vsel %vm1321_vm2, %v11453_v4, %v736_v31 }
  0xfb   : > { %v946_v55 = vpop.permute.xlu0 %945  ;;  %693 = vrot.lane.b32.xlu1 %v558_v44, %s11175_s25 }
  0xfc   : > { %v1414_v25 = vsel %vm1391_vm3, %v1344_v41, %v946_v55  ;;  %v11890_v41 = vld [vmem:[%s11286_s20 + $0x180] sm:$0xff] }
  0xfd   : > { %981 = vrot.lane.b32.xlu0 %v11769_v54, %s11173_s23  ;;  %v1159_v30 = vpop.permute.xlu1 %1158 }
  0xfe   : > { %v1484_v45 = vsel %vm1461_vm4, %v1414_v25, %v1159_v30  ;;  %v649_v30 = vrot.slane %v11890_v41, 1 }
  0xff   : > { %v738_v52 = vpop.permute.xlu0 %737  ;;  %9413 = vmatmul.mubr.msk.f32.gmra.mrb[38].mxu1 %vm1544_vm5, %v1484_v45  ;;  %903 = vrot.lane.b32.xlu1 %v11295_v12, %s11173_s23  ;;  %v560_v12 = vsel %vm553_vm1, %v557_v51, %v559_v20  ;;  %v644_v20 = vsel %vm553_vm1, %v641_v11, %v643_v21 }
 0x100   : > { %v1345_v57 = vsel %vm1321_vm2, %v11460_v6, %v738_v52  ;;  %9415 = vmatprep.mubr.msk.f32.mxu1 %vm11171_vm0, %v16951_v9 }
 0x101   : > { %1194 = vrot.lane.b32.xlu0 %v642_v48, %s11174_s24  ;;  %v948_v4 = vpop.permute.xlu1 %947 }
 0x102   : > { %v1415_v59 = vsel %vm1391_vm3, %v1345_v57, %v948_v4  ;;  %v11911_v4 = vld [vmem:[%s11286_s20 + $0x188] sm:$0xff] }
 0x103   : > { %v1161_v60 = vpop.permute.xlu0 %1160  ;;  %1116 = vrot.lane.b32.xlu1 %v11320_v23, %s11174_s24 }
 0x104   : > { %v1485_v1 = vsel %vm1461_vm4, %v1415_v59, %v1161_v60 }
 0x105   : > { %9416 = vmatmul.mubr.msk.f32.gmra.mrb[40].mxu1 %vm1544_vm5, %v1485_v1  ;;  %773 = vrot.lane.b32.xlu0 %v11761_v33, %s11175_s25  ;;  %v740_v6 = vpop.permute.xlu1 %739  ;;  %v651_v1 = vrot.slane %v11911_v4, 1 }
 0x106   : > { %9418 = vmatprep.mubr.msk.f32.mxu1 %vm11171_vm0, %v16951_v9  ;;  %v1346_v5 = vsel %vm1321_vm2, %v11471_v14, %v740_v6 }
 0x107   : > { %v950_v23 = vpop.permute.xlu0 %949  ;;  %695 = vrot.lane.b32.xlu1 %v560_v12, %s11175_s25 }
 0x108   : > { %v1416_v33 = vsel %vm1391_vm3, %v1346_v5, %v950_v23  ;;  %v11922_v23 = vld [vmem:[%s11286_s20 + $0x190] sm:$0xff] }
 0x109   : > { %983 = vrot.lane.b32.xlu0 %v11805_v38, %s11173_s23  ;;  %v1163_v17 = vpop.permute.xlu1 %1162 }
 0x10a   : > { %v1486_v37 = vsel %vm1461_vm4, %v1416_v33, %v1163_v17 }
 0x10b   : > { %v742_v8 = vpop.permute.xlu0 %741  ;;  %9419 = vmatmul.mubr.msk.f32.gmra.mrb[42].mxu1 %vm1544_vm5, %v1486_v37  ;;  %905 = vrot.lane.b32.xlu1 %v11302_v15, %s11173_s23 }
 0x10c   : > { %v1347_v39 = vsel %vm1321_vm2, %v11478_v18, %v742_v8  ;;  %9421 = vmatprep.mubr.msk.f32.mxu1 %vm11171_vm0, %v16951_v9  ;;  %v646_v18 = vsel %vm553_vm1, %v643_v21, %v645_v19 }
 0x10d   : > { %1196 = vrot.lane.b32.xlu0 %v644_v20, %s11174_s24  ;;  %v952_v14 = vpop.permute.xlu1 %951 }
 0x10e   : > { %v1417_v61 = vsel %vm1391_vm3, %v1347_v39, %v952_v14 }
 0x10f   : > { %v1165_v51 = vpop.permute.xlu0 %1164  ;;  %1118 = vrot.lane.b32.xlu1 %v11337_v28, %s11174_s24  ;;  %v647_v28 = vrot.slane %v11879_v35, 1 }
 0x110   : > { %v1487_v24 = vsel %vm1461_vm4, %v1417_v61, %v1165_v51 }
 0x111   : > { %9422 = vmatmul.mubr.msk.f32.gmra.mrb[44].mxu1 %vm1544_vm5, %v1487_v24  ;;  %775 = vrot.lane.b32.xlu0 %v11787_v26, %s11175_s25  ;;  %v744_v15 = vpop.permute.xlu1 %743  ;;  %v650_v57 = vsel %vm553_vm1, %v647_v28, %v649_v30 }
 0x112   : > { %9424 = vmatprep.mubr.msk.f32.mxu1 %vm11171_vm0, %v16951_v9  ;;  %v1348_v36 = vsel %vm1321_vm2, %v11489_v27, %v744_v15  ;;  %v648_v27 = vsel %vm553_vm1, %v645_v19, %v647_v28  ;;  %v11943_v19 = vld [vmem:[%s11286_s20 + $0x198] sm:$0xff]  ;;  %v11954_v28 = vld [vmem:[%s11286_s20 + $0x1a0] sm:$0xff] }
 0x113   : > { %v954_v63 = vpop.permute.xlu0 %953  ;;  %985 = vrot.lane.b32.xlu1 %v11834_v62, %s11173_s23  ;;  %v655_v24 = vrot.slane %v11943_v19, 1 }
 0x114   : > { %v1418_v26 = vsel %vm1391_vm3, %v1348_v36, %v954_v63 }
 0x115   : > { %1198 = vrot.lane.b32.xlu0 %v646_v18, %s11174_s24  ;;  %v1167_v44 = vpop.permute.xlu1 %1166 }
 0x116   : > { %v1488_v31 = vsel %vm1461_vm4, %v1418_v26, %v1167_v44 }
 0x117   : > { %v746_v11 = vpop.permute.xlu0 %745  ;;  %9425 = vmatmul.mubr.msk.f32.gmra.mrb[46].mxu1 %vm1544_vm5, %v1488_v31  ;;  %777 = vrot.lane.b32.xlu1 %v642_v48, %s11175_s25  ;;  %v657_v31 = vrot.slane %v11954_v28, 1 }
 0x118   : > { %v1349_v55 = vsel %vm1321_vm2, %v11496_v32, %v746_v11  ;;  %9427 = vmatprep.mubr.msk.f32.mxu1 %vm11171_vm0, %v16951_v9 }
 0x119   : > { %987 = vrot.lane.b32.xlu0 %v11857_v49, %s11173_s23  ;;  %v956_v25 = vpop.permute.xlu1 %955 }
 0x11a   : > { %v1419_v45 = vsel %vm1391_vm3, %v1349_v55, %v956_v25  ;;  %v658_v25 = vsel %vm553_vm1, %v655_v24, %v657_v31 }
 0x11b   : > { %v1169_v52 = vpop.permute.xlu0 %1168  ;;  %1200 = vrot.lane.b32.xlu1 %v648_v27, %s11174_s24 }
 0x11c   : > { %v1489_v32 = vsel %vm1461_vm4, %v1419_v45, %v1169_v52 }
 0x11d   : > { %9428 = vmatmul.mubr.msk.f32.gmra.mrb[48].mxu1 %vm1544_vm5, %v1489_v32  ;;  %779 = vrot.lane.b32.xlu0 %v644_v20, %s11175_s25  ;;  %v748_v48 = vpop.permute.xlu1 %747  ;;  %v653_v20 = vrot.slane %v11922_v23, 1 }
 0x11e   : > { %9430 = vmatprep.mubr.msk.f32.mxu1 %vm11171_vm0, %v16951_v9  ;;  %v1350_v59 = vsel %vm1321_vm2, %v11507_v42, %v748_v48  ;;  %v652_v42 = vsel %vm553_vm1, %v649_v30, %v651_v1  ;;  %v11975_v30 = vld [vmem:[%s11286_s20 + $0x1a8] sm:$0xff] }
 0x11f   : > { %v958_v60 = vpop.permute.xlu0 %957  ;;  %989 = vrot.lane.b32.xlu1 %v11879_v35, %s11173_s23  ;;  %v654_v14 = vsel %vm553_vm1, %v651_v1, %v653_v20  ;;  %v659_v32 = vrot.slane %v11975_v30, 1  ;;  %v11986_v1 = vld [vmem:[%s11286_s20 + $0x1b0] sm:$0xff] }
 0x120   : > { %v1420_v12 = vsel %vm1391_vm3, %v1350_v59, %v958_v60 }
 0x121   : > { %1202 = vrot.lane.b32.xlu0 %v650_v57, %s11174_s24  ;;  %v1171_v6 = vpop.permute.xlu1 %1170 }
 0x122   : > { %v1490_v21 = vsel %vm1461_vm4, %v1420_v12, %v1171_v6 }
 0x123   : > { %v750_v5 = vpop.permute.xlu0 %749  ;;  %9431 = vmatmul.mubr.msk.f32.gmra.mrb[50].mxu1 %vm1544_vm5, %v1490_v21  ;;  %781 = vrot.lane.b32.xlu1 %v646_v18, %s11175_s25  ;;  %v661_v21 = vrot.slane %v11986_v1, 1 }
 0x124   : > { %v1351_v33 = vsel %vm1321_vm2, %v11521_v56, %v750_v5  ;;  %9433 = vmatprep.mubr.msk.f32.mxu1 %vm11171_vm0, %v16951_v9 }
 0x125   : > { %991 = vrot.lane.b32.xlu0 %v11890_v41, %s11173_s23  ;;  %v960_v17 = vpop.permute.xlu1 %959 }
 0x126   : > { %v1421_v37 = vsel %vm1391_vm3, %v1351_v33, %v960_v17  ;;  %v662_v17 = vsel %vm553_vm1, %v659_v32, %v661_v21 }
 0x127   : > { %v1173_v8 = vpop.permute.xlu0 %1172  ;;  %1204 = vrot.lane.b32.xlu1 %v652_v42, %s11174_s24 }
 0x128   : > { %v1491_v56 = vsel %vm1461_vm4, %v1421_v37, %v1173_v8 }
 0x129   : > { %9434 = vmatmul.mubr.msk.f32.gmra.mrb[52].mxu1 %vm1544_vm5, %v1491_v56  ;;  %783 = vrot.lane.b32.xlu0 %v648_v27, %s11175_s25  ;;  %v752_v39 = vpop.permute.xlu1 %751 }
 0x12a   : > { %9436 = vmatprep.mubr.msk.f32.mxu1 %vm11171_vm0, %v16951_v9  ;;  %v1352_v61 = vsel %vm1321_vm2, %v11543_v16, %v752_v39  ;;  %v656_v16 = vsel %vm553_vm1, %v653_v20, %v655_v24  ;;  %v12007_v20 = vld [vmem:[%s11286_s20 + $0x1b8] sm:$0xff]  ;;  %v12018_v24 = vld [vmem:[%s11286_s20 + $0x1c0] sm:$0xff] }
 0x12b   : > { %v962_v51 = vpop.permute.xlu0 %961  ;;  %993 = vrot.lane.b32.xlu1 %v11911_v4, %s11173_s23  ;;  %v663_v56 = vrot.slane %v12007_v20, 1 }
 0x12c   : > { %v1422_v15 = vsel %vm1391_vm3, %v1352_v61, %v962_v51 }
 0x12d   : > { %1206 = vrot.lane.b32.xlu0 %v654_v14, %s11174_s24  ;;  %v1175_v18 = vpop.permute.xlu1 %1174 }
 0x12e   : > { %v1492_v36 = vsel %vm1461_vm4, %v1422_v15, %v1175_v18 }
 0x12f   : > { %v754_v63 = vpop.permute.xlu0 %753  ;;  %9437 = vmatmul.mubr.msk.f32.gmra.mrb[54].mxu1 %vm1544_vm5, %v1492_v36  ;;  %785 = vrot.lane.b32.xlu1 %v650_v57, %s11175_s25  ;;  %v665_v36 = vrot.slane %v12018_v24, 1 }
 0x130   : > { %v1353_v26 = vsel %vm1321_vm2, %v11557_v10, %v754_v63  ;;  %9439 = vmatprep.mubr.msk.f32.mxu1 %vm11171_vm0, %v16951_v9 }
 0x131   : > { %995 = vrot.lane.b32.xlu0 %v11922_v23, %s11173_s23  ;;  %v964_v44 = vpop.permute.xlu1 %963 }
 0x132   : > { %v1423_v11 = vsel %vm1391_vm3, %v1353_v26, %v964_v44  ;;  %v666_v44 = vsel %vm553_vm1, %v663_v56, %v665_v36 }
 0x133   : > { %v1177_v55 = vpop.permute.xlu0 %1176  ;;  %1208 = vrot.lane.b32.xlu1 %v656_v16, %s11174_s24 }
 0x134   : > { %v1493_v10 = vsel %vm1461_vm4, %v1423_v11, %v1177_v55 }
 0x135   : > { %9440 = vmatmul.mubr.msk.f32.gmra.mrb[56].mxu1 %vm1544_vm5, %v1493_v10  ;;  %787 = vrot.lane.b32.xlu0 %v652_v42, %s11175_s25  ;;  %v756_v27 = vpop.permute.xlu1 %755 }
 0x136   : > { %9442 = vmatprep.mubr.msk.f32.mxu1 %vm11171_vm0, %v16951_v9  ;;  %v1354_v45 = vsel %vm1321_vm2, %v11578_v50, %v756_v27  ;;  %v660_v50 = vsel %vm553_vm1, %v657_v31, %v659_v32  ;;  %v12039_v31 = vld [vmem:[%s11286_s20 + $0x1c8] sm:$0xff]  ;;  %v12050_v32 = vld [vmem:[%s11286_s20 + $0x1d0] sm:$0xff] }
 0x137   : > { %v966_v52 = vpop.permute.xlu0 %965  ;;  %997 = vrot.lane.b32.xlu1 %v11943_v19, %s11173_s23  ;;  %v667_v10 = vrot.slane %v12039_v31, 1 }
 0x138   : > { %v1424_v48 = vsel %vm1391_vm3, %v1354_v45, %v966_v52 }
 0x139   : > { %1210 = vrot.lane.b32.xlu0 %v658_v25, %s11174_s24  ;;  %v1179_v57 = vpop.permute.xlu1 %1178 }
 0x13a   : > { %v1494_v59 = vsel %vm1461_vm4, %v1424_v48, %v1179_v57 }
 0x13b   : > { %v758_v60 = vpop.permute.xlu0 %757  ;;  %9443 = vmatmul.mubr.msk.f32.gmra.mrb[58].mxu1 %vm1544_vm5, %v1494_v59  ;;  %789 = vrot.lane.b32.xlu1 %v654_v14, %s11175_s25  ;;  %v669_v59 = vrot.slane %v12050_v32, 1 }
 0x13c   : > { %v1355_v12 = vsel %vm1321_vm2, %v11589_v0, %v758_v60  ;;  %9445 = vmatprep.mubr.msk.f32.mxu1 %vm11171_vm0, %v16951_v9 }
 0x13d   : > { %999 = vrot.lane.b32.xlu0 %v11954_v28, %s11173_s23  ;;  %v968_v6 = vpop.permute.xlu1 %967 }
 0x13e   : > { %v1425_v5 = vsel %vm1391_vm3, %v1355_v12, %v968_v6  ;;  %v670_v6 = vsel %vm553_vm1, %v667_v10, %v669_v59 }
 0x13f   : > { %v1181_v33 = vpop.permute.xlu0 %1180  ;;  %1212 = vrot.lane.b32.xlu1 %v660_v50, %s11174_s24 }
 0x140   : > { %v1495_v0 = vsel %vm1461_vm4, %v1425_v5, %v1181_v33 }
 0x141   : > { %9446 = vmatmul.mubr.msk.f32.gmra.mrb[60].mxu1 %vm1544_vm5, %v1495_v0  ;;  %791 = vrot.lane.b32.xlu0 %v656_v16, %s11175_s25  ;;  %v760_v42 = vpop.permute.xlu1 %759 }
 0x142   : > { %9448 = vmatprep.mubr.msk.f32.mxu1 %vm11171_vm0, %v16951_v9  ;;  %v1356_v37 = vsel %vm1321_vm2, %v11610_v22, %v760_v42  ;;  %v664_v22 = vsel %vm553_vm1, %v661_v21, %v663_v56  ;;  %v12071_v21 = vld [vmem:[%s11286_s20 + $0x1d8] sm:$0xff]  ;;  %v12082_v56 = vld [vmem:[%s11286_s20 + $0x1e0] sm:$0xff] }
 0x143   : > { %v970_v8 = vpop.permute.xlu0 %969  ;;  %1001 = vrot.lane.b32.xlu1 %v11975_v30, %s11173_s23  ;;  %v671_v0 = vrot.slane %v12071_v21, 1 }
 0x144   : > { %v1426_v39 = vsel %vm1391_vm3, %v1356_v37, %v970_v8 }
 0x145   : > { %1214 = vrot.lane.b32.xlu0 %v662_v17, %s11174_s24  ;;  %v1183_v14 = vpop.permute.xlu1 %1182 }
 0x146   : > { %v1496_v61 = vsel %vm1461_vm4, %v1426_v39, %v1183_v14  ;;  %v673_v14 = vrot.slane %v12082_v56, 1 }
 0x147   : > { %v762_v51 = vpop.permute.xlu0 %761  ;;  %9449 = vmatmul.mubr.msk.f32.gmra.mrb[62].mxu1 %vm1544_vm5, %v1496_v61  ;;  %793 = vrot.lane.b32.xlu1 %v658_v25, %s11175_s25 }
 0x148   : > { %v1357_v15 = vsel %vm1321_vm2, %v11621_v40, %v762_v51  ;;  %9451 = vmatprep.mubr.msk.f32.mxu1 %vm11171_vm0, %v16951_v9 }
 0x149   : > { %1003 = vrot.lane.b32.xlu0 %v11986_v1, %s11173_s23  ;;  %v972_v18 = vpop.permute.xlu1 %971 }
 0x14a   : > { %v1427_v63 = vsel %vm1391_vm3, %v1357_v15, %v972_v18  ;;  %v674_v18 = vsel %vm553_vm1, %v671_v0, %v673_v14 }
 0x14b   : > { %v1185_v26 = vpop.permute.xlu0 %1184  ;;  %1216 = vrot.lane.b32.xlu1 %v664_v22, %s11174_s24 }
 0x14c   : > { %v1497_v40 = vsel %vm1461_vm4, %v1427_v63, %v1185_v26 }
 0x14d   : > { %9452 = vmatmul.mubr.msk.f32.gmra.mrb[64].mxu1 %vm1544_vm5, %v1497_v40  ;;  %795 = vrot.lane.b32.xlu0 %v660_v50, %s11175_s25  ;;  %v764_v16 = vpop.permute.xlu1 %763 }
 0x14e   : > { %9454 = vmatprep.mubr.msk.f32.mxu1 %vm11171_vm0, %v16951_v9  ;;  %v1358_v11 = vsel %vm1321_vm2, %v11642_v53, %v764_v16  ;;  %v668_v53 = vsel %vm553_vm1, %v665_v36, %v667_v10  ;;  %v12100_v36 = vld [vmem:[%s11286_s20 + $0x1e8] sm:$0xff] }
 0x14f   : > { %v974_v55 = vpop.permute.xlu0 %973  ;;  %1005 = vrot.lane.b32.xlu1 %v12007_v20, %s11173_s23 }
 0x150   : > { %v1428_v27 = vsel %vm1391_vm3, %v1358_v11, %v974_v55 }
 0x151   : > { %1218 = vrot.lane.b32.xlu0 %v666_v44, %s11174_s24  ;;  %v1187_v25 = vpop.permute.xlu1 %1186 }
 0x152   : > { %v1498_v45 = vsel %vm1461_vm4, %v1428_v27, %v1187_v25 }
 0x153   : > { %v766_v52 = vpop.permute.xlu0 %765  ;;  %9455 = vmatmul.mubr.msk.f32.gmra.mrb[66].mxu1 %vm1544_vm5, %v1498_v45  ;;  %797 = vrot.lane.b32.xlu1 %v662_v17, %s11175_s25 }
 0x154   : > { %v1359_v48 = vsel %vm1321_vm2, %v11653_v3, %v766_v52  ;;  %9457 = vmatprep.mubr.msk.f32.mxu1 %vm11171_vm0, %v16951_v9  ;;  %v12116_v52 = vld [vmem:[%s11286_s20 + $0x1f0] sm:$0xff] }
 0x155   : > { %1007 = vrot.lane.b32.xlu0 %v12018_v24, %s11173_s23  ;;  %v976_v57 = vpop.permute.xlu1 %975 }
 0x156   : > { %v1429_v60 = vsel %vm1391_vm3, %v1359_v48, %v976_v57 }
 0x157   : > { %v1189_v12 = vpop.permute.xlu0 %1188  ;;  %1220 = vrot.lane.b32.xlu1 %v668_v53, %s11174_s24 }
 0x158   : > { %v1499_v3 = vsel %vm1461_vm4, %v1429_v60, %v1189_v12  ;;  %v677_v60 = vrot.slane %v12116_v52, 1 }
 0x159   : > { %9458 = vmatmul.mubr.msk.f32.gmra.mrb[68].mxu1 %vm1544_vm5, %v1499_v3  ;;  %799 = vrot.lane.b32.xlu0 %v664_v22, %s11175_s25  ;;  %v768_v50 = vpop.permute.xlu1 %767 }
 0x15a   : > { %9460 = vmatprep.mubr.msk.f32.mxu1 %vm11171_vm0, %v16951_v9  ;;  %v1360_v5 = vsel %vm1321_vm2, %v11674_v29, %v768_v50  ;;  %v672_v29 = vsel %vm553_vm1, %v669_v59, %v671_v0 }
 0x15b   : > { %v978_v33 = vpop.permute.xlu0 %977  ;;  %1009 = vrot.lane.b32.xlu1 %v12039_v31, %s11173_s23 }
 0x15c   : > { %v1430_v42 = vsel %vm1391_vm3, %v1360_v5, %v978_v33 }
 0x15d   : > { %1222 = vrot.lane.b32.xlu0 %v670_v6, %s11174_s24  ;;  %v1191_v17 = vpop.permute.xlu1 %1190 }
 0x15e   : > { %v1500_v37 = vsel %vm1461_vm4, %v1430_v42, %v1191_v17  ;;  %v12139_v17 = vld [vmem:[%s11286_s20 + $0x1f8] sm:$0xff] }
 0x15f   : > { %v770_v8 = vpop.permute.xlu0 %769  ;;  %9461 = vmatmul.mubr.msk.f32.gmra.mrb[70].mxu1 %vm1544_vm5, %v1500_v37  ;;  %801 = vrot.lane.b32.xlu1 %v666_v44, %s11175_s25  ;;  %v675_v44 = vrot.slane %v12100_v36, 1 }
 0x160   : > { %9463 = vmatprep.mubr.msk.f32.mxu1 %vm11171_vm0, %v16951_v9  ;;  %v1361_v51 = vsel %vm1321_vm2, %v11685_v46, %v770_v8 }
 0x161   : > { %1011 = vrot.lane.b32.xlu0 %v12050_v32, %s11173_s23  ;;  %v692_v39 = vpop.permute.xlu1 %691  ;;  %v678_v42 = vsel %vm553_vm1, %v675_v44, %v677_v60 }
 0x162   : > { %v1322_v46 = vsel %vm1321_vm2, %v11748_v47, %v692_v39  ;;  %v12121_v47 = vld [vmem:[%s16943_s5] ss:$0 sm:$0xff] }
 0x163   : > { %v980_v61 = vpop.permute.xlu0 %979  ;;  %1224 = vrot.lane.b32.xlu1 %v672_v29, %s11174_s24 }
 0x164   : > { %v1431_v63 = vsel %vm1391_vm3, %v1361_v51, %v980_v61  ;;  %v679_v51 = vrot.slane %v12139_v17, 1 }
 0x165   : > { %803 = vrot.lane.b32.xlu0 %v668_v53, %s11175_s25  ;;  %v902_v22 = vpop.permute.xlu1 %901  ;;  %v676_v53 = vsel %vm553_vm1, %v673_v14, %v675_v44 }
 0x166   : > { %v12096_v15 = vpop.f32.mrb[0].mxu1  ;;  %v1392_v11 = vsel %vm1391_vm3, %v1322_v46, %v902_v22  ;;  %v12158_v46 = vld [vmem:[%s11286_s20 + $0x200] sm:$0xff] }
 0x167   : > { %v9357_v26 = vpop.f32.mrb[1].mxu1  ;;  %v1193_v40 = vpop.permute.xlu0 %1192  ;;  %1013 = vrot.lane.b32.xlu1 %v12071_v21, %s11173_s23 }
 0x168   : > { %v1501_v16 = vsel %vm1461_vm4, %v1431_v63, %v1193_v40 }
 0x169   : > { %9464 = vmatmul.mubr.msk.f32.gmra.mrb[72].mxu1 %vm1544_vm5, %v1501_v16  ;;  %1226 = vrot.lane.b32.xlu0 %v674_v18, %s11174_s24  ;;  %v1115_v10 = vpop.permute.xlu1 %1114 }
 0x16a   : > { %v1838_v55 = vpop.f32.mrb[2].mxu1  ;;  %9466 = vmatprep.mubr.msk.f32.mxu1 %vm11171_vm0, %v16951_v9  ;;  %v1462_v27 = vsel %vm1461_vm4, %v1392_v11, %v1115_v10 }
 0x16b   : > { %v9360_v25 = vpop.f32.mrb[3].mxu1  ;;  %v772_v45 = vpop.permute.xlu0 %771  ;;  %805 = vrot.lane.b32.xlu1 %v670_v6, %s11175_s25  ;;  %9347 = vmatmul.mubr.msk.f32.vlgmr.msra.gmra.mrb[0].mxu0 %vm1544_vm5, %v1462_v27  ;;  %v1839_v48 = vadd.f32 %v12121_v47, %v1838_v55  ;;  %v680_v55 = vsel %vm553_vm1, %v677_v60, %v679_v51  ;;  %v681_v27 = vrot.slane %v12158_v46, 1 }
 0x16c   : > { %9349 = vmatprep.mubr.msk.f32.mxu0 %vm11171_vm0, %v16951_v9  ;;  %v1362_v6 = vsel %vm1321_vm2, %v11706_v58, %v772_v45 }
 0x16d   : > { %1015 = vrot.lane.b32.xlu0 %v12082_v56, %s11173_s23  ;;  %v694_v59 = vpop.permute.xlu1 %693  ;;  %v2166_v5 = vmax.f32 %v1839_v48, 0.0  ;;  %v682_v60 = vsel %vm553_vm1, %v679_v51, %v681_v27 }
 0x16e   : > { %v1843_v57 = vpop.f32.mrb[4].mxu1 }
 0x16f   : > { %v1844_v12 = vadd.f32 %v12121_v47, %v1843_v57  ;;  %v9363_v3 = vpop.f32.mrb[5].mxu1  ;;  %v982_v50 = vpop.permute.xlu0 %981  ;;  %1228 = vrot.lane.b32.xlu1 %v676_v53, %s11174_s24 }
 0x170   : > { %v1432_v8 = vsel %vm1391_vm3, %v1362_v6, %v982_v50 }
 0x171   : > { %v2167_v33 = vmax.f32 %v1844_v12, 0.0  ;;  %807 = vrot.lane.b32.xlu0 %v672_v29, %s11175_s25  ;;  %v904_v0 = vpop.permute.xlu1 %903  ;;  %v1323_v29 = vsel %vm1321_vm2, %v11751_v43, %v694_v59  ;;  %v12177_v12 = vld [vmem:[%s11286_s20 + $0x208] sm:$0xff] }
 0x172   : > { %v1848_v39 = vpop.f32.mrb[6].mxu1  ;;  %v1393_v22 = vsel %vm1391_vm3, %v1323_v29, %v904_v0 }
 0x173   : > { %v12141_v37 = vpack.c.bf16 %v2167_v33, %v2166_v5  ;;  %v1195_v14 = vpop.permute.xlu0 %1194  ;;  %v9366_v61 = vpop.f32.mrb[7].mxu1  ;;  %1017 = vrot.lane.b32.xlu1 %v12100_v36, %s11173_s23  ;;  %v1849_v26 = vadd.f32 %v12121_v47, %v1848_v39 }
 0x174   : > { %v1502_v58 = vsel %vm1461_vm4, %v1432_v8, %v1195_v14 }
 0x175   : > { %1230 = vrot.lane.b32.xlu0 %v678_v42, %s11174_s24  ;;  %9467 = vmatmul.mubr.msk.f32.gmra.mrb[74].mxu1 %vm1544_vm5, %v1502_v58  ;;  %v1117_v63 = vpop.permute.xlu1 %1116  ;;  %v2168_v25 = vmax.f32 %v1849_v26, 0.0  ;;  %v12194_v58 = vld [vmem:[%s11286_s20 + $0x210] sm:$0xff] }
 0x176   : > { %9469 = vmatprep.mubr.msk.f32.mxu1 %vm11171_vm0, %v16951_v9  ;;  %v1463_v40 = vsel %vm1461_vm4, %v1393_v22, %v1117_v63 }
 0x177   : > { %v774_v16 = vpop.permute.xlu0 %773  ;;  %809 = vrot.lane.b32.xlu1 %v674_v18, %s11175_s25  ;;  %9350 = vmatmul.mubr.msk.f32.gmra.mrb[2].mxu0 %vm1544_vm5, %v1463_v40  ;;  %v685_v40 = vrot.slane %v12194_v58, 1 }
 0x178   : > { %v1853_v43 = vpop.f32.mrb[8].mxu1  ;;  %9352 = vmatprep.mubr.msk.f32.mxu0 %vm11171_vm0, %v16951_v9  ;;  %v1363_v48 = vsel %vm1321_vm2, %v11717_v7, %v774_v16 }
 0x179   : > { %v1854_v44 = vadd.f32 %v12121_v47, %v1853_v43  ;;  %v9369_v11 = vpop.f32.mrb[9].mxu1  ;;  %1019 = vrot.lane.b32.xlu0 %v12116_v52, %s11173_s23  ;;  %v696_v10 = vpop.permute.xlu1 %695 }
 0x17a   : > { %v1324_v7 = vsel %vm1321_vm2, %v11790_v13, %v696_v10 }
 0x17b   : > { %v2169_v45 = vmax.f32 %v1854_v44, 0.0  ;;  %v984_v18 = vpop.permute.xlu0 %983  ;;  %1232 = vrot.lane.b32.xlu1 %v680_v55, %s11174_s24 }
 0x17c   : > { %v1433_v3 = vsel %vm1391_vm3, %v1363_v48, %v984_v18 }
 0x17d   : > { %v12172_v57 = vpack.c.bf16 %v2169_v45, %v2168_v25  ;;  %811 = vrot.lane.b32.xlu0 %v676_v53, %s11175_s25  ;;  %v906_v59 = vpop.permute.xlu1 %905  ;;  %v683_v53 = vrot.slane %v12177_v12, 1  ;;  %v12214_v25 = vld [vmem:[%s11286_s20 + $0x218] sm:$0xff] }
 0x17e   : > { %v1858_v50 = vpop.f32.mrb[10].mxu1  ;;  %v1394_v0 = vsel %vm1391_vm3, %v1324_v7, %v906_v59  ;;  %v12228_v7 = vld [vmem:[%s11286_s20 + $0x220] sm:$0xff] }
 0x17f   : > { %v1197_v6 = vpop.permute.xlu0 %1196  ;;  %v9372_v5 = vpop.f32.mrb[11].mxu1  ;;  %1021 = vrot.lane.b32.xlu1 %v12139_v17, %s11173_s23  ;;  %v1859_v39 = vadd.f32 %v12121_v47, %v1858_v50  ;;  %v684_v63 = vsel %vm553_vm1, %v681_v27, %v683_v53  ;;  %v686_v27 = vsel %vm553_vm1, %v683_v53, %v685_v40 }
 0x180   : > { %v1503_v33 = vsel %vm1461_vm4, %v1433_v3, %v1197_v6 }
 0x181   : > { %1234 = vrot.lane.b32.xlu0 %v682_v60, %s11174_s24  ;;  %9470 = vmatmul.mubr.msk.f32.gmra.mrb[76].mxu1 %vm1544_vm5, %v1503_v33  ;;  %v1119_v8 = vpop.permute.xlu1 %1118  ;;  %v2170_v16 = vmax.f32 %v1859_v39, 0.0 }
 0x182   : > { %9472 = vmatprep.mubr.msk.f32.mxu1 %vm11171_vm0, %v16951_v9  ;;  %v1464_v14 = vsel %vm1461_vm4, %v1394_v0, %v1119_v8 }
 0x183   : > { %v776_v61 = vpop.permute.xlu0 %775  ;;  %813 = vrot.lane.b32.xlu1 %v678_v42, %s11175_s25  ;;  %9353 = vmatmul.mubr.msk.f32.gmra.mrb[4].mxu0 %vm1544_vm5, %v1464_v14 }
 0x184   : > { %v1863_v13 = vpop.f32.mrb[12].mxu1  ;;  %v1364_v29 = vsel %vm1321_vm2, %v11738_v34, %v776_v61  ;;  %v12241_v61 = vrot.slane %v12228_v7, 1 }
 0x185   : > { %v1864_v51 = vadd.f32 %v12121_v47, %v1863_v13  ;;  %v9375_v22 = vpop.f32.mrb[13].mxu1  ;;  %1023 = vrot.lane.b32.xlu0 %v12158_v46, %s11173_s23  ;;  %v986_v26 = vpop.permute.xlu1 %985 }
 0x186   : > { %v1434_v34 = vsel %vm1391_vm3, %v1364_v29, %v986_v26 }
 0x187   : > { %v2171_v43 = vmax.f32 %v1864_v51, 0.0  ;;  %v1199_v44 = vpop.permute.xlu0 %1198  ;;  %1236 = vrot.lane.b32.xlu1 %v684_v63, %s11174_s24 }
 0x188   : > { %v1504_v42 = vsel %vm1461_vm4, %v1434_v34, %v1199_v44 }
 0x189   : > { %v12208_v11 = vpack.c.bf16 %v2171_v43, %v2170_v16  ;;  %815 = vrot.lane.b32.xlu0 %v680_v55, %s11175_s25  ;;  %9473 = vmatmul.mubr.msk.f32.gmra.mrb[78].mxu1 %vm1544_vm5, %v1504_v42  ;;  %v778_v10 = vpop.permute.xlu1 %777  ;;  %v687_v55 = vrot.slane %v12214_v25, 1  ;;  %v481_v16 = vld [vmem:[%s11286_s20 + $0x228] sm:$0xff] }
 0x18a   : > { %9475 = vmatprep.mubr.msk.f32.mxu1 %vm11171_vm0, %v16951_v9  ;;  %v1365_v45 = vsel %vm1321_vm2, %v11769_v54, %v778_v10  ;;  %v1868_v18 = vpop.f32.mrb[14].mxu1 }
 0x18b   : > { %v988_v48 = vpop.permute.xlu0 %987  ;;  %v9378_v59 = vpop.f32.mrb[15].mxu1  ;;  %1025 = vrot.lane.b32.xlu1 %v12177_v12, %s11173_s23  ;;  %v1869_v6 = vadd.f32 %v12121_v47, %v1868_v18  ;;  %v688_v39 = vsel %vm553_vm1, %v685_v40, %v687_v55  ;;  %v690_v40 = vsel %vm553_vm1, %v687_v55, %v12241_v61  ;;  %v482_v55 = vld [vmem:[%s11286_s20 + $0x230] sm:$0xff] }
 0x18c   : > { %v1435_v3 = vsel %vm1391_vm3, %v1365_v45, %v988_v48 }
 0x18d   : > { %1238 = vrot.lane.b32.xlu0 %v686_v27, %s11174_s24  ;;  %v1201_v50 = vpop.permute.xlu1 %1200 }
 0x18e   : > { %v1505_v5 = vsel %vm1461_vm4, %v1435_v3, %v1201_v50 }
 0x18f   : > { %v780_v33 = vpop.permute.xlu0 %779  ;;  %817 = vrot.lane.b32.xlu1 %v682_v60, %s11175_s25  ;;  %9476 = vmatmul.mubr.msk.f32.gmra.mrb[80].mxu1 %vm1544_vm5, %v1505_v5 }
 0x190   : > { %v1873_v54 = vpop.f32.mrb[16].mxu1  ;;  %v1366_v53 = vsel %vm1321_vm2, %v11805_v38, %v780_v33  ;;  %9478 = vmatprep.mubr.msk.f32.mxu1 %vm11171_vm0, %v16951_v9  ;;  %v2172_v38 = vmax.f32 %v1869_v6, 0.0 }
 0x191   : > { %v1874_v0 = vadd.f32 %v12121_v47, %v1873_v54  ;;  %v9381_v8 = vpop.f32.mrb[17].mxu1  ;;  %1027 = vrot.lane.b32.xlu0 %v12194_v58, %s11173_s23  ;;  %v990_v14 = vpop.permute.xlu1 %989  ;;  %v1110_v54 = vrot.slane %v482_v55, 1 }
 0x192   : > { %v1436_v13 = vsel %vm1391_vm3, %v1366_v53, %v990_v14 }
 0x193   : > { %v2173_v60 = vmax.f32 %v1874_v0, 0.0  ;;  %v1203_v29 = vpop.permute.xlu0 %1202  ;;  %1240 = vrot.lane.b32.xlu1 %v688_v39, %s11174_s24 }
 0x194   : > { %v1506_v51 = vsel %vm1461_vm4, %v1436_v13, %v1203_v29  ;;  %v483_v13 = vld [vmem:[%s11286_s20 + $0x238] sm:$0xff] }
 0x195   : > { %v12246_v22 = vpack.c.bf16 %v2173_v60, %v2172_v38  ;;  %819 = vrot.lane.b32.xlu0 %v684_v63, %s11175_s25  ;;  %9479 = vmatmul.mubr.msk.f32.gmra.mrb[82].mxu1 %vm1544_vm5, %v1506_v51  ;;  %v782_v26 = vpop.permute.xlu1 %781  ;;  %v1108_v63 = vrot.slane %v481_v16, 1 }
 0x196   : > { %9481 = vmatprep.mubr.msk.f32.mxu1 %vm11171_vm0, %v16951_v9  ;;  %v1367_v43 = vsel %vm1321_vm2, %v11834_v62, %v782_v26  ;;  %v1878_v34 = vpop.f32.mrb[18].mxu1 }
 0x197   : > { %v992_v44 = vpop.permute.xlu0 %991  ;;  %v9384_v42 = vpop.f32.mrb[19].mxu1  ;;  %1029 = vrot.lane.b32.xlu1 %v12214_v25, %s11173_s23  ;;  %v1879_v18 = vadd.f32 %v12121_v47, %v1878_v34  ;;  %v1109_v5 = vsel %vm553_vm1, %v12241_v61, %v1108_v63  ;;  %v1111_v60 = vsel %vm553_vm1, %v1108_v63, %v1110_v54 }
 0x198   : > { %v1437_v10 = vsel %vm1391_vm3, %v1367_v43, %v992_v44 }
 0x199   : > { %1242 = vrot.lane.b32.xlu0 %v690_v40, %s11174_s24  ;;  %v1205_v45 = vpop.permute.xlu1 %1204 }
 0x19a   : > { %v1507_v48 = vsel %vm1461_vm4, %v1437_v10, %v1205_v45 }
 0x19b   : > { %v784_v59 = vpop.permute.xlu0 %783  ;;  %821 = vrot.lane.b32.xlu1 %v686_v27, %s11175_s25  ;;  %9482 = vmatmul.mubr.msk.f32.gmra.mrb[84].mxu1 %vm1544_vm5, %v1507_v48 }
 0x19c   : > { %v1883_v3 = vpop.f32.mrb[20].mxu1  ;;  %v1368_v62 = vsel %vm1321_vm2, %v11857_v49, %v784_v59  ;;  %9484 = vmatprep.mubr.msk.f32.mxu1 %vm11171_vm0, %v16951_v9  ;;  %v2174_v49 = vmax.f32 %v1879_v18, 0.0 }
 0x19d   : > { %v1884_v50 = vadd.f32 %v12121_v47, %v1883_v3  ;;  %v9387_v6 = vpop.f32.mrb[21].mxu1  ;;  %1031 = vrot.lane.b32.xlu0 %v12228_v7, %s11173_s23  ;;  %v994_v33 = vpop.permute.xlu1 %993 }
 0x19e   : > { %v1438_v27 = vsel %vm1391_vm3, %v1368_v62, %v994_v33 }
 0x19f   : > { %v2175_v53 = vmax.f32 %v1884_v50, 0.0  ;;  %v1207_v0 = vpop.permute.xlu0 %1206  ;;  %1244 = vrot.lane.b32.xlu1 %v1109_v5, %s11174_s24 }
 0x1a0   : > { %v1508_v8 = vsel %vm1461_vm4, %v1438_v27, %v1207_v0 }
 0x1a1   : > { %v12278_v14 = vpack.c.bf16 %v2175_v53, %v2174_v49  ;;  %823 = vrot.lane.b32.xlu0 %v688_v39, %s11175_s25  ;;  %9485 = vmatmul.mubr.msk.f32.gmra.mrb[86].mxu1 %vm1544_vm5, %v1508_v8  ;;  %v786_v38 = vpop.permute.xlu1 %785  ;;  %v1112_v39 = vrot.slane %v483_v13, 1 }
 0x1a2   : > { %9487 = vmatprep.mubr.msk.f32.mxu1 %vm11171_vm0, %v16951_v9  ;;  %v1369_v29 = vsel %vm1321_vm2, %v11879_v35, %v786_v38  ;;  %v1888_v51 = vpop.f32.mrb[22].mxu1 }
 0x1a3   : > { %v996_v26 = vpop.permute.xlu0 %995  ;;  %v9390_v43 = vpop.f32.mrb[23].mxu1  ;;  %1033 = vrot.lane.b32.xlu1 %v481_v16, %s11173_s23  ;;  %v1889_v42 = vadd.f32 %v12121_v47, %v1888_v51  ;;  %v1113_v48 = vsel %vm553_vm1, %v1110_v54, %v1112_v39 }
 0x1a4   : > { %v1439_v34 = vsel %vm1391_vm3, %v1369_v29, %v996_v26 }
 0x1a5   : > { %1246 = vrot.lane.b32.xlu0 %v1111_v60, %s11174_s24  ;;  %v1209_v44 = vpop.permute.xlu1 %1208  ;;  %v2176_v3 = vmax.f32 %v1889_v42, 0.0 }
 0x1a6   : > { %v1509_v63 = vsel %vm1461_vm4, %v1439_v34, %v1209_v44 }
 0x1a7   : > { %v788_v10 = vpop.permute.xlu0 %787  ;;  %825 = vrot.lane.b32.xlu1 %v690_v40, %s11175_s25  ;;  %9488 = vmatmul.mubr.msk.f32.gmra.mrb[88].mxu1 %vm1544_vm5, %v1509_v63 }
 0x1a8   : > { %v1893_v45 = vpop.f32.mrb[24].mxu1  ;;  %v1370_v35 = vsel %vm1321_vm2, %v11890_v41, %v788_v10  ;;  %9490 = vmatprep.mubr.msk.f32.mxu1 %vm11171_vm0, %v16951_v9 }
 0x1a9   : > { %v1894_v16 = vadd.f32 %v12121_v47, %v1893_v45  ;;  %v9393_v18 = vpop.f32.mrb[25].mxu1  ;;  %1035 = vrot.lane.b32.xlu0 %v482_v55, %s11173_s23  ;;  %v998_v59 = vpop.permute.xlu1 %997 }
 0x1aa   : > { %v1440_v50 = vsel %vm1391_vm3, %v1370_v35, %v998_v59 }
 0x1ab   : > { %v2177_v62 = vmax.f32 %v1894_v16, 0.0  ;;  %v1211_v41 = vpop.permute.xlu0 %1210  ;;  %1248 = vrot.lane.b32.xlu1 %v1113_v48, %s11174_s24 }
 0x1ac   : > { %v1510_v40 = vsel %vm1461_vm4, %v1440_v50, %v1211_v41 }
 0x1ad   : > { %v12305_v6 = vpack.c.bf16 %v2177_v62, %v2176_v3  ;;  %827 = vrot.lane.b32.xlu0 %v12241_v61, %s11175_s25  ;;  %9491 = vmatmul.mubr.msk.f32.gmra.mrb[90].mxu1 %vm1544_vm5, %v1510_v40  ;;  %v790_v55 = vpop.permute.xlu1 %789 }
 0x1ae   : > { %9493 = vmatprep.mubr.msk.f32.mxu1 %vm11171_vm0, %v16951_v9  ;;  %v1371_v5 = vsel %vm1321_vm2, %v11911_v4, %v790_v55  ;;  %v1898_v33 = vpop.f32.mrb[26].mxu1 }
 0x1af   : > { %v1000_v54 = vpop.permute.xlu0 %999  ;;  %v9396_v49 = vpop.f32.mrb[27].mxu1  ;;  %1037 = vrot.lane.b32.xlu1 %v483_v13, %s11173_s23  ;;  %v1899_v61 = vadd.f32 %v12121_v47, %v1898_v33 }
 0x1b0   : > { %v1441_v53 = vsel %vm1391_vm3, %v1371_v5, %v1000_v54 }
 0x1b1   : > { %1250 = vrot.lane.b32.xlu0 %v1112_v39, %s11174_s24  ;;  %v1213_v27 = vpop.permute.xlu1 %1212  ;;  %v2178_v51 = vmax.f32 %v1899_v61, 0.0 }
 0x1b2   : > { %v1511_v0 = vsel %vm1461_vm4, %v1441_v53, %v1213_v27 }
 0x1b3   : > { %v792_v8 = vpop.permute.xlu0 %791  ;;  %9494 = vmatmul.mubr.msk.f32.gmra.mrb[92].mxu1 %vm1544_vm5, %v1511_v0 }
 0x1b4   : > { %v1903_v38 = vpop.f32.mrb[28].mxu1  ;;  %v1372_v60 = vsel %vm1321_vm2, %v11922_v23, %v792_v8  ;;  %9496 = vmatprep.mubr.msk.f32.mxu1 %vm11171_vm0, %v16951_v9 }
 0x1b5   : > { %v1904_v4 = vadd.f32 %v12121_v47, %v1903_v38  ;;  %v9399_v29 = vpop.f32.mrb[29].mxu1  ;;  %v1002_v13 = vpop.permute.xlu1 %1001 }
 0x1b6   : > { %v1442_v43 = vsel %vm1391_vm3, %v1372_v60, %v1002_v13 }
 0x1b7   : > { %v2179_v26 = vmax.f32 %v1904_v4, 0.0  ;;  %v1215_v39 = vpop.permute.xlu0 %1214 }
 0x1b8   : > { %v1512_v34 = vsel %vm1461_vm4, %v1442_v43, %v1215_v39 }
 0x1b9   : > { %v12327_v44 = vpack.c.bf16 %v2179_v26, %v2178_v51  ;;  %9497 = vmatmul.mubr.msk.f32.gmra.mrb[94].mxu1 %vm1544_vm5, %v1512_v34  ;;  %v794_v23 = vpop.permute.xlu1 %793 }
 0x1ba   : > { %9499 = vmatprep.mubr.msk.f32.mxu1 %vm11171_vm0, %v16951_v9  ;;  %v1373_v42 = vsel %vm1321_vm2, %v11943_v19, %v794_v23  ;;  %v1908_v63 = vpop.f32.mrb[30].mxu1 }
 0x1bb   : > { %9871 = vmatprep.subr.bf16.mxu1 %v12327_v44  ;;  %v1004_v10 = vpop.permute.xlu0 %1003  ;;  %v9402_v45 = vpop.f32.mrb[31].mxu1  ;;  %v1909_v18 = vadd.f32 %v12121_v47, %v1908_v63 }
 0x1bc   : > { %v1443_v35 = vsel %vm1391_vm3, %v1373_v42, %v1004_v10 }
 0x1bd   : > { %v1217_v16 = vpop.permute.xlu1 %1216  ;;  %v2180_v40 = vmax.f32 %v1909_v18, 0.0 }
 0x1be   : > { %v1513_v48 = vsel %vm1461_vm4, %v1443_v35, %v1217_v16 }
 0x1bf   : > { %v796_v59 = vpop.permute.xlu0 %795  ;;  %9500 = vmatmul.mubr.msk.f32.gmra.mrb[96].mxu1 %vm1544_vm5, %v1513_v48 }
 0x1c0   : > { %v1913_v3 = vpop.f32.mrb[32].mxu1  ;;  %v1374_v62 = vsel %vm1321_vm2, %v11954_v28, %v796_v59  ;;  %9502 = vmatprep.mubr.msk.f32.mxu1 %vm11171_vm0, %v16951_v9 }
 0x1c1   : > { %v1914_v19 = vadd.f32 %v12121_v47, %v1913_v3  ;;  %v9405_v50 = vpop.f32.mrb[33].mxu1  ;;  %v1006_v41 = vpop.permute.xlu1 %1005 }
 0x1c2   : > { %v1444_v5 = vsel %vm1391_vm3, %v1374_v62, %v1006_v41 }
 0x1c3   : > { %v2181_v55 = vmax.f32 %v1914_v19, 0.0  ;;  %v1219_v33 = vpop.permute.xlu0 %1218 }
 0x1c4   : > { %v1514_v54 = vsel %vm1461_vm4, %v1444_v5, %v1219_v33 }
 0x1c5   : > { %v12346_v49 = vpack.c.bf16 %v2181_v55, %v2180_v40  ;;  %9503 = vmatmul.mubr.msk.f32.gmra.mrb[98].mxu1 %vm1544_vm5, %v1514_v54  ;;  %v798_v28 = vpop.permute.xlu1 %797 }
 0x1c6   : > { %9505 = vmatprep.mubr.msk.f32.mxu1 %vm11171_vm0, %v16951_v9  ;;  %v1375_v53 = vsel %vm1321_vm2, %v11975_v30, %v798_v28  ;;  %v1918_v27 = vpop.f32.mrb[34].mxu1 }
 0x1c7   : > { %v1008_v61 = vpop.permute.xlu0 %1007  ;;  %v9408_v0 = vpop.f32.mrb[35].mxu1  ;;  %v1919_v60 = vadd.f32 %v12121_v47, %v1918_v27 }
 0x1c8   : > { %v1445_v8 = vsel %vm1391_vm3, %v1375_v53, %v1008_v61 }
 0x1c9   : > { %v1221_v38 = vpop.permute.xlu1 %1220  ;;  %v2182_v39 = vmax.f32 %v1919_v60, 0.0 }
 0x1ca   : > { %v1515_v4 = vsel %vm1461_vm4, %v1445_v8, %v1221_v38 }
 0x1cb   : > { %v800_v29 = vpop.permute.xlu0 %799  ;;  %9506 = vmatmul.mubr.msk.f32.gmra.mrb[100].mxu1 %vm1544_vm5, %v1515_v4 }
 0x1cc   : > { %v1923_v13 = vpop.f32.mrb[36].mxu1  ;;  %v1376_v51 = vsel %vm1321_vm2, %v11986_v1, %v800_v29  ;;  %9508 = vmatprep.mubr.msk.f32.mxu1 %vm11171_vm0, %v16951_v9 }
 0x1cd   : > { %v1924_v26 = vadd.f32 %v12121_v47, %v1923_v13  ;;  %v9411_v30 = vpop.f32.mrb[37].mxu1  ;;  %v1010_v43 = vpop.permute.xlu1 %1009 }
 0x1ce   : > { %v1446_v23 = vsel %vm1391_vm3, %v1376_v51, %v1010_v43 }
 0x1cf   : > { %v2183_v34 = vmax.f32 %v1924_v26, 0.0  ;;  %v1223_v42 = vpop.permute.xlu0 %1222 }
 0x1d0   : > { %v1516_v63 = vsel %vm1461_vm4, %v1446_v23, %v1223_v42 }
 0x1d1   : > { %v12364_v10 = vpack.c.bf16 %v2183_v34, %v2182_v39  ;;  %9509 = vmatmul.mubr.msk.f32.gmra.mrb[102].mxu1 %vm1544_vm5, %v1516_v63  ;;  %v802_v1 = vpop.permute.xlu1 %801 }
 0x1d2   : > { %9511 = vmatprep.mubr.msk.f32.mxu1 %vm11171_vm0, %v16951_v9  ;;  %v1377_v45 = vsel %vm1321_vm2, %v12007_v20, %v802_v1  ;;  %v1928_v35 = vpop.f32.mrb[38].mxu1 }
 0x1d3   : > { %v1012_v16 = vpop.permute.xlu0 %1011  ;;  %v9414_v18 = vpop.f32.mrb[39].mxu1  ;;  %v1929_v3 = vadd.f32 %v12121_v47, %v1928_v35 }
 0x1d4   : > { %v1447_v48 = vsel %vm1391_vm3, %v1377_v45, %v1012_v16 }
 0x1d5   : > { %v1225_v59 = vpop.permute.xlu1 %1224  ;;  %v2184_v5 = vmax.f32 %v1929_v3, 0.0 }
 0x1d6   : > { %v1517_v62 = vsel %vm1461_vm4, %v1447_v48, %v1225_v59 }
 0x1d7   : > { %v804_v19 = vpop.permute.xlu0 %803  ;;  %9512 = vmatmul.mubr.msk.f32.gmra.mrb[104].mxu1 %vm1544_vm5, %v1517_v62 }
 0x1d8   : > { %v1933_v50 = vpop.f32.mrb[40].mxu1  ;;  %v1378_v41 = vsel %vm1321_vm2, %v12018_v24, %v804_v19  ;;  %9514 = vmatprep.mubr.msk.f32.mxu1 %vm11171_vm0, %v16951_v9 }
 0x1d9   : > { %v1934_v40 = vadd.f32 %v12121_v47, %v1933_v50  ;;  %v9417_v20 = vpop.f32.mrb[41].mxu1  ;;  %v1014_v55 = vpop.permute.xlu1 %1013 }
 0x1da   : > { %v1448_v54 = vsel %vm1391_vm3, %v1378_v41, %v1014_v55 }
 0x1db   : > { %v2185_v33 = vmax.f32 %v1934_v40, 0.0  ;;  %v1227_v28 = vpop.permute.xlu0 %1226 }
 0x1dc   : > { %v1518_v53 = vsel %vm1461_vm4, %v1448_v54, %v1227_v28 }
 0x1dd   : > { %v12382_v27 = vpack.c.bf16 %v2185_v33, %v2184_v5  ;;  %9515 = vmatmul.mubr.msk.f32.gmra.mrb[106].mxu1 %vm1544_vm5, %v1518_v53  ;;  %v806_v24 = vpop.permute.xlu1 %805 }
 0x1de   : > { %9517 = vmatprep.mubr.msk.f32.mxu1 %vm11171_vm0, %v16951_v9  ;;  %v1379_v61 = vsel %vm1321_vm2, %v12039_v31, %v806_v24  ;;  %v1938_v0 = vpop.f32.mrb[42].mxu1 }
 0x1df   : > { %v1016_v8 = vpop.permute.xlu0 %1015  ;;  %v9420_v38 = vpop.f32.mrb[43].mxu1  ;;  %v1939_v29 = vadd.f32 %v12121_v47, %v1938_v0 }
 0x1e0   : > { %v1449_v60 = vsel %vm1391_vm3, %v1379_v61, %v1016_v8 }
 0x1e1   : > { %v1229_v4 = vpop.permute.xlu1 %1228  ;;  %v2186_v34 = vmax.f32 %v1939_v29, 0.0 }
 0x1e2   : > { %v1519_v13 = vsel %vm1461_vm4, %v1449_v60, %v1229_v4 }
 0x1e3   : > { %v808_v51 = vpop.permute.xlu0 %807  ;;  %9518 = vmatmul.mubr.msk.f32.gmra.mrb[108].mxu1 %vm1544_vm5, %v1519_v13 }
 0x1e4   : > { %v1943_v26 = vpop.f32.mrb[44].mxu1  ;;  %v1380_v30 = vsel %vm1321_vm2, %v12050_v32, %v808_v51  ;;  %9520 = vmatprep.mubr.msk.f32.mxu1 %vm11171_vm0, %v16951_v9 }
 0x1e5   : > { %v1944_v43 = vadd.f32 %v12121_v47, %v1943_v26  ;;  %v9423_v31 = vpop.f32.mrb[45].mxu1  ;;  %v1018_v39 = vpop.permute.xlu1 %1017 }
 0x1e6   : > { %v1450_v42 = vsel %vm1391_vm3, %v1380_v30, %v1018_v39 }
 0x1e7   : > { %v2187_v23 = vmax.f32 %v1944_v43, 0.0  ;;  %v1231_v63 = vpop.permute.xlu0 %1230 }
 0x1e8   : > { %v1520_v1 = vsel %vm1461_vm4, %v1450_v42, %v1231_v63 }
 0x1e9   : > { %v12400_v45 = vpack.c.bf16 %v2187_v23, %v2186_v34  ;;  %9521 = vmatmul.mubr.msk.f32.gmra.mrb[110].mxu1 %vm1544_vm5, %v1520_v1  ;;  %v810_v32 = vpop.permute.xlu1 %809 }
 0x1ea   : > { %9523 = vmatprep.mubr.msk.f32.mxu1 %vm11171_vm0, %v16951_v9  ;;  %v1381_v35 = vsel %vm1321_vm2, %v12071_v21, %v810_v32  ;;  %v1948_v16 = vpop.f32.mrb[46].mxu1 }
 0x1eb   : > { %v1020_v18 = vpop.permute.xlu0 %1019  ;;  %v9426_v48 = vpop.f32.mrb[47].mxu1  ;;  %v1949_v62 = vadd.f32 %v12121_v47, %v1948_v16 }
 0x1ec   : > { %v1451_v59 = vsel %vm1391_vm3, %v1381_v35, %v1020_v18 }
 0x1ed   : > { %v1233_v3 = vpop.permute.xlu1 %1232  ;;  %v2188_v5 = vmax.f32 %v1949_v62, 0.0 }
 0x1ee   : > { %v1521_v19 = vsel %vm1461_vm4, %v1451_v59, %v1233_v3 }
 0x1ef   : > { %v812_v50 = vpop.permute.xlu0 %811  ;;  %9524 = vmatmul.mubr.msk.f32.gmra.mrb[112].mxu1 %vm1544_vm5, %v1521_v19 }
 0x1f0   : > { %v1953_v41 = vpop.f32.mrb[48].mxu1  ;;  %v1382_v40 = vsel %vm1321_vm2, %v12082_v56, %v812_v50  ;;  %9526 = vmatprep.mubr.msk.f32.mxu1 %vm11171_vm0, %v16951_v9 }
 0x1f1   : > { %v1954_v20 = vadd.f32 %v12121_v47, %v1953_v41  ;;  %v9429_v21 = vpop.f32.mrb[49].mxu1  ;;  %v1022_v55 = vpop.permute.xlu1 %1021 }
 0x1f2   : > { %v1452_v54 = vsel %vm1391_vm3, %v1382_v40, %v1022_v55 }
 0x1f3   : > { %v2189_v33 = vmax.f32 %v1954_v20, 0.0  ;;  %v1235_v28 = vpop.permute.xlu0 %1234 }
 0x1f4   : > { %v1522_v53 = vsel %vm1461_vm4, %v1452_v54, %v1235_v28 }
 0x1f5   : > { %v12418_v24 = vpack.c.bf16 %v2189_v33, %v2188_v5  ;;  %9527 = vmatmul.mubr.msk.f32.gmra.mrb[114].mxu1 %vm1544_vm5, %v1522_v53  ;;  %v814_v56 = vpop.permute.xlu1 %813 }
 0x1f6   : > { %9529 = vmatprep.mubr.msk.f32.mxu1 %vm11171_vm0, %v16951_v9  ;;  %v1383_v61 = vsel %vm1321_vm2, %v12100_v36, %v814_v56  ;;  %v1958_v0 = vpop.f32.mrb[50].mxu1 }
 0x1f7   : > { %v1024_v8 = vpop.permute.xlu0 %1023  ;;  %v9432_v38 = vpop.f32.mrb[51].mxu1  ;;  %v1959_v29 = vadd.f32 %v12121_v47, %v1958_v0 }
 0x1f8   : > { %v1453_v60 = vsel %vm1391_vm3, %v1383_v61, %v1024_v8 }
 0x1f9   : > { %v1237_v4 = vpop.permute.xlu1 %1236  ;;  %v2190_v39 = vmax.f32 %v1959_v29, 0.0 }
 0x1fa   : > { %v1523_v13 = vsel %vm1461_vm4, %v1453_v60, %v1237_v4 }
 0x1fb   : > { %v816_v51 = vpop.permute.xlu0 %815  ;;  %9530 = vmatmul.mubr.msk.f32.gmra.mrb[116].mxu1 %vm1544_vm5, %v1523_v13 }
 0x1fc   : > { %v1963_v26 = vpop.f32.mrb[52].mxu1  ;;  %v1384_v30 = vsel %vm1321_vm2, %v12116_v52, %v816_v51  ;;  %9532 = vmatprep.mubr.msk.f32.mxu1 %vm11171_vm0, %v16951_v9 }
 0x1fd   : > { %v1964_v43 = vadd.f32 %v12121_v47, %v1963_v26  ;;  %v9435_v36 = vpop.f32.mrb[53].mxu1  ;;  %v1026_v31 = vpop.permute.xlu1 %1025 }
 0x1fe   : > { %v1454_v23 = vsel %vm1391_vm3, %v1384_v30, %v1026_v31 }
 0x1ff   : > { %v2191_v34 = vmax.f32 %v1964_v43, 0.0  ;;  %v1239_v42 = vpop.permute.xlu0 %1238 }
 0x200   : > { %v1524_v63 = vsel %vm1461_vm4, %v1454_v23, %v1239_v42 }
 0x201   : > { %v12436_v1 = vpack.c.bf16 %v2191_v34, %v2190_v39  ;;  %9533 = vmatmul.mubr.msk.f32.gmra.mrb[118].mxu1 %vm1544_vm5, %v1524_v63  ;;  %v818_v52 = vpop.permute.xlu1 %817 }
 0x202   : > { %9535 = vmatprep.mubr.msk.f32.mxu1 %vm11171_vm0, %v16951_v9  ;;  %v1385_v32 = vsel %vm1321_vm2, %v12139_v17, %v818_v52  ;;  %v1968_v35 = vpop.f32.mrb[54].mxu1 }
 0x203   : > { %v1028_v16 = vpop.permute.xlu0 %1027  ;;  %v9438_v18 = vpop.f32.mrb[55].mxu1  ;;  %v1969_v3 = vadd.f32 %v12121_v47, %v1968_v35 }
 0x204   : > { %v1455_v48 = vsel %vm1391_vm3, %v1385_v32, %v1028_v16 }
 0x205   : > { %v1241_v59 = vpop.permute.xlu1 %1240  ;;  %v2192_v21 = vmax.f32 %v1969_v3, 0.0 }
 0x206   : > { %v1525_v62 = vsel %vm1461_vm4, %v1455_v48, %v1241_v59 }
 0x207   : > { %v820_v19 = vpop.permute.xlu0 %819  ;;  %9536 = vmatmul.mubr.msk.f32.gmra.mrb[120].mxu1 %vm1544_vm5, %v1525_v62 }
 0x208   : > { %v1973_v50 = vpop.f32.mrb[56].mxu1  ;;  %v1386_v41 = vsel %vm1321_vm2, %v12158_v46, %v820_v19  ;;  %9538 = vmatprep.mubr.msk.f32.mxu1 %vm11171_vm0, %v16951_v9 }
 0x209   : > { %v1974_v40 = vadd.f32 %v12121_v47, %v1973_v50  ;;  %v9441_v17 = vpop.f32.mrb[57].mxu1  ;;  %v1030_v20 = vpop.permute.xlu1 %1029 }
 0x20a   : > { %v1456_v5 = vsel %vm1391_vm3, %v1386_v41, %v1030_v20 }
 0x20b   : > { %v2193_v55 = vmax.f32 %v1974_v40, 0.0  ;;  %v1243_v33 = vpop.permute.xlu0 %1242 }
 0x20c   : > { %v1526_v54 = vsel %vm1461_vm4, %v1456_v5, %v1243_v33 }
 0x20d   : > { %v12454_v28 = vpack.c.bf16 %v2193_v55, %v2192_v21  ;;  %9539 = vmatmul.mubr.msk.f32.gmra.mrb[122].mxu1 %vm1544_vm5, %v1526_v54  ;;  %v822_v46 = vpop.permute.xlu1 %821  ;;  %v2232_v21 = vld [vmem:[%s16947_s9 + $0x8] sm:$0xff] }
 0x20e   : > { %9541 = vmatprep.mubr.msk.f32.mxu1 %vm11171_vm0, %v16951_v9  ;;  %v1387_v53 = vsel %vm1321_vm2, %v12177_v12, %v822_v46  ;;  %v1978_v56 = vpop.f32.mrb[58].mxu1 }
 0x20f   : > { %v1032_v61 = vpop.permute.xlu0 %1031  ;;  %v9444_v0 = vpop.f32.mrb[59].mxu1  ;;  %v1979_v60 = vadd.f32 %v12121_v47, %v1978_v56 }
 0x210   : > { %v1457_v8 = vsel %vm1391_vm3, %v1387_v53, %v1032_v61 }
 0x211   : > { %v1245_v38 = vpop.permute.xlu1 %1244  ;;  %v2194_v43 = vmax.f32 %v1979_v60, 0.0 }
 0x212   : > { %v1527_v4 = vsel %vm1461_vm4, %v1457_v8, %v1245_v38 }
 0x213   : > { %v824_v29 = vpop.permute.xlu0 %823  ;;  %9542 = vmatmul.mubr.msk.f32.gmra.mrb[124].mxu1 %vm1544_vm5, %v1527_v4 }
 0x214   : > { %v1983_v13 = vpop.f32.mrb[60].mxu1  ;;  %v1388_v51 = vsel %vm1321_vm2, %v12194_v58, %v824_v29  ;;  %9544 = vmatprep.mubr.msk.f32.mxu1 %vm11171_vm0, %v16951_v9 }
 0x215   : > { %v1984_v26 = vadd.f32 %v12121_v47, %v1983_v13  ;;  %v9447_v12 = vpop.f32.mrb[61].mxu1  ;;  %v1034_v30 = vpop.permute.xlu1 %1033 }
 0x216   : > { %v1458_v31 = vsel %vm1391_vm3, %v1388_v51, %v1034_v30 }
 0x217   : > { %v2195_v36 = vmax.f32 %v1984_v26, 0.0  ;;  %v1247_v39 = vpop.permute.xlu0 %1246 }
 0x218   : > { %v1528_v34 = vsel %vm1461_vm4, %v1458_v31, %v1247_v39 }
 0x219   : > { %v12472_v23 = vpack.c.bf16 %v2195_v36, %v2194_v43  ;;  %9545 = vmatmul.mubr.msk.f32.gmra.mrb[126].mxu1 %vm1544_vm5, %v1528_v34  ;;  %v826_v58 = vpop.permute.xlu1 %825 }
 0x21a   : > { %9547 = vmatprep.mubr.msk.f32.mxu1 %vm11171_vm0, %v16951_v9  ;;  %v1389_v42 = vsel %vm1321_vm2, %v12214_v25, %v826_v58  ;;  %v1988_v63 = vpop.f32.mrb[62].mxu1 }
 0x21b   : > { %v1036_v52 = vpop.permute.xlu0 %1035  ;;  %v9450_v32 = vpop.f32.mrb[63].mxu1  ;;  %v1989_v18 = vadd.f32 %v12121_v47, %v1988_v63 }
 0x21c   : > { %v1459_v35 = vsel %vm1391_vm3, %v1389_v42, %v1036_v52 }
 0x21d   : > { %v1249_v16 = vpop.permute.xlu1 %1248  ;;  %v2196_v41 = vmax.f32 %v1989_v18, 0.0 }
 0x21e   : > { %v1529_v48 = vsel %vm1461_vm4, %v1459_v35, %v1249_v16 }
 0x21f   : > { %v828_v59 = vpop.permute.xlu0 %827  ;;  %9548 = vmatmul.mubr.msk.f32.gmra.mrb[128].mxu1 %vm1544_vm5, %v1529_v48 }
 0x220   : > { %v1993_v3 = vpop.f32.mrb[64].mxu1  ;;  %v1390_v62 = vsel %vm1321_vm2, %v12228_v7, %v828_v59  ;;  %9550 = vmatprep.mubr.msk.f32.mxu1 %vm11171_vm0, %v16951_v9  ;;  %vm5723_vm2 = vcmask 1041408  }
 0x221   : > { %v1994_v19 = vadd.f32 %v12121_v47, %v1993_v3  ;;  %v9453_v25 = vpop.f32.mrb[65].mxu1  ;;  %v1038_v50 = vpop.permute.xlu1 %1037  ;;  %v1834_v3 = vadd.f32 %v12121_v47, %v12096_v15 }
 0x222   : > { %v1460_v17 = vsel %vm1391_vm3, %v1390_v62, %v1038_v50 }
 0x223   : > { %v2197_v40 = vmax.f32 %v1994_v19, 0.0  ;;  %v1251_v20 = vpop.permute.xlu0 %1250 }
 0x224   : > { %v1530_v7 = vsel %vm1461_vm4, %v1460_v17, %v1251_v20  ;;  %v2165_v17 = vmax.f32 %v1834_v3, 0.0  ;;  %v7801_v3 = vld [vmem:[%s16947_s9 + $0x2a0] sm:$0xff] }
 0x225   : > { %v12493_v55 = vpack.c.bf16 %v2197_v40, %v2196_v41  ;;  %9551 = vmatmul.mubr.msk.f32.gmra.mrb[130].mxu1 %vm1544_vm5, %v1530_v7  ;;  %9597 = vmatprep.mubr.msk.f32.mxu0 %vm2311_vm6, %v7801_v3 }
 0x226   : > { %2427 = vmatprep.mubr.f32.mxu1 %v2232_v21  ;;  %v1998_v5 = vpop.f32.mrb[66].mxu1 }
 0x227   : > { %v9456_v33 = vpop.f32.mrb[67].mxu1  ;;  %v1999_v54 = vadd.f32 %v12121_v47, %v1998_v5 }
 0x229   : > { %v2198_v61 = vmax.f32 %v1999_v54, 0.0  ;;  %v12527_v54 = vld [vmem:[%s16943_s5] ss:$0 sm:$0xff] }
 0x22c   : > { %v2003_v46 = vpop.f32.mrb[68].mxu1 }
 0x22d   : > { %v2004_v53 = vadd.f32 %v12121_v47, %v2003_v46  ;;  %v9459_v56 = vpop.f32.mrb[69].mxu1 }
 0x22f   : > { %v2199_v0 = vmax.f32 %v2004_v53, 0.0 }
 0x231   : > { %v12498_v8 = vpack.c.bf16 %v2199_v0, %v2198_v61 }
 0x232   : > { %v2008_v38 = vpop.f32.mrb[70].mxu1 }
 0x233   : > { %v9462_v60 = vpop.f32.mrb[71].mxu1  ;;  %v2009_v4 = vadd.f32 %v12121_v47, %v2008_v38 }
 0x235   : > { %v2200_v26 = vmax.f32 %v2009_v4, 0.0 }
 0x23c   : > { %v2013_v29 = vpop.f32.mrb[72].mxu1 }
 0x23d   : > { %v2014_v13 = vadd.f32 %v12121_v47, %v2013_v29  ;;  %v9465_v51 = vpop.f32.mrb[73].mxu1 }
 0x23e   : > { %v1818_v30 = vpop.f32.mrb[0].mxu0 }
 0x23f   : > { %v2201_v12 = vmax.f32 %v2014_v13, 0.0  ;;  %v9348_v43 = vpop.f32.mrb[1].mxu0  ;;  %v1819_v34 = vadd.f32 %v12121_v47, %v1818_v30 }
 0x241   : > { %v12502_v36 = vpack.c.bf16 %v2201_v12, %v2200_v26  ;;  %v2162_v52 = vmax.f32 %v1819_v34, 0.0 }
 0x248   : > { %v2018_v31 = vpop.f32.mrb[74].mxu1 }
 0x249   : > { %v9468_v39 = vpop.f32.mrb[75].mxu1  ;;  %v2019_v16 = vadd.f32 %v12121_v47, %v2018_v31  ;;  %v2231_v31 = vld [vmem:[%s16947_s9] sm:$0xff] }
 0x24a   : > { %v1823_v58 = vpop.f32.mrb[2].mxu0  ;;  %v2237_v39 = vld [vmem:[%s16947_s9 + $0x30] sm:$0xff] }
 0x24b   : > { %v1824_v42 = vadd.f32 %v12121_v47, %v1823_v58  ;;  %v9351_v63 = vpop.f32.mrb[3].mxu0  ;;  %v2202_v19 = vmax.f32 %v2019_v16, 0.0  ;;  %v2236_v58 = vld [vmem:[%s16947_s9 + $0x28] sm:$0xff] }
 0x24c   : > { %v2242_v63 = vld [vmem:[%s16947_s9 + $0x58] sm:$0xff] }
 0x24d   : > { %v2163_v32 = vmax.f32 %v1824_v42, 0.0 }
 0x24f   : > { %v12506_v35 = vpack.c.bf16 %v2163_v32, %v2162_v52 }
 0x251   : > { %9873 = vmatpush3.bf16.msra.mxu1 %v12506_v35 }
 0x252   : > { %9875 = vmatprep.subr.bf16.mxu1 %v12346_v49 }
 0x254   : > { %v2023_v18 = vpop.f32.mrb[76].mxu1 }
 0x255   : > { %v2024_v48 = vadd.f32 %v12121_v47, %v2023_v18  ;;  %v9471_v59 = vpop.f32.mrb[77].mxu1 }
 0x256   : > { %v1828_v62 = vpop.f32.mrb[4].mxu0  ;;  %v2247_v59 = vld [vmem:[%s16947_s9 + $0x80] sm:$0xff] }
 0x257   : > { %v2203_v25 = vmax.f32 %v2024_v48, 0.0  ;;  %v1829_v50 = vadd.f32 %v12121_v47, %v1828_v62  ;;  %v9354_v41 = vpop.f32.mrb[5].mxu0  ;;  %v2241_v48 = vld [vmem:[%s16947_s9 + $0x50] sm:$0xff] }
 0x258   : > { %v2252_v41 = vld [vmem:[%s16947_s9 + $0xa8] sm:$0xff] }
 0x259   : > { %v12515_v40 = vpack.c.bf16 %v2203_v25, %v2202_v19  ;;  %v2164_v20 = vmax.f32 %v1829_v50, 0.0  ;;  %v2246_v50 = vld [vmem:[%s16947_s9 + $0x78] sm:$0xff] }
 0x25b   : > { %v12517_v21 = vpack.c.bf16 %v2165_v17, %v2164_v20  ;;  %v2251_v20 = vld [vmem:[%s16947_s9 + $0xa0] sm:$0xff] }
 0x25c   : > { %v2028_v7 = vpop.f32.mrb[78].mxu1 }
 0x25d   : > { %v9474_v5 = vpop.f32.mrb[79].mxu1  ;;  %9877 = vmatpush3.bf16.msra.mxu1 %v12517_v21  ;;  %v2029_v15 = vadd.f32 %v12121_v47, %v2028_v7 }
 0x25e   : > { %9879 = vmatprep.subr.bf16.mxu1 %v12364_v10  ;;  %v2257_v5 = vld [vmem:[%s16947_s9 + $0xd0] sm:$0xff] }
 0x25f   : > { %v2204_v56 = vmax.f32 %v2029_v15, 0.0 }
 0x261   : > { %9881 = vmatpush3.bf16.msra.mxu1 %v12141_v37 }
 0x262   : > { %9883 = vmatprep.subr.bf16.mxu1 %v12382_v27  ;;  %v2033_v33 = vpop.f32.mrb[80].mxu1 }
 0x263   : > { %v2034_v46 = vadd.f32 %v12527_v54, %v2033_v33  ;;  %v9477_v53 = vpop.f32.mrb[81].mxu1 }
 0x265   : > { %9885 = vmatpush3.bf16.msra.mxu1 %v12172_v57  ;;  %v2205_v61 = vmax.f32 %v2034_v46, 0.0 }
 0x266   : > { %9887 = vmatprep.subr.bf16.mxu1 %v12400_v45 }
 0x267   : > { %v12532_v0 = vpack.c.bf16 %v2205_v61, %v2204_v56  ;;  %v2256_v56 = vld [vmem:[%s16947_s9 + $0xc8] sm:$0xff]  ;;  %v2262_v61 = vld [vmem:[%s16947_s9 + $0xf8] sm:$0xff] }
 0x268   : > { %v2038_v47 = vpop.f32.mrb[82].mxu1 }
 0x269   : > { %v9480_v38 = vpop.f32.mrb[83].mxu1  ;;  %9889 = vmatpush3.bf16.msra.mxu1 %v12208_v11  ;;  %v2039_v60 = vadd.f32 %v12527_v54, %v2038_v47 }
 0x26a   : > { %9891 = vmatprep.subr.bf16.mxu1 %v12418_v24 }
 0x26b   : > { %v2206_v51 = vmax.f32 %v2039_v60, 0.0 }
 0x26d   : > { %9893 = vmatpush3.bf16.msra.mxu1 %v12246_v22 }
 0x26e   : > { %9895 = vmatprep.subr.bf16.mxu1 %v12436_v1  ;;  %v2043_v4 = vpop.f32.mrb[84].mxu1 }
 0x26f   : > { %v2044_v29 = vadd.f32 %v12527_v54, %v2043_v4  ;;  %v9483_v13 = vpop.f32.mrb[85].mxu1  ;;  %v2261_v4 = vld [vmem:[%s16947_s9 + $0xf0] sm:$0xff] }
 0x271   : > { %9897 = vmatpush3.bf16.msra.mxu1 %v12278_v14  ;;  %v2207_v26 = vmax.f32 %v2044_v29, 0.0  ;;  %v2267_v29 = vld [vmem:[%s16947_s9 + $0x120] sm:$0xff] }
 0x272   : > { %9899 = vmatprep.subr.bf16.mxu1 %v12454_v28 }
 0x273   : > { %v12542_v12 = vpack.c.bf16 %v2207_v26, %v2206_v51  ;;  %v2266_v51 = vld [vmem:[%s16947_s9 + $0x118] sm:$0xff] }
 0x274   : > { %v2048_v30 = vpop.f32.mrb[86].mxu1 }
 0x275   : > { %v9486_v43 = vpop.f32.mrb[87].mxu1  ;;  %9901 = vmatpush3.bf16.msra.mxu1 %v12305_v6  ;;  %v2049_v34 = vadd.f32 %v12527_v54, %v2048_v30  ;;  %v2272_v30 = vld [vmem:[%s16947_s9 + $0x148] sm:$0xff] }
 0x277   : > { %v2208_v16 = vmax.f32 %v2049_v34, 0.0 }
 0x278   : > { %2428 = vmatmul.mubr.f32.vlgmr.msra.gmra.mrb[132].mxu1 %v2231_v31 }
 0x279   : > { %2432 = vmatprep.mubr.f32.mxu1 %v2237_v39 }
 0x27a   : > { %v2053_v42 = vpop.f32.mrb[88].mxu1 }
 0x27b   : > { %v2054_v52 = vadd.f32 %v12527_v54, %v2053_v42  ;;  %v9489_v32 = vpop.f32.mrb[89].mxu1  ;;  %v2277_v42 = vld [vmem:[%s16947_s9 + $0x170] sm:$0xff] }
 0x27c   : > { %2433 = vmatmul.mubr.f32.gmra.mrb[134].mxu1 %v2236_v58  ;;  %v2271_v58 = vld [vmem:[%s16947_s9 + $0x140] sm:$0xff] }
 0x27d   : > { %v2209_v18 = vmax.f32 %v2054_v52, 0.0  ;;  %2437 = vmatprep.mubr.f32.mxu1 %v2242_v63 }
 0x27f   : > { %v12568_v62 = vpack.c.bf16 %v2209_v18, %v2208_v16  ;;  %v2276_v16 = vld [vmem:[%s16947_s9 + $0x168] sm:$0xff]  ;;  %v2282_v18 = vld [vmem:[%s16947_s9 + $0x198] sm:$0xff] }
 0x280   : > { %v2058_v19 = vpop.f32.mrb[90].mxu1  ;;  %2438 = vmatmul.mubr.f32.gmra.mrb[136].mxu1 %v2241_v48 }
 0x281   : > { %v9492_v25 = vpop.f32.mrb[91].mxu1  ;;  %2442 = vmatprep.mubr.f32.mxu1 %v2247_v59  ;;  %v2059_v17 = vadd.f32 %v12527_v54, %v2058_v19  ;;  %v2281_v59 = vld [vmem:[%s16947_s9 + $0x190] sm:$0xff]  ;;  %v2287_v19 = vld [vmem:[%s16947_s9 + $0x1c0] sm:$0xff] }
 0x283   : > { %v2210_v46 = vmax.f32 %v2059_v17, 0.0 }
 0x284   : > { %2443 = vmatmul.mubr.f32.gmra.mrb[138].mxu1 %v2246_v50 }
 0x285   : > { %2447 = vmatprep.mubr.f32.mxu1 %v2252_v41 }
 0x286   : > { %v2063_v7 = vpop.f32.mrb[92].mxu1 }
 0x287   : > { %v2064_v15 = vadd.f32 %v12527_v54, %v2063_v7  ;;  %v9495_v33 = vpop.f32.mrb[93].mxu1  ;;  %v2292_v7 = vld [vmem:[%s16947_s9 + $0x1e8] sm:$0xff] }
 0x288   : > { %2448 = vmatmul.mubr.f32.gmra.mrb[140].mxu1 %v2251_v20  ;;  %v2286_v20 = vld [vmem:[%s16947_s9 + $0x1b8] sm:$0xff] }
 0x289   : > { %v2211_v53 = vmax.f32 %v2064_v15, 0.0  ;;  %2452 = vmatprep.mubr.f32.mxu1 %v2257_v5 }
 0x28b   : > { %v12591_v47 = vpack.c.bf16 %v2211_v53, %v2210_v46  ;;  %v2291_v46 = vld [vmem:[%s16947_s9 + $0x1e0] sm:$0xff]  ;;  %v2297_v53 = vld [vmem:[%s16947_s9 + $0x210] sm:$0xff] }
 0x28c   : > { %v2068_v38 = vpop.f32.mrb[94].mxu1  ;;  %2453 = vmatmul.mubr.f32.gmra.mrb[142].mxu1 %v2256_v56 }
 0x28d   : > { %v9498_v60 = vpop.f32.mrb[95].mxu1  ;;  %9903 = vmatprep.subr.bf16.mxu1 %v12591_v47  ;;  %2457 = vmatprep.mubr.f32.mxu1 %v2262_v61  ;;  %v2069_v13 = vadd.f32 %v12527_v54, %v2068_v38  ;;  %v2296_v61 = vld [vmem:[%s16947_s9 + $0x208] sm:$0xff] }
 0x28e   : > { %9905 = vmatpush3.bf16.msra.mxu1 %v12472_v23  ;;  %v2302_v60 = vld [vmem:[%s16947_s9 + $0x238] sm:$0xff] }
 0x28f   : > { %v2212_v39 = vmax.f32 %v2069_v13, 0.0 }
 0x290   : > { %2458 = vmatmul.mubr.f32.gmra.mrb[144].mxu1 %v2261_v4 }
 0x291   : > { %2462 = vmatprep.mubr.f32.mxu1 %v2267_v29 }
 0x292   : > { %v2073_v26 = vpop.f32.mrb[96].mxu1 }
 0x293   : > { %v2074_v43 = vadd.f32 %v12527_v54, %v2073_v26  ;;  %v9501_v31 = vpop.f32.mrb[97].mxu1  ;;  %v2301_v26 = vld [vmem:[%s16947_s9 + $0x230] sm:$0xff] }
 0x294   : > { %2463 = vmatmul.mubr.f32.gmra.mrb[146].mxu1 %v2266_v51 }
 0x295   : > { %v2213_v34 = vmax.f32 %v2074_v43, 0.0  ;;  %2467 = vmatprep.mubr.f32.mxu1 %v2272_v30  ;;  %v2307_v30 = vld [vmem:[%s16947_s9 + $0x260] sm:$0x1] }
 0x297   : > { %v12615_v63 = vpack.c.bf16 %v2213_v34, %v2212_v39  ;;  %v2306_v34 = vld [vmem:[%s16947_s9 + $0x258] sm:$0x1] }
 0x298   : > { %v2078_v52 = vpop.f32.mrb[98].mxu1  ;;  %2468 = vmatmul.mubr.f32.gmra.mrb[148].mxu1 %v2271_v58  ;;  %v2234_v58 = vld [vmem:[%s16947_s9 + $0x18] sm:$0xff] }
 0x299   : > { %v9504_v32 = vpop.f32.mrb[99].mxu1  ;;  %9907 = vmatprep.subr.bf16.mxu1 %v12615_v63  ;;  %2472 = vmatprep.mubr.f32.mxu1 %v2277_v42  ;;  %v2079_v48 = vadd.f32 %v12527_v54, %v2078_v52 }
 0x29a   : > { %9909 = vmatpush3.bf16.msra.mxu1 %v12493_v55 }
 0x29b   : > { %v2214_v41 = vmax.f32 %v2079_v48, 0.0 }
 0x29c   : > { %2473 = vmatmul.mubr.f32.gmra.mrb[150].mxu1 %v2276_v16 }
 0x29d   : > { %2477 = vmatprep.mubr.f32.mxu1 %v2282_v18 }
 0x29e   : > { %v2083_v3 = vpop.f32.mrb[100].mxu1 }
 0x29f   : > { %v2084_v25 = vadd.f32 %v12527_v54, %v2083_v3  ;;  %v9507_v50 = vpop.f32.mrb[101].mxu1 }
 0x2a0   : > { %2478 = vmatmul.mubr.f32.gmra.mrb[152].mxu1 %v2281_v59 }
 0x2a1   : > { %v2215_v17 = vmax.f32 %v2084_v25, 0.0  ;;  %2482 = vmatprep.mubr.f32.mxu1 %v2287_v19 }
 0x2a3   : > { %v12639_v5 = vpack.c.bf16 %v2215_v17, %v2214_v41 }
 0x2a4   : > { %v2088_v15 = vpop.f32.mrb[102].mxu1  ;;  %2483 = vmatmul.mubr.f32.gmra.mrb[154].mxu1 %v2286_v20 }
 0x2a5   : > { %v9510_v33 = vpop.f32.mrb[103].mxu1  ;;  %9911 = vmatprep.subr.bf16.mxu1 %v12639_v5  ;;  %2487 = vmatprep.mubr.f32.mxu1 %v2292_v7  ;;  %v2089_v56 = vadd.f32 %v12527_v54, %v2088_v15 }
 0x2a6   : > { %9913 = vmatpush3.bf16.msra.mxu1 %v12498_v8 }
 0x2a7   : > { %v2216_v13 = vmax.f32 %v2089_v56, 0.0 }
 0x2a8   : > { %2488 = vmatmul.mubr.f32.gmra.mrb[156].mxu1 %v2291_v46 }
 0x2a9   : > { %2492 = vmatprep.mubr.f32.mxu1 %v2297_v53 }
 0x2aa   : > { %v2093_v38 = vpop.f32.mrb[104].mxu1 }
 0x2ab   : > { %v2094_v4 = vadd.f32 %v12527_v54, %v2093_v38  ;;  %v9513_v29 = vpop.f32.mrb[105].mxu1 }
 0x2ac   : > { %2493 = vmatmul.mubr.f32.gmra.mrb[158].mxu1 %v2296_v61 }
 0x2ad   : > { %v2217_v51 = vmax.f32 %v2094_v4, 0.0  ;;  %2497 = vmatprep.mubr.f32.mxu1 %v2302_v60 }
 0x2af   : > { %v12663_v43 = vpack.c.bf16 %v2217_v51, %v2216_v13 }
 0x2b0   : > { %v2098_v31 = vpop.f32.mrb[106].mxu1  ;;  %2498 = vmatmul.mubr.f32.gmra.mrb[160].mxu1 %v2301_v26 }
 0x2b1   : > { %v9516_v39 = vpop.f32.mrb[107].mxu1  ;;  %9915 = vmatprep.subr.bf16.mxu1 %v12663_v43  ;;  %2502 = vmatprep.mubr.f32.mxu1 %v2307_v30  ;;  %v2099_v42 = vadd.f32 %v12527_v54, %v2098_v31 }
 0x2b2   : > { %9917 = vmatpush3.bf16.msra.mxu1 %v12502_v36 }
 0x2b3   : > { %v2218_v18 = vmax.f32 %v2099_v42, 0.0 }
 0x2b4   : > { %2503 = vmatmul.mubr.f32.gmra.mrb[162].mxu1 %v2306_v34 }
 0x2b5   : > { %2572 = vmatprep.mubr.f32.mxu1 %v2234_v58 }
 0x2b6   : > { %v2103_v52 = vpop.f32.mrb[108].mxu1 }
 0x2b7   : > { %v2104_v32 = vadd.f32 %v12527_v54, %v2103_v52  ;;  %v9519_v16 = vpop.f32.mrb[109].mxu1 }
 0x2b8   : > { %v2233_v16 = vld [vmem:[%s16947_s9 + $0x10] sm:$0xff] }
 0x2b9   : > { %v2219_v48 = vmax.f32 %v2104_v32, 0.0 }
 0x2bb   : > { %v12675_v59 = vpack.c.bf16 %v2219_v48, %v2218_v18  ;;  %v2239_v18 = vld [vmem:[%s16947_s9 + $0x40] sm:$0xff] }
 0x2bc   : > { %v2108_v3 = vpop.f32.mrb[110].mxu1 }
 0x2bd   : > { %v9522_v19 = vpop.f32.mrb[111].mxu1  ;;  %9919 = vmatprep.subr.bf16.mxu1 %v12675_v59  ;;  %v2109_v25 = vadd.f32 %v12527_v54, %v2108_v3  ;;  %v2238_v3 = vld [vmem:[%s16947_s9 + $0x38] sm:$0xff] }
 0x2be   : > { %9921 = vmatpush3.bf16.msra.mxu1 %v12515_v40 }
 0x2bf   : > { %v2220_v20 = vmax.f32 %v2109_v25, 0.0 }
 0x2c2   : > { %v2113_v50 = vpop.f32.mrb[112].mxu1 }
 0x2c3   : > { %v2114_v41 = vadd.f32 %v12527_v54, %v2113_v50  ;;  %v9525_v17 = vpop.f32.mrb[113].mxu1  ;;  %v2244_v50 = vld [vmem:[%s16947_s9 + $0x68] sm:$0xff] }
 0x2c5   : > { %v2221_v7 = vmax.f32 %v2114_v41, 0.0 }
 0x2c7   : > { %v12681_v15 = vpack.c.bf16 %v2221_v7, %v2220_v20  ;;  %v2243_v7 = vld [vmem:[%s16947_s9 + $0x60] sm:$0xff] }
 0x2c8   : > { %v2118_v33 = vpop.f32.mrb[114].mxu1 }
 0x2c9   : > { %v9528_v46 = vpop.f32.mrb[115].mxu1  ;;  %9923 = vmatprep.subr.bf16.mxu1 %v12681_v15  ;;  %v2119_v53 = vadd.f32 %v12527_v54, %v2118_v33 }
 0x2ca   : > { %9925 = vmatpush3.bf16.msra.mxu1 %v12532_v0 }
 0x2cb   : > { %v2222_v60 = vmax.f32 %v2119_v53, 0.0  ;;  %v2249_v53 = vld [vmem:[%s16947_s9 + $0x90] sm:$0xff] }
 0x2ce   : > { %v2123_v56 = vpop.f32.mrb[116].mxu1 }
 0x2cf   : > { %v2124_v61 = vadd.f32 %v12527_v54, %v2123_v56  ;;  %v9531_v38 = vpop.f32.mrb[117].mxu1 }
 0x2d1   : > { %v2223_v4 = vmax.f32 %v2124_v61, 0.0  ;;  %v2248_v61 = vld [vmem:[%s16947_s9 + $0x88] sm:$0xff] }
 0x2d3   : > { %v12687_v29 = vpack.c.bf16 %v2223_v4, %v2222_v60  ;;  %v2254_v60 = vld [vmem:[%s16947_s9 + $0xb8] sm:$0xff] }
 0x2d4   : > { %v2128_v13 = vpop.f32.mrb[118].mxu1 }
 0x2d5   : > { %v9534_v51 = vpop.f32.mrb[119].mxu1  ;;  %9927 = vmatprep.subr.bf16.mxu1 %v12687_v29  ;;  %v2129_v26 = vadd.f32 %v12527_v54, %v2128_v13  ;;  %v2253_v13 = vld [vmem:[%s16947_s9 + $0xb0] sm:$0xff] }
 0x2d6   : > { %9929 = vmatpush3.bf16.msra.mxu1 %v12542_v12 }
 0x2d7   : > { %v2224_v34 = vmax.f32 %v2129_v26, 0.0 }
 0x2da   : > { %v2133_v30 = vpop.f32.mrb[120].mxu1 }
 0x2db   : > { %v2134_v31 = vadd.f32 %v12527_v54, %v2133_v30  ;;  %v9537_v39 = vpop.f32.mrb[121].mxu1 }
 0x2dd   : > { %v2225_v58 = vmax.f32 %v2134_v31, 0.0  ;;  %v2259_v31 = vld [vmem:[%s16947_s9 + $0xe0] sm:$0xff] }
 0x2df   : > { %v12693_v42 = vpack.c.bf16 %v2225_v58, %v2224_v34  ;;  %v2258_v34 = vld [vmem:[%s16947_s9 + $0xd8] sm:$0xff] }
 0x2e0   : > { %v2138_v52 = vpop.f32.mrb[122].mxu1 }
 0x2e1   : > { %v9540_v32 = vpop.f32.mrb[123].mxu1  ;;  %9931 = vmatprep.subr.bf16.mxu1 %v12693_v42  ;;  %v2139_v48 = vadd.f32 %v12527_v54, %v2138_v52 }
 0x2e2   : > { %9933 = vmatpush3.bf16.msra.mxu1 %v12568_v62 }
 0x2e3   : > { %v2226_v25 = vmax.f32 %v2139_v48, 0.0 }
 0x2e5   : > { %2573 = vmatmul.mubr.f32.vlgmr.msra.gmra.mrb[164].mxu1 %v2233_v16  ;;  %v2264_v16 = vld [vmem:[%s16947_s9 + $0x108] sm:$0xff] }
 0x2e6   : > { %2577 = vmatprep.mubr.f32.mxu1 %v2239_v18  ;;  %v2143_v19 = vpop.f32.mrb[124].mxu1 }
 0x2e7   : > { %v2144_v41 = vadd.f32 %v12527_v54, %v2143_v19  ;;  %v9543_v17 = vpop.f32.mrb[125].mxu1  ;;  %v7806_v19 = vld [vmem:[%s16947_s9 + $0x2c8] sm:$0xff] }
 0x2e8   : > { %v7816_v17 = vld [vmem:[%s16947_s9 + $0x318] sm:$0xff] }
 0x2e9   : > { %2578 = vmatmul.mubr.f32.gmra.mrb[166].mxu1 %v2238_v3  ;;  %v2227_v20 = vmax.f32 %v2144_v41, 0.0  ;;  %v2263_v3 = vld [vmem:[%s16947_s9 + $0x100] sm:$0xff]  ;;  %v2274_v41 = vld [vmem:[%s16947_s9 + $0x158] sm:$0xff] }
 0x2ea   : > { %2582 = vmatprep.mubr.f32.mxu1 %v2244_v50  ;;  %v7811_v50 = vld [vmem:[%s16947_s9 + $0x2f0] sm:$0xff] }
 0x2eb   : > { %v12714_v33 = vpack.c.bf16 %v2227_v20, %v2226_v25  ;;  %v2268_v25 = vld [vmem:[%s16947_s9 + $0x128] sm:$0xff]  ;;  %v2273_v20 = vld [vmem:[%s16947_s9 + $0x150] sm:$0xff] }
 0x2ec   : > { %v2148_v46 = vpop.f32.mrb[126].mxu1 }
 0x2ed   : > { %v9546_v56 = vpop.f32.mrb[127].mxu1  ;;  %2583 = vmatmul.mubr.f32.gmra.mrb[168].mxu1 %v2243_v7  ;;  %9935 = vmatprep.subr.bf16.mxu1 %v12714_v33  ;;  %v2149_v38 = vadd.f32 %v12527_v54, %v2148_v46  ;;  %v7821_v7 = vld [vmem:[%s16947_s9 + $0x340] sm:$0xff] }
 0x2ee   : > { %2587 = vmatprep.mubr.f32.mxu1 %v2249_v53  ;;  %10007 = vmatprep.subr.bf16.mxu0 %v12714_v33  ;;  %v2279_v46 = vld [vmem:[%s16947_s9 + $0x180] sm:$0xff]  ;;  %v7826_v53 = vld [vmem:[%s16947_s9 + $0x368] sm:$0xff]  ;;  %v2278_v56 = vld [vmem:[%s16947_s9 + $0x178] sm:$0xff] }
 0x2ef   : > { %9937 = vmatpush3.bf16.msra.mxu1 %v12714_v33  ;;  %10009 = vmatpush3.bf16.msra.mxu0 %v12714_v33  ;;  %v2228_v51 = vmax.f32 %v2149_v38, 0.0  ;;  %v2284_v38 = vld [vmem:[%s16947_s9 + $0x1a8] sm:$0xff] }
 0x2f1   : > { %2588 = vmatmul.mubr.f32.gmra.mrb[170].mxu1 %v2248_v61  ;;  %v7831_v61 = vld [vmem:[%s16947_s9 + $0x390] sm:$0xff] }
 0x2f2   : > { %v2153_v4 = vpop.f32.mrb[128].mxu1  ;;  %2592 = vmatprep.mubr.f32.mxu1 %v2254_v60  ;;  %v7836_v60 = vld [vmem:[%s16947_s9 + $0x3b8] sm:$0xff] }
 0x2f3   : > { %v2154_v26 = vadd.f32 %v12527_v54, %v2153_v4  ;;  %v9549_v30 = vpop.f32.mrb[129].mxu1  ;;  %v2283_v4 = vld [vmem:[%s16947_s9 + $0x1a0] sm:$0xff] }
 0x2f4   : > { %v2288_v30 = vld [vmem:[%s16947_s9 + $0x1c8] sm:$0xff] }
 0x2f5   : > { %v2229_v39 = vmax.f32 %v2154_v26, 0.0  ;;  %2593 = vmatmul.mubr.f32.gmra.mrb[172].mxu1 %v2253_v13  ;;  %v7841_v13 = vld [vmem:[%s16947_s9 + $0x3e0] sm:$0xff]  ;;  %v7846_v26 = vld [vmem:[%s16947_s9 + $0x408] sm:$0xff] }
 0x2f6   : > { %2597 = vmatprep.mubr.f32.mxu1 %v2259_v31  ;;  %v7851_v31 = vld [vmem:[%s16947_s9 + $0x430] sm:$0xff] }
 0x2f7   : > { %v12740_v58 = vpack.c.bf16 %v2229_v39, %v2228_v51  ;;  %v2289_v51 = vld [vmem:[%s16947_s9 + $0x1d0] sm:$0xff]  ;;  %v2294_v39 = vld [vmem:[%s16947_s9 + $0x1f8] sm:$0xff] }
 0x2f8   : > { %v2158_v52 = vpop.f32.mrb[130].mxu1 }
 0x2f9   : > { %v2159_v32 = vadd.f32 %v12527_v54, %v2158_v52  ;;  %v9552_v18 = vpop.f32.mrb[131].mxu1  ;;  %2598 = vmatmul.mubr.f32.gmra.mrb[174].mxu1 %v2258_v34  ;;  %9939 = vmatprep.subr.bf16.mxu1 %v12740_v58  ;;  %v2269_v54 = vld [vmem:[%s16947_s9 + $0x130] sm:$0xff]  ;;  %v7856_v34 = vld [vmem:[%s16947_s9 + $0x458] sm:$0xff] }
 0x2fa   : > { %10011 = vmatprep.subr.bf16.mxu0 %v12740_v58  ;;  %9941 = vmatpush3.bf16.msra.mxu1 %v12740_v58  ;;  %v2293_v52 = vld [vmem:[%s16947_s9 + $0x1f0] sm:$0xff]  ;;  %v7866_v18 = vld [vmem:[%s16947_s9 + $0x4a8] sm:$0xff] }
 0x2fb   : > { %v12747_v48 = vmax.f32 %v2159_v32, 0.0  ;;  %10013 = vmatpush3.bf16.msra.mxu0 %v12740_v58  ;;  %2602 = vmatprep.mubr.f32.mxu1 %v2264_v16  ;;  %v7861_v32 = vld [vmem:[%s16947_s9 + $0x480] sm:$0xff] }
 0x2fc   : > { %v2299_v16 = vld [vmem:[%s16947_s9 + $0x220] sm:$0xff] }
 0x2fd   : > { %9561 = vmatprep.subr.msk.mxu1 %vm553_vm1, %v12747_v48  ;;  %9595 = vmatprep.subr.msk.mxu0 %vm553_vm1, %v12747_v48 }
 0x2fe   : > { %2603 = vmatmul.mubr.f32.gmra.mrb[176].mxu1 %v2263_v3  ;;  %v2298_v3 = vld [vmem:[%s16947_s9 + $0x218] sm:$0xff] }
 0x2ff   : > { %9562 = vmatpush3.msk.msra.mxu1 %vm553_vm1, %v12747_v48  ;;  %2607 = vmatprep.mubr.f32.mxu1 %v2269_v54  ;;  %v7871_v54 = vld [vmem:[%s16947_s9 + $0x4d0] sm:$0xff] }
 0x300   : > { %9596 = vmatpush3.msk.msra.mxu0 %vm553_vm1, %v12747_v48  ;;  %9943 = vmatprep.subr.bf16.mxu1 %v12327_v44 }
 0x301   : > { %9598 = vmatmul.mubr.msk.f32.vlgmr.msra.gmra.mrb[6].mxu0 %vm2311_vm6, %v7806_v19  ;;  %10015 = vmatprep.subr.bf16.mxu0 %v12327_v44  ;;  %v2304_v19 = vld [vmem:[%s16947_s9 + $0x248] sm:$0xff] }
 0x302   : > { %10017 = vmatpush3.bf16.msra.mxu0 %v12506_v35  ;;  %2608 = vmatmul.mubr.f32.gmra.mrb[178].mxu1 %v2268_v25  ;;  %v7876_v25 = vld [vmem:[%s16947_s9 + $0x4f8] sm:$0x1] }
 0x303   : > { %10019 = vmatprep.subr.bf16.mxu0 %v12346_v49  ;;  %9600 = vmatprep.mubr.msk.f32.mxu0 %vm2311_vm6, %v7811_v50  ;;  %v2303_v50 = vld [vmem:[%s16947_s9 + $0x240] sm:$0xff] }
 0x304   : > { %2612 = vmatprep.mubr.f32.mxu1 %v2274_v41  ;;  %v7895_v41 = vld [vmem:[%s16947_s9 + $0x508] sm:$0xff] }
 0x305   : > { %9601 = vmatmul.mubr.msk.f32.gmra.mrb[8].mxu0 %vm2311_vm6, %v7816_v17  ;;  %v2309_v17 = vld [vmem:[%s16947_s9 + $0x270] sm:$0x1] }
 0x306   : > { %10021 = vmatpush3.bf16.msra.mxu0 %v12517_v21  ;;  %2613 = vmatmul.mubr.f32.gmra.mrb[180].mxu1 %v2273_v20  ;;  %v7894_v20 = vld [vmem:[%s16947_s9 + $0x500] sm:$0xff] }
 0x307   : > { %10023 = vmatprep.subr.bf16.mxu0 %v12364_v10  ;;  %9603 = vmatprep.mubr.msk.f32.mxu0 %vm2311_vm6, %v7821_v7  ;;  %v2308_v7 = vld [vmem:[%s16947_s9 + $0x268] sm:$0x1] }
 0x308   : > { %2617 = vmatprep.mubr.f32.mxu1 %v2279_v46  ;;  %v7900_v46 = vld [vmem:[%s16947_s9 + $0x530] sm:$0xff] }
 0x309   : > { %9604 = vmatmul.mubr.msk.f32.gmra.mrb[10].mxu0 %vm2311_vm6, %v7826_v53  ;;  %v2235_v53 = vld [vmem:[%s16947_s9 + $0x20] sm:$0xff] }
 0x30a   : > { %10025 = vmatpush3.bf16.msra.mxu0 %v12141_v37  ;;  %2618 = vmatmul.mubr.f32.gmra.mrb[182].mxu1 %v2278_v56  ;;  %v7899_v56 = vld [vmem:[%s16947_s9 + $0x528] sm:$0xff] }
 0x30b   : > { %10027 = vmatprep.subr.bf16.mxu0 %v12382_v27  ;;  %9606 = vmatprep.mubr.msk.f32.mxu0 %vm2311_vm6, %v7831_v61  ;;  %v2240_v61 = vld [vmem:[%s16947_s9 + $0x48] sm:$0xff] }
 0x30c   : > { %2622 = vmatprep.mubr.f32.mxu1 %v2284_v38  ;;  %v7905_v38 = vld [vmem:[%s16947_s9 + $0x558] sm:$0xff] }
 0x30d   : > { %9607 = vmatmul.mubr.msk.f32.gmra.mrb[12].mxu0 %vm2311_vm6, %v7836_v60  ;;  %v2245_v60 = vld [vmem:[%s16947_s9 + $0x70] sm:$0xff] }
 0x30e   : > { %10029 = vmatpush3.bf16.msra.mxu0 %v12172_v57  ;;  %2623 = vmatmul.mubr.f32.gmra.mrb[184].mxu1 %v2283_v4  ;;  %v7904_v4 = vld [vmem:[%s16947_s9 + $0x550] sm:$0xff] }
 0x30f   : > { %10031 = vmatprep.subr.bf16.mxu0 %v12400_v45  ;;  %9609 = vmatprep.mubr.msk.f32.mxu0 %vm2311_vm6, %v7841_v13  ;;  %v2250_v13 = vld [vmem:[%s16947_s9 + $0x98] sm:$0xff] }
 0x310   : > { %2627 = vmatprep.mubr.f32.mxu1 %v2289_v51  ;;  %v7910_v51 = vld [vmem:[%s16947_s9 + $0x580] sm:$0xff] }
 0x311   : > { %9610 = vmatmul.mubr.msk.f32.gmra.mrb[14].mxu0 %vm2311_vm6, %v7846_v26  ;;  %v2255_v26 = vld [vmem:[%s16947_s9 + $0xc0] sm:$0xff] }
 0x312   : > { %10033 = vmatpush3.bf16.msra.mxu0 %v12208_v11  ;;  %2628 = vmatmul.mubr.f32.gmra.mrb[186].mxu1 %v2288_v30  ;;  %v7909_v30 = vld [vmem:[%s16947_s9 + $0x578] sm:$0xff] }
 0x313   : > { %10035 = vmatprep.subr.bf16.mxu0 %v12418_v24  ;;  %9612 = vmatprep.mubr.msk.f32.mxu0 %vm2311_vm6, %v7851_v31  ;;  %v2260_v31 = vld [vmem:[%s16947_s9 + $0xe8] sm:$0xff] }
 0x314   : > { %2632 = vmatprep.mubr.f32.mxu1 %v2294_v39  ;;  %v7915_v39 = vld [vmem:[%s16947_s9 + $0x5a8] sm:$0xff] }
 0x315   : > { %9613 = vmatmul.mubr.msk.f32.gmra.mrb[16].mxu0 %vm2311_vm6, %v7856_v34  ;;  %v2265_v34 = vld [vmem:[%s16947_s9 + $0x110] sm:$0xff] }
 0x316   : > { %10037 = vmatpush3.bf16.msra.mxu0 %v12246_v22  ;;  %2633 = vmatmul.mubr.f32.gmra.mrb[188].mxu1 %v2293_v52  ;;  %v7914_v52 = vld [vmem:[%s16947_s9 + $0x5a0] sm:$0xff] }
 0x317   : > { %10039 = vmatprep.subr.bf16.mxu0 %v12436_v1  ;;  %9615 = vmatprep.mubr.msk.f32.mxu0 %vm2311_vm6, %v7861_v32  ;;  %v2270_v32 = vld [vmem:[%s16947_s9 + $0x138] sm:$0xff] }
 0x318   : > { %2637 = vmatprep.mubr.f32.mxu1 %v2299_v16  ;;  %v7920_v16 = vld [vmem:[%s16947_s9 + $0x5d0] sm:$0xff] }
 0x319   : > { %9616 = vmatmul.mubr.msk.f32.gmra.mrb[18].mxu0 %vm2311_vm6, %v7866_v18  ;;  %v2275_v18 = vld [vmem:[%s16947_s9 + $0x160] sm:$0xff] }
 0x31a   : > { %10041 = vmatpush3.bf16.msra.mxu0 %v12278_v14  ;;  %2638 = vmatmul.mubr.f32.gmra.mrb[190].mxu1 %v2298_v3  ;;  %v7919_v3 = vld [vmem:[%s16947_s9 + $0x5c8] sm:$0xff] }
 0x31b   : > { %10043 = vmatprep.subr.bf16.mxu0 %v12454_v28  ;;  %9618 = vmatprep.mubr.msk.f32.mxu0 %vm2311_vm6, %v7871_v54  ;;  %v2280_v54 = vld [vmem:[%s16947_s9 + $0x188] sm:$0xff] }
 0x31c   : > { %2642 = vmatprep.mubr.f32.mxu1 %v2304_v19  ;;  %v7925_v19 = vld [vmem:[%s16947_s9 + $0x5f8] sm:$0xff] }
 0x31d   : > { %9619 = vmatmul.mubr.msk.f32.gmra.mrb[20].mxu0 %vm2311_vm6, %v7876_v25  ;;  %v2285_v25 = vld [vmem:[%s16947_s9 + $0x1b0] sm:$0xff] }
 0x31e   : > { %10045 = vmatpush3.bf16.msra.mxu0 %v12305_v6  ;;  %2643 = vmatmul.mubr.f32.gmra.mrb[192].mxu1 %v2303_v50  ;;  %v7924_v50 = vld [vmem:[%s16947_s9 + $0x5f0] sm:$0xff] }
 0x31f   : > { %3555 = vmatprep.mubr.f32.mxu0 %v7895_v41  ;;  %2647 = vmatprep.mubr.f32.mxu1 %v2309_v17  ;;  %v2290_v41 = vld [vmem:[%s16947_s9 + $0x1d8] sm:$0xff]  ;;  %v7930_v17 = vld [vmem:[%s16947_s9 + $0x620] sm:$0xff] }
 0x320   : > { %10079 = vmatprep.subr.bf16.mxu0 %v12714_v33 }
 0x321   : > { %3556 = vmatmul.mubr.f32.vlgmr.msra.gmra.mrb[22].mxu0 %v7894_v20  ;;  %v2295_v20 = vld [vmem:[%s16947_s9 + $0x200] sm:$0xff] }
 0x322   : > { %2648 = vmatmul.mubr.f32.gmra.mrb[194].mxu1 %v2308_v7  ;;  %3560 = vmatprep.mubr.f32.mxu0 %v7900_v46  ;;  %v7929_v7 = vld [vmem:[%s16947_s9 + $0x618] sm:$0xff]  ;;  %v2300_v46 = vld [vmem:[%s16947_s9 + $0x228] sm:$0xff] }
 0x323   : > { %9563 = vmatprep.mubr.msk.f32.mxu1 %vm2311_vm6, %v2235_v53  ;;  %10081 = vmatpush3.bf16.msra.mxu0 %v12714_v33  ;;  %v7935_v53 = vld [vmem:[%s16947_s9 + $0x648] sm:$0xff] }
 0x324   : > { %10083 = vmatprep.subr.bf16.mxu0 %v12740_v58 }
 0x325   : > { %3561 = vmatmul.mubr.f32.gmra.mrb[24].mxu0 %v7899_v56  ;;  %v2305_v56 = vld [vmem:[%s16947_s9 + $0x250] sm:$0xff] }
 0x326   : > { %9564 = vmatmul.mubr.msk.f32.vlgmr.msra.gmra.mrb[196].mxu1 %vm2311_vm6, %v2240_v61  ;;  %3565 = vmatprep.mubr.f32.mxu0 %v7905_v38  ;;  %v7934_v61 = vld [vmem:[%s16947_s9 + $0x640] sm:$0xff]  ;;  %v2310_v38 = vld [vmem:[%s16947_s9 + $0x278] sm:$0x1] }
 0x327   : > { %9945 = vmatpush3.bf16.msra.mxu1 %v12506_v35  ;;  %9566 = vmatprep.mubr.msk.f32.mxu1 %vm2311_vm6, %v2245_v60  ;;  %v7940_v60 = vld [vmem:[%s16947_s9 + $0x670] sm:$0xff] }
 0x328   : > { %9947 = vmatprep.subr.bf16.mxu1 %v12346_v49  ;;  %10085 = vmatpush3.bf16.msra.mxu0 %v12740_v58 }
 0x329   : > { %3566 = vmatmul.mubr.f32.gmra.mrb[26].mxu0 %v7904_v4  ;;  %9629 = vmatprep.subr.msk.mxu0 %vm553_vm1, %v12747_v48  ;;  %v7798_v4 = vld [vmem:[%s16947_s9 + $0x288] sm:$0xff] }
 0x32a   : > { %9567 = vmatmul.mubr.msk.f32.gmra.mrb[198].mxu1 %vm2311_vm6, %v2250_v13  ;;  %3570 = vmatprep.mubr.f32.mxu0 %v7910_v51  ;;  %v7939_v13 = vld [vmem:[%s16947_s9 + $0x668] sm:$0xff]  ;;  %v7797_v51 = vld [vmem:[%s16947_s9 + $0x280] sm:$0xff] }
 0x32b   : > { %9949 = vmatpush3.bf16.msra.mxu1 %v12517_v21  ;;  %9569 = vmatprep.mubr.msk.f32.mxu1 %vm2311_vm6, %v2255_v26  ;;  %v7945_v26 = vld [vmem:[%s16947_s9 + $0x698] sm:$0xff] }
 0x32c   : > { %9951 = vmatprep.subr.bf16.mxu1 %v12364_v10  ;;  %9630 = vmatpush3.msk.msra.mxu0 %vm553_vm1, %v12747_v48 }
 0x32d   : > { %3571 = vmatmul.mubr.f32.gmra.mrb[28].mxu0 %v7909_v30  ;;  %10119 = vmatprep.subr.bf16.mxu0 %v12591_v47  ;;  %v7803_v30 = vld [vmem:[%s16947_s9 + $0x2b0] sm:$0xff] }
 0x32e   : > { %9570 = vmatmul.mubr.msk.f32.gmra.mrb[200].mxu1 %vm2311_vm6, %v2260_v31  ;;  %3575 = vmatprep.mubr.f32.mxu0 %v7915_v39  ;;  %v7944_v31 = vld [vmem:[%s16947_s9 + $0x690] sm:$0xff]  ;;  %v7802_v39 = vld [vmem:[%s16947_s9 + $0x2a8] sm:$0xff] }
 0x32f   : > { %9953 = vmatpush3.bf16.msra.mxu1 %v12141_v37  ;;  %9572 = vmatprep.mubr.msk.f32.mxu1 %vm2311_vm6, %v2265_v34  ;;  %v7950_v34 = vld [vmem:[%s16947_s9 + $0x6c0] sm:$0xff] }
 0x330   : > { %9955 = vmatprep.subr.bf16.mxu1 %v12382_v27 }
 0x331   : > { %3576 = vmatmul.mubr.f32.gmra.mrb[30].mxu0 %v7914_v52  ;;  %v7808_v52 = vld [vmem:[%s16947_s9 + $0x2d8] sm:$0xff] }
 0x332   : > { %9573 = vmatmul.mubr.msk.f32.gmra.mrb[202].mxu1 %vm2311_vm6, %v2270_v32  ;;  %3580 = vmatprep.mubr.f32.mxu0 %v7920_v16  ;;  %v7949_v32 = vld [vmem:[%s16947_s9 + $0x6b8] sm:$0xff]  ;;  %v7807_v16 = vld [vmem:[%s16947_s9 + $0x2d0] sm:$0xff] }
 0x333   : > { %9957 = vmatpush3.bf16.msra.mxu1 %v12172_v57  ;;  %9575 = vmatprep.mubr.msk.f32.mxu1 %vm2311_vm6, %v2275_v18  ;;  %v7955_v18 = vld [vmem:[%s16947_s9 + $0x6e8] sm:$0xff] }
 0x334   : > { %9959 = vmatprep.subr.bf16.mxu1 %v12400_v45 }
 0x335   : > { %3581 = vmatmul.mubr.f32.gmra.mrb[32].mxu0 %v7919_v3  ;;  %v7813_v3 = vld [vmem:[%s16947_s9 + $0x300] sm:$0xff] }
 0x336   : > { %9576 = vmatmul.mubr.msk.f32.gmra.mrb[204].mxu1 %vm2311_vm6, %v2280_v54  ;;  %3585 = vmatprep.mubr.f32.mxu0 %v7925_v19 }
 0x337   : > { %9961 = vmatpush3.bf16.msra.mxu1 %v12208_v11  ;;  %9578 = vmatprep.mubr.msk.f32.mxu1 %vm2311_vm6, %v2285_v25  ;;  %v7954_v25 = vld [vmem:[%s16947_s9 + $0x6e0] sm:$0xff] }
 0x338   : > { %9963 = vmatprep.subr.bf16.mxu1 %v12418_v24 }
 0x339   : > { %3586 = vmatmul.mubr.f32.gmra.mrb[34].mxu0 %v7924_v50 }
 0x33a   : > { %9579 = vmatmul.mubr.msk.f32.gmra.mrb[206].mxu1 %vm2311_vm6, %v2290_v41  ;;  %3590 = vmatprep.mubr.f32.mxu0 %v7930_v17  ;;  %v7812_v41 = vld [vmem:[%s16947_s9 + $0x2f8] sm:$0xff]  ;;  %v7960_v17 = vld [vmem:[%s16947_s9 + $0x710] sm:$0xff] }
 0x33b   : > { %9965 = vmatpush3.bf16.msra.mxu1 %v12246_v22  ;;  %9581 = vmatprep.mubr.msk.f32.mxu1 %vm2311_vm6, %v2295_v20  ;;  %v7818_v20 = vld [vmem:[%s16947_s9 + $0x328] sm:$0xff] }
 0x33c   : > { %9967 = vmatprep.subr.bf16.mxu1 %v12436_v1 }
 0x33d   : > { %3591 = vmatmul.mubr.f32.gmra.mrb[36].mxu0 %v7929_v7 }
 0x33e   : > { %9582 = vmatmul.mubr.msk.f32.gmra.mrb[208].mxu1 %vm2311_vm6, %v2300_v46  ;;  %3595 = vmatprep.mubr.f32.mxu0 %v7935_v53  ;;  %v7959_v53 = vld [vmem:[%s16947_s9 + $0x708] sm:$0xff] }
 0x33f   : > { %9969 = vmatpush3.bf16.msra.mxu1 %v12278_v14  ;;  %9584 = vmatprep.mubr.msk.f32.mxu1 %vm2311_vm6, %v2305_v56 }
 0x340   : > { %9971 = vmatprep.subr.bf16.mxu1 %v12454_v28 }
 0x341   : > { %3596 = vmatmul.mubr.f32.gmra.mrb[38].mxu0 %v7934_v61  ;;  %v7817_v61 = vld [vmem:[%s16947_s9 + $0x320] sm:$0xff] }
 0x342   : > { %9585 = vmatmul.mubr.msk.f32.gmra.mrb[210].mxu1 %vm2311_vm6, %v2310_v38  ;;  %3600 = vmatprep.mubr.f32.mxu0 %v7940_v60  ;;  %v7965_v38 = vld [vmem:[%s16947_s9 + $0x738] sm:$0xff]  ;;  %v7823_v60 = vld [vmem:[%s16947_s9 + $0x350] sm:$0xff] }
 0x343   : > { %9973 = vmatpush3.bf16.msra.mxu1 %v12305_v6  ;;  %2991 = vmatprep.mubr.f32.mxu1 %v7798_v4 }
 0x344   : > { %9975 = vmatprep.subr.bf16.mxu1 %v12591_v47 }
 0x345   : > { %3601 = vmatmul.mubr.f32.gmra.mrb[40].mxu0 %v7939_v13 }
 0x346   : > { %2992 = vmatmul.mubr.f32.vlgmr.msra.gmra.mrb[212].mxu1 %v7797_v51  ;;  %3605 = vmatprep.mubr.f32.mxu0 %v7945_v26  ;;  %v7964_v51 = vld [vmem:[%s16947_s9 + $0x730] sm:$0xff] }
 0x347   : > { %9977 = vmatpush3.bf16.msra.mxu1 %v12472_v23  ;;  %2996 = vmatprep.mubr.f32.mxu1 %v7803_v30  ;;  %v7822_v30 = vld [vmem:[%s16947_s9 + $0x348] sm:$0xff] }
 0x348   : > { %9979 = vmatprep.subr.bf16.mxu1 %v12615_v63 }
 0x349   : > { %3606 = vmatmul.mubr.f32.gmra.mrb[42].mxu0 %v7944_v31  ;;  %v7970_v31 = vld [vmem:[%s16947_s9 + $0x760] sm:$0x1] }
 0x34a   : > { %2997 = vmatmul.mubr.f32.gmra.mrb[214].mxu1 %v7802_v39  ;;  %3610 = vmatprep.mubr.f32.mxu0 %v7950_v34  ;;  %v7828_v39 = vld [vmem:[%s16947_s9 + $0x378] sm:$0xff] }
 0x34b   : > { %9981 = vmatpush3.bf16.msra.mxu1 %v12493_v55  ;;  %3001 = vmatprep.mubr.f32.mxu1 %v7808_v52  ;;  %v8242_v54 = vpop.f32.mrb[132].mxu1 }
 0x34c   : > { %9983 = vmatprep.subr.bf16.mxu1 %v12639_v5  ;;  %v8243_v19 = vpop.f32.mrb[133].mxu1 }
 0x34d   : > { %3611 = vmatmul.mubr.f32.gmra.mrb[44].mxu0 %v7949_v32  ;;  %v13086_v50 = vadd.f32 %v8243_v19, %v8242_v54  ;;  %v7969_v32 = vld [vmem:[%s16947_s9 + $0x758] sm:$0x1]  ;;  %v7833_v54 = vld [vmem:[%s16947_s9 + $0x3a0] sm:$0xff] }
 0x34e   : > { %3002 = vmatmul.mubr.f32.gmra.mrb[216].mxu1 %v7807_v16  ;;  %3615 = vmatprep.mubr.f32.mxu0 %v7955_v18  ;;  %v7827_v18 = vld [vmem:[%s16947_s9 + $0x370] sm:$0xff] }
 0x34f   : > { %9985 = vmatpush3.bf16.msra.mxu1 %v12498_v8  ;;  %3006 = vmatprep.mubr.f32.mxu1 %v7813_v3  ;;  %v8245_v7 = vpop.f32.mrb[134].mxu1  ;;  %v7898_v3 = vld [vmem:[%s16947_s9 + $0x520] sm:$0xff] }
 0x350   : > { %9987 = vmatprep.subr.bf16.mxu1 %v12663_v43  ;;  %v8246_v46 = vpop.f32.mrb[135].mxu1 }
 0x351   : > { %3616 = vmatmul.mubr.f32.gmra.mrb[46].mxu0 %v7954_v25  ;;  %v13102_v56 = vadd.f32 %v8246_v46, %v8245_v7  ;;  %v7838_v46 = vld [vmem:[%s16947_s9 + $0x3c8] sm:$0xff] }
 0x352   : > { %3007 = vmatmul.mubr.f32.gmra.mrb[218].mxu1 %v7812_v41  ;;  %3620 = vmatprep.mubr.f32.mxu0 %v7960_v17  ;;  %v7903_v41 = vld [vmem:[%s16947_s9 + $0x548] sm:$0xff] }
 0x353   : > { %9989 = vmatpush3.bf16.msra.mxu1 %v12502_v36  ;;  %3011 = vmatprep.mubr.f32.mxu1 %v7818_v20  ;;  %v8248_v4 = vpop.f32.mrb[136].mxu1  ;;  %v7832_v20 = vld [vmem:[%s16947_s9 + $0x398] sm:$0xff] }
 0x354   : > { %9991 = vmatprep.subr.bf16.mxu1 %v12675_v59  ;;  %v8249_v13 = vpop.f32.mrb[137].mxu1 }
 0x355   : > { %3621 = vmatmul.mubr.f32.gmra.mrb[48].mxu0 %v7959_v53  ;;  %v13118_v26 = vadd.f32 %v8249_v13, %v8248_v4  ;;  %v7843_v4 = vld [vmem:[%s16947_s9 + $0x3f0] sm:$0xff] }
 0x356   : > { %3012 = vmatmul.mubr.f32.gmra.mrb[220].mxu1 %v7817_v61  ;;  %3625 = vmatprep.mubr.f32.mxu0 %v7965_v38  ;;  %v7908_v61 = vld [vmem:[%s16947_s9 + $0x570] sm:$0xff] }
 0x357   : > { %9993 = vmatpush3.bf16.msra.mxu1 %v12515_v40  ;;  %3016 = vmatprep.mubr.f32.mxu1 %v7823_v60  ;;  %v8251_v34 = vpop.f32.mrb[138].mxu1  ;;  %v7837_v60 = vld [vmem:[%s16947_s9 + $0x3c0] sm:$0xff] }
 0x358   : > { %9995 = vmatprep.subr.bf16.mxu1 %v12681_v15  ;;  %v8252_v52 = vpop.f32.mrb[139].mxu1 }
 0x359   : > { %3626 = vmatmul.mubr.f32.gmra.mrb[50].mxu0 %v7964_v51  ;;  %v13134_v16 = vadd.f32 %v8252_v52, %v8251_v34  ;;  %v7913_v51 = vld [vmem:[%s16947_s9 + $0x598] sm:$0xff] }
 0x35a   : > { %3017 = vmatmul.mubr.f32.gmra.mrb[222].mxu1 %v7822_v30  ;;  %3630 = vmatprep.mubr.f32.mxu0 %v7970_v31  ;;  %v7848_v34 = vld [vmem:[%s16947_s9 + $0x418] sm:$0xff] }
 0x35b   : > { %9997 = vmatpush3.bf16.msra.mxu1 %v12532_v0  ;;  %3021 = vmatprep.mubr.f32.mxu1 %v7828_v39  ;;  %v8254_v19 = vpop.f32.mrb[140].mxu1  ;;  %v7842_v39 = vld [vmem:[%s16947_s9 + $0x3e8] sm:$0xff] }
 0x35c   : > { %9999 = vmatprep.subr.bf16.mxu1 %v12687_v29  ;;  %v8255_v25 = vpop.f32.mrb[141].mxu1 }
 0x35d   : > { %3631 = vmatmul.mubr.f32.gmra.mrb[52].mxu0 %v7969_v32  ;;  %v13151_v17 = vadd.f32 %v8255_v25, %v8254_v19  ;;  %v7847_v19 = vld [vmem:[%s16947_s9 + $0x410] sm:$0xff]  ;;  %v7853_v25 = vld [vmem:[%s16947_s9 + $0x440] sm:$0xff] }
 0x35e   : > { %3022 = vmatmul.mubr.f32.gmra.mrb[224].mxu1 %v7827_v18  ;;  %9631 = vmatprep.mubr.msk.f32.mxu0 %vm2311_vm6, %v7898_v3  ;;  %v7923_v18 = vld [vmem:[%s16947_s9 + $0x5e8] sm:$0xff] }
 0x35f   : > { %10001 = vmatpush3.bf16.msra.mxu1 %v12542_v12  ;;  %3026 = vmatprep.mubr.f32.mxu1 %v7833_v54  ;;  %v8257_v7 = vpop.f32.mrb[142].mxu1  ;;  %v7928_v54 = vld [vmem:[%s16947_s9 + $0x610] sm:$0xff] }
 0x360   : > { %10003 = vmatprep.subr.bf16.mxu1 %v12693_v42  ;;  %v8258_v53 = vpop.f32.mrb[143].mxu1 }
 0x361   : > { %9632 = vmatmul.mubr.msk.f32.vlgmr.msra.gmra.mrb[54].mxu0 %vm2311_vm6, %v7903_v41  ;;  %v13166_v38 = vadd.f32 %v8258_v53, %v8257_v7  ;;  %v7933_v7 = vld [vmem:[%s16947_s9 + $0x638] sm:$0xff]  ;;  %v7938_v53 = vld [vmem:[%s16947_s9 + $0x660] sm:$0xff] }
 0x362   : > { %10121 = vmatpush3.bf16.msra.mxu0 %v12472_v23  ;;  %3027 = vmatmul.mubr.f32.gmra.mrb[226].mxu1 %v7832_v20 }
 0x363   : > { %10123 = vmatprep.subr.bf16.mxu0 %v12615_v63  ;;  %10005 = vmatpush3.bf16.msra.mxu1 %v12568_v62  ;;  %v8260_v13 = vpop.f32.mrb[144].mxu1 }
 0x364   : > { %10047 = vmatprep.subr.bf16.mxu1 %v12591_v47  ;;  %3031 = vmatprep.mubr.f32.mxu1 %v7838_v46  ;;  %v8261_v30 = vpop.f32.mrb[145].mxu1  ;;  %v7918_v47 = vld [vmem:[%s16947_s9 + $0x5c0] sm:$0xff] }
 0x365   : > { %9634 = vmatprep.mubr.msk.f32.mxu0 %vm2311_vm6, %v7908_v61  ;;  %v13182_v31 = vadd.f32 %v8261_v30, %v8260_v13  ;;  %v7852_v61 = vld [vmem:[%s16947_s9 + $0x438] sm:$0xff] }
 0x366   : > { %10125 = vmatpush3.bf16.msra.mxu0 %v12493_v55  ;;  %3032 = vmatmul.mubr.f32.gmra.mrb[228].mxu1 %v7837_v60  ;;  %v7858_v60 = vld [vmem:[%s16947_s9 + $0x468] sm:$0xff] }
 0x367   : > { %10127 = vmatprep.subr.bf16.mxu0 %v12639_v5  ;;  %3036 = vmatprep.mubr.f32.mxu1 %v7843_v4  ;;  %v8263_v52 = vpop.f32.mrb[146].mxu1 }
 0x368   : > { %9635 = vmatmul.mubr.msk.f32.gmra.mrb[56].mxu0 %vm2311_vm6, %v7913_v51  ;;  %v8264_v32 = vpop.f32.mrb[147].mxu1  ;;  %v7943_v51 = vld [vmem:[%s16947_s9 + $0x688] sm:$0xff] }
 0x369   : > { %9637 = vmatprep.mubr.msk.f32.mxu0 %vm2311_vm6, %v7918_v47  ;;  %v13200_v3 = vadd.f32 %v8264_v32, %v8263_v52  ;;  %v7857_v47 = vld [vmem:[%s16947_s9 + $0x460] sm:$0xff] }
 0x36a   : > { %10129 = vmatpush3.bf16.msra.mxu0 %v12498_v8  ;;  %3037 = vmatmul.mubr.f32.gmra.mrb[230].mxu1 %v7842_v39  ;;  %v7948_v39 = vld [vmem:[%s16947_s9 + $0x6b0] sm:$0xff] }
 0x36b   : > { %10131 = vmatprep.subr.bf16.mxu0 %v12663_v43  ;;  %3041 = vmatprep.mubr.f32.mxu1 %v7848_v34  ;;  %v8266_v41 = vpop.f32.mrb[148].mxu1  ;;  %v7863_v34 = vld [vmem:[%s16947_s9 + $0x490] sm:$0xff] }
 0x36c   : > { %9638 = vmatmul.mubr.msk.f32.gmra.mrb[58].mxu0 %vm2311_vm6, %v7923_v18  ;;  %v8267_v20 = vpop.f32.mrb[149].mxu1  ;;  %v7953_v18 = vld [vmem:[%s16947_s9 + $0x6d8] sm:$0xff] }
 0x36d   : > { %9640 = vmatprep.mubr.msk.f32.mxu0 %vm2311_vm6, %v7928_v54  ;;  %v13218_v46 = vadd.f32 %v8267_v20, %v8266_v41 }
 0x36e   : > { %10133 = vmatpush3.bf16.msra.mxu0 %v12502_v36  ;;  %3042 = vmatmul.mubr.f32.gmra.mrb[232].mxu1 %v7847_v19  ;;  %v7862_v19 = vld [vmem:[%s16947_s9 + $0x488] sm:$0xff] }
 0x36f   : > { %10135 = vmatprep.subr.bf16.mxu0 %v12675_v59  ;;  %3046 = vmatprep.mubr.f32.mxu1 %v7853_v25  ;;  %v8269_v4 = vpop.f32.mrb[150].mxu1  ;;  %v7868_v25 = vld [vmem:[%s16947_s9 + $0x4b8] sm:$0xff] }
 0x370   : > { %9641 = vmatmul.mubr.msk.f32.gmra.mrb[60].mxu0 %vm2311_vm6, %v7933_v7  ;;  %v8270_v13 = vpop.f32.mrb[151].mxu1 }
 0x371   : > { %9643 = vmatprep.mubr.msk.f32.mxu0 %vm2311_vm6, %v7938_v53  ;;  %v13236_v30 = vadd.f32 %v8270_v13, %v8269_v4  ;;  %v7867_v53 = vld [vmem:[%s16947_s9 + $0x4b0] sm:$0xff]  ;;  %v7963_v13 = vld [vmem:[%s16947_s9 + $0x728] sm:$0xff] }
 0x372   : > { %10137 = vmatpush3.bf16.msra.mxu0 %v12515_v40  ;;  %3047 = vmatmul.mubr.f32.gmra.mrb[234].mxu1 %v7852_v61  ;;  %v7958_v61 = vld [vmem:[%s16947_s9 + $0x700] sm:$0xff] }
 0x373   : > { %10139 = vmatprep.subr.bf16.mxu0 %v12681_v15  ;;  %3051 = vmatprep.mubr.f32.mxu1 %v7858_v60  ;;  %v8272_v52 = vpop.f32.mrb[152].mxu1  ;;  %v7873_v60 = vld [vmem:[%s16947_s9 + $0x4e0] sm:$0x1] }
 0x374   : > { %9644 = vmatmul.mubr.msk.f32.gmra.mrb[62].mxu0 %vm2311_vm6, %v7943_v51  ;;  %v8273_v32 = vpop.f32.mrb[153].mxu1 }
 0x375   : > { %9646 = vmatprep.mubr.msk.f32.mxu0 %vm2311_vm6, %v7948_v39  ;;  %v13254_v54 = vadd.f32 %v8273_v32, %v8272_v52  ;;  %v7872_v39 = vld [vmem:[%s16947_s9 + $0x4d8] sm:$0x1] }
 0x376   : > { %10141 = vmatpush3.bf16.msra.mxu0 %v12532_v0  ;;  %3052 = vmatmul.mubr.f32.gmra.mrb[236].mxu1 %v7857_v47 }
 0x377   : > { %10143 = vmatprep.subr.bf16.mxu0 %v12687_v29  ;;  %3056 = vmatprep.mubr.f32.mxu1 %v7863_v34  ;;  %v8275_v41 = vpop.f32.mrb[154].mxu1  ;;  %v7800_v34 = vld [vmem:[%s16947_s9 + $0x298] sm:$0xff] }
 0x378   : > { %9647 = vmatmul.mubr.msk.f32.gmra.mrb[64].mxu0 %vm2311_vm6, %v7953_v18  ;;  %v8276_v20 = vpop.f32.mrb[155].mxu1 }
 0x379   : > { %v13265_v7 = vadd.f32 %v8276_v20, %v8275_v41  ;;  %9649 = vmatprep.mubr.msk.f32.mxu0 %vm2311_vm6, %v7958_v61  ;;  %v7805_v41 = vld [vmem:[%s16947_s9 + $0x2c0] sm:$0xff] }
 0x37a   : > { %10145 = vmatpush3.bf16.msra.mxu0 %v12542_v12  ;;  %3057 = vmatmul.mubr.f32.gmra.mrb[238].mxu1 %v7862_v19  ;;  %v7799_v19 = vld [vmem:[%s16947_s9 + $0x290] sm:$0xff] }
 0x37b   : > { %10147 = vmatprep.subr.bf16.mxu0 %v12693_v42  ;;  %3061 = vmatprep.mubr.f32.mxu1 %v7868_v25  ;;  %v8278_v4 = vpop.f32.mrb[156].mxu1  ;;  %v7968_v25 = vld [vmem:[%s16947_s9 + $0x750] sm:$0xff] }
 0x37c   : > { %v8279_v51 = vpop.f32.mrb[157].mxu1  ;;  %9650 = vmatmul.mubr.msk.f32.gmra.mrb[66].mxu0 %vm2311_vm6, %v7963_v13  ;;  %v7994_v13 = vld [vmem:[%s16947_s9 + $0x798] sm:$0xff] }
 0x37d   : > { %v13283_v47 = vadd.f32 %v8279_v51, %v8278_v4  ;;  %9652 = vmatprep.mubr.msk.f32.mxu0 %vm2311_vm6, %v7968_v25  ;;  %v7804_v4 = vld [vmem:[%s16947_s9 + $0x2b8] sm:$0xff]  ;;  %v7810_v51 = vld [vmem:[%s16947_s9 + $0x2e8] sm:$0xff] }
 0x37e   : > { %10149 = vmatpush3.bf16.msra.mxu0 %v12568_v62  ;;  %3062 = vmatmul.mubr.f32.gmra.mrb[240].mxu1 %v7867_v53  ;;  %v7973_v53 = vld [vmem:[%s16947_s9 + $0x778] sm:$0x1]  ;;  %v7814_v25 = vld [vmem:[%s16947_s9 + $0x308] sm:$0xff] }
 0x37f   : > { %3066 = vmatprep.mubr.f32.mxu1 %v7873_v60  ;;  %v8281_v52 = vpop.f32.mrb[158].mxu1 }
 0x380   : > { %v8282_v32 = vpop.f32.mrb[159].mxu1  ;;  %9653 = vmatmul.mubr.msk.f32.gmra.mrb[68].mxu0 %vm2311_vm6, %v7973_v53  ;;  %v7825_v53 = vld [vmem:[%s16947_s9 + $0x360] sm:$0xff] }
 0x381   : > { %v13291_v18 = vadd.f32 %v8282_v32, %v8281_v52  ;;  %4264 = vmatprep.mubr.f32.mxu0 %v7994_v13  ;;  %v7999_v32 = vld [vmem:[%s16947_s9 + $0x7c0] sm:$0xff] }
 0x382   : > { %3067 = vmatmul.mubr.f32.gmra.mrb[242].mxu1 %v7872_v39  ;;  %v7829_v13 = vld [vmem:[%s16947_s9 + $0x380] sm:$0xff] }
 0x383   : > { %3136 = vmatprep.mubr.f32.mxu1 %v7800_v34  ;;  %v8284_v20 = vpop.f32.mrb[160].mxu1 }
 0x384   : > { %v8285_v61 = vpop.f32.mrb[161].mxu1 }
 0x385   : > { %v13307_v60 = vadd.f32 %v8285_v61, %v8284_v20  ;;  %v7819_v20 = vld [vmem:[%s16947_s9 + $0x330] sm:$0xff]  ;;  %v7824_v61 = vld [vmem:[%s16947_s9 + $0x358] sm:$0xff] }
 0x386   : > { %3137 = vmatmul.mubr.f32.vlgmr.msra.gmra.mrb[244].mxu1 %v7799_v19  ;;  %v7815_v19 = vld [vmem:[%s16947_s9 + $0x310] sm:$0xff] }
 0x387   : > { %10049 = vmatpush3.bf16.msra.mxu1 %v12472_v23  ;;  %3141 = vmatprep.mubr.f32.mxu1 %v7805_v41  ;;  %v8287_v39 = vpop.f32.mrb[162].mxu1  ;;  %v7993_v23 = vld [vmem:[%s16947_s9 + $0x790] sm:$0xff]  ;;  %v7820_v41 = vld [vmem:[%s16947_s9 + $0x338] sm:$0xff] }
 0x388   : > { %10051 = vmatprep.subr.bf16.mxu1 %v12615_v63  ;;  %v8288_v34 = vpop.f32.mrb[163].mxu1  ;;  %4265 = vmatmul.mubr.f32.vlgmr.msra.gmra.mrb[70].mxu0 %v7993_v23  ;;  %v7809_v63 = vld [vmem:[%s16947_s9 + $0x2e0] sm:$0xff]  ;;  %v7840_v23 = vld [vmem:[%s16947_s9 + $0x3d8] sm:$0xff] }
 0x389   : > { %v13323_v52 = vadd.f32 %v8288_v34, %v8287_v39  ;;  %4269 = vmatprep.mubr.f32.mxu0 %v7999_v32  ;;  %v7834_v39 = vld [vmem:[%s16947_s9 + $0x3a8] sm:$0xff]  ;;  %v7839_v34 = vld [vmem:[%s16947_s9 + $0x3d0] sm:$0xff]  ;;  %v7844_v32 = vld [vmem:[%s16947_s9 + $0x3f8] sm:$0xff] }
 0x38a   : > { %3142 = vmatmul.mubr.f32.gmra.mrb[246].mxu1 %v7804_v4  ;;  %v7830_v4 = vld [vmem:[%s16947_s9 + $0x388] sm:$0xff] }
 0x38b   : > { %10053 = vmatpush3.bf16.msra.mxu1 %v12493_v55  ;;  %3146 = vmatprep.mubr.f32.mxu1 %v7810_v51  ;;  %v7998_v55 = vld [vmem:[%s16947_s9 + $0x7b8] sm:$0xff]  ;;  %v7835_v51 = vld [vmem:[%s16947_s9 + $0x3b0] sm:$0xff] }
 0x38c   : > { %10055 = vmatprep.subr.bf16.mxu1 %v12639_v5  ;;  %4270 = vmatmul.mubr.f32.gmra.mrb[72].mxu0 %v7998_v55  ;;  %v8004_v5 = vld [vmem:[%s16947_s9 + $0x7e8] sm:$0xff]  ;;  %v8033_v55 = vld [vmem:[%s16947_s9 + $0x8d0] sm:$0xff] }
 0x38d   : > { %4274 = vmatprep.mubr.f32.mxu0 %v8004_v5  ;;  %v8039_v5 = vld [vmem:[%s16947_s9 + $0x900] sm:$0xff] }
 0x38e   : > { %3147 = vmatmul.mubr.f32.gmra.mrb[248].mxu1 %v7809_v63  ;;  %v7845_v63 = vld [vmem:[%s16947_s9 + $0x400] sm:$0xff] }
 0x38f   : > { %10057 = vmatpush3.bf16.msra.mxu1 %v12498_v8  ;;  %3151 = vmatprep.mubr.f32.mxu1 %v7815_v19  ;;  %v8003_v8 = vld [vmem:[%s16947_s9 + $0x7e0] sm:$0xff]  ;;  %v7850_v19 = vld [vmem:[%s16947_s9 + $0x428] sm:$0xff] }
 0x390   : > { %10059 = vmatprep.subr.bf16.mxu1 %v12663_v43  ;;  %4275 = vmatmul.mubr.f32.gmra.mrb[74].mxu0 %v8003_v8  ;;  %v8009_v43 = vld [vmem:[%s16947_s9 + $0x810] sm:$0xff]  ;;  %v8038_v8 = vld [vmem:[%s16947_s9 + $0x8f8] sm:$0xff] }
 0x391   : > { %4279 = vmatprep.mubr.f32.mxu0 %v8009_v43  ;;  %v8044_v43 = vld [vmem:[%s16947_s9 + $0x928] sm:$0xff] }
 0x392   : > { %3152 = vmatmul.mubr.f32.gmra.mrb[250].mxu1 %v7814_v25  ;;  %v7849_v25 = vld [vmem:[%s16947_s9 + $0x420] sm:$0xff] }
 0x393   : > { %10061 = vmatpush3.bf16.msra.mxu1 %v12502_v36  ;;  %3156 = vmatprep.mubr.f32.mxu1 %v7820_v41  ;;  %v8008_v36 = vld [vmem:[%s16947_s9 + $0x808] sm:$0xff]  ;;  %v7855_v41 = vld [vmem:[%s16947_s9 + $0x450] sm:$0xff] }
 0x394   : > { %10063 = vmatprep.subr.bf16.mxu1 %v12675_v59  ;;  %4280 = vmatmul.mubr.f32.gmra.mrb[76].mxu0 %v8008_v36  ;;  %v8014_v59 = vld [vmem:[%s16947_s9 + $0x838] sm:$0xff]  ;;  %v8043_v36 = vld [vmem:[%s16947_s9 + $0x920] sm:$0xff] }
 0x395   : > { %4284 = vmatprep.mubr.f32.mxu0 %v8014_v59  ;;  %v8049_v59 = vld [vmem:[%s16947_s9 + $0x950] sm:$0xff] }
 0x396   : > { %3157 = vmatmul.mubr.f32.gmra.mrb[252].mxu1 %v7819_v20  ;;  %v7854_v20 = vld [vmem:[%s16947_s9 + $0x448] sm:$0xff] }
 0x397   : > { %10065 = vmatpush3.bf16.msra.mxu1 %v12515_v40  ;;  %3161 = vmatprep.mubr.f32.mxu1 %v7825_v53  ;;  %v8013_v40 = vld [vmem:[%s16947_s9 + $0x830] sm:$0xff]  ;;  %v7860_v53 = vld [vmem:[%s16947_s9 + $0x478] sm:$0xff] }
 0x398   : > { %10067 = vmatprep.subr.bf16.mxu1 %v12681_v15  ;;  %4285 = vmatmul.mubr.f32.gmra.mrb[78].mxu0 %v8013_v40  ;;  %v8019_v15 = vld [vmem:[%s16947_s9 + $0x860] sm:$0xff]  ;;  %v8048_v40 = vld [vmem:[%s16947_s9 + $0x948] sm:$0xff] }
 0x399   : > { %4289 = vmatprep.mubr.f32.mxu0 %v8019_v15  ;;  %v8054_v15 = vld [vmem:[%s16947_s9 + $0x978] sm:$0xff] }
 0x39a   : > { %3162 = vmatmul.mubr.f32.gmra.mrb[254].mxu1 %v7824_v61  ;;  %v7859_v61 = vld [vmem:[%s16947_s9 + $0x470] sm:$0xff] }
 0x39b   : > { %10069 = vmatpush3.bf16.msra.mxu1 %v12532_v0  ;;  %3166 = vmatprep.mubr.f32.mxu1 %v7830_v4  ;;  %v8018_v0 = vld [vmem:[%s16947_s9 + $0x858] sm:$0xff]  ;;  %v7865_v4 = vld [vmem:[%s16947_s9 + $0x4a0] sm:$0xff] }
 0x39c   : > { %10071 = vmatprep.subr.bf16.mxu1 %v12687_v29  ;;  %4290 = vmatmul.mubr.f32.gmra.mrb[80].mxu0 %v8018_v0  ;;  %v8024_v29 = vld [vmem:[%s16947_s9 + $0x888] sm:$0xff]  ;;  %v8053_v0 = vld [vmem:[%s16947_s9 + $0x970] sm:$0xff] }
 0x39d   : > { %4294 = vmatprep.mubr.f32.mxu0 %v8024_v29 }
 0x39e   : > { %3167 = vmatmul.mubr.f32.gmra.mrb[0].mxu1 %v7829_v13  ;;  %v7864_v13 = vld [vmem:[%s16947_s9 + $0x498] sm:$0xff] }
 0x39f   : > { %10073 = vmatpush3.bf16.msra.mxu1 %v12542_v12  ;;  %3171 = vmatprep.mubr.f32.mxu1 %v7835_v51  ;;  %v8023_v12 = vld [vmem:[%s16947_s9 + $0x880] sm:$0xff]  ;;  %v7870_v51 = vld [vmem:[%s16947_s9 + $0x4c8] sm:$0xff] }
 0x3a0   : > { %10075 = vmatprep.subr.bf16.mxu1 %v12693_v42  ;;  %4295 = vmatmul.mubr.f32.gmra.mrb[82].mxu0 %v8023_v12  ;;  %v8029_v42 = vld [vmem:[%s16947_s9 + $0x8b0] sm:$0xff] }
 0x3a1   : > { %4299 = vmatprep.mubr.f32.mxu0 %v8029_v42  ;;  %v7875_v42 = vld [vmem:[%s16947_s9 + $0x4f0] sm:$0x1] }
 0x3a2   : > { %3172 = vmatmul.mubr.f32.gmra.mrb[2].mxu1 %v7834_v39 }
 0x3a3   : > { %10077 = vmatpush3.bf16.msra.mxu1 %v12568_v62  ;;  %3176 = vmatprep.mubr.f32.mxu1 %v7840_v23  ;;  %v8028_v62 = vld [vmem:[%s16947_s9 + $0x8a8] sm:$0xff]  ;;  %v7869_v23 = vld [vmem:[%s16947_s9 + $0x4c0] sm:$0xff] }
 0x3a4   : > { %10087 = vmatprep.subr.bf16.mxu1 %v12327_v44  ;;  %4300 = vmatmul.mubr.f32.gmra.mrb[84].mxu0 %v8028_v62  ;;  %v8034_v44 = vld [vmem:[%s16947_s9 + $0x8d8] sm:$0xff] }
 0x3a5   : > { %4304 = vmatprep.mubr.f32.mxu0 %v8034_v44 }
 0x3a6   : > { %3177 = vmatmul.mubr.f32.gmra.mrb[4].mxu1 %v7839_v34  ;;  %v8059_v34 = vld [vmem:[%s16947_s9 + $0x9a0] sm:$0xff] }
 0x3a7   : > { %3181 = vmatprep.mubr.f32.mxu1 %v7845_v63  ;;  %v8058_v63 = vld [vmem:[%s16947_s9 + $0x998] sm:$0xff] }
 0x3a8   : > { %4305 = vmatmul.mubr.f32.gmra.mrb[86].mxu0 %v8033_v55 }
 0x3a9   : > { %4309 = vmatprep.mubr.f32.mxu0 %v8039_v5  ;;  %v7897_v5 = vld [vmem:[%s16947_s9 + $0x518] sm:$0xff] }
 0x3aa   : > { %3182 = vmatmul.mubr.f32.gmra.mrb[6].mxu1 %v7844_v32 }
 0x3ab   : > { %3186 = vmatprep.mubr.f32.mxu1 %v7850_v19  ;;  %v7874_v19 = vld [vmem:[%s16947_s9 + $0x4e8] sm:$0x1] }
 0x3ac   : > { %4310 = vmatmul.mubr.f32.gmra.mrb[88].mxu0 %v8038_v8 }
 0x3ad   : > { %4314 = vmatprep.mubr.f32.mxu0 %v8044_v43  ;;  %v7896_v43 = vld [vmem:[%s16947_s9 + $0x510] sm:$0xff] }
 0x3ae   : > { %3187 = vmatmul.mubr.f32.gmra.mrb[8].mxu1 %v7849_v25  ;;  %v8064_v25 = vld [vmem:[%s16947_s9 + $0x9c8] sm:$0xff] }
 0x3af   : > { %3191 = vmatprep.mubr.f32.mxu1 %v7855_v41 }
 0x3b0   : > { %4315 = vmatmul.mubr.f32.gmra.mrb[90].mxu0 %v8043_v36  ;;  %v8069_v36 = vld [vmem:[%s16947_s9 + $0x9f0] sm:$0x1] }
 0x3b1   : > { %4319 = vmatprep.mubr.f32.mxu0 %v8049_v59 }
 0x3b2   : > { %3192 = vmatmul.mubr.f32.gmra.mrb[10].mxu1 %v7854_v20 }
 0x3b3   : > { %3196 = vmatprep.mubr.f32.mxu1 %v7860_v53 }
 0x3b4   : > { %4320 = vmatmul.mubr.f32.gmra.mrb[92].mxu0 %v8048_v40 }
 0x3b5   : > { %4324 = vmatprep.mubr.f32.mxu0 %v8054_v15 }
 0x3b6   : > { %3197 = vmatmul.mubr.f32.gmra.mrb[12].mxu1 %v7859_v61  ;;  %v7902_v61 = vld [vmem:[%s16947_s9 + $0x540] sm:$0xff] }
 0x3b7   : > { %3201 = vmatprep.mubr.f32.mxu1 %v7865_v4 }
 0x3b8   : > { %v8322_v39 = vpop.f32.mrb[164].mxu1  ;;  %4325 = vmatmul.mubr.f32.gmra.mrb[94].mxu0 %v8053_v0 }
 0x3b9   : > { %v8323_v29 = vpop.f32.mrb[165].mxu1  ;;  %4329 = vmatprep.mubr.f32.mxu0 %v8059_v34 }
 0x3ba   : > { %3202 = vmatmul.mubr.f32.gmra.mrb[14].mxu1 %v7864_v13  ;;  %v8324_v12 = vadd.f32 %v8323_v29, %v8322_v39  ;;  %v7901_v13 = vld [vmem:[%s16947_s9 + $0x538] sm:$0xff] }
 0x3bb   : > { %3206 = vmatprep.mubr.f32.mxu1 %v7870_v51  ;;  %v7907_v51 = vld [vmem:[%s16947_s9 + $0x568] sm:$0xff] }
 0x3bc   : > { %v8325_v62 = vpop.f32.mrb[166].mxu1  ;;  %v13496_v32 = vadd.f32 %v8324_v12, %v13086_v50  ;;  %4330 = vmatmul.mubr.f32.gmra.mrb[96].mxu0 %v8058_v63  ;;  %v8063_v50 = vld [vmem:[%s16947_s9 + $0x9c0] sm:$0xff] }
 0x3bd   : > { %v8326_v44 = vpop.f32.mrb[167].mxu1  ;;  %4334 = vmatprep.mubr.f32.mxu0 %v8064_v25 }
 0x3be   : > { %3207 = vmatmul.mubr.f32.gmra.mrb[16].mxu1 %v7869_v23  ;;  %v8327_v55 = vadd.f32 %v8326_v44, %v8325_v62 }
 0x3bf   : > { %3211 = vmatprep.mubr.f32.mxu1 %v7875_v42 }
 0x3c0   : > { %v8328_v41 = vpop.f32.mrb[168].mxu1  ;;  %v13511_v8 = vadd.f32 %v8327_v55, %v13102_v56  ;;  %4335 = vmatmul.mubr.f32.gmra.mrb[98].mxu0 %v8063_v50  ;;  %v8068_v56 = vld [vmem:[%s16947_s9 + $0x9e8] sm:$0x1] }
 0x3c1   : > { %v8329_v20 = vpop.f32.mrb[169].mxu1  ;;  %4339 = vmatprep.mubr.f32.mxu0 %v8069_v36 }
 0x3c2   : > { %3212 = vmatmul.mubr.f32.gmra.mrb[18].mxu1 %v7874_v19  ;;  %v8330_v53 = vadd.f32 %v8329_v20, %v8328_v41 }
 0x3c3   : > { %3700 = vmatprep.mubr.f32.mxu1 %v7897_v5 }
 0x3c4   : > { %v8331_v59 = vpop.f32.mrb[170].mxu1  ;;  %v13526_v4 = vadd.f32 %v8330_v53, %v13118_v26  ;;  %4340 = vmatmul.mubr.f32.gmra.mrb[100].mxu0 %v8068_v56 }
 0x3c5   : > { %v8332_v40 = vpop.f32.mrb[171].mxu1 }
 0x3c6   : > { %3701 = vmatmul.mubr.f32.vlgmr.msra.gmra.mrb[20].mxu1 %v7896_v43  ;;  %v8333_v15 = vadd.f32 %v8332_v40, %v8331_v59  ;;  %v7942_v59 = vld [vmem:[%s16947_s9 + $0x680] sm:$0xff] }
 0x3c7   : > { %10089 = vmatpush3.bf16.msra.mxu1 %v12506_v35  ;;  %3705 = vmatprep.mubr.f32.mxu1 %v7902_v61  ;;  %v7906_v35 = vld [vmem:[%s16947_s9 + $0x560] sm:$0xff] }
 0x3c8   : > { %10091 = vmatprep.subr.bf16.mxu1 %v12346_v49  ;;  %v8334_v0 = vpop.f32.mrb[172].mxu1  ;;  %v13537_v26 = vadd.f32 %v8333_v15, %v13134_v16  ;;  %v7912_v49 = vld [vmem:[%s16947_s9 + $0x590] sm:$0xff] }
 0x3c9   : > { %v8335_v39 = vpop.f32.mrb[173].mxu1 }
 0x3ca   : > { %3706 = vmatmul.mubr.f32.gmra.mrb[22].mxu1 %v7901_v13  ;;  %v8336_v29 = vadd.f32 %v8335_v39, %v8334_v0 }
 0x3cb   : > { %10093 = vmatpush3.bf16.msra.mxu1 %v12517_v21  ;;  %3710 = vmatprep.mubr.f32.mxu1 %v7907_v51  ;;  %v7911_v21 = vld [vmem:[%s16947_s9 + $0x588] sm:$0xff] }
 0x3cc   : > { %10095 = vmatprep.subr.bf16.mxu1 %v12364_v10  ;;  %v8337_v23 = vpop.f32.mrb[174].mxu1  ;;  %v13548_v16 = vadd.f32 %v8336_v29, %v13151_v17  ;;  %v7917_v10 = vld [vmem:[%s16947_s9 + $0x5b8] sm:$0xff]  ;;  %v7947_v51 = vld [vmem:[%s16947_s9 + $0x6a8] sm:$0xff] }
 0x3cd   : > { %v8338_v12 = vpop.f32.mrb[175].mxu1 }
 0x3ce   : > { %3711 = vmatmul.mubr.f32.gmra.mrb[24].mxu1 %v7906_v35  ;;  %v8339_v34 = vadd.f32 %v8338_v12, %v8337_v23  ;;  %v7952_v12 = vld [vmem:[%s16947_s9 + $0x6d0] sm:$0xff] }
 0x3cf   : > { %10097 = vmatpush3.bf16.msra.mxu1 %v12141_v37  ;;  %3715 = vmatprep.mubr.f32.mxu1 %v7912_v49  ;;  %v7916_v37 = vld [vmem:[%s16947_s9 + $0x5b0] sm:$0xff]  ;;  %v7946_v49 = vld [vmem:[%s16947_s9 + $0x6a0] sm:$0xff] }
 0x3d0   : > { %10099 = vmatprep.subr.bf16.mxu1 %v12382_v27  ;;  %v13559_v17 = vadd.f32 %v8339_v34, %v13166_v38  ;;  %v7922_v27 = vld [vmem:[%s16947_s9 + $0x5e0] sm:$0xff] }
 0x3d1   : > { %v8340_v42 = vpop.f32.mrb[176].mxu1 }
 0x3d2   : > { %3716 = vmatmul.mubr.f32.gmra.mrb[26].mxu1 %v7911_v21  ;;  %v8341_v63 = vpop.f32.mrb[177].mxu1 }
 0x3d3   : > { %10101 = vmatpush3.bf16.msra.mxu1 %v12172_v57  ;;  %3720 = vmatprep.mubr.f32.mxu1 %v7917_v10  ;;  %v8342_v62 = vadd.f32 %v8341_v63, %v8340_v42  ;;  %v7921_v57 = vld [vmem:[%s16947_s9 + $0x5d8] sm:$0xff]  ;;  %v7951_v10 = vld [vmem:[%s16947_s9 + $0x6c8] sm:$0xff] }
 0x3d4   : > { %10103 = vmatprep.subr.bf16.mxu1 %v12400_v45  ;;  %v7927_v45 = vld [vmem:[%s16947_s9 + $0x608] sm:$0xff]  ;;  %v13602_v53 = vpop.f32.mrb[6].mxu0 }
 0x3d5   : > { %v8343_v44 = vpop.f32.mrb[178].mxu1  ;;  %v13570_v38 = vadd.f32 %v8342_v62, %v13182_v31  ;;  %v13607_v61 = vpop.f32.mrb[7].mxu0 }
 0x3d6   : > { %3721 = vmatmul.mubr.f32.gmra.mrb[28].mxu1 %v7916_v37  ;;  %v8344_v19 = vpop.f32.mrb[179].mxu1  ;;  %v7957_v37 = vld [vmem:[%s16947_s9 + $0x6f8] sm:$0xff] }
 0x3d7   : > { %10105 = vmatpush3.bf16.msra.mxu1 %v12208_v11  ;;  %3725 = vmatprep.mubr.f32.mxu1 %v7922_v27  ;;  %v8345_v55 = vadd.f32 %v8344_v19, %v8343_v44  ;;  %v7926_v11 = vld [vmem:[%s16947_s9 + $0x600] sm:$0xff] }
 0x3d8   : > { %10107 = vmatprep.subr.bf16.mxu1 %v12418_v24  ;;  %v7932_v24 = vld [vmem:[%s16947_s9 + $0x630] sm:$0xff]  ;;  %v13626_v0 = vpop.f32.mrb[8].mxu0 }
 0x3d9   : > { %v8346_v25 = vpop.f32.mrb[180].mxu1  ;;  %v13581_v31 = vadd.f32 %v8345_v55, %v13200_v3  ;;  %v7956_v55 = vld [vmem:[%s16947_s9 + $0x6f0] sm:$0xff] }
 0x3da   : > { %3726 = vmatmul.mubr.f32.gmra.mrb[30].mxu1 %v7921_v57  ;;  %v8347_v5 = vpop.f32.mrb[181].mxu1 }
 0x3db   : > { %10109 = vmatpush3.bf16.msra.mxu1 %v12246_v22  ;;  %3730 = vmatprep.mubr.f32.mxu1 %v7927_v45  ;;  %v8348_v50 = vadd.f32 %v8347_v5, %v8346_v25  ;;  %v7931_v22 = vld [vmem:[%s16947_s9 + $0x628] sm:$0xff]  ;;  %v7962_v5 = vld [vmem:[%s16947_s9 + $0x720] sm:$0xff] }
 0x3dc   : > { %10111 = vmatprep.subr.bf16.mxu1 %v12436_v1  ;;  %v7937_v1 = vld [vmem:[%s16947_s9 + $0x658] sm:$0xff] }
 0x3dd   : > { %v8349_v41 = vpop.f32.mrb[182].mxu1  ;;  %v13592_v3 = vadd.f32 %v8348_v50, %v13218_v46 }
 0x3de   : > { %3731 = vmatmul.mubr.f32.gmra.mrb[32].mxu1 %v7926_v11  ;;  %v8350_v20 = vpop.f32.mrb[183].mxu1 }
 0x3df   : > { %10113 = vmatpush3.bf16.msra.mxu1 %v12278_v14  ;;  %3735 = vmatprep.mubr.f32.mxu1 %v7932_v24  ;;  %v8351_v43 = vadd.f32 %v8350_v20, %v8349_v41 }
 0x3e0   : > { %10115 = vmatprep.subr.bf16.mxu1 %v12454_v28  ;;  %v7936_v28 = vld [vmem:[%s16947_s9 + $0x650] sm:$0xff] }
 0x3e1   : > { %v8352_v46 = vpop.f32.mrb[184].mxu1  ;;  %v13605_v36 = vadd.f32 %v8351_v43, %v13236_v30 }
 0x3e2   : > { %3736 = vmatmul.mubr.f32.gmra.mrb[34].mxu1 %v7931_v22  ;;  %v8353_v14 = vpop.f32.mrb[185].mxu1  ;;  %v7961_v22 = vld [vmem:[%s16947_s9 + $0x718] sm:$0xff] }
 0x3e3   : > { %10117 = vmatpush3.bf16.msra.mxu1 %v12305_v6  ;;  %3740 = vmatprep.mubr.f32.mxu1 %v7937_v1  ;;  %v8354_v56 = vadd.f32 %v8353_v14, %v8352_v46  ;;  %v7941_v6 = vld [vmem:[%s16947_s9 + $0x678] sm:$0xff]  ;;  %v7967_v46 = vld [vmem:[%s16947_s9 + $0x748] sm:$0xff] }
 0x3e4   : > { %10151 = vmatprep.subr.bf16.mxu1 %v12714_v33 }
 0x3e5   : > { %v8355_v30 = vpop.f32.mrb[186].mxu1  ;;  %v13618_v40 = vadd.f32 %v8354_v56, %v13254_v54  ;;  %v13631_v54 = vpop.f32.mrb[9].mxu0 }
 0x3e6   : > { %3741 = vmatmul.mubr.f32.gmra.mrb[36].mxu1 %v7936_v28  ;;  %v8356_v13 = vpop.f32.mrb[187].mxu1  ;;  %v13645_v63 = vpop.f32.mrb[10].mxu0 }
 0x3e7   : > { %3745 = vmatprep.mubr.f32.mxu1 %v7942_v59  ;;  %v8357_v15 = vadd.f32 %v8356_v13, %v8355_v30  ;;  %v13650_v62 = vpop.f32.mrb[11].mxu0 }
 0x3e8   : > { %v13655_v44 = vpop.f32.mrb[12].mxu0 }
 0x3e9   : > { %v8358_v39 = vpop.f32.mrb[188].mxu1  ;;  %v13629_v35 = vadd.f32 %v8357_v15, %v13265_v7  ;;  %v13657_v57 = vpop.f32.mrb[13].mxu0 }
 0x3ea   : > { %3746 = vmatmul.mubr.f32.gmra.mrb[38].mxu1 %v7941_v6  ;;  %v8359_v29 = vpop.f32.mrb[189].mxu1  ;;  %v13662_v25 = vpop.f32.mrb[14].mxu0  ;;  %v7966_v6 = vld [vmem:[%s16947_s9 + $0x740] sm:$0xff] }
 0x3eb   : > { %3750 = vmatprep.mubr.f32.mxu1 %v7947_v51  ;;  %v8360_v23 = vadd.f32 %v8359_v29, %v8358_v39 }
 0x3ed   : > { %v8361_v21 = vpop.f32.mrb[190].mxu1  ;;  %v13640_v34 = vadd.f32 %v8360_v23, %v13283_v47 }
 0x3ee   : > { %3751 = vmatmul.mubr.f32.gmra.mrb[40].mxu1 %v7946_v49  ;;  %v8362_v7 = vpop.f32.mrb[191].mxu1 }
 0x3ef   : > { %3755 = vmatprep.mubr.f32.mxu1 %v7952_v12  ;;  %v8363_v42 = vadd.f32 %v8362_v7, %v8361_v21 }
 0x3f1   : > { %v8364_v27 = vpop.f32.mrb[192].mxu1  ;;  %v13653_v47 = vadd.f32 %v8363_v42, %v13291_v18  ;;  %v13667_v18 = vpop.f32.mrb[15].mxu0 }
 0x3f2   : > { %3756 = vmatmul.mubr.f32.gmra.mrb[42].mxu1 %v7951_v10  ;;  %v8365_v19 = vpop.f32.mrb[193].mxu1  ;;  %v13672_v24 = vpop.f32.mrb[16].mxu0 }
 0x3f3   : > { %3760 = vmatprep.mubr.f32.mxu1 %v7957_v37  ;;  %v8366_v45 = vadd.f32 %v8365_v19, %v8364_v27  ;;  %v13674_v20 = vpop.f32.mrb[17].mxu0  ;;  %v7992_v37 = vld [vmem:[%s16947_s9 + $0x788] sm:$0xff] }
 0x3f4   : > { %v13679_v1 = vpop.f32.mrb[18].mxu0 }
 0x3f5   : > { %v8367_v11 = vpop.f32.mrb[194].mxu1  ;;  %v13670_v50 = vadd.f32 %v8366_v45, %v13307_v60  ;;  %v13684_v60 = vpop.f32.mrb[19].mxu0 }
 0x3f6   : > { %3761 = vmatmul.mubr.f32.gmra.mrb[44].mxu1 %v7956_v55  ;;  %v8368_v41 = vpop.f32.mrb[195].mxu1  ;;  %v13689_v56 = vpop.f32.mrb[20].mxu0 }
 0x3f7   : > { %3765 = vmatprep.mubr.f32.mxu1 %v7962_v5  ;;  %v8369_v43 = vadd.f32 %v8368_v41, %v8367_v11  ;;  %v13694_v13 = vpop.f32.mrb[21].mxu0 }
 0x3f8   : > { %v8604_v51 = vpop.f32.mrb[22].mxu0 }
 0x3f9   : > { %v9565_v14 = vpop.f32.mrb[196].mxu1  ;;  %v13687_v28 = vadd.f32 %v8369_v43, %v13323_v52  ;;  %v7972_v52 = vld [vmem:[%s16947_s9 + $0x770] sm:$0x1]  ;;  %v8605_v39 = vpop.f32.mrb[23].mxu0 }
 0x3fa   : > { %3766 = vmatmul.mubr.f32.gmra.mrb[46].mxu1 %v7961_v22  ;;  %v13692_v59 = vadd.f32 %v9565_v14, %v13511_v8  ;;  %v2719_v30 = vpop.f32.mrb[197].mxu1  ;;  %v13705_v8 = vadd.f32 %v8605_v39, %v8604_v51  ;;  %v8607_v49 = vpop.f32.mrb[24].mxu0  ;;  %v7997_v43 = vld [vmem:[%s16947_s9 + $0x7b0] sm:$0xff] }
 0x3fb   : > { %3770 = vmatprep.mubr.f32.mxu1 %v7967_v46  ;;  %v13700_v15 = vadd.f32 %v2719_v30, %v13496_v32  ;;  %v8608_v21 = vpop.f32.mrb[25].mxu0  ;;  %v7971_v32 = vld [vmem:[%s16947_s9 + $0x768] sm:$0x1] }
 0x3fc   : > { %16955 = vst [vmem:[#allocation2_spill] sm:$0xff] %v13692_v59  ;;  %v13716_v10 = vadd.f32 %v8608_v21, %v8607_v49  ;;  %v8610_v42 = vpop.f32.mrb[26].mxu0 }
 0x3fd   : > { %16956 = vst [vmem:[#allocation3_spill] sm:$0xff] %v13700_v15  ;;  %v9568_v29 = vpop.f32.mrb[198].mxu1  ;;  %v8611_v27 = vpop.f32.mrb[27].mxu0 }
 0x3fe   : > { %3771 = vmatmul.mubr.f32.gmra.mrb[48].mxu1 %v7966_v6  ;;  %v13708_v23 = vadd.f32 %v9568_v29, %v13537_v26  ;;  %v2729_v12 = vpop.f32.mrb[199].mxu1  ;;  %v13721_v19 = vadd.f32 %v8611_v27, %v8610_v42 }
 0x3ff   : > { %3775 = vmatprep.mubr.f32.mxu1 %v7972_v52  ;;  %v13714_v7 = vadd.f32 %v2729_v12, %v13526_v4  ;;  %v7991_v4 = vld [vmem:[%s16947_s9 + $0x780] sm:$0xff] }
 0x400   : > { %16957 = vst [vmem:[#allocation4_spill] sm:$0xff] %v13708_v23  ;;  %v8613_v55 = vpop.f32.mrb[28].mxu0 }
 0x401   : > { %16958 = vst [vmem:[#allocation5_spill] sm:$0xff] %v13714_v7  ;;  %v9571_v26 = vpop.f32.mrb[200].mxu1  ;;  %v8614_v11 = vpop.f32.mrb[29].mxu0  ;;  %v8025_v7 = vld [vmem:[%s16947_s9 + $0x890] sm:$0xff] }
 0x402   : > { %3776 = vmatmul.mubr.f32.gmra.mrb[50].mxu1 %v7971_v32  ;;  %v13724_v45 = vadd.f32 %v9571_v26, %v13559_v17  ;;  %v2739_v5 = vpop.f32.mrb[201].mxu1  ;;  %v13732_v22 = vadd.f32 %v8614_v11, %v8613_v55  ;;  %v8012_v11 = vld [vmem:[%s16947_s9 + $0x828] sm:$0xff] }
 0x403   : > { %4119 = vmatprep.mubr.f32.mxu1 %v7992_v37  ;;  %v13730_v41 = vadd.f32 %v2739_v5, %v13548_v16  ;;  %v7996_v16 = vld [vmem:[%s16947_s9 + $0x7a8] sm:$0xff] }
 0x404   : > { %16959 = vst [vmem:[#allocation6_spill] sm:$0xff] %v13724_v45  ;;  %v8616_v46 = vpop.f32.mrb[30].mxu0  ;;  %v8015_v45 = vld [vmem:[%s16947_s9 + $0x840] sm:$0xff] }
 0x405   : > { %16960 = vst [vmem:[#allocation7_spill] sm:$0xff] %v13730_v41  ;;  %v9574_v14 = vpop.f32.mrb[202].mxu1  ;;  %v8617_v17 = vpop.f32.mrb[31].mxu0 }
 0x406   : > { %4120 = vmatmul.mubr.f32.vlgmr.msra.gmra.mrb[52].mxu1 %v7991_v4  ;;  %v13738_v30 = vadd.f32 %v9574_v14, %v13581_v31  ;;  %v2749_v6 = vpop.f32.mrb[203].mxu1  ;;  %v13740_v51 = vadd.f32 %v8617_v17, %v8616_v46  ;;  %v8002_v31 = vld [vmem:[%s16947_s9 + $0x7d8] sm:$0xff] }
 0x407   : > { %10153 = vmatpush3.bf16.msra.mxu1 %v12714_v33  ;;  %4124 = vmatprep.mubr.f32.mxu1 %v7997_v43  ;;  %v13747_v52 = vadd.f32 %v2749_v6, %v13570_v38  ;;  %v8001_v38 = vld [vmem:[%s16947_s9 + $0x7d0] sm:$0xff] }
 0x408   : > { %16961 = vst [vmem:[#allocation8_spill] sm:$0xff] %v13738_v30  ;;  %10155 = vmatprep.subr.bf16.mxu1 %v12740_v58  ;;  %v8619_v39 = vpop.f32.mrb[32].mxu0  ;;  %v8017_v6 = vld [vmem:[%s16947_s9 + $0x850] sm:$0xff] }
 0x409   : > { %16962 = vst [vmem:[#allocation9_spill] sm:$0xff] %v13747_v52  ;;  %v9577_v29 = vpop.f32.mrb[204].mxu1  ;;  %v8620_v49 = vpop.f32.mrb[33].mxu0 }
 0x40a   : > { %4125 = vmatmul.mubr.f32.gmra.mrb[54].mxu1 %v7996_v16  ;;  %v13754_v33 = vadd.f32 %v9577_v29, %v13605_v36  ;;  %v2759_v12 = vpop.f32.mrb[205].mxu1  ;;  %v13756_v21 = vadd.f32 %v8620_v49, %v8619_v39  ;;  %v8007_v36 = vld [vmem:[%s16947_s9 + $0x800] sm:$0xff] }
 0x40b   : > { %10157 = vmatpush3.bf16.msra.mxu1 %v12740_v58  ;;  %4129 = vmatprep.mubr.f32.mxu1 %v8002_v31  ;;  %v13763_v32 = vadd.f32 %v2759_v12, %v13592_v3  ;;  %v8006_v3 = vld [vmem:[%s16947_s9 + $0x7f8] sm:$0xff] }
 0x40c   : > { %16963 = vst [vmem:[#allocation10_spill] sm:$0xff] %v13754_v33  ;;  %9663 = vmatprep.subr.msk.mxu1 %vm553_vm1, %v12747_v48  ;;  %v8622_v42 = vpop.f32.mrb[34].mxu0 }
 0x40d   : > { %16964 = vst [vmem:[#allocation11_spill] sm:$0xff] %v13763_v32  ;;  %v9580_v37 = vpop.f32.mrb[206].mxu1  ;;  %v8623_v27 = vpop.f32.mrb[35].mxu0 }
 0x40e   : > { %4130 = vmatmul.mubr.f32.gmra.mrb[56].mxu1 %v8001_v38  ;;  %v13771_v58 = vadd.f32 %v9580_v37, %v13629_v35  ;;  %v2769_v26 = vpop.f32.mrb[207].mxu1  ;;  %v13773_v55 = vadd.f32 %v8623_v27, %v8622_v42  ;;  %v8022_v38 = vld [vmem:[%s16947_s9 + $0x878] sm:$0xff] }
 0x40f   : > { %9664 = vmatpush3.msk.msra.mxu1 %vm553_vm1, %v12747_v48  ;;  %4134 = vmatprep.mubr.f32.mxu1 %v8007_v36  ;;  %v13781_v5 = vadd.f32 %v2769_v26, %v13618_v40  ;;  %v8011_v40 = vld [vmem:[%s16947_s9 + $0x820] sm:$0xff]  ;;  %v8021_v26 = vld [vmem:[%s16947_s9 + $0x870] sm:$0xff] }
 0x410   : > { %16965 = vst [vmem:[#allocation12_spill] sm:$0xff] %v13771_v58  ;;  %v8625_v35 = vpop.f32.mrb[36].mxu0 }
 0x411   : > { %16966 = vst [vmem:[#allocation13_spill] sm:$0xff] %v13781_v5  ;;  %v9583_v4 = vpop.f32.mrb[208].mxu1  ;;  %v8626_v43 = vpop.f32.mrb[37].mxu0 }
 0x412   : > { %4135 = vmatmul.mubr.f32.gmra.mrb[58].mxu1 %v8006_v3  ;;  %v13787_v46 = vadd.f32 %v9583_v4, %v13653_v47  ;;  %v2779_v48 = vpop.f32.mrb[209].mxu1  ;;  %v13789_v14 = vadd.f32 %v8626_v43, %v8625_v35 }
 0x413   : > { %4139 = vmatprep.mubr.f32.mxu1 %v8012_v11  ;;  %v13795_v17 = vadd.f32 %v2779_v48, %v13640_v34  ;;  %v8016_v34 = vld [vmem:[%s16947_s9 + $0x848] sm:$0xff] }
 0x414   : > { %16967 = vst [vmem:[#allocation14_spill] sm:$0xff] %v13787_v46  ;;  %v8628_v16 = vpop.f32.mrb[38].mxu0 }
 0x415   : > { %16968 = vst [vmem:[#allocation15_spill] sm:$0xff] %v13795_v17  ;;  %v9586_v31 = vpop.f32.mrb[210].mxu1  ;;  %v8629_v39 = vpop.f32.mrb[39].mxu0 }
 0x416   : > { %4140 = vmatmul.mubr.f32.gmra.mrb[60].mxu1 %v8011_v40  ;;  %v13801_v47 = vadd.f32 %v9586_v31, %v13687_v28  ;;  %v2789_v29 = vpop.f32.mrb[211].mxu1  ;;  %v13803_v49 = vadd.f32 %v8629_v39, %v8628_v16  ;;  %v8026_v40 = vld [vmem:[%s16947_s9 + $0x898] sm:$0xff]  ;;  %v8032_v16 = vld [vmem:[%s16947_s9 + $0x8c8] sm:$0xff] }
 0x417   : > { %4144 = vmatprep.mubr.f32.mxu1 %v8017_v6  ;;  %v13809_v12 = vadd.f32 %v2789_v29, %v13670_v50  ;;  %v8027_v50 = vld [vmem:[%s16947_s9 + $0x8a0] sm:$0xff] }
 0x418   : > { %16969 = vst [vmem:[#allocation16_spill] sm:$0xff] %v13801_v47  ;;  %16970 = vst [vmem:[#allocation17_spill] sm:$0xff] %v13803_v49  ;;  %v8631_v36 = vpop.f32.mrb[40].mxu0 }
 0x419   : > { %16971 = vst [vmem:[#allocation18_spill] sm:$0xff] %v13809_v12  ;;  %v8423_v42 = vpop.f32.mrb[212].mxu1  ;;  %v8632_v37 = vpop.f32.mrb[41].mxu0 }
 0x41a   : > { %4145 = vmatmul.mubr.f32.gmra.mrb[62].mxu1 %v8016_v34  ;;  %v8424_v28 = vpop.f32.mrb[213].mxu1  ;;  %v13814_v27 = vadd.f32 %v8632_v37, %v8631_v36  ;;  %v8031_v36 = vld [vmem:[%s16947_s9 + $0x8c0] sm:$0xff]  ;;  %v8037_v37 = vld [vmem:[%s16947_s9 + $0x8f0] sm:$0xff] }
 0x41b   : > { %4149 = vmatprep.mubr.f32.mxu1 %v8022_v38  ;;  %v13819_v3 = vadd.f32 %v8424_v28, %v8423_v42 }
 0x41c   : > { %16972 = vst [vmem:[#allocation19_spill] sm:$0xff] %v13814_v27  ;;  %v8634_v11 = vpop.f32.mrb[42].mxu0 }
 0x41d   : > { %v8426_v35 = vpop.f32.mrb[214].mxu1  ;;  %v8635_v4 = vpop.f32.mrb[43].mxu0 }
 0x41e   : > { %4150 = vmatmul.mubr.f32.gmra.mrb[64].mxu1 %v8021_v26  ;;  %v8427_v43 = vpop.f32.mrb[215].mxu1  ;;  %v13824_v48 = vadd.f32 %v8635_v4, %v8634_v11  ;;  %v8036_v4 = vld [vmem:[%s16947_s9 + $0x8e8] sm:$0xff] }
 0x41f   : > { %4154 = vmatprep.mubr.f32.mxu1 %v8027_v50  ;;  %v13829_v6 = vadd.f32 %v8427_v43, %v8426_v35 }
 0x420   : > { %16973 = vst [vmem:[#allocation20_spill] sm:$0xff] %v13824_v48  ;;  %v8637_v31 = vpop.f32.mrb[44].mxu0 }
 0x421   : > { %v8429_v39 = vpop.f32.mrb[216].mxu1  ;;  %v8638_v29 = vpop.f32.mrb[45].mxu0 }
 0x422   : > { %4155 = vmatmul.mubr.f32.gmra.mrb[66].mxu1 %v8026_v40  ;;  %v8430_v34 = vpop.f32.mrb[217].mxu1  ;;  %v13834_v38 = vadd.f32 %v8638_v29, %v8637_v31  ;;  %v8042_v40 = vld [vmem:[%s16947_s9 + $0x918] sm:$0xff] }
 0x423   : > { %4159 = vmatprep.mubr.f32.mxu1 %v8032_v16  ;;  %v13839_v42 = vadd.f32 %v8430_v34, %v8429_v39 }
 0x424   : > { %16974 = vst [vmem:[#allocation21_spill] sm:$0xff] %v13834_v38  ;;  %v8640_v28 = vpop.f32.mrb[46].mxu0 }
 0x425   : > { %v8432_v26 = vpop.f32.mrb[218].mxu1  ;;  %v8641_v50 = vpop.f32.mrb[47].mxu0 }
 0x426   : > { %4160 = vmatmul.mubr.f32.gmra.mrb[68].mxu1 %v8031_v36  ;;  %v8433_v11 = vpop.f32.mrb[219].mxu1  ;;  %v13844_v35 = vadd.f32 %v8641_v50, %v8640_v28  ;;  %v8041_v36 = vld [vmem:[%s16947_s9 + $0x910] sm:$0xff]  ;;  %v8047_v28 = vld [vmem:[%s16947_s9 + $0x940] sm:$0xff] }
 0x427   : > { %4164 = vmatprep.mubr.f32.mxu1 %v8037_v37  ;;  %v13849_v43 = vadd.f32 %v8433_v11, %v8432_v26 }
 0x428   : > { %16975 = vst [vmem:[#allocation22_spill] sm:$0xff] %v13844_v35  ;;  %v8643_v16 = vpop.f32.mrb[48].mxu0 }
 0x429   : > { %v8435_v31 = vpop.f32.mrb[220].mxu1  ;;  %v8644_v39 = vpop.f32.mrb[49].mxu0 }
 0x42a   : > { %4165 = vmatmul.mubr.f32.gmra.mrb[70].mxu1 %v8036_v4  ;;  %v8436_v29 = vpop.f32.mrb[221].mxu1  ;;  %v13854_v34 = vadd.f32 %v8644_v39, %v8643_v16 }
 0x42b   : > { %4169 = vmatprep.mubr.f32.mxu1 %v8042_v40  ;;  %v13859_v37 = vadd.f32 %v8436_v29, %v8435_v31  ;;  %v8046_v40 = vld [vmem:[%s16947_s9 + $0x938] sm:$0xff]  ;;  %v8052_v31 = vld [vmem:[%s16947_s9 + $0x968] sm:$0xff] }
 0x42c   : > { %16976 = vst [vmem:[#allocation23_spill] sm:$0xff] %v13854_v34  ;;  %v8646_v26 = vpop.f32.mrb[50].mxu0 }
 0x42d   : > { %v8438_v50 = vpop.f32.mrb[222].mxu1  ;;  %v8647_v11 = vpop.f32.mrb[51].mxu0 }
 0x42e   : > { %4170 = vmatmul.mubr.f32.gmra.mrb[72].mxu1 %v8041_v36  ;;  %v8439_v9 = vpop.f32.mrb[223].mxu1  ;;  %v13864_v4 = vadd.f32 %v8647_v11, %v8646_v26 }
 0x42f   : > { %4174 = vmatprep.mubr.f32.mxu1 %v8047_v28  ;;  %v13869_v16 = vadd.f32 %v8439_v9, %v8438_v50  ;;  %v8051_v28 = vld [vmem:[%s16947_s9 + $0x960] sm:$0xff]  ;;  %v8057_v9 = vld [vmem:[%s16947_s9 + $0x990] sm:$0xff] }
 0x430   : > { %16977 = vst [vmem:[#allocation24_spill] sm:$0xff] %v13864_v4  ;;  %v8649_v39 = vpop.f32.mrb[52].mxu0 }
 0x431   : > { %v8441_v29 = vpop.f32.mrb[224].mxu1  ;;  %v8650_v2 = vpop.f32.mrb[53].mxu0 }
 0x432   : > { %4175 = vmatmul.mubr.f32.gmra.mrb[74].mxu1 %v8046_v40  ;;  %v8442_v47 = vpop.f32.mrb[225].mxu1  ;;  %v13874_v36 = vadd.f32 %v8650_v2, %v8649_v39  ;;  %v8056_v2 = vld [vmem:[%s16947_s9 + $0x988] sm:$0xff] }
 0x433   : > { %4179 = vmatprep.mubr.f32.mxu1 %v8052_v31  ;;  %v13879_v26 = vadd.f32 %v8442_v47, %v8441_v29  ;;  %v8062_v47 = vld [vmem:[%s16947_s9 + $0x9b8] sm:$0xff] }
 0x434   : > { %16978 = vst [vmem:[#allocation25_spill] sm:$0xff] %v13874_v36  ;;  %v13884_v50 = vpop.f32.mrb[54].mxu0 }
 0x435   : > { %v8444_v11 = vpop.f32.mrb[226].mxu1  ;;  %v13886_v12 = vpop.f32.mrb[55].mxu0 }
 0x436   : > { %4180 = vmatmul.mubr.f32.gmra.mrb[76].mxu1 %v8051_v28  ;;  %v8445_v40 = vpop.f32.mrb[227].mxu1  ;;  %v8061_v28 = vld [vmem:[%s16947_s9 + $0x9b0] sm:$0xff] }
 0x437   : > { %4184 = vmatprep.mubr.f32.mxu1 %v8057_v9  ;;  %v13891_v31 = vadd.f32 %v8445_v40, %v8444_v11  ;;  %v8067_v11 = vld [vmem:[%s16947_s9 + $0x9e0] sm:$0x1] }
 0x439   : > { %v8447_v39 = vpop.f32.mrb[228].mxu1 }
 0x43a   : > { %4185 = vmatmul.mubr.f32.gmra.mrb[78].mxu1 %v8056_v2  ;;  %v8448_v29 = vpop.f32.mrb[229].mxu1  ;;  %v8066_v2 = vld [vmem:[%s16947_s9 + $0x9d8] sm:$0x1] }
 0x43b   : > { %4189 = vmatprep.mubr.f32.mxu1 %v8062_v47  ;;  %v13899_v46 = vadd.f32 %v8448_v29, %v8447_v39  ;;  %v13901_v9 = vpop.f32.mrb[56].mxu0  ;;  %v7995_v29 = vld [vmem:[%s16947_s9 + $0x7a0] sm:$0xff] }
 0x43c   : > { %v13906_v40 = vpop.f32.mrb[57].mxu0 }
 0x43d   : > { %v8450_v17 = vpop.f32.mrb[230].mxu1 }
 0x43e   : > { %4190 = vmatmul.mubr.f32.gmra.mrb[80].mxu1 %v8061_v28  ;;  %v8451_v58 = vpop.f32.mrb[231].mxu1  ;;  %v8000_v28 = vld [vmem:[%s16947_s9 + $0x7c8] sm:$0xff] }
 0x43f   : > { %4194 = vmatprep.mubr.f32.mxu1 %v8067_v11  ;;  %v13911_v47 = vadd.f32 %v8451_v58, %v8450_v17  ;;  %v13913_v39 = vpop.f32.mrb[58].mxu0  ;;  %v8005_v17 = vld [vmem:[%s16947_s9 + $0x7f0] sm:$0xff] }
 0x440   : > { %v13918_v5 = vpop.f32.mrb[59].mxu0 }
 0x441   : > { %v8453_v33 = vpop.f32.mrb[232].mxu1 }
 0x442   : > { %4195 = vmatmul.mubr.f32.gmra.mrb[82].mxu1 %v8066_v2  ;;  %v8454_v32 = vpop.f32.mrb[233].mxu1 }
 0x443   : > { %9665 = vmatprep.mubr.msk.f32.mxu1 %vm2311_vm6, %v7995_v29  ;;  %v13924_v11 = vadd.f32 %v8454_v32, %v8453_v33  ;;  %v13926_v58 = vpop.f32.mrb[60].mxu0  ;;  %v8010_v29 = vld [vmem:[%s16947_s9 + $0x818] sm:$0xff] }
 0x444   : > { %v13931_v30 = vpop.f32.mrb[61].mxu0 }
 0x445   : > { %v8456_v52 = vpop.f32.mrb[234].mxu1 }
 0x446   : > { %9666 = vmatmul.mubr.msk.f32.vlgmr.msra.gmra.mrb[84].mxu1 %vm2311_vm6, %v8000_v28  ;;  %v8457_v2 = vpop.f32.mrb[235].mxu1 }
 0x447   : > { %9668 = vmatprep.mubr.msk.f32.mxu1 %vm2311_vm6, %v8005_v17  ;;  %v13938_v33 = vadd.f32 %v8457_v2, %v8456_v52  ;;  %v13940_v32 = vpop.f32.mrb[62].mxu0  ;;  %v8020_v17 = vld [vmem:[%s16947_s9 + $0x868] sm:$0xff] }
 0x448   : > { %16979 = vst [vmem:[#allocation26_spill] sm:$0xff] %v13940_v32  ;;  %v13945_v41 = vpop.f32.mrb[63].mxu0 }
 0x449   : > { %16980 = vst [vmem:[#allocation27_spill] sm:$0xff] %v13945_v41  ;;  %v8459_v23 = vpop.f32.mrb[236].mxu1 }
 0x44a   : > { %9669 = vmatmul.mubr.msk.f32.gmra.mrb[86].mxu1 %vm2311_vm6, %v8010_v29  ;;  %v8460_v28 = vpop.f32.mrb[237].mxu1 }
 0x44b   : > { %9671 = vmatprep.mubr.msk.f32.mxu1 %vm2311_vm6, %v8015_v45  ;;  %v13952_v52 = vadd.f32 %v8460_v28, %v8459_v23  ;;  %v13954_v2 = vpop.f32.mrb[64].mxu0  ;;  %v8030_v23 = vld [vmem:[%s16947_s9 + $0x8b8] sm:$0xff]  ;;  %v8035_v28 = vld [vmem:[%s16947_s9 + $0x8e0] sm:$0xff] }
 0x44c   : > { %16981 = vst [vmem:[#allocation28_spill] sm:$0xff] %v13954_v2  ;;  %v13959_v59 = vpop.f32.mrb[65].mxu0 }
 0x44d   : > { %16982 = vst [vmem:[#allocation29_spill] sm:$0xff] %v13959_v59  ;;  %v8462_v15 = vpop.f32.mrb[238].mxu1 }
 0x44e   : > { %9672 = vmatmul.mubr.msk.f32.gmra.mrb[88].mxu1 %vm2311_vm6, %v8020_v17  ;;  %v8463_v29 = vpop.f32.mrb[239].mxu1 }
 0x44f   : > { %9674 = vmatprep.mubr.msk.f32.mxu1 %vm2311_vm6, %v8025_v7  ;;  %v13963_v45 = vadd.f32 %v8463_v29, %v8462_v15  ;;  %v13971_v36 = vpop.f32.mrb[66].mxu0  ;;  %v8040_v15 = vld [vmem:[%s16947_s9 + $0x908] sm:$0xff]  ;;  %v8045_v7 = vld [vmem:[%s16947_s9 + $0x930] sm:$0xff] }
 0x450   : > { %16983 = vst [vmem:[#allocation30_spill] sm:$0xff] %v13971_v36  ;;  %v13973_v34 = vpop.f32.mrb[67].mxu0 }
 0x451   : > { %v8465_v4 = vpop.f32.mrb[240].mxu1  ;;  %16984 = vst [vmem:[#allocation31_spill] sm:$0xff] %v13973_v34 }
 0x452   : > { %9675 = vmatmul.mubr.msk.f32.gmra.mrb[90].mxu1 %vm2311_vm6, %v8030_v23  ;;  %v8466_v17 = vpop.f32.mrb[241].mxu1  ;;  %v8055_v23 = vld [vmem:[%s16947_s9 + $0x980] sm:$0xff] }
 0x453   : > { %v13976_v35 = vadd.f32 %v8466_v17, %v8465_v4  ;;  %9677 = vmatprep.mubr.msk.f32.mxu1 %vm2311_vm6, %v8035_v28  ;;  %v8050_v4 = vld [vmem:[%s16947_s9 + $0x958] sm:$0xff]  ;;  %v13995_v28 = vpop.f32.mrb[68].mxu0 }
 0x454   : > { %16985 = vst [vmem:[#allocation32_spill] sm:$0xff] %v13995_v28  ;;  %v13997_v2 = vpop.f32.mrb[69].mxu0 }
 0x455   : > { %v8468_v29 = vpop.f32.mrb[242].mxu1  ;;  %16986 = vst [vmem:[#allocation33_spill] sm:$0xff] %v13997_v2 }
 0x456   : > { %v8469_v36 = vpop.f32.mrb[243].mxu1  ;;  %9678 = vmatmul.mubr.msk.f32.gmra.mrb[92].mxu1 %vm2311_vm6, %v8040_v15  ;;  %v8060_v15 = vld [vmem:[%s16947_s9 + $0x9a8] sm:$0xff] }
 0x457   : > { %v13986_v34 = vadd.f32 %v8469_v36, %v8468_v29  ;;  %9680 = vmatprep.mubr.msk.f32.mxu1 %vm2311_vm6, %v8045_v7  ;;  %v8065_v7 = vld [vmem:[%s16947_s9 + $0x9d0] sm:$0xff] }
 0x459   : > { %v8503_v17 = vpop.f32.mrb[244].mxu1 }
 0x45a   : > { %v8504_v38 = vpop.f32.mrb[245].mxu1  ;;  %9681 = vmatmul.mubr.msk.f32.gmra.mrb[94].mxu1 %vm2311_vm6, %v8050_v4 }
 0x45b   : > { %v8505_v36 = vadd.f32 %v8504_v38, %v8503_v17  ;;  %9683 = vmatprep.mubr.msk.f32.mxu1 %vm2311_vm6, %v8055_v23  ;;  %v8865_v29 = vpop.f32.mrb[70].mxu0  ;;  %v8070_v17 = vld [vmem:[%s16947_s9 + $0x9f8] sm:$0x1] }
 0x45c   : > { %v8866_v48 = vpop.f32.mrb[71].mxu0 }
 0x45d   : > { %v8506_v59 = vpop.f32.mrb[246].mxu1  ;;  %v3139_v28 = vadd.f32 %v8505_v36, %v13819_v3  ;;  %v14009_v4 = vadd.f32 %v8866_v48, %v8865_v29 }
 0x45e   : > { %v8507_v2 = vpop.f32.mrb[247].mxu1  ;;  %9684 = vmatmul.mubr.msk.f32.gmra.mrb[96].mxu1 %vm2311_vm6, %v8060_v15 }
 0x45f   : > { %16987 = vst [vmem:[#allocation34_spill] sm:$0xff] %v14009_v4  ;;  %v8508_v38 = vadd.f32 %v8507_v2, %v8506_v59  ;;  %v3284_v23 = vadd.f32 %v13607_v61, %v3139_v28  ;;  %9686 = vmatprep.mubr.msk.f32.mxu1 %vm2311_vm6, %v8065_v7  ;;  %v8868_v32 = vpop.f32.mrb[72].mxu0 }
 0x460   : > { %v8869_v3 = vpop.f32.mrb[73].mxu0 }
 0x461   : > { %v3144_v27 = vadd.f32 %v8508_v38, %v13829_v6  ;;  %v8509_v41 = vpop.f32.mrb[248].mxu1  ;;  %v14018_v15 = vadd.f32 %v8869_v3, %v8868_v32 }
 0x462   : > { %v8510_v36 = vpop.f32.mrb[249].mxu1  ;;  %9687 = vmatmul.mubr.msk.f32.gmra.mrb[98].mxu1 %vm2311_vm6, %v8070_v17 }
 0x463   : > { %v3289_v59 = vadd.f32 %v13602_v53, %v3144_v27  ;;  %v8511_v48 = vadd.f32 %v8510_v36, %v8509_v41  ;;  %v8871_v61 = vpop.f32.mrb[74].mxu0 }
 0x464   : > { %v8872_v29 = vpop.f32.mrb[75].mxu0 }
 0x465   : > { %v11036_v2 = vpack.i.bf16 %v3289_v59, %v3284_v23  ;;  %v8512_v28 = vpop.f32.mrb[250].mxu1  ;;  %v3149_v7 = vadd.f32 %v8511_v48, %v13839_v42  ;;  %v14022_v49 = vadd.f32 %v8872_v29, %v8871_v61 }
 0x466   : > { %v8513_v4 = vpop.f32.mrb[251].mxu1 }
 0x467   : > { %v8514_v6 = vadd.f32 %v8513_v4, %v8512_v28  ;;  %11037 = vrot.lane.b32.xlu1 %v11036_v2, %s11176_s30  ;;  %v3294_v38 = vadd.f32 %v13631_v54, %v3149_v7  ;;  %v8874_v32 = vpop.f32.mrb[76].mxu0 }
 0x468   : > { %v8875_v41 = vpop.f32.mrb[77].mxu0 }
 0x469   : > { %v3154_v17 = vadd.f32 %v8514_v6, %v13849_v43  ;;  %v8515_v53 = vpop.f32.mrb[252].mxu1  ;;  %v14027_v23 = vadd.f32 %v8875_v41, %v8874_v32 }
 0x46a   : > { %v8516_v27 = vpop.f32.mrb[253].mxu1 }
 0x46b   : > { %v3299_v42 = vadd.f32 %v13626_v0, %v3154_v17  ;;  %v8517_v3 = vadd.f32 %v8516_v27, %v8515_v53  ;;  %v8877_v36 = vpop.f32.mrb[78].mxu0 }
 0x46c   : > { %v8878_v61 = vpop.f32.mrb[79].mxu0 }
 0x46d   : > { %v11041_v59 = vpack.i.bf16 %v3299_v42, %v3294_v38  ;;  %v3159_v4 = vadd.f32 %v8517_v3, %v13859_v37  ;;  %v8518_v48 = vpop.f32.mrb[254].mxu1  ;;  %v14031_v28 = vadd.f32 %v8878_v61, %v8877_v36 }
 0x46e   : > { %v8519_v2 = vpop.f32.mrb[255].mxu1 }
 0x46f   : > { %11042 = vrot.lane.b32.xlu1 %v11041_v59, %s11176_s30  ;;  %v14035_v54 = vadd.f32 %v13650_v62, %v3159_v4  ;;  %v8520_v43 = vadd.f32 %v8519_v2, %v8518_v48  ;;  %v8880_v7 = vpop.f32.mrb[80].mxu0 }
 0x470   : > { %v8881_v6 = vpop.f32.mrb[81].mxu0 }
 0x471   : > { %v3164_v29 = vadd.f32 %v8520_v43, %v13869_v16  ;;  %v8521_v0 = vpop.f32.mrb[0].mxu1  ;;  %v14038_v38 = vadd.f32 %v8881_v6, %v8880_v7 }
 0x472   : > { %v8522_v32 = vpop.f32.mrb[1].mxu1 }
 0x473   : > { %v14041_v37 = vadd.f32 %v13645_v63, %v3164_v29  ;;  %v8523_v17 = vadd.f32 %v8522_v32, %v8521_v0  ;;  %v8883_v53 = vpop.f32.mrb[82].mxu0 }
 0x474   : > { %v8884_v42 = vpop.f32.mrb[83].mxu0 }
 0x475   : > { %v11066_v41 = vpack.i.bf16 %v14041_v37, %v14035_v54  ;;  %v3169_v62 = vadd.f32 %v8523_v17, %v13879_v26  ;;  %v8524_v27 = vpop.f32.mrb[2].mxu1  ;;  %v14046_v36 = vadd.f32 %v8884_v42, %v8883_v53 }
 0x476   : > { %v8525_v3 = vpop.f32.mrb[3].mxu1 }
 0x477   : > { %v14049_v16 = vadd.f32 %v13657_v57, %v3169_v62  ;;  %v8526_v59 = vadd.f32 %v8525_v3, %v8524_v27  ;;  %v8886_v4 = vpop.f32.mrb[84].mxu0 }
 0x478   : > { %v8887_v61 = vpop.f32.mrb[85].mxu0 }
 0x479   : > { %v3174_v63 = vadd.f32 %v8526_v59, %v13891_v31  ;;  %v8527_v48 = vpop.f32.mrb[4].mxu1  ;;  %v14052_v43 = vadd.f32 %v8887_v61, %v8886_v4 }
 0x47a   : > { %v8528_v2 = vpop.f32.mrb[5].mxu1 }
 0x47b   : > { %v14055_v7 = vadd.f32 %v13655_v44, %v3174_v63  ;;  %v8529_v26 = vadd.f32 %v8528_v2, %v8527_v48  ;;  %v8889_v29 = vpop.f32.mrb[86].mxu0 }
 0x47c   : > { %v8890_v32 = vpop.f32.mrb[87].mxu0 }
 0x47d   : > { %v11081_v0 = vpack.i.bf16 %v14055_v7, %v14049_v16  ;;  %v3179_v57 = vadd.f32 %v8529_v26, %v13899_v46  ;;  %v8530_v6 = vpop.f32.mrb[6].mxu1  ;;  %v14060_v53 = vadd.f32 %v8890_v32, %v8889_v29 }
 0x47e   : > { %v8531_v17 = vpop.f32.mrb[7].mxu1 }
 0x47f   : > { %v14063_v31 = vadd.f32 %v13667_v18, %v3179_v57  ;;  %v8532_v62 = vadd.f32 %v8531_v17, %v8530_v6  ;;  %v8892_v27 = vpop.f32.mrb[88].mxu0 }
 0x480   : > { %v8893_v3 = vpop.f32.mrb[89].mxu0 }
 0x481   : > { %v3184_v44 = vadd.f32 %v8532_v62, %v13911_v47  ;;  %v8533_v42 = vpop.f32.mrb[8].mxu1  ;;  %v14066_v4 = vadd.f32 %v8893_v3, %v8892_v27 }
 0x482   : > { %v8534_v59 = vpop.f32.mrb[9].mxu1 }
 0x483   : > { %v14069_v63 = vadd.f32 %v13662_v25, %v3184_v44  ;;  %v8535_v46 = vadd.f32 %v8534_v59, %v8533_v42  ;;  %v8895_v48 = vpop.f32.mrb[90].mxu0 }
 0x484   : > { %v8896_v26 = vpop.f32.mrb[91].mxu0 }
 0x485   : > { %v11096_v61 = vpack.i.bf16 %v14069_v63, %v14063_v31  ;;  %v3189_v18 = vadd.f32 %v8535_v46, %v13924_v11  ;;  %v8536_v2 = vpop.f32.mrb[10].mxu1  ;;  %v14074_v57 = vadd.f32 %v8896_v26, %v8895_v48 }
 0x486   : > { %v8537_v29 = vpop.f32.mrb[11].mxu1 }
 0x487   : > { %v14077_v47 = vadd.f32 %v13674_v20, %v3189_v18  ;;  %v8538_v6 = vadd.f32 %v8537_v29, %v8536_v2  ;;  %v8898_v32 = vpop.f32.mrb[92].mxu0 }
 0x488   : > { %v8899_v62 = vpop.f32.mrb[93].mxu0 }
 0x489   : > { %v3194_v25 = vadd.f32 %v8538_v6, %v13938_v33  ;;  %v8539_v17 = vpop.f32.mrb[12].mxu1  ;;  %v14080_v44 = vadd.f32 %v8899_v62, %v8898_v32 }
 0x48a   : > { %v8540_v27 = vpop.f32.mrb[13].mxu1 }
 0x48b   : > { %v14083_v42 = vadd.f32 %v13672_v24, %v3194_v25  ;;  %v8541_v11 = vadd.f32 %v8540_v27, %v8539_v17  ;;  %v8901_v3 = vpop.f32.mrb[94].mxu0 }
 0x48c   : > { %v8902_v48 = vpop.f32.mrb[95].mxu0 }
 0x48d   : > { %v3199_v20 = vadd.f32 %v8541_v11, %v13952_v52  ;;  %v8542_v46 = vpop.f32.mrb[14].mxu1  ;;  %v14088_v2 = vadd.f32 %v8902_v48, %v8901_v3 }
 0x48e   : > { %v8543_v18 = vpop.f32.mrb[15].mxu1 }
 0x48f   : > { %v14091_v33 = vadd.f32 %v13684_v60, %v3199_v20  ;;  %v8544_v26 = vadd.f32 %v8543_v18, %v8542_v46  ;;  %v8904_v29 = vpop.f32.mrb[96].mxu0 }
 0x490   : > { %v8905_v32 = vpop.f32.mrb[97].mxu0 }
 0x491   : > { %v3204_v24 = vadd.f32 %v8544_v26, %v13963_v45  ;;  %v8545_v6 = vpop.f32.mrb[16].mxu1  ;;  %v14094_v17 = vadd.f32 %v8905_v32, %v8904_v29 }
 0x492   : > { %v8546_v25 = vpop.f32.mrb[17].mxu1 }
 0x493   : > { %v14097_v62 = vadd.f32 %v13679_v1, %v3204_v24  ;;  %v8547_v52 = vadd.f32 %v8546_v25, %v8545_v6  ;;  %v8907_v27 = vpop.f32.mrb[98].mxu0 }
 0x494   : > { %v8908_v20 = vpop.f32.mrb[99].mxu0 }
 0x495   : > { %v3209_v60 = vadd.f32 %v8547_v52, %v13976_v35  ;;  %v8548_v3 = vpop.f32.mrb[18].mxu1  ;;  %v14102_v48 = vadd.f32 %v8908_v20, %v8907_v27 }
 0x496   : > { %v8549_v46 = vpop.f32.mrb[19].mxu1 }
 0x497   : > { %v14105_v45 = vadd.f32 %v13694_v13, %v3209_v60  ;;  %v8550_v18 = vadd.f32 %v8549_v46, %v8548_v3  ;;  %v8910_v26 = vpop.f32.mrb[100].mxu0 }
 0x498   : > { %v8911_v24 = vpop.f32.mrb[101].mxu0 }
 0x499   : > { %v3214_v1 = vadd.f32 %v8550_v18, %v13986_v34  ;;  %v8684_v29 = vpop.f32.mrb[20].mxu1  ;;  %v14108_v32 = vadd.f32 %v8911_v24, %v8910_v26 }
 0x49a   : > { %v8685_v6 = vpop.f32.mrb[21].mxu1 }
 0x49b   : > { %v14111_v25 = vadd.f32 %v13689_v56, %v3214_v1  ;;  %v8686_v35 = vadd.f32 %v8685_v6, %v8684_v29 }
 0x49d   : > { %v8687_v52 = vpop.f32.mrb[22].mxu1  ;;  %v3703_v27 = vadd.f32 %v8686_v35, %v13705_v8 }
 0x49e   : > { %v8688_v20 = vpop.f32.mrb[23].mxu1 }
 0x49f   : > { %v8689_v11 = vadd.f32 %v8688_v20, %v8687_v52  ;;  %v3848_v13 = vadd.f32 %v13886_v12, %v3703_v27 }
 0x4a1   : > { %v3708_v60 = vadd.f32 %v8689_v11, %v13716_v10  ;;  %v8690_v3 = vpop.f32.mrb[24].mxu1 }
 0x4a2   : > { %v8691_v34 = vpop.f32.mrb[25].mxu1 }
 0x4a3   : > { %v3853_v46 = vadd.f32 %v13884_v50, %v3708_v60  ;;  %v8692_v18 = vadd.f32 %v8691_v34, %v8690_v3 }
 0x4a5   : > { %v11046_v26 = vpack.i.bf16 %v3853_v46, %v3848_v13  ;;  %v8693_v24 = vpop.f32.mrb[26].mxu1  ;;  %v3713_v56 = vadd.f32 %v8692_v18, %v13721_v19 }
 0x4a6   : > { %v8694_v1 = vpop.f32.mrb[27].mxu1 }
 0x4a7   : > { %v8695_v29 = vadd.f32 %v8694_v1, %v8693_v24  ;;  %11047 = vrot.lane.b32.xlu0 %v11046_v26, %s11177_s13  ;;  %v3858_v8 = vadd.f32 %v13906_v40, %v3713_v56  ;;  %v16988_v1 = vld [vmem:[#allocation17_spill] sm:$0xff] }
 0x4a9   : > { %v3718_v12 = vadd.f32 %v8695_v29, %v13732_v22  ;;  %v8696_v6 = vpop.f32.mrb[28].mxu1 }
 0x4aa   : > { %v8697_v10 = vpop.f32.mrb[29].mxu1 }
 0x4ab   : > { %v3863_v11 = vadd.f32 %v13901_v9, %v3718_v12  ;;  %v8698_v35 = vadd.f32 %v8697_v10, %v8696_v6  ;;  %v16989_v12 = vld [vmem:[#allocation27_spill] sm:$0xff] }
 0x4ac   : > { %v16990_v10 = vld [vmem:[#allocation19_spill] sm:$0xff] }
 0x4ad   : > { %v11051_v50 = vpack.i.bf16 %v3863_v11, %v3858_v8  ;;  %v8699_v52 = vpop.f32.mrb[30].mxu1  ;;  %v3723_v27 = vadd.f32 %v8698_v35, %v13740_v51 }
 0x4ae   : > { %v8700_v20 = vpop.f32.mrb[31].mxu1 }
 0x4af   : > { %11052 = vrot.lane.b32.xlu1 %v11051_v50, %s11177_s13  ;;  %v8701_v19 = vadd.f32 %v8700_v20, %v8699_v52  ;;  %v14125_v13 = vadd.f32 %v13918_v5, %v3723_v27  ;;  %v16991_v50 = vld [vmem:[#allocation26_spill] sm:$0xff]  ;;  %v16992_v20 = vld [vmem:[#allocation20_spill] sm:$0xff] }
 0x4b1   : > { %v8702_v60 = vpop.f32.mrb[32].mxu1  ;;  %v3728_v40 = vadd.f32 %v8701_v19, %v13756_v21 }
 0x4b2   : > { %v8703_v22 = vpop.f32.mrb[33].mxu1 }
 0x4b3   : > { %11067 = vrot.lane.b32.xlu1 %v11066_v41, %s11176_s30  ;;  %v8704_v9 = vadd.f32 %v8703_v22, %v8702_v60  ;;  %v14133_v3 = vadd.f32 %v13913_v39, %v3728_v40  ;;  %v16993_v22 = vld [vmem:[#allocation29_spill] sm:$0xff] }
 0x4b5   : > { %v8705_v51 = vpop.f32.mrb[34].mxu1  ;;  %v11071_v34 = vpack.i.bf16 %v14133_v3, %v14125_v13  ;;  %v3733_v5 = vadd.f32 %v8704_v9, %v13773_v55 }
 0x4b6   : > { %v8706_v46 = vpop.f32.mrb[35].mxu1 }
 0x4b7   : > { %v8707_v18 = vadd.f32 %v8706_v46, %v8705_v51  ;;  %v14139_v21 = vadd.f32 %v13931_v30, %v3733_v5  ;;  %v16994_v5 = vld [vmem:[#allocation21_spill] sm:$0xff] }
 0x4b9   : > { %v8708_v26 = vpop.f32.mrb[36].mxu1  ;;  %v3738_v24 = vadd.f32 %v8707_v18, %v13789_v14 }
 0x4ba   : > { %v8709_v54 = vpop.f32.mrb[37].mxu1 }
 0x4bb   : > { %v8710_v37 = vadd.f32 %v8709_v54, %v8708_v26  ;;  %v14143_v41 = vadd.f32 %v13926_v58, %v3738_v24  ;;  %v16995_v24 = vld [vmem:[#allocation28_spill] sm:$0xff] }
 0x4bd   : > { %v8711_v39 = vpop.f32.mrb[38].mxu1  ;;  %v11086_v56 = vpack.i.bf16 %v14143_v41, %v14139_v21  ;;  %v3743_v29 = vadd.f32 %v8710_v37, %v16988_v1  ;;  %v4892_v37 = vld [vmem:[%s16940_s2 + $0x80] sm:$0xff] }
 0x4be   : > { %v8712_v55 = vpop.f32.mrb[39].mxu1  ;;  %v4876_v1 = vld [vmem:[%s16940_s2] sm:$0xff] }
 0x4bf   : > { %v8713_v8 = vadd.f32 %v8712_v55, %v8711_v39  ;;  %v14149_v6 = vadd.f32 %v16989_v12, %v3743_v29  ;;  %v4893_v39 = vld [vmem:[%s16940_s2 + $0x88] sm:$0xff]  ;;  %v4895_v12 = vld [vmem:[%s16940_s2 + $0x98] sm:$0xff] }
 0x4c0   : > { %v10158_v29 = vpack.c.bf16 %v4893_v39, %v4892_v37  ;;  %v4877_v55 = vld [vmem:[%s16940_s2 + $0x8] sm:$0xff]  ;;  %v4896_v39 = vld [vmem:[%s16940_s2 + $0xa0] sm:$0xff] }
 0x4c1   : > { %v8714_v30 = vpop.f32.mrb[40].mxu1  ;;  %v3748_v11 = vadd.f32 %v8713_v8, %v16990_v10  ;;  %v4894_v8 = vld [vmem:[%s16940_s2 + $0x90] sm:$0xff] }
 0x4c2   : > { %v8715_v14 = vpop.f32.mrb[41].mxu1  ;;  %10159 = vmatprep.subr.bf16.mxu0 %v10158_v29  ;;  %v4926_v29 = vld [vmem:[%s16940_s2 + $0x190] sm:$0xff] }
 0x4c3   : > { %v8716_v35 = vadd.f32 %v8715_v14, %v8714_v30  ;;  %v14153_v52 = vadd.f32 %v16991_v50, %v3748_v11  ;;  %v16996_v11 = vld [vmem:[#allocation22_spill] sm:$0xff]  ;;  %v10162_v50 = vpack.c.bf16 %v4895_v12, %v4894_v8  ;;  %v4927_v8 = vld [vmem:[%s16940_s2 + $0x198] sm:$0xff] }
 0x4c4   : > { %v4880_v12 = vld [vmem:[%s16940_s2 + $0x20] sm:$0xff] }
 0x4c5   : > { %v8717_v58 = vpop.f32.mrb[42].mxu1  ;;  %v3753_v19 = vadd.f32 %v8716_v35, %v16992_v20  ;;  %v10160_v35 = vpack.c.bf16 %v4877_v55, %v4876_v1  ;;  %v4925_v20 = vld [vmem:[%s16940_s2 + $0x188] sm:$0xff] }
 0x4c6   : > { %v8718_v60 = vpop.f32.mrb[43].mxu1  ;;  %v4897_v1 = vld [vmem:[%s16940_s2 + $0xa8] sm:$0xff] }
 0x4c7   : > { %v8719_v40 = vadd.f32 %v8718_v60, %v8717_v58  ;;  %v14159_v9 = vadd.f32 %v16993_v22, %v3753_v19  ;;  %v4924_v58 = vld [vmem:[%s16940_s2 + $0x180] sm:$0xff]  ;;  %v4878_v19 = vld [vmem:[%s16940_s2 + $0x10] sm:$0xff]  ;;  %v4879_v22 = vld [vmem:[%s16940_s2 + $0x18] sm:$0xff]  ;;  %10161 = vmatpush3.bf16.msra.mxu0 %v10160_v35  ;;  %v10166_v55 = vpack.c.bf16 %v4897_v1, %v4896_v39 }
 0x4c8   : > { %10163 = vmatprep.subr.bf16.mxu0 %v10162_v50  ;;  %v4910_v50 = vld [vmem:[%s16940_s2 + $0x110] sm:$0xff] }
 0x4c9   : > { %v8720_v51 = vpop.f32.mrb[44].mxu1  ;;  %v3758_v46 = vadd.f32 %v8719_v40, %v16994_v5  ;;  %v10190_v40 = vpack.c.bf16 %v4925_v20, %v4924_v58  ;;  %v4909_v5 = vld [vmem:[%s16940_s2 + $0x108] sm:$0xff]  ;;  %v10194_v58 = vpack.c.bf16 %v4927_v8, %v4926_v29  ;;  %v4911_v20 = vld [vmem:[%s16940_s2 + $0x118] sm:$0xff]  ;;  %v4882_v1 = vld [vmem:[%s16940_s2 + $0x30] sm:$0xff] }
 0x4ca   : > { %v8721_v18 = vpop.f32.mrb[45].mxu1  ;;  %v4912_v29 = vld [vmem:[%s16940_s2 + $0x120] sm:$0xff] }
 0x4cb   : > { %v8722_v26 = vadd.f32 %v8721_v18, %v8720_v51  ;;  %v14163_v54 = vadd.f32 %v16995_v24, %v3758_v46  ;;  %v4908_v51 = vld [vmem:[%s16940_s2 + $0x100] sm:$0xff]  ;;  %v16997_v18 = vld [vmem:[#allocation31_spill] sm:$0xff]  ;;  %v10164_v24 = vpack.c.bf16 %v4879_v22, %v4878_v19  ;;  %10191 = vmatprep.subr.bf16.mxu1 %v10190_v40  ;;  %v4898_v19 = vld [vmem:[%s16940_s2 + $0xb0] sm:$0xff]  ;;  %v10196_v40 = vpack.c.bf16 %v4911_v20, %v4910_v50 }
 0x4cc   : > { %v10192_v37 = vpack.c.bf16 %v4909_v5, %v4908_v51  ;;  %v4899_v22 = vld [vmem:[%s16940_s2 + $0xb8] sm:$0xff]  ;;  %v4928_v51 = vld [vmem:[%s16940_s2 + $0x1a0] sm:$0xff]  ;;  %v4929_v5 = vld [vmem:[%s16940_s2 + $0x1a8] sm:$0xff] }
 0x4cd   : > { %v8723_v30 = vpop.f32.mrb[46].mxu1  ;;  %v3763_v14 = vadd.f32 %v8722_v26, %v16996_v11  ;;  %10165 = vmatpush3.bf16.msra.mxu0 %v10164_v24  ;;  %v10170_v8 = vpack.c.bf16 %v4899_v22, %v4898_v19  ;;  %v4913_v24 = vld [vmem:[%s16940_s2 + $0x128] sm:$0xff]  ;;  %v4930_v19 = vld [vmem:[%s16940_s2 + $0x1b0] sm:$0xff] }
 0x4ce   : > { %v8724_v60 = vpop.f32.mrb[47].mxu1  ;;  %10193 = vmatpush3.bf16.msra.mxu1 %v10192_v37  ;;  %10167 = vmatprep.subr.bf16.mxu0 %v10166_v55  ;;  %v10200_v50 = vpack.c.bf16 %v4913_v24, %v4912_v29  ;;  %v4901_v20 = vld [vmem:[%s16940_s2 + $0xc8] sm:$0xff] }
 0x4cf   : > { %v8725_v46 = vadd.f32 %v8724_v60, %v8723_v30  ;;  %v14205_v26 = vadd.f32 %v16997_v18, %v3763_v14  ;;  %v4881_v30 = vld [vmem:[%s16940_s2 + $0x28] sm:$0xff]  ;;  %v16999_v18 = vld [vmem:[#allocation30_spill] sm:$0xff]  ;;  %10195 = vmatprep.subr.bf16.mxu1 %v10194_v58  ;;  %v17000_v58 = vld [vmem:[#allocation24_spill] sm:$0xff] }
 0x4d0   : > { %v16998_v14 = vld [vmem:[#allocation23_spill] sm:$0xff]  ;;  %v10168_v39 = vpack.c.bf16 %v4881_v30, %v4880_v12  ;;  %v4900_v12 = vld [vmem:[%s16940_s2 + $0xc0] sm:$0xff] }
 0x4d1   : > { %v8726_v11 = vpop.f32.mrb[48].mxu1  ;;  %v3768_v35 = vadd.f32 %v8725_v46, %v16998_v14  ;;  %v10198_v14 = vpack.c.bf16 %v4929_v5, %v4928_v51  ;;  %v4915_v5 = vld [vmem:[%s16940_s2 + $0x138] sm:$0xff] }
 0x4d2   : > { %v8727_v60 = vpop.f32.mrb[49].mxu1  ;;  %10197 = vmatpush3.bf16.msra.mxu1 %v10196_v40  ;;  %v4914_v40 = vld [vmem:[%s16940_s2 + $0x130] sm:$0xff]  ;;  %10169 = vmatpush3.bf16.msra.mxu0 %v10168_v39 }
 0x4d3   : > { %v8728_v46 = vadd.f32 %v8727_v60, %v8726_v11  ;;  %v14245_v37 = vadd.f32 %v16999_v18, %v3768_v35  ;;  %v4883_v11 = vld [vmem:[%s16940_s2 + $0x38] sm:$0xff]  ;;  %10199 = vmatprep.subr.bf16.mxu1 %v10198_v14  ;;  %10171 = vmatprep.subr.bf16.mxu0 %v10170_v8  ;;  %v10174_v14 = vpack.c.bf16 %v4901_v20, %v4900_v12  ;;  %v4902_v8 = vld [vmem:[%s16940_s2 + $0xd0] sm:$0xff] }
 0x4d4   : > { %v4931_v60 = vld [vmem:[%s16940_s2 + $0x1b8] sm:$0xff]  ;;  %v10172_v24 = vpack.c.bf16 %v4883_v11, %v4882_v1  ;;  %v4934_v35 = vld [vmem:[%s16940_s2 + $0x1d0] sm:$0xff] }
 0x4d5   : > { %v8729_v30 = vpop.f32.mrb[50].mxu1  ;;  %v3773_v55 = vadd.f32 %v8728_v46, %v17000_v58  ;;  %v10202_v51 = vpack.c.bf16 %v4931_v60, %v4930_v19  ;;  %v17001_v18 = vld [vmem:[#allocation33_spill] sm:$0xff]  ;;  %v4932_v58 = vld [vmem:[%s16940_s2 + $0x1c0] sm:$0xff]  ;;  %v4885_v60 = vld [vmem:[%s16940_s2 + $0x48] sm:$0xff] }
 0x4d6   : > { %v8730_v22 = vpop.f32.mrb[51].mxu1  ;;  %v4884_v19 = vld [vmem:[%s16940_s2 + $0x40] sm:$0xff]  ;;  %v17002_v1 = vld [vmem:[#allocation25_spill] sm:$0xff]  ;;  %10201 = vmatpush3.bf16.msra.mxu1 %v10200_v50  ;;  %v4917_v50 = vld [vmem:[%s16940_s2 + $0x148] sm:$0xff]  ;;  %10173 = vmatpush3.bf16.msra.mxu0 %v10172_v24 }
 0x4d7   : > { %v8731_v46 = vadd.f32 %v8730_v22, %v8729_v30  ;;  %v14281_v29 = vadd.f32 %v17001_v18, %v3773_v55  ;;  %v4933_v30 = vld [vmem:[%s16940_s2 + $0x1c8] sm:$0xff]  ;;  %v10204_v55 = vpack.c.bf16 %v4915_v5, %v4914_v40  ;;  %v4903_v12 = vld [vmem:[%s16940_s2 + $0xd8] sm:$0xff]  ;;  %10203 = vmatprep.subr.bf16.mxu1 %v10202_v51  ;;  %v4916_v18 = vld [vmem:[%s16940_s2 + $0x140] sm:$0xff]  ;;  %10175 = vmatprep.subr.bf16.mxu0 %v10174_v14 }
 0x4d8   : > { %v10206_v22 = vpack.c.bf16 %v4933_v30, %v4932_v58  ;;  %v17003_v5 = vld [vmem:[#allocation32_spill] sm:$0xff]  ;;  %v4935_v51 = vld [vmem:[%s16940_s2 + $0x1d8] sm:$0xff]  ;;  %v10178_v58 = vpack.c.bf16 %v4903_v12, %v4902_v8  ;;  %v4905_v14 = vld [vmem:[%s16940_s2 + $0xe8] sm:$0xff] }
 0x4d9   : > { %v8785_v39 = vpop.f32.mrb[52].mxu1  ;;  %v3778_v11 = vadd.f32 %v8731_v46, %v17002_v1  ;;  %v10176_v1 = vpack.c.bf16 %v4885_v60, %v4884_v19  ;;  %v4886_v30 = vld [vmem:[%s16940_s2 + $0x50] sm:$0xff]  ;;  %v17004_v19 = vld [vmem:[#allocation34_spill] sm:$0xff]  ;;  %v10210_v12 = vpack.c.bf16 %v4935_v51, %v4934_v35 }
 0x4da   : > { %v8786_v20 = vpop.f32.mrb[53].mxu1  ;;  %10205 = vmatpush3.bf16.msra.mxu1 %v10204_v55 }
 0x4db   : > { %v8787_v40 = vadd.f32 %v8786_v20, %v8785_v39  ;;  %v14309_v46 = vadd.f32 %v17003_v5, %v3778_v11  ;;  %v4887_v39 = vld [vmem:[%s16940_s2 + $0x58] sm:$0xff]  ;;  %v10208_v11 = vpack.c.bf16 %v4917_v50, %v4916_v18  ;;  %v4904_v20 = vld [vmem:[%s16940_s2 + $0xe0] sm:$0xff]  ;;  %10207 = vmatprep.subr.bf16.mxu1 %v10206_v22  ;;  %10177 = vmatpush3.bf16.msra.mxu0 %v10176_v1 }
 0x4dc   : > { %v10180_v10 = vpack.c.bf16 %v4887_v39, %v4886_v30  ;;  %10179 = vmatprep.subr.bf16.mxu0 %v10178_v58  ;;  %v10182_v59 = vpack.c.bf16 %v4905_v14, %v4904_v20 }
 0x4dd   : > { %v8788_v24 = vpop.f32.mrb[54].mxu1  ;;  %v14324_v60 = vadd.f32 %v17004_v19, %v8787_v40 }
 0x4de   : > { %v8789_v8 = vpop.f32.mrb[55].mxu1  ;;  %10209 = vmatpush3.bf16.msra.mxu1 %v10208_v11 }
 0x4df   : > { %v8790_v5 = vadd.f32 %v8789_v8, %v8788_v24  ;;  %10211 = vmatprep.subr.bf16.mxu1 %v10210_v12  ;;  %10181 = vmatpush3.bf16.msra.mxu0 %v10180_v10 }
 0x4e0   : > { %10183 = vmatprep.subr.bf16.mxu0 %v10182_v59 }
 0x4e1   : > { %v8791_v40 = vpop.f32.mrb[56].mxu1  ;;  %v14333_v55 = vadd.f32 %v14018_v15, %v8790_v5 }
 0x4e2   : > { %v8792_v18 = vpop.f32.mrb[57].mxu1 }
 0x4e3   : > { %v8793_v50 = vadd.f32 %v8792_v18, %v8791_v40 }
 0x4e5   : > { %v8794_v19 = vpop.f32.mrb[58].mxu1  ;;  %v14336_v27 = vadd.f32 %v14022_v49, %v8793_v50 }
 0x4e6   : > { %v8795_v35 = vpop.f32.mrb[59].mxu1 }
 0x4e7   : > { %v8796_v22 = vadd.f32 %v8795_v35, %v8794_v19 }
 0x4e9   : > { %v8797_v1 = vpop.f32.mrb[60].mxu1  ;;  %v14339_v51 = vadd.f32 %v14027_v23, %v8796_v22 }
 0x4ea   : > { %v8798_v58 = vpop.f32.mrb[61].mxu1 }
 0x4eb   : > { %v8799_v30 = vadd.f32 %v8798_v58, %v8797_v1 }
 0x4ed   : > { %v8800_v15 = vpop.f32.mrb[62].mxu1  ;;  %v14342_v39 = vadd.f32 %v14031_v28, %v8799_v30 }
 0x4ee   : > { %v8801_v24 = vpop.f32.mrb[63].mxu1 }
 0x4ef   : > { %v8802_v11 = vadd.f32 %v8801_v24, %v8800_v15 }
 0x4f1   : > { %v8803_v10 = vpop.f32.mrb[64].mxu1  ;;  %v14345_v59 = vadd.f32 %v14038_v38, %v8802_v11 }
 0x4f2   : > { %v8804_v49 = vpop.f32.mrb[65].mxu1 }
 0x4f3   : > { %v8805_v20 = vadd.f32 %v8804_v49, %v8803_v10 }
 0x4f5   : > { %v8806_v14 = vpop.f32.mrb[66].mxu1  ;;  %v14348_v8 = vadd.f32 %v14046_v36, %v8805_v20 }
 0x4f6   : > { %v8807_v23 = vpop.f32.mrb[67].mxu1 }
 0x4f7   : > { %v8808_v12 = vadd.f32 %v8807_v23, %v8806_v14 }
 0x4f9   : > { %v8809_v5 = vpop.f32.mrb[68].mxu1  ;;  %v14351_v40 = vadd.f32 %v14052_v43, %v8808_v12 }
 0x4fa   : > { %v8810_v28 = vpop.f32.mrb[69].mxu1 }
 0x4fb   : > { %v8811_v18 = vadd.f32 %v8810_v28, %v8809_v5  ;;  %v4888_v28 = vld [vmem:[%s16940_s2 + $0x60] sm:$0xff] }
 0x4fd   : > { %v8812_v50 = vpop.f32.mrb[70].mxu1  ;;  %v14354_v19 = vadd.f32 %v14060_v53, %v8811_v18 }
 0x4fe   : > { %v8813_v38 = vpop.f32.mrb[71].mxu1 }
 0x4ff   : > { %v8814_v35 = vadd.f32 %v8813_v38, %v8812_v50 }
 0x501   : > { %v8815_v22 = vpop.f32.mrb[72].mxu1  ;;  %v14357_v1 = vadd.f32 %v14066_v4, %v8814_v35 }
 0x502   : > { %v8816_v36 = vpop.f32.mrb[73].mxu1 }
 0x503   : > { %v8817_v58 = vadd.f32 %v8816_v36, %v8815_v22  ;;  %v4906_v36 = vld [vmem:[%s16940_s2 + $0xf0] sm:$0xff] }
 0x505   : > { %v8818_v30 = vpop.f32.mrb[74].mxu1  ;;  %v14360_v15 = vadd.f32 %v14074_v57, %v8817_v58  ;;  %v4907_v58 = vld [vmem:[%s16940_s2 + $0xf8] sm:$0xff] }
 0x506   : > { %v8819_v43 = vpop.f32.mrb[75].mxu1 }
 0x507   : > { %v8820_v24 = vadd.f32 %v8819_v43, %v8818_v30  ;;  %v4936_v30 = vld [vmem:[%s16940_s2 + $0x1e0] sm:$0xff] }
 0x509   : > { %v8821_v11 = vpop.f32.mrb[76].mxu1  ;;  %v14363_v10 = vadd.f32 %v14080_v44, %v8820_v24  ;;  %v4889_v44 = vld [vmem:[%s16940_s2 + $0x68] sm:$0xff]  ;;  %v10186_v24 = vpack.c.bf16 %v4907_v58, %v4906_v36 }
 0x50a   : > { %v8822_v53 = vpop.f32.mrb[77].mxu1  ;;  %v10184_v50 = vpack.c.bf16 %v4889_v44, %v4888_v28 }
 0x50b   : > { %v8823_v49 = vadd.f32 %v8822_v53, %v8821_v11  ;;  %v4890_v11 = vld [vmem:[%s16940_s2 + $0x70] sm:$0xff]  ;;  %v4891_v53 = vld [vmem:[%s16940_s2 + $0x78] sm:$0xff] }
 0x50c   : > { %10185 = vmatpush3.bf16.msra.mxu0 %v10184_v50 }
 0x50d   : > { %v8824_v20 = vpop.f32.mrb[78].mxu1  ;;  %v14366_v14 = vadd.f32 %v14088_v2, %v8823_v49  ;;  %v4918_v2 = vld [vmem:[%s16940_s2 + $0x150] sm:$0xff]  ;;  %10187 = vmatprep.subr.bf16.mxu0 %v10186_v24 }
 0x50e   : > { %v8825_v4 = vpop.f32.mrb[79].mxu1 }
 0x50f   : > { %v8826_v23 = vadd.f32 %v8825_v4, %v8824_v20  ;;  %v10188_v4 = vpack.c.bf16 %v4891_v53, %v4890_v11 }
 0x511   : > { %v8827_v12 = vpop.f32.mrb[80].mxu1  ;;  %v14369_v5 = vadd.f32 %v14094_v17, %v8826_v23  ;;  %v4919_v17 = vld [vmem:[%s16940_s2 + $0x158] sm:$0xff]  ;;  %v4920_v23 = vld [vmem:[%s16940_s2 + $0x160] sm:$0xff]  ;;  %10189 = vmatpush3.bf16.msra.mxu0 %v10188_v4 }
 0x512   : > { %v8828_v57 = vpop.f32.mrb[81].mxu1  ;;  %v10212_v38 = vpack.c.bf16 %v4919_v17, %v4918_v2  ;;  %v4938_v2 = vld [vmem:[%s16940_s2 + $0x1f0] sm:$0xff] }
 0x513   : > { %v8829_v18 = vadd.f32 %v8828_v57, %v8827_v12  ;;  %v4921_v12 = vld [vmem:[%s16940_s2 + $0x168] sm:$0xff] }
 0x514   : > { %10213 = vmatpush3.bf16.msra.mxu1 %v10212_v38  ;;  %v10216_v57 = vpack.c.bf16 %v4921_v12, %v4920_v23 }
 0x515   : > { %v8830_v35 = vpop.f32.mrb[82].mxu1  ;;  %v14384_v22 = vadd.f32 %v14102_v48, %v8829_v18  ;;  %v4937_v48 = vld [vmem:[%s16940_s2 + $0x1e8] sm:$0xff]  ;;  %v4939_v18 = vld [vmem:[%s16940_s2 + $0x1f8] sm:$0xff] }
 0x516   : > { %v8831_v43 = vpop.f32.mrb[83].mxu1  ;;  %v10214_v20 = vpack.c.bf16 %v4937_v48, %v4936_v30  ;;  %v10218_v38 = vpack.c.bf16 %v4939_v18, %v4938_v2 }
 0x517   : > { %v8832_v49 = vadd.f32 %v8831_v43, %v8830_v35  ;;  %v4922_v35 = vld [vmem:[%s16940_s2 + $0x170] sm:$0xff] }
 0x518   : > { %10215 = vmatprep.subr.bf16.mxu1 %v10214_v20 }
 0x519   : > { %v9667_v28 = vpop.f32.mrb[84].mxu1  ;;  %v4342_v44 = vadd.f32 %v14108_v32, %v8832_v49  ;;  %10217 = vmatpush3.bf16.msra.mxu1 %v10216_v57  ;;  %v4923_v32 = vld [vmem:[%s16940_s2 + $0x178] sm:$0xff] }
 0x51a   : > { %v4417_v50 = vadd.f32 %v9667_v28, %v14333_v55  ;;  %v4411_v17 = vpop.f32.mrb[85].mxu1  ;;  %v10220_v58 = vpack.c.bf16 %v4923_v32, %v4922_v35  ;;  %10219 = vmatprep.subr.bf16.mxu1 %v10218_v38 }
 0x51b   : > { %v4412_v36 = vadd.f32 %v4411_v17, %v14324_v60 }
 0x51d   : > { %v11056_v30 = vpack.i.bf16 %v4417_v50, %v4412_v36  ;;  %v9670_v43 = vpop.f32.mrb[86].mxu1  ;;  %10221 = vmatpush3.bf16.msra.mxu1 %v10220_v58 }
 0x51e   : > { %v4427_v24 = vadd.f32 %v9670_v43, %v14339_v51  ;;  %v4421_v55 = vpop.f32.mrb[87].mxu1 }
 0x51f   : > { %v4422_v48 = vadd.f32 %v4421_v55, %v14336_v27  ;;  %11057 = vrot.lane.b32.xlu0 %v11056_v30, %s11178_s16  ;;  %v17012_v30 = vld [vmem:[#allocation5_spill] sm:$0xff] }
 0x521   : > { %v11061_v11 = vpack.i.bf16 %v4427_v24, %v4422_v48  ;;  %v9673_v53 = vpop.f32.mrb[88].mxu1  ;;  %v17013_v48 = vld [vmem:[#allocation4_spill] sm:$0xff] }
 0x522   : > { %v4437_v49 = vadd.f32 %v9673_v53, %v14345_v59  ;;  %v4431_v20 = vpop.f32.mrb[89].mxu1 }
 0x523   : > { %v4432_v60 = vadd.f32 %v4431_v20, %v14342_v39  ;;  %11062 = vrot.lane.b32.xlu0 %v11061_v11, %s11178_s16 }
 0x525   : > { %v11076_v4 = vpack.i.bf16 %v4437_v49, %v4432_v60  ;;  %v9676_v23 = vpop.f32.mrb[90].mxu1 }
 0x526   : > { %v4447_v51 = vadd.f32 %v9676_v23, %v14351_v40  ;;  %v4441_v12 = vpop.f32.mrb[91].mxu1 }
 0x527   : > { %11072 = vrot.lane.b32.xlu0 %v11071_v34, %s11177_s13  ;;  %11077 = vrot.lane.b32.xlu1 %v11076_v4, %s11178_s16  ;;  %v4442_v27 = vadd.f32 %v4441_v12, %v14348_v8  ;;  %v17014_v12 = vld [vmem:[#allocation7_spill] sm:$0xff] }
 0x529   : > { %v11091_v59 = vpack.i.bf16 %v4447_v51, %v4442_v27  ;;  %v9679_v57 = vpop.f32.mrb[92].mxu1 }
 0x52a   : > { %v4457_v39 = vadd.f32 %v9679_v57, %v14357_v1  ;;  %v4451_v28 = vpop.f32.mrb[93].mxu1 }
 0x52b   : > { %11082 = vrot.lane.b32.xlu0 %v11081_v0, %s11176_s30  ;;  %11087 = vrot.lane.b32.xlu1 %v11086_v56, %s11177_s13  ;;  %v4452_v13 = vadd.f32 %v4451_v28, %v14354_v19  ;;  %v17005_v56 = vpack.i.bf16 %v14153_v52, %v14149_v6  ;;  %v17008_v52 = vpack.i.bf16 %v14097_v62, %v14091_v33  ;;  %v11048_v62 = vpop.permute.xlu0 %11047 }
 0x52d   : > { %v11106_v3 = vpack.i.bf16 %v4457_v39, %v4452_v13  ;;  %v9682_v34 = vpop.f32.mrb[94].mxu1 }
 0x52e   : > { %v4467_v8 = vadd.f32 %v9682_v34, %v14363_v10  ;;  %v4461_v40 = vpop.f32.mrb[95].mxu1 }
 0x52f   : > { %11092 = vrot.lane.b32.xlu0 %v11091_v59, %s11178_s16  ;;  %11097 = vrot.lane.b32.xlu1 %v11096_v61, %s11176_s30  ;;  %v4462_v16 = vadd.f32 %v4461_v40, %v14360_v15  ;;  %v17006_v61 = vpack.i.bf16 %v14083_v42, %v14077_v47  ;;  %v17007_v15 = vpack.i.bf16 %v14163_v54, %v14159_v9  ;;  %v11038_v47 = vpop.permute.xlu1 %11037  ;;  %v17015_v59 = vld [vmem:[#allocation6_spill] sm:$0xff] }
 0x530   : > { %v11040_v9 = vunpack.i.h.bf16 %v11038_v47  ;;  %v11039_v54 = vunpack.i.l.bf16 %v11038_v47 }
 0x531   : > { %v11121_v7 = vpack.i.bf16 %v4467_v8, %v4462_v16  ;;  %v9685_v0 = vpop.f32.mrb[96].mxu1 }
 0x532   : > { %v4477_v21 = vadd.f32 %v9685_v0, %v14369_v5  ;;  %v4471_v41 = vpop.f32.mrb[97].mxu1  ;;  %v17010_v5 = vld [vmem:[#allocation3_spill] sm:$0xff] }
 0x533   : > { %11102 = vrot.lane.b32.xlu0 %v17005_v56, %s11177_s13  ;;  %11107 = vrot.lane.b32.xlu1 %v11106_v3, %s11178_s16  ;;  %v4472_v19 = vadd.f32 %v4471_v41, %v14366_v14  ;;  %v17009_v14 = vpack.i.bf16 %v14245_v37, %v14205_v26  ;;  %v11043_v42 = vpop.permute.xlu1 %11042  ;;  %v11050_v26 = vunpack.i.h.bf16 %v11048_v62 }
 0x534   : > { %v11044_v37 = vunpack.i.l.bf16 %v11043_v42 }
 0x535   : > { %v11136_v1 = vpack.i.bf16 %v4477_v21, %v4472_v19  ;;  %v9688_v10 = vpop.f32.mrb[98].mxu1 }
 0x536   : > { %v4481_v31 = vpop.f32.mrb[99].mxu1  ;;  %v4487_v63 = vadd.f32 %v9688_v10, %v4342_v44  ;;  %v11045_v44 = vunpack.i.h.bf16 %v11043_v42  ;;  %v4685_v43 = vsel %vm4682_vm7, %v17012_v30, %v11044_v37 }
 0x537   : > { %11112 = vrot.lane.b32.xlu0 %v17006_v61, %s11176_s30  ;;  %11117 = vrot.lane.b32.xlu1 %v17007_v15, %s11177_s13  ;;  %v4482_v6 = vadd.f32 %v4481_v31, %v14384_v22  ;;  %v11053_v33 = vpop.permute.xlu1 %11052  ;;  %v17011_v22 = vld [vmem:[#allocation2_spill] sm:$0xff] }
 0x538   : > { %v11054_v50 = vunpack.i.l.bf16 %v11053_v33  ;;  %v11055_v32 = vunpack.i.h.bf16 %v11053_v33  ;;  %v4686_v11 = vsel %vm4682_vm7, %v17013_v48, %v11045_v44  ;;  %v17017_v44 = vld [vmem:[#allocation8_spill] sm:$0xff] }
 0x53a   : > { %v4702_v60 = vsel %vm4699_vm8, %v4685_v43, %v11054_v50  ;;  %v4703_v51 = vsel %vm4699_vm8, %v4686_v11, %v11055_v32 }
 0x53b   : > { %11122 = vrot.lane.b32.xlu0 %v11121_v7, %s11178_s16  ;;  %11127 = vrot.lane.b32.xlu1 %v17008_v52, %s11176_s30 }
 0x53f   : > { %11132 = vrot.lane.b32.xlu0 %v17009_v14, %s11177_s13  ;;  %11137 = vrot.lane.b32.xlu1 %v11136_v1, %s11178_s16 }
 0x543   : > { %4534 = vrot.lane.b32.xlu0 %v14105_v45, %s11176_s30  ;;  %4598 = vrot.lane.b32.xlu1 %v14281_v29, %s11177_s13  ;;  %v11049_v45 = vunpack.i.l.bf16 %v11048_v62  ;;  %v11068_v29 = vpop.permute.xlu1 %11067 }
 0x544   : > { %v11070_v36 = vunpack.i.h.bf16 %v11068_v29  ;;  %v11069_v58 = vunpack.i.l.bf16 %v11068_v29 }
 0x546   : > { %v4687_v27 = vsel %vm4682_vm7, %v17014_v12, %v11069_v58  ;;  %v4688_v57 = vsel %vm4682_vm7, %v17015_v59, %v11070_v36 }
 0x547   : > { %4662 = vrot.lane.b32.xlu0 %v4482_v6, %s11178_s16  ;;  %4536 = vrot.lane.b32.xlu1 %v14111_v25, %s11176_s30  ;;  %v4683_v25 = vsel %vm4682_vm7, %v17010_v5, %v11039_v54 }
 0x548   : > { %v4700_v18 = vsel %vm4699_vm8, %v4683_v25, %v11049_v45 }
 0x54b   : > { %4600 = vrot.lane.b32.xlu0 %v14309_v46, %s11177_s13  ;;  %4664 = vrot.lane.b32.xlu1 %v4487_v63, %s11178_s16  ;;  %v4684_v46 = vsel %vm4682_vm7, %v17011_v22, %v11040_v9  ;;  %v17016_v22 = vld [vmem:[#allocation9_spill] sm:$0xff] }
 0x54c   : > { %v4701_v35 = vsel %vm4699_vm8, %v4684_v46, %v11050_v26 }
 0x591   : > { %v11058_v2 = vpop.permute.xlu0 %11057 }
 0x592   : > { %v11060_v17 = vunpack.i.h.bf16 %v11058_v2  ;;  %v11059_v38 = vunpack.i.l.bf16 %v11058_v2 }
 0x594   : > { %v4717_v24 = vsel %vm4716_vm9, %v4700_v18, %v11059_v38  ;;  %v4718_v55 = vsel %vm4716_vm9, %v4701_v35, %v11060_v17 }
 0x595   : > { %v11063_v53 = vpop.permute.xlu0 %11062  ;;  %v4747_v49 = vrot.slane %v4717_v24, 1  ;;  %v4748_v20 = vrot.slane %v4718_v55, 1  ;;  %v4790_v28 = vrot.slane %v4718_v55, 3  ;;  %v4833_v34 = vrot.slane %v4718_v55, 4 }
 0x596   : > { %v11065_v4 = vunpack.i.h.bf16 %v11063_v53  ;;  %v11064_v23 = vunpack.i.l.bf16 %v11063_v53 }
 0x597   : > { %v4749_v39 = vsel %vm553_vm1, %v4747_v49, %v4748_v20 }
 0x598   : > { %v4719_v13 = vsel %vm4716_vm9, %v4702_v60, %v11064_v23  ;;  %v14512_v3 = vsel %vm4716_vm9, %v4703_v51, %v11065_v4  ;;  %5011 = vmatprep.mubr.f32.mxu0 %v4749_v39  ;;  %v17018_v4 = vld [vmem:[#allocation11_spill] sm:$0xff]  ;;  %v17019_v51 = vld [vmem:[#allocation10_spill] sm:$0xff] }
 0x599   : > { %v4791_v8 = vrot.slane %v4719_v13, 3  ;;  %v11073_v40 = vpop.permute.xlu0 %11072  ;;  %v11078_v16 = vpop.permute.xlu1 %11077  ;;  %5012 = vmatmul.mubr.f32.vlgmr.msra.gmra.mrb[102].mxu0 %v4717_v24  ;;  %v4750_v7 = vrot.slane %v4719_v13, 1  ;;  %v4834_v0 = vrot.slane %v4719_v13, 4  ;;  %v4752_v21 = vrot.slane %v14512_v3, 1 }
 0x59a   : > { %v11075_v41 = vunpack.i.h.bf16 %v11073_v40  ;;  %v11074_v56 = vunpack.i.l.bf16 %v11073_v40  ;;  %v11080_v19 = vunpack.i.h.bf16 %v11078_v16  ;;  %v11079_v1 = vunpack.i.l.bf16 %v11078_v16 }
 0x59b   : > { %v4751_v10 = vsel %vm553_vm1, %v4748_v20, %v4750_v7  ;;  %v4835_v31 = vsel %vm4832_vm10, %v4833_v34, %v4834_v0  ;;  %v4792_v63 = vsel %vm4789_vm11, %v4790_v28, %v4791_v8  ;;  %v4753_v61 = vsel %vm553_vm1, %v4750_v7, %v4752_v21 }
 0x59c   : > { %v4704_v15 = vsel %vm4699_vm8, %v4687_v27, %v11074_v56  ;;  %v4705_v6 = vsel %vm4699_vm8, %v4688_v57, %v11075_v41  ;;  %5016 = vmatprep.mubr.f32.mxu0 %v4751_v10  ;;  %5146 = vmatprep.mubr.f32.mxu1 %v4835_v31  ;;  %v4836_v52 = vrot.slane %v14512_v3, 4  ;;  %v4793_v14 = vrot.slane %v14512_v3, 3 }
 0x59d   : > { %v14524_v47 = vsel %vm4716_vm9, %v4704_v15, %v11079_v1  ;;  %v14527_v42 = vsel %vm4716_vm9, %v4705_v6, %v11080_v19  ;;  %v11083_v33 = vpop.permute.xlu0 %11082  ;;  %v11088_v62 = vpop.permute.xlu1 %11087  ;;  %5017 = vmatmul.mubr.f32.gmra.mrb[104].mxu0 %v4718_v55  ;;  %5147 = vmatmul.mubr.f32.vlgmr.msra.gmra.mrb[100].mxu1 %v4792_v63 }
 0x59e   : > { %v11085_v9 = vunpack.i.h.bf16 %v11083_v33  ;;  %v11084_v54 = vunpack.i.l.bf16 %v11083_v33  ;;  %v11090_v45 = vunpack.i.h.bf16 %v11088_v62  ;;  %v11089_v26 = vunpack.i.l.bf16 %v11088_v62  ;;  %5021 = vmatprep.mubr.f32.mxu0 %v4753_v61 }
 0x59f   : > { %v4837_v37 = vsel %vm4832_vm10, %v4834_v0, %v4836_v52  ;;  %v4794_v29 = vsel %vm4789_vm11, %v4791_v8, %v4793_v14  ;;  %v4754_v5 = vrot.slane %v14524_v47, 1  ;;  %v4838_v25 = vrot.slane %v14524_v47, 4 }
 0x5a0   : > { %v4689_v46 = vsel %vm4682_vm7, %v17016_v22, %v11084_v54  ;;  %v4690_v2 = vsel %vm4682_vm7, %v17017_v44, %v11085_v9  ;;  %5151 = vmatprep.mubr.f32.mxu1 %v4837_v37  ;;  %v4795_v18 = vrot.slane %v14524_v47, 3  ;;  %v4756_v50 = vrot.slane %v14527_v42, 1  ;;  %v17021_v37 = vld [vmem:[#allocation12_spill] sm:$0xff] }
 0x5a1   : > { %v4706_v17 = vsel %vm4699_vm8, %v4689_v46, %v11089_v26  ;;  %v4707_v38 = vsel %vm4699_vm8, %v4690_v2, %v11090_v45  ;;  %v11093_v35 = vpop.permute.xlu0 %11092  ;;  %v11098_v32 = vpop.permute.xlu1 %11097  ;;  %5022 = vmatmul.mubr.f32.gmra.mrb[106].mxu0 %v4719_v13  ;;  %5152 = vmatmul.mubr.f32.gmra.mrb[102].mxu1 %v4794_v29  ;;  %v4755_v36 = vsel %vm553_vm1, %v4752_v21, %v4754_v5  ;;  %v4840_v58 = vrot.slane %v14527_v42, 4  ;;  %v17020_v26 = vld [vmem:[#allocation13_spill] sm:$0xff] }
 0x5a2   : > { %v11095_v30 = vunpack.i.h.bf16 %v11093_v35  ;;  %v11094_v43 = vunpack.i.l.bf16 %v11093_v35  ;;  %v11100_v24 = vunpack.i.h.bf16 %v11098_v32  ;;  %v11099_v55 = vunpack.i.l.bf16 %v11098_v32  ;;  %5026 = vmatprep.mubr.f32.mxu0 %v4755_v36 }
 0x5a3   : > { %v4839_v48 = vsel %vm4832_vm10, %v4836_v52, %v4838_v25  ;;  %v4796_v11 = vsel %vm4789_vm11, %v4793_v14, %v4795_v18  ;;  %v4757_v53 = vsel %vm553_vm1, %v4754_v5, %v4756_v50  ;;  %v4841_v49 = vsel %vm4832_vm10, %v4838_v25, %v4840_v58 }
 0x5a4   : > { %v14548_v20 = vsel %vm4716_vm9, %v4706_v17, %v11094_v43  ;;  %v14551_v60 = vsel %vm4716_vm9, %v4707_v38, %v11095_v30  ;;  %v4691_v23 = vsel %vm4682_vm7, %v17018_v4, %v11099_v55  ;;  %v4692_v12 = vsel %vm4682_vm7, %v17019_v51, %v11100_v24  ;;  %5156 = vmatprep.mubr.f32.mxu1 %v4839_v48  ;;  %v17022_v55 = vld [vmem:[#allocation15_spill] sm:$0xff] }
 0x5a5   : > { %v11103_v27 = vpop.permute.xlu0 %11102  ;;  %v11108_v59 = vpop.permute.xlu1 %11107  ;;  %5027 = vmatmul.mubr.f32.gmra.mrb[108].mxu0 %v14512_v3  ;;  %5157 = vmatmul.mubr.f32.gmra.mrb[104].mxu1 %v4796_v11  ;;  %v4797_v57 = vrot.slane %v14527_v42, 3  ;;  %v4758_v39 = vrot.slane %v14548_v20, 1  ;;  %v4842_v28 = vrot.slane %v14548_v20, 4  ;;  %v4799_v13 = vrot.slane %v14548_v20, 3  ;;  %v17023_v11 = vld [vmem:[#allocation14_spill] sm:$0xff] }
 0x5a6   : > { %v11105_v34 = vunpack.i.h.bf16 %v11103_v27  ;;  %v11104_v8 = vunpack.i.l.bf16 %v11103_v27  ;;  %v11110_v40 = vunpack.i.h.bf16 %v11108_v59  ;;  %v11109_v16 = vunpack.i.l.bf16 %v11108_v59  ;;  %5031 = vmatprep.mubr.f32.mxu0 %v4757_v53  ;;  %5161 = vmatprep.mubr.f32.mxu1 %v4841_v49 }
 0x5a7   : > { %v4798_v7 = vsel %vm4789_vm11, %v4795_v18, %v4797_v57  ;;  %v4759_v0 = vsel %vm553_vm1, %v4756_v50, %v4758_v39  ;;  %v4843_v3 = vsel %vm4832_vm10, %v4840_v58, %v4842_v28  ;;  %v4800_v21 = vsel %vm4789_vm11, %v4797_v57, %v4799_v13 }
 0x5a8   : > { %v4708_v41 = vsel %vm4699_vm8, %v4691_v23, %v11104_v8  ;;  %v4709_v56 = vsel %vm4699_vm8, %v4692_v12, %v11105_v34  ;;  %v4760_v19 = vrot.slane %v14551_v60, 1  ;;  %v4844_v1 = vrot.slane %v14551_v60, 4 }
 0x5a9   : > { %v14571_v10 = vsel %vm4716_vm9, %v4708_v41, %v11109_v16  ;;  %v14574_v31 = vsel %vm4716_vm9, %v4709_v56, %v11110_v40  ;;  %v11113_v63 = vpop.permute.xlu0 %11112  ;;  %v11118_v61 = vpop.permute.xlu1 %11117  ;;  %5032 = vmatmul.mubr.f32.gmra.mrb[110].mxu0 %v14524_v47  ;;  %5162 = vmatmul.mubr.f32.gmra.mrb[106].mxu1 %v4798_v7  ;;  %v4801_v15 = vrot.slane %v14551_v60, 3 }
 0x5aa   : > { %v11115_v6 = vunpack.i.h.bf16 %v11113_v63  ;;  %v11114_v52 = vunpack.i.l.bf16 %v11113_v63  ;;  %v11120_v14 = vunpack.i.h.bf16 %v11118_v61  ;;  %v11119_v33 = vunpack.i.l.bf16 %v11118_v61  ;;  %5036 = vmatprep.mubr.f32.mxu0 %v4759_v0  ;;  %5166 = vmatprep.mubr.f32.mxu1 %v4843_v3  ;;  %v17024_v63 = vld [vmem:[#allocation18_spill] sm:$0xff] }
 0x5ab   : > { %v4761_v62 = vsel %vm553_vm1, %v4758_v39, %v4760_v19  ;;  %v4845_v9 = vsel %vm4832_vm10, %v4842_v28, %v4844_v1  ;;  %v4802_v54 = vsel %vm4789_vm11, %v4799_v13, %v4801_v15  ;;  %v4762_v45 = vrot.slane %v14571_v10, 1 }
 0x5ac   : > { %v4693_v47 = vsel %vm4682_vm7, %v17020_v26, %v11114_v52  ;;  %v4694_v29 = vsel %vm4682_vm7, %v17021_v37, %v11115_v6  ;;  %v4846_v5 = vrot.slane %v14571_v10, 4  ;;  %v4803_v25 = vrot.slane %v14571_v10, 3 }
 0x5ad   : > { %v4710_v22 = vsel %vm4699_vm8, %v4693_v47, %v11119_v33  ;;  %v4711_v46 = vsel %vm4699_vm8, %v4694_v29, %v11120_v14  ;;  %v11123_v44 = vpop.permute.xlu0 %11122  ;;  %v11128_v2 = vpop.permute.xlu1 %11127  ;;  %5037 = vmatmul.mubr.f32.gmra.mrb[112].mxu0 %v14527_v42  ;;  %5167 = vmatmul.mubr.f32.gmra.mrb[108].mxu1 %v4800_v21  ;;  %v4763_v18 = vsel %vm553_vm1, %v4760_v19, %v4762_v45  ;;  %v4764_v50 = vrot.slane %v14574_v31, 1 }
 0x5ae   : > { %v11125_v17 = vunpack.i.h.bf16 %v11123_v44  ;;  %v11124_v38 = vunpack.i.l.bf16 %v11123_v44  ;;  %v11130_v35 = vunpack.i.h.bf16 %v11128_v2  ;;  %v11129_v32 = vunpack.i.l.bf16 %v11128_v2  ;;  %5041 = vmatprep.mubr.f32.mxu0 %v4761_v62  ;;  %5171 = vmatprep.mubr.f32.mxu1 %v4845_v9 }
 0x5af   : > { %v4847_v36 = vsel %vm4832_vm10, %v4844_v1, %v4846_v5  ;;  %v4804_v58 = vsel %vm4789_vm11, %v4801_v15, %v4803_v25  ;;  %v4765_v30 = vsel %vm553_vm1, %v4762_v45, %v4764_v50  ;;  %v4848_v43 = vrot.slane %v14574_v31, 4 }
 0x5b0   : > { %v14598_v42 = vsel %vm4716_vm9, %v4710_v22, %v11124_v38  ;;  %v14601_v24 = vsel %vm4716_vm9, %v4711_v46, %v11125_v17  ;;  %v4695_v48 = vsel %vm4682_vm7, %v17022_v55, %v11129_v32  ;;  %v4696_v53 = vsel %vm4682_vm7, %v17023_v11, %v11130_v35  ;;  %v14660_v11 = vld [vmem:[%s16944_s6] ss:$0 sm:$0xff] }
 0x5b1   : > { %v11133_v49 = vpop.permute.xlu0 %11132  ;;  %v11138_v4 = vpop.permute.xlu1 %11137  ;;  %5042 = vmatmul.mubr.f32.gmra.mrb[114].mxu0 %v14548_v20  ;;  %5172 = vmatmul.mubr.f32.gmra.mrb[110].mxu1 %v4802_v54  ;;  %v4849_v23 = vsel %vm4832_vm10, %v4846_v5, %v4848_v43  ;;  %v4805_v51 = vrot.slane %v14574_v31, 3  ;;  %v4766_v12 = vrot.slane %v14598_v42, 1  ;;  %v4850_v27 = vrot.slane %v14598_v42, 4 }
 0x5b2   : > { %v11135_v59 = vunpack.i.h.bf16 %v11133_v49  ;;  %v11134_v57 = vunpack.i.l.bf16 %v11133_v49  ;;  %v11140_v39 = vunpack.i.h.bf16 %v11138_v4  ;;  %v11139_v28 = vunpack.i.l.bf16 %v11138_v4  ;;  %5046 = vmatprep.mubr.f32.mxu0 %v4763_v18  ;;  %5176 = vmatprep.mubr.f32.mxu1 %v4847_v36 }
 0x5b3   : > { %v4806_v13 = vsel %vm4789_vm11, %v4803_v25, %v4805_v51  ;;  %v4767_v34 = vsel %vm553_vm1, %v4764_v50, %v4766_v12  ;;  %v4851_v20 = vsel %vm4832_vm10, %v4848_v43, %v4850_v27  ;;  %v4807_v8 = vrot.slane %v14598_v42, 3  ;;  %v17025_v50 = vld [vmem:[#allocation16_spill] sm:$0xff]  ;;  %v5231_v43 = vld [vmem:[%s16948_s10] sm:$0xff] }
 0x5b4   : > { %v4712_v40 = vsel %vm4699_vm8, %v4695_v48, %v11134_v57  ;;  %v4713_v16 = vsel %vm4699_vm8, %v4696_v53, %v11135_v59  ;;  %v4768_v7 = vrot.slane %v14601_v24, 1  ;;  %v4852_v0 = vrot.slane %v14601_v24, 4 }
 0x5b5   : > { %v4729_v3 = vsel %vm4716_vm9, %v4712_v40, %v11139_v28  ;;  %v4730_v21 = vsel %vm4716_vm9, %v4713_v16, %v11140_v39  ;;  %v4535_v41 = vpop.permute.xlu0 %4534  ;;  %v4599_v56 = vpop.permute.xlu1 %4598  ;;  %5047 = vmatmul.mubr.f32.gmra.mrb[116].mxu0 %v14551_v60  ;;  %5177 = vmatmul.mubr.f32.gmra.mrb[112].mxu1 %v4804_v58  ;;  %v4808_v19 = vsel %vm4789_vm11, %v4805_v51, %v4807_v8  ;;  %v4809_v1 = vrot.slane %v14601_v24, 3 }
 0x5b6   : > { %v4697_v61 = vsel %vm4682_vm7, %v17024_v63, %v4535_v41  ;;  %5051 = vmatprep.mubr.f32.mxu0 %v4765_v30  ;;  %5181 = vmatprep.mubr.f32.mxu1 %v4849_v23  ;;  %v4769_v15 = vsel %vm553_vm1, %v4766_v12, %v4768_v7  ;;  %v4853_v6 = vsel %vm4832_vm10, %v4850_v27, %v4852_v0  ;;  %v4770_v52 = vrot.slane %v4729_v3, 1 }
 0x5b7   : > { %v4810_v14 = vsel %vm4789_vm11, %v4807_v8, %v4809_v1  ;;  %v4854_v33 = vrot.slane %v4729_v3, 4  ;;  %v4811_v62 = vrot.slane %v4729_v3, 3  ;;  %v4772_v9 = vrot.slane %v4730_v21, 1 }
 0x5b8   : > { %v4771_v60 = vsel %vm553_vm1, %v4768_v7, %v4770_v52  ;;  %v4856_v54 = vrot.slane %v4730_v21, 4  ;;  %v4813_v45 = vrot.slane %v4730_v21, 3  ;;  %v4714_v26 = vsel %vm4699_vm8, %v4697_v61, %v4599_v56 }
 0x5b9   : > { %v4663_v47 = vpop.permute.xlu0 %4662  ;;  %v4537_v37 = vpop.permute.xlu1 %4536  ;;  %5052 = vmatmul.mubr.f32.gmra.mrb[118].mxu0 %v14571_v10  ;;  %5182 = vmatmul.mubr.f32.gmra.mrb[114].mxu1 %v4806_v13  ;;  %v4855_v29 = vsel %vm4832_vm10, %v4852_v0, %v4854_v33  ;;  %v4812_v5 = vsel %vm4789_vm11, %v4809_v1, %v4811_v62  ;;  %v4773_v22 = vsel %vm553_vm1, %v4770_v52, %v4772_v9 }
 0x5ba   : > { %v4731_v25 = vsel %vm4716_vm9, %v4714_v26, %v4663_v47  ;;  %5056 = vmatprep.mubr.f32.mxu0 %v4767_v34  ;;  %5186 = vmatprep.mubr.f32.mxu1 %v4851_v20  ;;  %v4857_v2 = vsel %vm4832_vm10, %v4854_v33, %v4856_v54  ;;  %v4814_v18 = vsel %vm4789_vm11, %v4811_v62, %v4813_v45 }
 0x5bb   : > { %v4815_v46 = vrot.slane %v4731_v25, 3  ;;  %v4858_v44 = vrot.slane %v4731_v25, 4  ;;  %v4698_v10 = vsel %vm4682_vm7, %v17025_v50, %v4537_v37 }
 0x5bd   : > { %v4601_v17 = vpop.permute.xlu0 %4600  ;;  %5057 = vmatmul.mubr.f32.gmra.mrb[120].mxu0 %v14574_v31  ;;  %5187 = vmatmul.mubr.f32.gmra.mrb[116].mxu1 %v4808_v19  ;;  %v4665_v38 = vpop.permute.xlu1 %4664  ;;  %v4859_v35 = vsel %vm4832_vm10, %v4856_v54, %v4858_v44  ;;  %v4816_v32 = vsel %vm4789_vm11, %v4813_v45, %v4815_v46 }
 0x5be   : > { %v4715_v36 = vsel %vm4699_vm8, %v4698_v10, %v4601_v17  ;;  %5061 = vmatprep.mubr.f32.mxu0 %v4769_v15  ;;  %5191 = vmatprep.mubr.f32.mxu1 %v4853_v6 }
 0x5bf   : > { %v4732_v58 = vsel %vm4716_vm9, %v4715_v36, %v4665_v38 }
 0x5c0   : > { %v4860_v30 = vrot.slane %v4732_v58, 4 }
 0x5c1   : > { %5062 = vmatmul.mubr.f32.gmra.mrb[122].mxu0 %v14598_v42  ;;  %5192 = vmatmul.mubr.f32.gmra.mrb[118].mxu1 %v4810_v14  ;;  %v8094_v42 = vld [vmem:[%s16948_s10 + $0x20] sm:$0xff] }
 0x5c2   : > { %5066 = vmatprep.mubr.f32.mxu0 %v4771_v60  ;;  %5196 = vmatprep.mubr.f32.mxu1 %v4855_v29  ;;  %v4861_v31 = vsel %vm4832_vm10, %v4858_v44, %v4860_v30 }
 0x5c5   : > { %5067 = vmatmul.mubr.f32.gmra.mrb[124].mxu0 %v14601_v24  ;;  %5197 = vmatmul.mubr.f32.gmra.mrb[120].mxu1 %v4812_v5 }
 0x5c6   : > { %5071 = vmatprep.mubr.f32.mxu0 %v4773_v22  ;;  %5201 = vmatprep.mubr.f32.mxu1 %v4857_v2 }
 0x5c9   : > { %5072 = vmatmul.mubr.f32.gmra.mrb[126].mxu0 %v4729_v3  ;;  %5202 = vmatmul.mubr.f32.gmra.mrb[122].mxu1 %v4814_v18 }
 0x5ca   : > { %5076 = vmatprep.mubr.f32.mxu0 %v4772_v9  ;;  %5206 = vmatprep.mubr.f32.mxu1 %v4859_v35 }
 0x5cd   : > { %5077 = vmatmul.mubr.f32.gmra.mrb[128].mxu0 %v4730_v21  ;;  %5207 = vmatmul.mubr.f32.gmra.mrb[124].mxu1 %v4816_v32 }
 0x5ce   : > { %5211 = vmatprep.mubr.f32.mxu1 %v4861_v31  ;;  %9717 = vmatprep.mubr.msk.f32.mxu0 %vm5235_vm12, %v5231_v43 }
 0x5d1   : > { %5212 = vmatmul.mubr.f32.gmra.mrb[126].mxu1 %v4815_v46 }
 0x5d2   : > { %9751 = vmatprep.mubr.msk.f32.mxu1 %vm5235_vm12, %v8094_v42 }
 0x66c   : > { %v8966_v24 = vpop.f32.mrb[102].mxu0 }
 0x66d   : > { %v8967_v55 = vpop.f32.mrb[103].mxu0 }
 0x66e   : > { %v8968_v48 = vadd.f32 %v8967_v55, %v8966_v24 }
 0x670   : > { %v8969_v53 = vpop.f32.mrb[104].mxu0  ;;  %v9040_v49 = vpop.f32.mrb[100].mxu1  ;;  %v5014_v51 = vadd.f32 %v8968_v48, %v14660_v11 }
 0x671   : > { %v8970_v4 = vpop.f32.mrb[105].mxu0  ;;  %v9041_v23 = vpop.f32.mrb[101].mxu1 }
 0x672   : > { %v8971_v12 = vadd.f32 %v8970_v4, %v8969_v53  ;;  %v9042_v27 = vadd.f32 %v9041_v23, %v9040_v49 }
 0x674   : > { %v5149_v59 = vadd.f32 %v9042_v27, %v5014_v51  ;;  %v8972_v57 = vpop.f32.mrb[106].mxu0  ;;  %v9043_v39 = vpop.f32.mrb[102].mxu1  ;;  %v5019_v34 = vadd.f32 %v8971_v12, %v14660_v11 }
 0x675   : > { %v8973_v28 = vpop.f32.mrb[107].mxu0  ;;  %v9044_v13 = vpop.f32.mrb[103].mxu1 }
 0x676   : > { %v8974_v20 = vadd.f32 %v8973_v28, %v8972_v57  ;;  %v9045_v8 = vadd.f32 %v9044_v13, %v9043_v39  ;;  %v5217_v0 = vmax.f32 %v5149_v59, 0.0 }
 0x678   : > { %v5154_v40 = vadd.f32 %v9045_v8, %v5019_v34  ;;  %v8975_v16 = vpop.f32.mrb[108].mxu0  ;;  %v9046_v7 = vpop.f32.mrb[104].mxu1  ;;  %v5024_v41 = vadd.f32 %v8974_v20, %v14660_v11 }
 0x679   : > { %v8976_v3 = vpop.f32.mrb[109].mxu0  ;;  %v9047_v21 = vpop.f32.mrb[105].mxu1 }
 0x67a   : > { %v5218_v56 = vmax.f32 %v5154_v40, 0.0  ;;  %v8977_v19 = vadd.f32 %v8976_v3, %v8975_v16  ;;  %v9048_v1 = vadd.f32 %v9047_v21, %v9046_v7 }
 0x67c   : > { %v14665_v63 = vpack.c.bf16 %v5218_v56, %v5217_v0  ;;  %v5159_v61 = vadd.f32 %v9048_v1, %v5024_v41  ;;  %v8978_v15 = vpop.f32.mrb[110].mxu0  ;;  %v9049_v6 = vpop.f32.mrb[106].mxu1  ;;  %v5029_v33 = vadd.f32 %v8977_v19, %v14660_v11 }
 0x67d   : > { %v8979_v52 = vpop.f32.mrb[111].mxu0  ;;  %v9050_v14 = vpop.f32.mrb[107].mxu1 }
 0x67e   : > { %v8980_v62 = vadd.f32 %v8979_v52, %v8978_v15  ;;  %v9051_v60 = vadd.f32 %v9050_v14, %v9049_v6  ;;  %10223 = vmatprep.subr.bf16.mxu0 %v14665_v63  ;;  %10253 = vmatprep.subr.bf16.mxu1 %v14665_v63  ;;  %v5219_v26 = vmax.f32 %v5159_v61, 0.0 }
 0x67f   : > { %10225 = vmatpush3.bf16.msra.mxu0 %v14665_v63  ;;  %10255 = vmatpush3.bf16.msra.mxu1 %v14665_v63 }
 0x680   : > { %v5164_v9 = vadd.f32 %v9051_v60, %v5029_v33  ;;  %v8981_v54 = vpop.f32.mrb[112].mxu0  ;;  %v9052_v45 = vpop.f32.mrb[108].mxu1  ;;  %v5034_v29 = vadd.f32 %v8980_v62, %v14660_v11 }
 0x681   : > { %v8982_v47 = vpop.f32.mrb[113].mxu0  ;;  %v9053_v37 = vpop.f32.mrb[109].mxu1 }
 0x682   : > { %v5220_v5 = vmax.f32 %v5164_v9, 0.0  ;;  %v8983_v25 = vadd.f32 %v8982_v47, %v8981_v54  ;;  %v9054_v22 = vadd.f32 %v9053_v37, %v9052_v45 }
 0x684   : > { %v14673_v46 = vpack.c.bf16 %v5220_v5, %v5219_v26  ;;  %v5169_v44 = vadd.f32 %v9054_v22, %v5034_v29  ;;  %v8984_v2 = vpop.f32.mrb[114].mxu0  ;;  %v9055_v18 = vpop.f32.mrb[110].mxu1  ;;  %v5039_v17 = vadd.f32 %v8983_v25, %v14660_v11 }
 0x685   : > { %v8985_v50 = vpop.f32.mrb[115].mxu0  ;;  %v9056_v10 = vpop.f32.mrb[111].mxu1 }
 0x686   : > { %v8986_v38 = vadd.f32 %v8985_v50, %v8984_v2  ;;  %v9057_v35 = vadd.f32 %v9056_v10, %v9055_v18  ;;  %10227 = vmatprep.subr.bf16.mxu0 %v14673_v46  ;;  %10257 = vmatprep.subr.bf16.mxu1 %v14673_v46  ;;  %v5221_v30 = vmax.f32 %v5169_v44, 0.0 }
 0x687   : > { %10229 = vmatpush3.bf16.msra.mxu0 %v14673_v46  ;;  %10259 = vmatpush3.bf16.msra.mxu1 %v14673_v46 }
 0x688   : > { %v5174_v32 = vadd.f32 %v9057_v35, %v5039_v17  ;;  %v8987_v36 = vpop.f32.mrb[116].mxu0  ;;  %v9058_v58 = vpop.f32.mrb[112].mxu1  ;;  %v5044_v42 = vadd.f32 %v8986_v38, %v14660_v11 }
 0x689   : > { %v8988_v31 = vpop.f32.mrb[117].mxu0  ;;  %v9059_v43 = vpop.f32.mrb[113].mxu1 }
 0x68a   : > { %v5222_v24 = vmax.f32 %v5174_v32, 0.0  ;;  %v8989_v55 = vadd.f32 %v8988_v31, %v8987_v36  ;;  %v9060_v48 = vadd.f32 %v9059_v43, %v9058_v58 }
 0x68c   : > { %v14681_v53 = vpack.c.bf16 %v5222_v24, %v5221_v30  ;;  %v5179_v49 = vadd.f32 %v9060_v48, %v5044_v42  ;;  %v8990_v4 = vpop.f32.mrb[118].mxu0  ;;  %v9061_v23 = vpop.f32.mrb[114].mxu1  ;;  %v5049_v27 = vadd.f32 %v8989_v55, %v14660_v11 }
 0x68d   : > { %v8991_v51 = vpop.f32.mrb[119].mxu0  ;;  %v9062_v12 = vpop.f32.mrb[115].mxu1 }
 0x68e   : > { %v8992_v59 = vadd.f32 %v8991_v51, %v8990_v4  ;;  %v9063_v57 = vadd.f32 %v9062_v12, %v9061_v23  ;;  %10231 = vmatprep.subr.bf16.mxu0 %v14681_v53  ;;  %10261 = vmatprep.subr.bf16.mxu1 %v14681_v53  ;;  %v5223_v34 = vmax.f32 %v5179_v49, 0.0 }
 0x68f   : > { %10233 = vmatpush3.bf16.msra.mxu0 %v14681_v53  ;;  %10263 = vmatpush3.bf16.msra.mxu1 %v14681_v53 }
 0x690   : > { %v5184_v39 = vadd.f32 %v9063_v57, %v5049_v27  ;;  %v8993_v28 = vpop.f32.mrb[120].mxu0  ;;  %v9064_v13 = vpop.f32.mrb[116].mxu1  ;;  %v5054_v40 = vadd.f32 %v8992_v59, %v14660_v11  ;;  %v8095_v57 = vld [vmem:[%s16948_s10 + $0x28] sm:$0xff] }
 0x691   : > { %v8994_v20 = vpop.f32.mrb[121].mxu0  ;;  %v9065_v8 = vpop.f32.mrb[117].mxu1 }
 0x692   : > { %v5224_v16 = vmax.f32 %v5184_v39, 0.0  ;;  %v8995_v7 = vadd.f32 %v8994_v20, %v8993_v28  ;;  %v9066_v0 = vadd.f32 %v9065_v8, %v9064_v13  ;;  %v8096_v39 = vld [vmem:[%s16948_s10 + $0x30] sm:$0xff]  ;;  %v8097_v13 = vld [vmem:[%s16948_s10 + $0x38] sm:$0x1]  ;;  %v8103_v20 = vld [vmem:[%s16948_s10 + $0x40] sm:$0xff] }
 0x693   : > { %v5233_v28 = vld [vmem:[%s16948_s10 + $0x10] sm:$0xff] }
 0x694   : > { %v14689_v3 = vpack.c.bf16 %v5224_v16, %v5223_v34  ;;  %v5189_v21 = vadd.f32 %v9066_v0, %v5054_v40  ;;  %v8996_v41 = vpop.f32.mrb[122].mxu0  ;;  %v9067_v56 = vpop.f32.mrb[118].mxu1  ;;  %v5059_v61 = vadd.f32 %v8995_v7, %v14660_v11  ;;  %v5234_v34 = vld [vmem:[%s16948_s10 + $0x18] sm:$0x1]  ;;  %v8114_v8 = vld [vmem:[%s16948_s10 + $0x70] sm:$0xff]  ;;  %v5760_v0 = vld [vmem:[%s16941_s3 + $0x80] sm:$0xff] }
 0x695   : > { %v8997_v19 = vpop.f32.mrb[123].mxu0  ;;  %v9068_v1 = vpop.f32.mrb[119].mxu1  ;;  %v8105_v40 = vld [vmem:[%s16948_s10 + $0x50] sm:$0xff]  ;;  %v8115_v16 = vld [vmem:[%s16948_s10 + $0x78] sm:$0x1] }
 0x696   : > { %v8998_v15 = vadd.f32 %v8997_v19, %v8996_v41  ;;  %v9069_v6 = vadd.f32 %v9068_v1, %v9067_v56  ;;  %10235 = vmatprep.subr.bf16.mxu0 %v14689_v3  ;;  %10265 = vmatprep.subr.bf16.mxu1 %v14689_v3  ;;  %v5225_v62 = vmax.f32 %v5189_v21, 0.0  ;;  %v8106_v7 = vld [vmem:[%s16948_s10 + $0x58] sm:$0x1]  ;;  %v5744_v21 = vld [vmem:[%s16941_s3] sm:$0xff]  ;;  %v5745_v56 = vld [vmem:[%s16941_s3 + $0x8] sm:$0xff] }
 0x697   : > { %10237 = vmatpush3.bf16.msra.mxu0 %v14689_v3  ;;  %10267 = vmatpush3.bf16.msra.mxu1 %v14689_v3  ;;  %v5792_v19 = vld [vmem:[%s16941_s3 + $0x180] sm:$0xff]  ;;  %v5793_v1 = vld [vmem:[%s16941_s3 + $0x188] sm:$0xff] }
 0x698   : > { %v5194_v52 = vadd.f32 %v9069_v6, %v5059_v61  ;;  %v8999_v14 = vpop.f32.mrb[124].mxu0  ;;  %v9070_v33 = vpop.f32.mrb[120].mxu1  ;;  %v5064_v54 = vadd.f32 %v8998_v15, %v14660_v11  ;;  %v10344_v61 = vpack.c.bf16 %v5745_v56, %v5744_v21  ;;  %v10374_v15 = vpack.c.bf16 %v5793_v1, %v5792_v19  ;;  %v5776_v6 = vld [vmem:[%s16941_s3 + $0x100] sm:$0xff]  ;;  %v5755_v21 = vld [vmem:[%s16941_s3 + $0x58] sm:$0xff] }
 0x699   : > { %v9000_v60 = vpop.f32.mrb[125].mxu0  ;;  %v9071_v9 = vpop.f32.mrb[121].mxu1  ;;  %v5787_v19 = vld [vmem:[%s16941_s3 + $0x158] sm:$0xff]  ;;  %v5772_v1 = vld [vmem:[%s16941_s3 + $0xe0] sm:$0xff] }
 0x69a   : > { %v5226_v45 = vmax.f32 %v5194_v52, 0.0  ;;  %v9001_v26 = vadd.f32 %v9000_v60, %v8999_v14  ;;  %v9072_v47 = vadd.f32 %v9071_v9, %v9070_v33  ;;  %v5777_v52 = vld [vmem:[%s16941_s3 + $0x108] sm:$0xff]  ;;  %v5762_v14 = vld [vmem:[%s16941_s3 + $0x90] sm:$0xff]  ;;  %v5747_v9 = vld [vmem:[%s16941_s3 + $0x18] sm:$0xff] }
 0x69b   : > { %v10376_v33 = vpack.c.bf16 %v5777_v52, %v5776_v6  ;;  %v5746_v60 = vld [vmem:[%s16941_s3 + $0x10] sm:$0xff]  ;;  %v5805_v6 = vld [vmem:[%s16941_s3 + $0x1e8] sm:$0xff] }
 0x69c   : > { %v14697_v37 = vpack.c.bf16 %v5226_v45, %v5225_v62  ;;  %v5199_v29 = vadd.f32 %v9072_v47, %v5064_v54  ;;  %v9002_v5 = vpop.f32.mrb[126].mxu0  ;;  %v9073_v25 = vpop.f32.mrb[122].mxu1  ;;  %v5069_v2 = vadd.f32 %v9001_v26, %v14660_v11  ;;  %v5763_v62 = vld [vmem:[%s16941_s3 + $0x98] sm:$0xff]  ;;  %v10348_v45 = vpack.c.bf16 %v5747_v9, %v5746_v60  ;;  %v5794_v26 = vld [vmem:[%s16941_s3 + $0x190] sm:$0xff]  ;;  %v5757_v60 = vld [vmem:[%s16941_s3 + $0x68] sm:$0xff] }
 0x69d   : > { %v9003_v22 = vpop.f32.mrb[127].mxu0  ;;  %v9074_v44 = vpop.f32.mrb[123].mxu1  ;;  %v10346_v54 = vpack.c.bf16 %v5763_v62, %v5762_v14  ;;  %v5795_v47 = vld [vmem:[%s16941_s3 + $0x198] sm:$0xff]  ;;  %v5756_v62 = vld [vmem:[%s16941_s3 + $0x60] sm:$0xff] }
 0x69e   : > { %v9004_v18 = vadd.f32 %v9003_v22, %v9002_v5  ;;  %v9075_v50 = vadd.f32 %v9074_v44, %v9073_v25  ;;  %10239 = vmatprep.subr.bf16.mxu0 %v14697_v37  ;;  %10269 = vmatprep.subr.bf16.mxu1 %v14697_v37  ;;  %v5227_v35 = vmax.f32 %v5199_v29, 0.0  ;;  %v10378_v29 = vpack.c.bf16 %v5795_v47, %v5794_v26  ;;  %v5779_v5 = vld [vmem:[%s16941_s3 + $0x118] sm:$0xff]  ;;  %v5764_v25 = vld [vmem:[%s16941_s3 + $0xa0] sm:$0xff]  ;;  %v5765_v22 = vld [vmem:[%s16941_s3 + $0xa8] sm:$0xff] }
 0x69f   : > { %10241 = vmatpush3.bf16.msra.mxu0 %v14697_v37  ;;  %10271 = vmatpush3.bf16.msra.mxu1 %v14697_v37  ;;  %v10368_v26 = vpack.c.bf16 %v5757_v60, %v5756_v62  ;;  %v5827_v62 = vld [vmem:[%s16941_s3 + $0x298] sm:$0xff]  ;;  %v15060_v60 = vld [vmem:[%s16941_s3 + $0x210] sm:$0xff] }
 0x6a0   : > { %v5204_v10 = vadd.f32 %v9075_v50, %v5069_v2  ;;  %v9005_v17 = vpop.f32.mrb[128].mxu0  ;;  %v9076_v38 = vpop.f32.mrb[124].mxu1  ;;  %v5074_v58 = vadd.f32 %v9004_v18, %v14660_v11  ;;  %v10350_v2 = vpack.c.bf16 %v5765_v22, %v5764_v25  ;;  %v5748_v18 = vld [vmem:[%s16941_s3 + $0x20] sm:$0xff]  ;;  %v5749_v50 = vld [vmem:[%s16941_s3 + $0x28] sm:$0xff] }
 0x6a1   : > { %v9006_v32 = vpop.f32.mrb[129].mxu0  ;;  %v9077_v36 = vpop.f32.mrb[125].mxu1 }
 0x6a2   : > { %v5228_v30 = vmax.f32 %v5204_v10, 0.0  ;;  %v9007_v31 = vadd.f32 %v9006_v32, %v9005_v17  ;;  %v9078_v43 = vadd.f32 %v9077_v36, %v9076_v38  ;;  %v5796_v10 = vld [vmem:[%s16941_s3 + $0x1a0] sm:$0xff]  ;;  %v5797_v17 = vld [vmem:[%s16941_s3 + $0x1a8] sm:$0xff]  ;;  %v10352_v32 = vpack.c.bf16 %v5749_v50, %v5748_v18 }
 0x6a3   : > { %v5780_v38 = vld [vmem:[%s16941_s3 + $0x120] sm:$0xff]  ;;  %v10382_v36 = vpack.c.bf16 %v5797_v17, %v5796_v10  ;;  %v5774_v10 = vld [vmem:[%s16941_s3 + $0xf0] sm:$0xff]  ;;  %v5775_v17 = vld [vmem:[%s16941_s3 + $0xf8] sm:$0xff] }
 0x6a4   : > { %v10242_v42 = vpack.c.bf16 %v5228_v30, %v5227_v35  ;;  %v5209_v24 = vadd.f32 %v9078_v43, %v5074_v58  ;;  %v9079_v55 = vpop.f32.mrb[126].mxu1  ;;  %v5079_v49 = vadd.f32 %v9007_v31, %v14660_v11  ;;  %v5232_v11 = vld [vmem:[%s16948_s10 + $0x8] sm:$0xff]  ;;  %v5766_v58 = vld [vmem:[%s16941_s3 + $0xb0] sm:$0xff]  ;;  %v5767_v30 = vld [vmem:[%s16941_s3 + $0xb8] sm:$0xff] }
 0x6a5   : > { %v9080_v48 = vpop.f32.mrb[127].mxu1  ;;  %v5781_v35 = vld [vmem:[%s16941_s3 + $0x128] sm:$0xff]  ;;  %v5750_v31 = vld [vmem:[%s16941_s3 + $0x30] sm:$0xff] }
 0x6a6   : > { %v9081_v4 = vadd.f32 %v9080_v48, %v9079_v55  ;;  %10243 = vmatprep.subr.bf16.mxu0 %v10242_v42  ;;  %10273 = vmatprep.subr.bf16.mxu1 %v10242_v42  ;;  %v5229_v51 = vmax.f32 %v5209_v24, 0.0  ;;  %v10384_v43 = vpack.c.bf16 %v5781_v35, %v5780_v38  ;;  %v5751_v24 = vld [vmem:[%s16941_s3 + $0x38] sm:$0xff]  ;;  %v5798_v55 = vld [vmem:[%s16941_s3 + $0x1b0] sm:$0xff]  ;;  %v10370_v38 = vpack.c.bf16 %v5775_v17, %v5774_v10  ;;  %v15109_v10 = vld [vmem:[%s16941_s3 + $0x3a8] sm:$0xff] }
 0x6a7   : > { %10245 = vmatpush3.bf16.msra.mxu0 %v10242_v42  ;;  %10275 = vmatpush3.bf16.msra.mxu1 %v10242_v42  ;;  %v5799_v48 = vld [vmem:[%s16941_s3 + $0x1b8] sm:$0xff]  ;;  %v10356_v27 = vpack.c.bf16 %v5751_v24, %v5750_v31  ;;  %v5758_v35 = vld [vmem:[%s16941_s3 + $0x70] sm:$0xff] }
 0x6a8   : > { %v5214_v23 = vadd.f32 %v9081_v4, %v5079_v49  ;;  %v10386_v49 = vpack.c.bf16 %v5799_v48, %v5798_v55  ;;  %v5782_v4 = vld [vmem:[%s16941_s3 + $0x130] sm:$0xff]  ;;  %v5824_v55 = vld [vmem:[%s16941_s3 + $0x280] sm:$0xff]  ;;  %v5825_v48 = vld [vmem:[%s16941_s3 + $0x288] sm:$0xff] }
 0x6a9   : > { %v5790_v31 = vld [vmem:[%s16941_s3 + $0x170] sm:$0xff] }
 0x6aa   : > { %v5230_v12 = vmax.f32 %v5214_v23, 0.0  ;;  %v5783_v23 = vld [vmem:[%s16941_s3 + $0x138] sm:$0xff] }
 0x6ac   : > { %v10246_v59 = vpack.c.bf16 %v5230_v12, %v5229_v51  ;;  %v5768_v51 = vld [vmem:[%s16941_s3 + $0xc0] sm:$0xff]  ;;  %v5769_v12 = vld [vmem:[%s16941_s3 + $0xc8] sm:$0xff] }
 0x6ae   : > { %10248 = vmatprep.subr.msk.bf16.mxu0 %vm14707_vm14, %v10246_v59  ;;  %10278 = vmatprep.subr.msk.bf16.mxu1 %vm14707_vm14, %v10246_v59 }
 0x6af   : > { %10251 = vmatpush3.bf16.msk.msra.mxu0 %vm14707_vm14, %v10246_v59  ;;  %10281 = vmatpush3.bf16.msk.msra.mxu1 %vm14707_vm14, %v10246_v59 }
 0x6b0   : > { %10283 = vmatprep.subr.bf16.mxu0 %v14665_v63  ;;  %10313 = vmatprep.subr.bf16.mxu1 %v14665_v63 }
 0x6b2   : > { %9718 = vmatmul.mubr.msk.f32.vlgmr.msra.gmra.mrb[130].mxu0 %vm5235_vm12, %v5232_v11  ;;  %9752 = vmatmul.mubr.msk.f32.vlgmr.msra.gmra.mrb[128].mxu1 %vm5235_vm12, %v8095_v57  ;;  %v5801_v11 = vld [vmem:[%s16941_s3 + $0x1c8] sm:$0xff]  ;;  %v10388_v57 = vpack.c.bf16 %v5783_v23, %v5782_v4  ;;  %v5856_v4 = vld [vmem:[%s16941_s3 + $0x380] sm:$0xff] }
 0x6b3   : > { %10285 = vmatpush3.bf16.msra.mxu0 %v14665_v63  ;;  %10315 = vmatpush3.bf16.msra.mxu1 %v14665_v63  ;;  %v8112_v63 = vld [vmem:[%s16948_s10 + $0x60] sm:$0xff]  ;;  %v5857_v23 = vld [vmem:[%s16941_s3 + $0x388] sm:$0xff] }
 0x6b4   : > { %10287 = vmatprep.subr.bf16.mxu0 %v14673_v46  ;;  %10317 = vmatprep.subr.bf16.mxu1 %v14673_v46 }
 0x6b5   : > { %9754 = vmatprep.mubr.msk.f32.mxu1 %vm5235_vm12, %v8096_v39  ;;  %9720 = vmatprep.mubr.msk.f32.mxu0 %vm5235_vm12, %v5233_v28  ;;  %v10358_v39 = vpack.c.bf16 %v5769_v12, %v5768_v51  ;;  %v5752_v28 = vld [vmem:[%s16941_s3 + $0x40] sm:$0xff]  ;;  %v10438_v51 = vpack.c.bf16 %v5857_v23, %v5856_v4 }
 0x6b6   : > { %9755 = vmatmul.mubr.msk.f32.gmra.mrb[130].mxu1 %vm5235_vm12, %v8097_v13  ;;  %9721 = vmatmul.mubr.msk.f32.gmra.mrb[132].mxu0 %vm5235_vm12, %v5234_v34  ;;  %v5753_v13 = vld [vmem:[%s16941_s3 + $0x48] sm:$0xff]  ;;  %v5784_v34 = vld [vmem:[%s16941_s3 + $0x140] sm:$0xff] }
 0x6b7   : > { %10289 = vmatpush3.bf16.msra.mxu0 %v14673_v46  ;;  %10319 = vmatpush3.bf16.msra.mxu1 %v14673_v46  ;;  %v8113_v46 = vld [vmem:[%s16948_s10 + $0x68] sm:$0xff] }
 0x6b8   : > { %10291 = vmatprep.subr.bf16.mxu0 %v14681_v53  ;;  %10321 = vmatprep.subr.bf16.mxu1 %v14681_v53 }
 0x6b9   : > { %9819 = vmatprep.mubr.msk.f32.mxu1 %vm5235_vm12, %v8112_v63  ;;  %9785 = vmatprep.mubr.msk.f32.mxu0 %vm5235_vm12, %v8103_v20  ;;  %v5785_v20 = vld [vmem:[%s16941_s3 + $0x148] sm:$0xff] }
 0x6bb   : > { %10293 = vmatpush3.bf16.msra.mxu0 %v14681_v53  ;;  %10323 = vmatpush3.bf16.msra.mxu1 %v14681_v53  ;;  %v8104_v53 = vld [vmem:[%s16948_s10 + $0x48] sm:$0xff] }
 0x6bc   : > { %10295 = vmatprep.subr.bf16.mxu0 %v14689_v3  ;;  %10325 = vmatprep.subr.bf16.mxu1 %v14689_v3 }
 0x6bf   : > { %10297 = vmatpush3.bf16.msra.mxu0 %v14689_v3  ;;  %10327 = vmatpush3.bf16.msra.mxu1 %v14689_v3  ;;  %v5761_v3 = vld [vmem:[%s16941_s3 + $0x88] sm:$0xff] }
 0x6c0   : > { %10299 = vmatprep.subr.bf16.mxu0 %v14697_v37  ;;  %10329 = vmatprep.subr.bf16.mxu1 %v14697_v37  ;;  %v10342_v41 = vpack.c.bf16 %v5761_v3, %v5760_v0  ;;  %v5754_v3 = vld [vmem:[%s16941_s3 + $0x50] sm:$0xff] }
 0x6c1   : > { %v10364_v52 = vpack.c.bf16 %v5755_v21, %v5754_v3 }
 0x6c3   : > { %10301 = vmatpush3.bf16.msra.mxu0 %v14697_v37  ;;  %10331 = vmatpush3.bf16.msra.mxu1 %v14697_v37  ;;  %v5778_v37 = vld [vmem:[%s16941_s3 + $0x110] sm:$0xff] }
 0x6c4   : > { %10303 = vmatprep.subr.bf16.mxu0 %v10242_v42  ;;  %10333 = vmatprep.subr.bf16.mxu1 %v10242_v42  ;;  %v10380_v44 = vpack.c.bf16 %v5779_v5, %v5778_v37 }
 0x6c7   : > { %10305 = vmatpush3.bf16.msra.mxu0 %v10242_v42  ;;  %10335 = vmatpush3.bf16.msra.mxu1 %v10242_v42  ;;  %v10354_v42 = vpack.c.bf16 %v5767_v30, %v5766_v58  ;;  %v5807_v30 = vld [vmem:[%s16941_s3 + $0x1f8] sm:$0xff] }
 0x6c8   : > { %10308 = vmatprep.subr.msk.bf16.mxu0 %vm14707_vm14, %v10246_v59  ;;  %10338 = vmatprep.subr.msk.bf16.mxu1 %vm14707_vm14, %v10246_v59 }
 0x6cb   : > { %10311 = vmatpush3.bf16.msk.msra.mxu0 %vm14707_vm14, %v10246_v59  ;;  %10341 = vmatpush3.bf16.msk.msra.mxu1 %vm14707_vm14, %v10246_v59  ;;  %v5800_v59 = vld [vmem:[%s16941_s3 + $0x1c0] sm:$0xff] }
 0x6cc   : > { %10343 = vmatprep.subr.bf16.mxu0 %v10342_v41  ;;  %10375 = vmatprep.subr.bf16.mxu1 %v10374_v15  ;;  %v10390_v63 = vpack.c.bf16 %v5801_v11, %v5800_v59  ;;  %v5786_v41 = vld [vmem:[%s16941_s3 + $0x150] sm:$0xff]  ;;  %v5804_v15 = vld [vmem:[%s16941_s3 + $0x1e0] sm:$0xff] }
 0x6cd   : > { %v10396_v14 = vpack.c.bf16 %v5787_v19, %v5786_v41  ;;  %v10398_v9 = vpack.c.bf16 %v5805_v6, %v5804_v15  ;;  %v5808_v15 = vld [vmem:[%s16941_s3 + $0x200] sm:$0xff]  ;;  %v5809_v6 = vld [vmem:[%s16941_s3 + $0x208] sm:$0xff] }
 0x6ce   : > { %9820 = vmatmul.mubr.msk.f32.vlgmr.msra.gmra.mrb[132].mxu1 %vm5235_vm12, %v8113_v46  ;;  %9786 = vmatmul.mubr.msk.f32.vlgmr.msra.gmra.mrb[134].mxu0 %vm5235_vm12, %v8104_v53  ;;  %v5770_v46 = vld [vmem:[%s16941_s3 + $0xd0] sm:$0xff]  ;;  %v5771_v53 = vld [vmem:[%s16941_s3 + $0xd8] sm:$0xff] }
 0x6cf   : > { %9822 = vmatprep.mubr.msk.f32.mxu1 %vm5235_vm12, %v8114_v8  ;;  %9788 = vmatprep.mubr.msk.f32.mxu0 %vm5235_vm12, %v8105_v40  ;;  %v5802_v8 = vld [vmem:[%s16941_s3 + $0x1d0] sm:$0xff]  ;;  %v5803_v40 = vld [vmem:[%s16941_s3 + $0x1d8] sm:$0xff]  ;;  %v10362_v0 = vpack.c.bf16 %v5771_v53, %v5770_v46 }
 0x6d0   : > { %10345 = vmatpush3.bf16.msra.mxu0 %v10344_v61  ;;  %10377 = vmatpush3.bf16.msra.mxu1 %v10376_v33  ;;  %v10394_v56 = vpack.c.bf16 %v5803_v40, %v5802_v8  ;;  %v5773_v61 = vld [vmem:[%s16941_s3 + $0xe8] sm:$0xff] }
 0x6d1   : > { %10347 = vmatprep.subr.bf16.mxu0 %v10346_v54  ;;  %10379 = vmatprep.subr.bf16.mxu1 %v10378_v29  ;;  %v10366_v33 = vpack.c.bf16 %v5773_v61, %v5772_v1  ;;  %v5788_v54 = vld [vmem:[%s16941_s3 + $0x160] sm:$0xff] }
 0x6d2   : > { %9823 = vmatmul.mubr.msk.f32.gmra.mrb[134].mxu1 %vm5235_vm12, %v8115_v16  ;;  %9789 = vmatmul.mubr.msk.f32.gmra.mrb[136].mxu0 %vm5235_vm12, %v8106_v7  ;;  %v10360_v16 = vpack.c.bf16 %v5753_v13, %v5752_v28  ;;  %v10392_v7 = vpack.c.bf16 %v5785_v20, %v5784_v34 }
 0x6d4   : > { %10349 = vmatpush3.bf16.msra.mxu0 %v10348_v45  ;;  %10381 = vmatpush3.bf16.msra.mxu1 %v10380_v44  ;;  %v5789_v45 = vld [vmem:[%s16941_s3 + $0x168] sm:$0xff] }
 0x6d5   : > { %10351 = vmatprep.subr.bf16.mxu0 %v10350_v2  ;;  %10383 = vmatprep.subr.bf16.mxu1 %v10382_v36  ;;  %v10400_v47 = vpack.c.bf16 %v5789_v45, %v5788_v54  ;;  %v5806_v36 = vld [vmem:[%s16941_s3 + $0x1f0] sm:$0xff]  ;;  %v5859_v45 = vld [vmem:[%s16941_s3 + $0x398] sm:$0xff] }
 0x6d6   : > { %v5858_v54 = vld [vmem:[%s16941_s3 + $0x390] sm:$0xff] }
 0x6d8   : > { %10353 = vmatpush3.bf16.msra.mxu0 %v10352_v32  ;;  %10385 = vmatpush3.bf16.msra.mxu1 %v10384_v43  ;;  %v5759_v32 = vld [vmem:[%s16941_s3 + $0x78] sm:$0xff] }
 0x6d9   : > { %10355 = vmatprep.subr.bf16.mxu0 %v10354_v42  ;;  %10387 = vmatprep.subr.bf16.mxu1 %v10386_v49  ;;  %v10372_v58 = vpack.c.bf16 %v5759_v32, %v5758_v35  ;;  %v5791_v43 = vld [vmem:[%s16941_s3 + $0x178] sm:$0xff]  ;;  %v10402_v42 = vpack.c.bf16 %v5807_v30, %v5806_v36  ;;  %v10406_v49 = vpack.c.bf16 %v5825_v48, %v5824_v55  ;;  %v15125_v48 = vld [vmem:[%s16941_s3 + $0x2b0] sm:$0xff] }
 0x6da   : > { %v10404_v24 = vpack.c.bf16 %v5791_v43, %v5790_v31 }
 0x6dc   : > { %10357 = vmatpush3.bf16.msra.mxu0 %v10356_v27  ;;  %10389 = vmatpush3.bf16.msra.mxu1 %v10388_v57 }
 0x6dd   : > { %10359 = vmatprep.subr.bf16.mxu0 %v10358_v39  ;;  %10391 = vmatprep.subr.bf16.mxu1 %v10390_v63 }
 0x6e0   : > { %10361 = vmatpush3.bf16.msra.mxu0 %v10360_v16  ;;  %10393 = vmatpush3.bf16.msra.mxu1 %v10392_v7 }
 0x6e1   : > { %10363 = vmatprep.subr.bf16.mxu0 %v10362_v0  ;;  %10395 = vmatprep.subr.bf16.mxu1 %v10394_v56 }
 0x6e4   : > { %10365 = vmatpush3.bf16.msra.mxu0 %v10364_v52  ;;  %10397 = vmatpush3.bf16.msra.mxu1 %v10396_v14  ;;  %v5840_v52 = vld [vmem:[%s16941_s3 + $0x300] sm:$0xff]  ;;  %v5841_v14 = vld [vmem:[%s16941_s3 + $0x308] sm:$0xff] }
 0x6e5   : > { %10367 = vmatprep.subr.bf16.mxu0 %v10366_v33  ;;  %10399 = vmatprep.subr.bf16.mxu1 %v10398_v9  ;;  %v5826_v33 = vld [vmem:[%s16941_s3 + $0x290] sm:$0xff]  ;;  %v5811_v9 = vld [vmem:[%s16941_s3 + $0x218] sm:$0xff]  ;;  %v10440_v35 = vpack.c.bf16 %v5841_v14, %v5840_v52  ;;  %v5844_v14 = vld [vmem:[%s16941_s3 + $0x320] sm:$0xff] }
 0x6e6   : > { %v10410_v32 = vpack.c.bf16 %v5827_v62, %v5826_v33  ;;  %v10412_v36 = vpack.c.bf16 %v5811_v9, %v15060_v60  ;;  %v5845_v33 = vld [vmem:[%s16941_s3 + $0x328] sm:$0xff]  ;;  %v5814_v62 = vld [vmem:[%s16941_s3 + $0x230] sm:$0xff] }
 0x6e8   : > { %10369 = vmatpush3.bf16.msra.mxu0 %v10368_v26  ;;  %10401 = vmatpush3.bf16.msra.mxu1 %v10400_v47  ;;  %v15074_v26 = vld [vmem:[%s16941_s3 + $0x310] sm:$0xff]  ;;  %v15079_v47 = vld [vmem:[%s16941_s3 + $0x318] sm:$0xff] }
 0x6e9   : > { %10371 = vmatprep.subr.bf16.mxu0 %v10370_v38  ;;  %10403 = vmatprep.subr.bf16.mxu1 %v10402_v42  ;;  %v10444_v30 = vpack.c.bf16 %v15079_v47, %v15074_v26 }
 0x6ec   : > { %10373 = vmatpush3.bf16.msra.mxu0 %v10372_v58  ;;  %10405 = vmatpush3.bf16.msra.mxu1 %v10404_v24  ;;  %v10442_v58 = vpack.c.bf16 %v5859_v45, %v5858_v54  ;;  %v5815_v54 = vld [vmem:[%s16941_s3 + $0x238] sm:$0xff]  ;;  %v5862_v45 = vld [vmem:[%s16941_s3 + $0x3b0] sm:$0xff] }
 0x6ed   : > { %10407 = vmatprep.subr.bf16.mxu0 %v10406_v49  ;;  %10439 = vmatprep.subr.bf16.mxu1 %v10438_v51  ;;  %v15130_v49 = vld [vmem:[%s16941_s3 + $0x2b8] sm:$0xff]  ;;  %v10420_v26 = vpack.c.bf16 %v5815_v54, %v5814_v62 }
 0x785   : > { %v9753_v37 = vpop.f32.mrb[128].mxu1  ;;  %v9719_v29 = vpop.f32.mrb[130].mxu0 }
 0x786   : > { %v5419_v5 = vpop.f32.mrb[129].mxu1  ;;  %v5317_v25 = vpop.f32.mrb[131].mxu0 }
 0x787   : > { %v11146_v22 = vpack.i.bf16 %v9753_v37, %v5419_v5  ;;  %v15084_v37 = vld [vmem:[%s16941_s3 + $0x2a0] sm:$0xff] }
 0x788   : > { %v15094_v5 = vld [vmem:[%s16941_s3 + $0x220] sm:$0xff] }
 0x789   : > { %v9756_v44 = vpop.f32.mrb[130].mxu1  ;;  %11147 = vrot.lane.b32.xlu1 %v11146_v22, %s11177_s13  ;;  %v14972_v2 = vpop.f32.mrb[132].mxu0  ;;  %v10408_v22 = vpack.c.bf16 %v5809_v6, %v5808_v15 }
 0x78a   : > { %v5429_v18 = vpop.f32.mrb[131].mxu1  ;;  %v14974_v50 = vpop.f32.mrb[133].mxu0 }
 0x7a1   : > { %v9821_v12 = vpop.f32.mrb[132].mxu1  ;;  %v9787_v27 = vpop.f32.mrb[134].mxu0 }
 0x7a2   : > { %v5623_v59 = vpop.f32.mrb[133].mxu1  ;;  %v5521_v11 = vpop.f32.mrb[135].mxu0 }
 0x7a3   : > { %v11141_v57 = vpack.i.bf16 %v9821_v12, %v5623_v59 }
 0x7a5   : > { %11142 = vrot.lane.b32.xlu0 %v11141_v57, %s11177_s13  ;;  %v9824_v39 = vpop.f32.mrb[134].mxu1  ;;  %v15013_v28 = vpop.f32.mrb[136].mxu0 }
 0x7a6   : > { %v11156_v13 = vpack.i.bf16 %v9756_v44, %v9824_v39  ;;  %v5633_v34 = vpop.f32.mrb[135].mxu1  ;;  %v15015_v63 = vpop.f32.mrb[137].mxu0  ;;  %v15099_v44 = vld [vmem:[%s16941_s3 + $0x228] sm:$0xff] }
 0x7a7   : > { %v11151_v20 = vpack.i.bf16 %v5429_v18, %v5633_v34  ;;  %v15104_v18 = vld [vmem:[%s16941_s3 + $0x3a0] sm:$0xff]  ;;  %v10416_v24 = vpack.c.bf16 %v15099_v44, %v15094_v5  ;;  %v5817_v44 = vld [vmem:[%s16941_s3 + $0x248] sm:$0xff] }
 0x7a8   : > { %11157 = vrot.lane.b32.xlu1 %v11156_v13, %s11177_s13  ;;  %v10446_v55 = vpack.c.bf16 %v15109_v10, %v15104_v18  ;;  %v5864_v18 = vld [vmem:[%s16941_s3 + $0x3c0] sm:$0xff]  ;;  %v5865_v10 = vld [vmem:[%s16941_s3 + $0x3c8] sm:$0xff] }
 0x7a9   : > { %11152 = vrot.lane.b32.xlu0 %v11151_v20, %s11177_s13  ;;  %v10418_v20 = vpack.c.bf16 %v15130_v49, %v15125_v48  ;;  %v5849_v48 = vld [vmem:[%s16941_s3 + $0x348] sm:$0xff]  ;;  %v5818_v49 = vld [vmem:[%s16941_s3 + $0x250] sm:$0xff] }
 0x7fb   : > { %v11148_v46 = vpop.permute.xlu1 %11147 }
 0x7fc   : > { %v11150_v53 = vunpack.i.h.bf16 %v11148_v46  ;;  %v11149_v8 = vunpack.i.l.bf16 %v11148_v46 }
 0x7fe   : > { %v15020_v40 = vsel %vm4699_vm8, %v9719_v29, %v11150_v53  ;;  %v5674_v16 = vsel %vm4699_vm8, %v5317_v25, %v11149_v8  ;;  %v15089_v29 = vld [vmem:[%s16941_s3 + $0x2a8] sm:$0xff] }
 0x7ff   : > { %v5689_v7 = vrot.slane %v15020_v40, 1  ;;  %v5725_v0 = vrot.slane %v15020_v40, 6  ;;  %v5688_v3 = vrot.slane %v5674_v16, 1  ;;  %v5705_v21 = vrot.slane %v5674_v16, 5 }
 0x800   : > { %v5724_v41 = vrot.slane %v5674_v16, 6  ;;  %v5706_v56 = vrot.slane %v15020_v40, 5  ;;  %v10414_v31 = vpack.c.bf16 %v15089_v29, %v15084_v37  ;;  %v5863_v37 = vld [vmem:[%s16941_s3 + $0x3b8] sm:$0xff] }
 0x801   : > { %v5690_v19 = vsel %vm553_vm1, %v5688_v3, %v5689_v7  ;;  %v10450_v47 = vpack.c.bf16 %v5863_v37, %v5862_v45 }
 0x802   : > { %v15032_v1 = vsel %vm5704_vm15, %v5705_v21, %v5706_v56  ;;  %v15037_v61 = vsel %vm5723_vm2, %v5724_v41, %v5725_v0 }
 0x817   : > { %v11143_v25 = vpop.permute.xlu0 %11142 }
 0x818   : > { %v11145_v17 = vunpack.i.h.bf16 %v11143_v25  ;;  %v11144_v38 = vunpack.i.l.bf16 %v11143_v25 }
 0x81a   : > { %v5679_v43 = vsel %vm4699_vm8, %v9787_v27, %v11145_v17  ;;  %v5678_v42 = vsel %vm4699_vm8, %v5521_v11, %v11144_v38  ;;  %v11158_v4 = vpop.permute.xlu1 %11157  ;;  %v5832_v17 = vld [vmem:[%s16941_s3 + $0x2c0] sm:$0xff]  ;;  %v5833_v38 = vld [vmem:[%s16941_s3 + $0x2c8] sm:$0xff] }
 0x81b   : > { %v5692_v23 = vrot.slane %v5679_v43, 1  ;;  %v5709_v51 = vrot.slane %v5679_v43, 5  ;;  %v5728_v12 = vrot.slane %v5679_v43, 6  ;;  %v5691_v27 = vrot.slane %v5678_v42, 1  ;;  %5943 = vmatprep.mubr.f32.mxu0 %v5678_v42  ;;  %v11153_v59 = vpop.permute.xlu0 %11152 }
 0x81c   : > { %v5708_v11 = vrot.slane %v5678_v42, 5  ;;  %v5727_v57 = vrot.slane %v5678_v42, 6  ;;  %5944 = vmatmul.mubr.f32.vlgmr.msra.gmra.mrb[138].mxu0 %v5674_v16  ;;  %v11155_v39 = vunpack.i.h.bf16 %v11153_v59  ;;  %v11154_v13 = vunpack.i.l.bf16 %v11153_v59  ;;  %v5837_v59 = vld [vmem:[%s16941_s3 + $0x2e8] sm:$0xff] }
 0x81d   : > { %10409 = vmatpush3.bf16.msra.mxu0 %v10408_v22  ;;  %v5693_v34 = vsel %vm553_vm1, %v5691_v27, %v5692_v23  ;;  %5948 = vmatprep.mubr.f32.mxu0 %v5679_v43  ;;  %v11160_v46 = vunpack.i.h.bf16 %v11158_v4  ;;  %v11159_v53 = vunpack.i.l.bf16 %v11158_v4  ;;  %v10422_v5 = vpack.c.bf16 %v5833_v38, %v5832_v17  ;;  %v5836_v27 = vld [vmem:[%s16941_s3 + $0x2e0] sm:$0xff]  ;;  %v5855_v17 = vld [vmem:[%s16941_s3 + $0x378] sm:$0xff] }
 0x81e   : > { %6023 = vmatprep.mubr.f32.mxu1 %v5693_v34  ;;  %10411 = vmatprep.subr.bf16.mxu0 %v10410_v32  ;;  %v15137_v8 = vsel %vm4699_vm8, %v14974_v50, %v11155_v39  ;;  %v15141_v16 = vsel %vm4699_vm8, %v15015_v63, %v11154_v13  ;;  %v5710_v3 = vsel %vm5704_vm15, %v5708_v11, %v5709_v51  ;;  %v5850_v13 = vld [vmem:[%s16941_s3 + $0x350] sm:$0xff]  ;;  %v5851_v34 = vld [vmem:[%s16941_s3 + $0x358] sm:$0xff] }
 0x81f   : > { %6024 = vmatmul.mubr.f32.vlgmr.msra.gmra.mrb[136].mxu1 %v5690_v19  ;;  %v5694_v21 = vrot.slane %v15137_v8, 1  ;;  %v5730_v41 = vrot.slane %v15137_v8, 6  ;;  %v5696_v15 = vrot.slane %v15141_v16, 1  ;;  %v5713_v6 = vrot.slane %v15141_v16, 5 }
 0x820   : > { %10441 = vmatpush3.bf16.msra.mxu1 %v10440_v35  ;;  %v5732_v52 = vrot.slane %v15141_v16, 6  ;;  %5949 = vmatmul.mubr.f32.gmra.mrb[140].mxu0 %v15020_v40  ;;  %v5729_v50 = vsel %vm5723_vm2, %v5727_v57, %v5728_v12  ;;  %v5677_v63 = vsel %vm4699_vm8, %v14972_v2, %v11160_v46  ;;  %v5681_v19 = vsel %vm4699_vm8, %v15013_v28, %v11159_v53  ;;  %v5846_v40 = vld [vmem:[%s16941_s3 + $0x330] sm:$0xff]  ;;  %v5821_v53 = vld [vmem:[%s16941_s3 + $0x268] sm:$0xff] }
 0x821   : > { %10413 = vmatpush3.bf16.msra.mxu0 %v10412_v36  ;;  %10443 = vmatprep.subr.bf16.mxu1 %v10442_v58  ;;  %v5697_v60 = vsel %vm553_vm1, %v5692_v23, %v5696_v15  ;;  %v5695_v2 = vsel %vm553_vm1, %v5689_v7, %v5694_v21  ;;  %v15171_v28 = vsel %vm5704_vm15, %v5709_v51, %v5713_v6  ;;  %v5734_v9 = vrot.slane %v5677_v63, 6  ;;  %v5816_v58 = vld [vmem:[%s16941_s3 + $0x240] sm:$0xff]  ;;  %v5819_v23 = vld [vmem:[%s16941_s3 + $0x258] sm:$0xff]  ;;  %v5866_v51 = vld [vmem:[%s16941_s3 + $0x3d0] sm:$0xff] }
 0x822   : > { %10415 = vmatprep.subr.bf16.mxu0 %v10414_v31  ;;  %6028 = vmatprep.mubr.f32.mxu1 %v5697_v60  ;;  %v5736_v7 = vrot.slane %v5681_v19, 6  ;;  %v5711_v29 = vrot.slane %v15137_v8, 5  ;;  %v15184_v25 = vsel %vm5723_vm2, %v5728_v12, %v5732_v52  ;;  %v15189_v22 = vsel %vm5723_vm2, %v5725_v0, %v5730_v41  ;;  %v5835_v31 = vld [vmem:[%s16941_s3 + $0x2d8] sm:$0xff]  ;;  %v5852_v19 = vld [vmem:[%s16941_s3 + $0x360] sm:$0xff] }
 0x823   : > { %6029 = vmatmul.mubr.f32.gmra.mrb[138].mxu1 %v5695_v2  ;;  %5953 = vmatprep.mubr.f32.mxu0 %v15141_v16  ;;  %v15199_v35 = vsel %vm5723_vm2, %v5730_v41, %v5734_v9  ;;  %v10448_v0 = vpack.c.bf16 %v5845_v33, %v5844_v14  ;;  %v10424_v42 = vpack.c.bf16 %v5817_v44, %v5816_v58  ;;  %v5867_v12 = vld [vmem:[%s16941_s3 + $0x3d8] sm:$0xff]  ;;  %v5838_v41 = vld [vmem:[%s16941_s3 + $0x2f0] sm:$0xff]  ;;  %v5853_v14 = vld [vmem:[%s16941_s3 + $0x368] sm:$0xff]  ;;  %vm6203_vm1 = vcmask 154624  }
 0x824   : > { %10445 = vmatpush3.bf16.msra.mxu1 %v10444_v30  ;;  %5954 = vmatmul.mubr.f32.gmra.mrb[142].mxu0 %v15137_v8  ;;  %v15210_v32 = vsel %vm5704_vm15, %v5706_v56, %v5711_v29  ;;  %v15213_v36 = vsel %vm5723_vm2, %v5732_v52, %v5736_v7  ;;  %v5847_v56 = vld [vmem:[%s16941_s3 + $0x338] sm:$0xff]  ;;  %v5834_v30 = vld [vmem:[%s16941_s3 + $0x2d0] sm:$0xff]  ;;  %v10428_v57 = vpack.c.bf16 %v5819_v23, %v5818_v49  ;;  %v8121_v16 = vld [vmem:[%s16945_s7] ss:$0 sm:$0xff] }
 0x825   : > { %10417 = vmatpush3.bf16.msra.mxu0 %v10416_v24  ;;  %10447 = vmatprep.subr.bf16.mxu1 %v10446_v55  ;;  %v10452_v43 = vpack.c.bf16 %v5847_v56, %v5846_v40  ;;  %v10454_v24 = vpack.c.bf16 %v5865_v10, %v5864_v18  ;;  %v5848_v55 = vld [vmem:[%s16941_s3 + $0x340] sm:$0xff]  ;;  %v10426_v4 = vpack.c.bf16 %v5835_v31, %v5834_v30  ;;  %v5822_v33 = vld [vmem:[%s16941_s3 + $0x270] sm:$0xff]  ;;  %v5823_v60 = vld [vmem:[%s16941_s3 + $0x278] sm:$0xff] }
 0x826   : > { %10419 = vmatprep.subr.bf16.mxu0 %v10418_v20  ;;  %6033 = vmatprep.mubr.f32.mxu1 %v5696_v15  ;;  %v10456_v11 = vpack.c.bf16 %v5849_v48, %v5848_v55  ;;  %v10458_v39 = vpack.c.bf16 %v5867_v12, %v5866_v51  ;;  %v5820_v20 = vld [vmem:[%s16941_s3 + $0x260] sm:$0xff]  ;;  %v10430_v46 = vpack.c.bf16 %v5837_v59, %v5836_v27  ;;  %v5839_v15 = vld [vmem:[%s16941_s3 + $0x2f8] sm:$0xff]  ;;  %v5870_v2 = vld [vmem:[%s16941_s3 + $0x3f0] sm:$0xff] }
 0x827   : > { %6034 = vmatmul.mubr.f32.gmra.mrb[140].mxu1 %v5694_v21  ;;  %6103 = vmatprep.mubr.f32.mxu0 %v5710_v3  ;;  %v5868_v3 = vld [vmem:[%s16941_s3 + $0x3e0] sm:$0xff]  ;;  %v5869_v21 = vld [vmem:[%s16941_s3 + $0x3e8] sm:$0xff]  ;;  %v10460_v52 = vpack.c.bf16 %v5851_v34, %v5850_v13  ;;  %v10434_v62 = vpack.c.bf16 %v5839_v15, %v5838_v41  ;;  %v5871_v9 = vld [vmem:[%s16941_s3 + $0x3f8] sm:$0xff]  ;;  %v10464_v54 = vpack.c.bf16 %v5853_v14, %v5852_v19 }
 0x828   : > { %10449 = vmatpush3.bf16.msra.mxu1 %v10448_v0  ;;  %6183 = vmatprep.mubr.f32.mxu1 %v5729_v50  ;;  %v10432_v50 = vpack.c.bf16 %v5821_v53, %v5820_v20  ;;  %v10462_v63 = vpack.c.bf16 %v5869_v21, %v5868_v3  ;;  %v10436_v45 = vpack.c.bf16 %v5823_v60, %v5822_v33  ;;  %v5854_v7 = vld [vmem:[%s16941_s3 + $0x370] sm:$0xff]  ;;  %v17028_v0 = vmov 0.0|0.0   ;;  %v8124_v60 = vld [vmem:[%s16949_s11 + $0x4] sm:$0xf] }
 0x829   : > { %10421 = vmatpush3.bf16.msra.mxu0 %v10420_v26  ;;  %10451 = vmatprep.subr.bf16.mxu1 %v10450_v47  ;;  %v10466_v37 = vpack.c.bf16 %v5871_v9, %v5870_v2  ;;  %v10468_v38 = vpack.c.bf16 %v5855_v17, %v5854_v7  ;;  %v6202_v2 = vld [vmem:[%s16949_s11] sm:$0xf]  ;;  %v6534_v9 = vld [vmem:[%s16942_s4 + $0x8] sm:$0xff]  ;;  %v6540_v17 = vld [vmem:[%s16942_s4 + $0x38] sm:$0xff] }
 0x82a   : > { %10423 = vmatprep.subr.bf16.mxu0 %v10422_v5  ;;  %v6538_v7 = vld [vmem:[%s16942_s4 + $0x28] sm:$0xff] }
 0x82c   : > { %10453 = vmatpush3.bf16.msra.mxu1 %v10452_v43 }
 0x82d   : > { %10425 = vmatpush3.bf16.msra.mxu0 %v10424_v42  ;;  %10455 = vmatprep.subr.bf16.mxu1 %v10454_v24 }
 0x82e   : > { %10427 = vmatprep.subr.bf16.mxu0 %v10426_v4 }
 0x830   : > { %10457 = vmatpush3.bf16.msra.mxu1 %v10456_v11 }
 0x831   : > { %10429 = vmatpush3.bf16.msra.mxu0 %v10428_v57  ;;  %10459 = vmatprep.subr.bf16.mxu1 %v10458_v39 }
 0x832   : > { %10431 = vmatprep.subr.bf16.mxu0 %v10430_v46 }
 0x834   : > { %10461 = vmatpush3.bf16.msra.mxu1 %v10460_v52 }
 0x835   : > { %10433 = vmatpush3.bf16.msra.mxu0 %v10432_v50  ;;  %10463 = vmatprep.subr.bf16.mxu1 %v10462_v63 }
 0x836   : > { %10435 = vmatprep.subr.bf16.mxu0 %v10434_v62 }
 0x838   : > { %10465 = vmatpush3.bf16.msra.mxu1 %v10464_v54  ;;  %v6536_v54 = vld [vmem:[%s16942_s4 + $0x18] sm:$0xff] }
 0x839   : > { %10437 = vmatpush3.bf16.msra.mxu0 %v10436_v45  ;;  %10467 = vmatprep.subr.bf16.mxu1 %v10466_v37  ;;  %v6533_v45 = vld [vmem:[%s16942_s4] sm:$0xff]  ;;  %v6535_v37 = vld [vmem:[%s16942_s4 + $0x10] sm:$0xff] }
 0x83a   : > { %10470 = vmatprep.subr.bf16.mxu0 %v17028_v0 }
 0x83c   : > { %10469 = vmatpush3.bf16.msra.mxu1 %v10468_v38  ;;  %6104 = vmatmul.mubr.f32.vlgmr.msra.gmra.mrb[144].mxu0 %v15032_v1  ;;  %v17029_v1 = vmov 0.0   ;;  %v8130_v38 = vld [vmem:[%s16949_s11 + $0xc] sm:$0xf] }
 0x83d   : > { %6108 = vmatprep.mubr.f32.mxu0 %v15171_v28  ;;  %10473 = vmatprep.subr.bf16.mxu1 %v17028_v0 }
 0x83f   : > { %6184 = vmatmul.mubr.f32.vlgmr.msra.gmra.mrb[142].mxu1 %v15037_v61 }
 0x840   : > { %6109 = vmatmul.mubr.f32.gmra.mrb[146].mxu0 %v15210_v32  ;;  %6188 = vmatprep.mubr.f32.mxu1 %v15184_v25 }
 0x841   : > { %6113 = vmatprep.mubr.f32.mxu0 %v5713_v6 }
 0x843   : > { %6189 = vmatmul.mubr.f32.gmra.mrb[144].mxu1 %v15189_v22 }
 0x844   : > { %6114 = vmatmul.mubr.f32.gmra.mrb[148].mxu0 %v5711_v29  ;;  %6193 = vmatprep.mubr.f32.mxu1 %v15213_v36 }
 0x845   : > { %9831 = vmatprep.mubr.msk.f32.mxu0 %vm11171_vm0, %v17029_v1 }
 0x847   : > { %6194 = vmatmul.mubr.f32.gmra.mrb[146].mxu1 %v15199_v35 }
 0x848   : > { %9840 = vmatprep.mubr.msk.f32.mxu1 %vm11171_vm0, %v17029_v1 }
 0x8ef   : > { %v9186_v61 = vpop.f32.mrb[138].mxu0 }
 0x8f0   : > { %v9187_v6 = vpop.f32.mrb[139].mxu0 }
 0x8f1   : > { %v9188_v28 = vadd.f32 %v9187_v6, %v9186_v61  ;;  %v10482_v61 = vpack.c.bf16 %v6536_v54, %v6534_v9  ;;  %v10486_v6 = vpack.c.bf16 %v6540_v17, %v6538_v7  ;;  %v6573_v54 = vld [vmem:[%s16942_s4 + $0x140] sm:$0xff]  ;;  %v6580_v7 = vld [vmem:[%s16942_s4 + $0x178] sm:$0xff] }
 0x8f2   : > { %v9227_v25 = vpop.f32.mrb[136].mxu1 }
 0x8f3   : > { %v5946_v8 = vadd.f32 %v9188_v28, %v8121_v16  ;;  %v9189_v29 = vpop.f32.mrb[140].mxu0  ;;  %v9228_v22 = vpop.f32.mrb[137].mxu1  ;;  %v6537_v28 = vld [vmem:[%s16942_s4 + $0x20] sm:$0xff] }
 0x8f4   : > { %v9190_v32 = vpop.f32.mrb[141].mxu0  ;;  %v9229_v36 = vadd.f32 %v9228_v22, %v9227_v25  ;;  %v6542_v25 = vld [vmem:[%s16942_s4 + $0x48] sm:$0xff] }
 0x8f5   : > { %v9191_v26 = vadd.f32 %v9190_v32, %v9189_v29  ;;  %v6541_v32 = vld [vmem:[%s16942_s4 + $0x40] sm:$0xff] }
 0x8f6   : > { %v6026_v47 = vadd.f32 %v9229_v36, %v5946_v8  ;;  %v9230_v40 = vpop.f32.mrb[138].mxu1  ;;  %v6544_v8 = vld [vmem:[%s16942_s4 + $0x58] sm:$0xff]  ;;  %v6543_v36 = vld [vmem:[%s16942_s4 + $0x50] sm:$0xff] }
 0x8f7   : > { %v5951_v35 = vadd.f32 %v9191_v26, %v8121_v16  ;;  %v9192_v56 = vpop.f32.mrb[142].mxu0  ;;  %v9231_v58 = vpop.f32.mrb[139].mxu1  ;;  %v10490_v22 = vpack.c.bf16 %v6544_v8, %v6542_v25  ;;  %v6546_v26 = vld [vmem:[%s16942_s4 + $0x68] sm:$0xff]  ;;  %v6581_v25 = vld [vmem:[%s16942_s4 + $0x180] sm:$0xff]  ;;  %v6583_v8 = vld [vmem:[%s16942_s4 + $0x190] sm:$0xff] }
 0x8f8   : > { %v9193_v5 = vpop.f32.mrb[143].mxu0  ;;  %v9232_v44 = vadd.f32 %v9231_v58, %v9230_v40  ;;  %v10492_v40 = vpack.c.bf16 %v6543_v36, %v6541_v32  ;;  %v6547_v58 = vld [vmem:[%s16942_s4 + $0x70] sm:$0xff]  ;;  %v10532_v32 = vpack.c.bf16 %v6583_v8, %v6581_v25  ;;  %v6622_v25 = vld [vmem:[%s16942_s4 + $0x2c8] sm:$0xff]  ;;  %v6624_v8 = vld [vmem:[%s16942_s4 + $0x2d8] sm:$0xff] }
 0x8f9   : > { %v9194_v18 = vadd.f32 %v9193_v5, %v9192_v56  ;;  %v6545_v56 = vld [vmem:[%s16942_s4 + $0x60] sm:$0xff]  ;;  %v6550_v5 = vld [vmem:[%s16942_s4 + $0x88] sm:$0xff] }
 0x8fa   : > { %v6031_v10 = vadd.f32 %v9232_v44, %v5951_v35  ;;  %v9233_v30 = vpop.f32.mrb[140].mxu1  ;;  %v6552_v44 = vld [vmem:[%s16942_s4 + $0x98] sm:$0xff] }
 0x8fb   : > { %v5956_v31 = vadd.f32 %v9194_v18, %v8121_v16  ;;  %v9234_v43 = vpop.f32.mrb[141].mxu1  ;;  %v10484_v16 = vpack.c.bf16 %v6535_v37, %v6533_v45  ;;  %v10496_v18 = vpack.c.bf16 %v6547_v58, %v6545_v56  ;;  %v6575_v45 = vld [vmem:[%s16942_s4 + $0x150] sm:$0xff]  ;;  %v6578_v37 = vld [vmem:[%s16942_s4 + $0x168] sm:$0xff] }
 0x8fc   : > { %v9235_v42 = vadd.f32 %v9234_v43, %v9233_v30  ;;  %v6549_v30 = vld [vmem:[%s16942_s4 + $0x80] sm:$0xff]  ;;  %v6554_v43 = vld [vmem:[%s16942_s4 + $0xa8] sm:$0xff]  ;;  %v10524_v17 = vpack.c.bf16 %v6575_v45, %v6573_v54  ;;  %v6616_v54 = vld [vmem:[%s16942_s4 + $0x298] sm:$0xff] }
 0x8fe   : > { %v6036_v24 = vadd.f32 %v9235_v42, %v5956_v31  ;;  %v6551_v31 = vld [vmem:[%s16942_s4 + $0x90] sm:$0xff]  ;;  %v6556_v42 = vld [vmem:[%s16942_s4 + $0xb8] sm:$0xff] }
 0x90f   : > { %v9268_v55 = vpop.f32.mrb[144].mxu0 }
 0x910   : > { %v9269_v48 = vpop.f32.mrb[145].mxu0 }
 0x911   : > { %v9270_v49 = vadd.f32 %v9269_v48, %v9268_v55  ;;  %v10502_v55 = vpack.c.bf16 %v6556_v42, %v6554_v43  ;;  %v6553_v48 = vld [vmem:[%s16942_s4 + $0xa0] sm:$0xff]  ;;  %v6595_v42 = vld [vmem:[%s16942_s4 + $0x1f0] sm:$0xff] }
 0x912   : > { %v9309_v4 = vpop.f32.mrb[142].mxu1  ;;  %v6593_v43 = vld [vmem:[%s16942_s4 + $0x1e0] sm:$0xff] }
 0x913   : > { %v6106_v23 = vadd.f32 %v9270_v49, %v6026_v47  ;;  %v9271_v51 = vpop.f32.mrb[146].mxu0  ;;  %v9310_v12 = vpop.f32.mrb[143].mxu1  ;;  %v6548_v47 = vld [vmem:[%s16942_s4 + $0x78] sm:$0xff]  ;;  %v6555_v49 = vld [vmem:[%s16942_s4 + $0xb0] sm:$0xff] }
 0x914   : > { %v9272_v27 = vpop.f32.mrb[147].mxu0  ;;  %v9311_v59 = vadd.f32 %v9310_v12, %v9309_v4  ;;  %v10494_v35 = vpack.c.bf16 %v6548_v47, %v6546_v26  ;;  %v6558_v4 = vld [vmem:[%s16942_s4 + $0xc8] sm:$0xff]  ;;  %v6585_v26 = vld [vmem:[%s16942_s4 + $0x1a0] sm:$0xff]  ;;  %v6587_v47 = vld [vmem:[%s16942_s4 + $0x1b0] sm:$0xff] }
 0x915   : > { %v9273_v11 = vadd.f32 %v9272_v27, %v9271_v51  ;;  %v10504_v51 = vpack.c.bf16 %v6555_v49, %v6553_v48  ;;  %v6557_v27 = vld [vmem:[%s16942_s4 + $0xc0] sm:$0xff]  ;;  %v10536_v56 = vpack.c.bf16 %v6587_v47, %v6585_v26  ;;  %v6600_v48 = vld [vmem:[%s16942_s4 + $0x218] sm:$0xff]  ;;  %v6626_v26 = vld [vmem:[%s16942_s4 + $0x2e8] sm:$0xff] }
 0x916   : > { %v6186_v57 = vadd.f32 %v9311_v59, %v6106_v23  ;;  %v9312_v39 = vpop.f32.mrb[144].mxu1  ;;  %v6560_v23 = vld [vmem:[%s16942_s4 + $0xd8] sm:$0xff]  ;;  %v6559_v59 = vld [vmem:[%s16942_s4 + $0xd0] sm:$0xff] }
 0x917   : > { %v6111_v13 = vadd.f32 %v9273_v11, %v6031_v10  ;;  %v9313_v34 = vpop.f32.mrb[145].mxu1  ;;  %v9274_v20 = vpop.f32.mrb[148].mxu0  ;;  %v10498_v10 = vpack.c.bf16 %v6552_v44, %v6550_v5  ;;  %v10506_v12 = vpack.c.bf16 %v6560_v23, %v6558_v4  ;;  %v6562_v11 = vld [vmem:[%s16942_s4 + $0xe8] sm:$0xff]  ;;  %v6589_v5 = vld [vmem:[%s16942_s4 + $0x1c0] sm:$0xff]  ;;  %v6591_v44 = vld [vmem:[%s16942_s4 + $0x1d0] sm:$0xff] }
 0x918   : > { %v9314_v46 = vadd.f32 %v9313_v34, %v9312_v39  ;;  %v9275_v53 = vpop.f32.mrb[149].mxu0  ;;  %v6199_v50 = vmax.f32 %v6186_v57, 0.0  ;;  %v6564_v57 = vld [vmem:[%s16942_s4 + $0xf8] sm:$0xff]  ;;  %v10508_v39 = vpack.c.bf16 %v6559_v59, %v6557_v27  ;;  %v6561_v34 = vld [vmem:[%s16942_s4 + $0xe0] sm:$0xff]  ;;  %v6599_v23 = vld [vmem:[%s16942_s4 + $0x210] sm:$0xff] }
 0x919   : > { %v9276_v3 = vadd.f32 %v9275_v53, %v9274_v20  ;;  %v6563_v20 = vld [vmem:[%s16942_s4 + $0xf0] sm:$0xff]  ;;  %v6568_v53 = vld [vmem:[%s16942_s4 + $0x118] sm:$0xff]  ;;  %v6597_v4 = vld [vmem:[%s16942_s4 + $0x200] sm:$0xff] }
 0x91a   : > { %v6191_v21 = vadd.f32 %v9314_v46, %v6111_v13  ;;  %v9315_v41 = vpop.f32.mrb[146].mxu1  ;;  %v10510_v13 = vpack.c.bf16 %v6564_v57, %v6562_v11  ;;  %v6566_v46 = vld [vmem:[%s16942_s4 + $0x108] sm:$0xff]  ;;  %v10548_v27 = vpack.c.bf16 %v6599_v23, %v6597_v4  ;;  %v6628_v47 = vld [vmem:[%s16942_s4 + $0x2f8] sm:$0xff] }
 0x91b   : > { %v6116_v15 = vadd.f32 %v9276_v3, %v6036_v24  ;;  %v9316_v52 = vpop.f32.mrb[147].mxu1  ;;  %v10500_v24 = vpack.c.bf16 %v6551_v31, %v6549_v30  ;;  %v10512_v3 = vpack.c.bf16 %v6563_v20, %v6561_v34  ;;  %v10540_v30 = vpack.c.bf16 %v6591_v44, %v6589_v5  ;;  %v6606_v34 = vld [vmem:[%s16942_s4 + $0x248] sm:$0xff]  ;;  %v6608_v20 = vld [vmem:[%s16942_s4 + $0x258] sm:$0xff] }
 0x91c   : > { %v6200_v63 = vmax.f32 %v6191_v21, 0.0  ;;  %v9317_v19 = vadd.f32 %v9316_v52, %v9315_v41  ;;  %v10514_v21 = vpack.c.bf16 %v6568_v53, %v6566_v46  ;;  %v6565_v41 = vld [vmem:[%s16942_s4 + $0x100] sm:$0xff]  ;;  %v6570_v52 = vld [vmem:[%s16942_s4 + $0x128] sm:$0xff]  ;;  %v6632_v44 = vld [vmem:[%s16942_s4 + $0x318] sm:$0xff] }
 0x91d   : > { %v6630_v5 = vld [vmem:[%s16942_s4 + $0x308] sm:$0xff]  ;;  %v6640_v23 = vld [vmem:[%s16942_s4 + $0x358] sm:$0xff] }
 0x91e   : > { %v10471_v14 = vpack.c.bf16 %v6200_v63, %v6199_v50  ;;  %v6196_v33 = vadd.f32 %v9317_v19, %v6116_v15  ;;  %v6567_v15 = vld [vmem:[%s16942_s4 + $0x110] sm:$0xff]  ;;  %v6572_v50 = vld [vmem:[%s16942_s4 + $0x138] sm:$0xff]  ;;  %v6638_v4 = vld [vmem:[%s16942_s4 + $0x348] sm:$0xff] }
 0x91f   : > { %v10516_v63 = vpack.c.bf16 %v6567_v15, %v6565_v41  ;;  %v10518_v19 = vpack.c.bf16 %v6572_v50, %v6570_v52  ;;  %v6605_v41 = vld [vmem:[%s16942_s4 + $0x240] sm:$0xff]  ;;  %v6607_v15 = vld [vmem:[%s16942_s4 + $0x250] sm:$0xff]  ;;  %v6610_v52 = vld [vmem:[%s16942_s4 + $0x268] sm:$0xff] }
 0x920   : > { %10475 = vmatpush3.bf16.msra.mxu1 %v10471_v14  ;;  %10472 = vmatpush3.bf16.msra.mxu0 %v10471_v14  ;;  %v6201_v62 = vmax.f32 %v6196_v33, 0.0  ;;  %v6571_v33 = vld [vmem:[%s16942_s4 + $0x130] sm:$0xff]  ;;  %v6612_v50 = vld [vmem:[%s16942_s4 + $0x278] sm:$0xff] }
 0x921   : > { %9838 = vmatprep.subr.mxu1 %v17029_v1  ;;  %9829 = vmatprep.subr.mxu0 %v17029_v1 }
 0x924   : > { %9839 = vmatpush3.msk.msra.mxu1 %vm5704_vm15, %v6201_v62  ;;  %9830 = vmatpush3.msk.msra.mxu0 %vm5704_vm15, %v6201_v62 }
 0x925   : > { %9841 = vmatmul.mubr.msk.f32.vlgmr.msra.gmra.mrb[148].mxu1 %vm6203_vm1, %v8124_v60  ;;  %9832 = vmatmul.mubr.msk.f32.vlgmr.msra.gmra.mrb[150].mxu0 %vm6203_vm1, %v6202_v2  ;;  %v6576_v60 = vld [vmem:[%s16942_s4 + $0x158] sm:$0xff] }
 0x926   : > { %10479 = vmatprep.subr.bf16.mxu1 %v17028_v0  ;;  %10476 = vmatprep.subr.bf16.mxu0 %v17028_v0  ;;  %v8127_v0 = vld [vmem:[%s16949_s11 + $0x8] sm:$0xf] }
 0x927   : > { %10481 = vmatpush3.bf16.msra.mxu1 %v10471_v14  ;;  %10478 = vmatpush3.bf16.msra.mxu0 %v10471_v14  ;;  %v6569_v14 = vld [vmem:[%s16942_s4 + $0x120] sm:$0xff] }
 0x928   : > { %9856 = vmatprep.subr.mxu1 %v17029_v1  ;;  %9847 = vmatprep.subr.mxu0 %v17029_v1  ;;  %v10520_v2 = vpack.c.bf16 %v6571_v33, %v6569_v14  ;;  %v10558_v33 = vpack.c.bf16 %v6612_v50, %v6610_v52  ;;  %v6645_v52 = vld [vmem:[%s16942_s4 + $0x380] sm:$0xff]  ;;  %v6647_v50 = vld [vmem:[%s16942_s4 + $0x390] sm:$0xff] }
 0x929   : > { %9858 = vmatprep.mubr.msk.f32.mxu1 %vm11171_vm0, %v17029_v1  ;;  %9849 = vmatprep.mubr.msk.f32.mxu0 %vm11171_vm0, %v17029_v1  ;;  %v6539_v1 = vld [vmem:[%s16942_s4 + $0x30] sm:$0xff] }
 0x92a   : > { %v10488_v29 = vpack.c.bf16 %v6539_v1, %v6537_v28 }
 0x92b   : > { %9857 = vmatpush3.msk.msra.mxu1 %vm5704_vm15, %v6201_v62  ;;  %9848 = vmatpush3.msk.msra.mxu0 %vm5704_vm15, %v6201_v62  ;;  %v6574_v62 = vld [vmem:[%s16942_s4 + $0x148] sm:$0xff] }
 0x92c   : > { %9859 = vmatmul.mubr.msk.f32.vlgmr.msra.gmra.mrb[150].mxu1 %vm6203_vm1, %v8130_v38  ;;  %9850 = vmatmul.mubr.msk.f32.vlgmr.msra.gmra.mrb[152].mxu0 %vm6203_vm1, %v8127_v0  ;;  %v10522_v9 = vpack.c.bf16 %v6576_v60, %v6574_v62  ;;  %v10526_v38 = vpack.c.bf16 %v6580_v7, %v6578_v37  ;;  %v6577_v0 = vld [vmem:[%s16942_s4 + $0x160] sm:$0xff]  ;;  %v6611_v60 = vld [vmem:[%s16942_s4 + $0x270] sm:$0xff] }
 0x92d   : > { %10483 = vmatprep.subr.bf16.mxu0 %v10482_v61  ;;  %v6579_v61 = vld [vmem:[%s16942_s4 + $0x170] sm:$0xff]  ;;  %v6609_v62 = vld [vmem:[%s16942_s4 + $0x260] sm:$0xff] }
 0x92e   : > { %10485 = vmatpush1.bf16.msra.mxu0 %v10484_v16  ;;  %v6582_v16 = vld [vmem:[%s16942_s4 + $0x188] sm:$0xff]  ;;  %v10528_v28 = vpack.c.bf16 %v6579_v61, %v6577_v0  ;;  %v10560_v37 = vpack.c.bf16 %v6611_v60, %v6609_v62  ;;  %v6620_v61 = vld [vmem:[%s16942_s4 + $0x2b8] sm:$0xff]  ;;  %v10596_v62 = vpack.c.bf16 %v6647_v50, %v6645_v52  ;;  %v6685_v50 = vld [vmem:[%s16942_s4 + $0x4c0] sm:$0xff] }
 0x92f   : > { %10487 = vmatprep.subr.bf16.mxu0 %v10486_v6  ;;  %v6584_v6 = vld [vmem:[%s16942_s4 + $0x198] sm:$0xff]  ;;  %v6618_v0 = vld [vmem:[%s16942_s4 + $0x2a8] sm:$0xff] }
 0x930   : > { %v10530_v1 = vpack.c.bf16 %v6584_v6, %v6582_v16  ;;  %v10566_v6 = vpack.c.bf16 %v6620_v61, %v6618_v0  ;;  %v6658_v0 = vld [vmem:[%s16942_s4 + $0x3e8] sm:$0xff]  ;;  %v6660_v61 = vld [vmem:[%s16942_s4 + $0x3f8] sm:$0xff] }
 0x932   : > { %10489 = vmatpush1.bf16.msra.mxu0 %v10488_v29  ;;  %v6586_v29 = vld [vmem:[%s16942_s4 + $0x1a8] sm:$0xff] }
 0x933   : > { %10491 = vmatprep.subr.bf16.mxu0 %v10490_v22  ;;  %v6588_v22 = vld [vmem:[%s16942_s4 + $0x1b8] sm:$0xff] }
 0x934   : > { %v10534_v36 = vpack.c.bf16 %v6588_v22, %v6586_v29  ;;  %v10570_v22 = vpack.c.bf16 %v6624_v8, %v6622_v25  ;;  %v6662_v25 = vld [vmem:[%s16942_s4 + $0x408] sm:$0xff]  ;;  %v6664_v8 = vld [vmem:[%s16942_s4 + $0x418] sm:$0xff] }
 0x936   : > { %10493 = vmatpush1.bf16.msra.mxu0 %v10492_v40  ;;  %v6590_v40 = vld [vmem:[%s16942_s4 + $0x1c8] sm:$0xff] }
 0x937   : > { %10495 = vmatprep.subr.bf16.mxu0 %v10494_v35  ;;  %v6592_v35 = vld [vmem:[%s16942_s4 + $0x1d8] sm:$0xff] }
 0x938   : > { %v10538_v58 = vpack.c.bf16 %v6592_v35, %v6590_v40  ;;  %v10574_v35 = vpack.c.bf16 %v6628_v47, %v6626_v26  ;;  %v6666_v26 = vld [vmem:[%s16942_s4 + $0x428] sm:$0xff]  ;;  %v6668_v47 = vld [vmem:[%s16942_s4 + $0x438] sm:$0xff] }
 0x93a   : > { %10497 = vmatpush1.bf16.msra.mxu0 %v10496_v18  ;;  %v6594_v18 = vld [vmem:[%s16942_s4 + $0x1e8] sm:$0xff] }
 0x93b   : > { %10499 = vmatprep.subr.bf16.mxu0 %v10498_v10  ;;  %v6596_v10 = vld [vmem:[%s16942_s4 + $0x1f8] sm:$0xff] }
 0x93c   : > { %v10542_v31 = vpack.c.bf16 %v6596_v10, %v6594_v18  ;;  %v10578_v10 = vpack.c.bf16 %v6632_v44, %v6630_v5  ;;  %v6670_v5 = vld [vmem:[%s16942_s4 + $0x448] sm:$0xff]  ;;  %v6672_v44 = vld [vmem:[%s16942_s4 + $0x458] sm:$0xff] }
 0x93e   : > { %10501 = vmatpush1.bf16.msra.mxu0 %v10500_v24  ;;  %v10544_v24 = vpack.c.bf16 %v6595_v42, %v6593_v43  ;;  %v6634_v43 = vld [vmem:[%s16942_s4 + $0x328] sm:$0xff]  ;;  %v6636_v42 = vld [vmem:[%s16942_s4 + $0x338] sm:$0xff] }
 0x93f   : > { %10503 = vmatprep.subr.bf16.mxu0 %v10502_v55  ;;  %v6598_v55 = vld [vmem:[%s16942_s4 + $0x208] sm:$0xff] }
 0x940   : > { %v10546_v49 = vpack.c.bf16 %v6600_v48, %v6598_v55  ;;  %v10582_v55 = vpack.c.bf16 %v6636_v42, %v6634_v43  ;;  %v6633_v48 = vld [vmem:[%s16942_s4 + $0x320] sm:$0xff]  ;;  %v6671_v43 = vld [vmem:[%s16942_s4 + $0x450] sm:$0xff]  ;;  %v6674_v42 = vld [vmem:[%s16942_s4 + $0x468] sm:$0xff] }
 0x942   : > { %10505 = vmatpush1.bf16.msra.mxu0 %v10504_v51  ;;  %v6602_v51 = vld [vmem:[%s16942_s4 + $0x228] sm:$0xff] }
 0x943   : > { %10507 = vmatprep.subr.bf16.mxu0 %v10506_v12  ;;  %v6604_v12 = vld [vmem:[%s16942_s4 + $0x238] sm:$0xff] }
 0x944   : > { %v10550_v57 = vpack.c.bf16 %v6604_v12, %v6602_v51  ;;  %v10586_v12 = vpack.c.bf16 %v6640_v23, %v6638_v4  ;;  %v6675_v4 = vld [vmem:[%s16942_s4 + $0x470] sm:$0xff]  ;;  %v6678_v23 = vld [vmem:[%s16942_s4 + $0x488] sm:$0xff] }
 0x946   : > { %10509 = vmatpush1.bf16.msra.mxu0 %v10508_v39  ;;  %v6601_v39 = vld [vmem:[%s16942_s4 + $0x220] sm:$0xff] }
 0x947   : > { %10511 = vmatprep.subr.bf16.mxu0 %v10510_v13  ;;  %v6603_v13 = vld [vmem:[%s16942_s4 + $0x230] sm:$0xff] }
 0x94a   : > { %10513 = vmatpush1.bf16.msra.mxu0 %v10512_v3  ;;  %v10552_v3 = vpack.c.bf16 %v6603_v13, %v6601_v39  ;;  %v6642_v39 = vld [vmem:[%s16942_s4 + $0x368] sm:$0xff]  ;;  %v6644_v13 = vld [vmem:[%s16942_s4 + $0x378] sm:$0xff] }
 0x94b   : > { %10515 = vmatprep.subr.bf16.mxu0 %v10514_v21  ;;  %v10554_v21 = vpack.c.bf16 %v6608_v20, %v6606_v34  ;;  %v10590_v20 = vpack.c.bf16 %v6644_v13, %v6642_v39  ;;  %v6679_v39 = vld [vmem:[%s16942_s4 + $0x490] sm:$0xff]  ;;  %v6682_v13 = vld [vmem:[%s16942_s4 + $0x4a8] sm:$0xff] }
 0x94e   : > { %10517 = vmatpush1.bf16.msra.mxu0 %v10516_v63  ;;  %v10556_v63 = vpack.c.bf16 %v6607_v15, %v6605_v41 }
 0x94f   : > { %10519 = vmatprep.subr.bf16.mxu0 %v10518_v19 }
 0x952   : > { %10521 = vmatpush1.bf16.msra.mxu0 %v10520_v2 }
 0x953   : > { %10523 = vmatprep.subr.bf16.mxu0 %v10522_v9  ;;  %v6614_v9 = vld [vmem:[%s16942_s4 + $0x288] sm:$0xff] }
 0x954   : > { %v10562_v7 = vpack.c.bf16 %v6616_v54, %v6614_v9  ;;  %v6651_v9 = vld [vmem:[%s16942_s4 + $0x3b0] sm:$0xff]  ;;  %v6654_v54 = vld [vmem:[%s16942_s4 + $0x3c8] sm:$0xff] }
 0x956   : > { %10525 = vmatpush1.bf16.msra.mxu0 %v10524_v17  ;;  %v6613_v17 = vld [vmem:[%s16942_s4 + $0x280] sm:$0xff] }
 0x957   : > { %10527 = vmatprep.subr.bf16.mxu0 %v10526_v38  ;;  %v6615_v38 = vld [vmem:[%s16942_s4 + $0x290] sm:$0xff] }
 0x958   : > { %v10564_v16 = vpack.c.bf16 %v6615_v38, %v6613_v17  ;;  %v6653_v17 = vld [vmem:[%s16942_s4 + $0x3c0] sm:$0xff]  ;;  %v6655_v38 = vld [vmem:[%s16942_s4 + $0x3d0] sm:$0xff] }
 0x95a   : > { %10529 = vmatpush1.bf16.msra.mxu0 %v10528_v28  ;;  %v6617_v28 = vld [vmem:[%s16942_s4 + $0x2a0] sm:$0xff] }
 0x95b   : > { %10531 = vmatprep.subr.bf16.mxu0 %v10530_v1  ;;  %v6619_v1 = vld [vmem:[%s16942_s4 + $0x2b0] sm:$0xff] }
 0x95c   : > { %v10568_v29 = vpack.c.bf16 %v6619_v1, %v6617_v28  ;;  %v6657_v28 = vld [vmem:[%s16942_s4 + $0x3e0] sm:$0xff]  ;;  %v6659_v1 = vld [vmem:[%s16942_s4 + $0x3f0] sm:$0xff] }
 0x95e   : > { %10533 = vmatpush1.bf16.msra.mxu0 %v10532_v32  ;;  %v6621_v32 = vld [vmem:[%s16942_s4 + $0x2c0] sm:$0xff] }
 0x95f   : > { %10535 = vmatprep.subr.bf16.mxu0 %v10534_v36  ;;  %v6623_v36 = vld [vmem:[%s16942_s4 + $0x2d0] sm:$0xff] }
 0x960   : > { %v10572_v40 = vpack.c.bf16 %v6623_v36, %v6621_v32  ;;  %v6661_v32 = vld [vmem:[%s16942_s4 + $0x400] sm:$0xff]  ;;  %v6663_v36 = vld [vmem:[%s16942_s4 + $0x410] sm:$0xff] }
 0x962   : > { %10537 = vmatpush1.bf16.msra.mxu0 %v10536_v56  ;;  %v6625_v56 = vld [vmem:[%s16942_s4 + $0x2e0] sm:$0xff] }
 0x963   : > { %10539 = vmatprep.subr.bf16.mxu0 %v10538_v58  ;;  %v6627_v58 = vld [vmem:[%s16942_s4 + $0x2f0] sm:$0xff] }
 0x964   : > { %v10576_v18 = vpack.c.bf16 %v6627_v58, %v6625_v56  ;;  %v6665_v56 = vld [vmem:[%s16942_s4 + $0x420] sm:$0xff]  ;;  %v6667_v58 = vld [vmem:[%s16942_s4 + $0x430] sm:$0xff] }
 0x966   : > { %10541 = vmatpush1.bf16.msra.mxu0 %v10540_v30  ;;  %v6629_v30 = vld [vmem:[%s16942_s4 + $0x300] sm:$0xff] }
 0x967   : > { %10543 = vmatprep.subr.bf16.mxu0 %v10542_v31  ;;  %v6631_v31 = vld [vmem:[%s16942_s4 + $0x310] sm:$0xff] }
 0x96a   : > { %10545 = vmatpush1.bf16.msra.mxu0 %v10544_v24  ;;  %v10580_v24 = vpack.c.bf16 %v6631_v31, %v6629_v30  ;;  %v10618_v30 = vpack.c.bf16 %v6672_v44, %v6670_v5  ;;  %v6669_v31 = vld [vmem:[%s16942_s4 + $0x440] sm:$0xff]  ;;  %v6707_v5 = vld [vmem:[%s16942_s4 + $0x570] sm:$0xff]  ;;  %v6710_v44 = vld [vmem:[%s16942_s4 + $0x588] sm:$0xff] }
 0x96b   : > { %10547 = vmatprep.subr.bf16.mxu0 %v10546_v49  ;;  %v6635_v49 = vld [vmem:[%s16942_s4 + $0x330] sm:$0xff] }
 0x96c   : > { %v10584_v51 = vpack.c.bf16 %v6635_v49, %v6633_v48  ;;  %v6673_v49 = vld [vmem:[%s16942_s4 + $0x460] sm:$0xff] }
 0x9f8   : > { %v15578_v59 = vpop.f32.mrb[148].mxu1  ;;  %v15580_v11 = vpop.f32.mrb[150].mxu0 }
 0x9f9   : > { %7121 = vmatprep.mubr.f32.mxu0 %v15578_v59  ;;  %v9842_v46 = vpop.f32.mrb[149].mxu1  ;;  %v9833_v53 = vpop.f32.mrb[151].mxu0 }
 0x9fa   : > { %7122 = vmatmul.mubr.f32.vlgmr.msra.gmra.mrb[154].mxu0 %v15580_v11  ;;  %v6641_v46 = vld [vmem:[%s16942_s4 + $0x360] sm:$0xff]  ;;  %v6643_v53 = vld [vmem:[%s16942_s4 + $0x370] sm:$0xff] }
 0x9fb   : > { %10549 = vmatpush1.bf16.msra.mxu0 %v10548_v27  ;;  %v6637_v27 = vld [vmem:[%s16942_s4 + $0x340] sm:$0xff]  ;;  %v10592_v41 = vpack.c.bf16 %v6643_v53, %v6641_v46 }
 0x9fc   : > { %10551 = vmatprep.subr.bf16.mxu0 %v10550_v57  ;;  %v6639_v57 = vld [vmem:[%s16942_s4 + $0x350] sm:$0xff]  ;;  %v6681_v53 = vld [vmem:[%s16942_s4 + $0x4a0] sm:$0xff] }
 0x9fd   : > { %v10588_v34 = vpack.c.bf16 %v6639_v57, %v6637_v27  ;;  %v6677_v57 = vld [vmem:[%s16942_s4 + $0x480] sm:$0xff] }
 0x9ff   : > { %10553 = vmatpush1.bf16.msra.mxu0 %v10552_v3  ;;  %v15608_v19 = vpop.f32.mrb[150].mxu1  ;;  %v15610_v14 = vpop.f32.mrb[152].mxu0  ;;  %v6646_v3 = vld [vmem:[%s16942_s4 + $0x388] sm:$0xff] }
 0xa00   : > { %10555 = vmatprep.subr.bf16.mxu0 %v10554_v21  ;;  %7192 = vmatprep.mubr.f32.mxu0 %v15608_v19  ;;  %v9860_v2 = vpop.f32.mrb[151].mxu1  ;;  %v9851_v45 = vpop.f32.mrb[153].mxu0  ;;  %v6648_v21 = vld [vmem:[%s16942_s4 + $0x398] sm:$0xff] }
 0xa01   : > { %v10594_v15 = vpack.c.bf16 %v6648_v21, %v6646_v3  ;;  %v6649_v2 = vld [vmem:[%s16942_s4 + $0x3a0] sm:$0xff]  ;;  %v6656_v45 = vld [vmem:[%s16942_s4 + $0x3d8] sm:$0xff]  ;;  %v6683_v3 = vld [vmem:[%s16942_s4 + $0x4b0] sm:$0xff] }
 0xa02   : > { %v6686_v21 = vld [vmem:[%s16942_s4 + $0x4c8] sm:$0xff] }
 0xa03   : > { %10557 = vmatpush1.bf16.msra.mxu0 %v10556_v63  ;;  %v6650_v63 = vld [vmem:[%s16942_s4 + $0x3a8] sm:$0xff] }
 0xa04   : > { %10559 = vmatprep.subr.bf16.mxu0 %v10558_v33  ;;  %v6652_v33 = vld [vmem:[%s16942_s4 + $0x3b8] sm:$0xff] }
 0xa05   : > { %v10598_v60 = vpack.c.bf16 %v6652_v33, %v6650_v63  ;;  %v6687_v63 = vld [vmem:[%s16942_s4 + $0x4d0] sm:$0xff]  ;;  %v6690_v33 = vld [vmem:[%s16942_s4 + $0x4e8] sm:$0xff] }
 0xa07   : > { %10561 = vmatpush1.bf16.msra.mxu0 %v10560_v37  ;;  %v10600_v37 = vpack.c.bf16 %v6651_v9, %v6649_v2  ;;  %v6689_v9 = vld [vmem:[%s16942_s4 + $0x4e0] sm:$0xff] }
 0xa08   : > { %10563 = vmatprep.subr.bf16.mxu0 %v10562_v7  ;;  %v10602_v7 = vpack.c.bf16 %v6656_v45, %v6654_v54  ;;  %v6691_v54 = vld [vmem:[%s16942_s4 + $0x4f0] sm:$0xff]  ;;  %v6694_v45 = vld [vmem:[%s16942_s4 + $0x508] sm:$0xff] }
 0xa0b   : > { %10565 = vmatpush1.bf16.msra.mxu0 %v10564_v16  ;;  %v10604_v16 = vpack.c.bf16 %v6655_v38, %v6653_v17  ;;  %v6693_v38 = vld [vmem:[%s16942_s4 + $0x500] sm:$0xff] }
 0xa0c   : > { %10567 = vmatprep.subr.bf16.mxu0 %v10566_v6  ;;  %v10606_v6 = vpack.c.bf16 %v6660_v61, %v6658_v0  ;;  %v6695_v0 = vld [vmem:[%s16942_s4 + $0x510] sm:$0xff]  ;;  %v6698_v61 = vld [vmem:[%s16942_s4 + $0x528] sm:$0xff] }
 0xa0f   : > { %10569 = vmatpush1.bf16.msra.mxu0 %v10568_v29  ;;  %v10608_v29 = vpack.c.bf16 %v6659_v1, %v6657_v28  ;;  %v6697_v1 = vld [vmem:[%s16942_s4 + $0x520] sm:$0xff] }
 0xa10   : > { %10571 = vmatprep.subr.bf16.mxu0 %v10570_v22  ;;  %v10610_v22 = vpack.c.bf16 %v6664_v8, %v6662_v25  ;;  %v6699_v25 = vld [vmem:[%s16942_s4 + $0x530] sm:$0xff]  ;;  %v6702_v8 = vld [vmem:[%s16942_s4 + $0x548] sm:$0xff] }
 0xa13   : > { %10573 = vmatpush1.bf16.msra.mxu0 %v10572_v40  ;;  %v10612_v40 = vpack.c.bf16 %v6663_v36, %v6661_v32  ;;  %v6701_v36 = vld [vmem:[%s16942_s4 + $0x540] sm:$0xff] }
 0xa14   : > { %10575 = vmatprep.subr.bf16.mxu0 %v10574_v35  ;;  %v10614_v35 = vpack.c.bf16 %v6668_v47, %v6666_v26  ;;  %v6703_v26 = vld [vmem:[%s16942_s4 + $0x550] sm:$0xff]  ;;  %v6706_v47 = vld [vmem:[%s16942_s4 + $0x568] sm:$0xff] }
 0xa17   : > { %10577 = vmatpush1.bf16.msra.mxu0 %v10576_v18  ;;  %v6510_v18 = vrot.slane %v15578_v59, 1 }
 0xa18   : > { %10579 = vmatprep.subr.bf16.mxu0 %v10578_v10  ;;  %v10616_v10 = vpack.c.bf16 %v6667_v58, %v6665_v56  ;;  %v6705_v58 = vld [vmem:[%s16942_s4 + $0x560] sm:$0xff] }
 0xa1b   : > { %10581 = vmatpush1.bf16.msra.mxu0 %v10580_v24  ;;  %v6676_v24 = vld [vmem:[%s16942_s4 + $0x478] sm:$0xff] }
 0xa1c   : > { %10583 = vmatprep.subr.bf16.mxu0 %v10582_v55  ;;  %v10620_v55 = vpack.c.bf16 %v6671_v43, %v6669_v31  ;;  %v10622_v48 = vpack.c.bf16 %v6676_v24, %v6674_v42  ;;  %v6709_v31 = vld [vmem:[%s16942_s4 + $0x580] sm:$0xff]  ;;  %v6711_v43 = vld [vmem:[%s16942_s4 + $0x590] sm:$0xff]  ;;  %v6714_v42 = vld [vmem:[%s16942_s4 + $0x5a8] sm:$0xff] }
 0xa1d   : > { %v6716_v24 = vld [vmem:[%s16942_s4 + $0x5b8] sm:$0xff] }
 0xa1f   : > { %10585 = vmatpush1.bf16.msra.mxu0 %v10584_v51  ;;  %v6680_v51 = vld [vmem:[%s16942_s4 + $0x498] sm:$0xff] }
 0xa20   : > { %10587 = vmatprep.subr.bf16.mxu0 %v10586_v12  ;;  %v10624_v12 = vpack.c.bf16 %v6675_v4, %v6673_v49  ;;  %v10626_v27 = vpack.c.bf16 %v6680_v51, %v6678_v23  ;;  %v6713_v49 = vld [vmem:[%s16942_s4 + $0x5a0] sm:$0xff]  ;;  %v6715_v4 = vld [vmem:[%s16942_s4 + $0x5b0] sm:$0xff]  ;;  %v6718_v23 = vld [vmem:[%s16942_s4 + $0x5c8] sm:$0xff] }
 0xa21   : > { %v6720_v51 = vld [vmem:[%s16942_s4 + $0x5d8] sm:$0xff] }
 0xa23   : > { %10589 = vmatpush1.bf16.msra.mxu0 %v10588_v34  ;;  %v6684_v34 = vld [vmem:[%s16942_s4 + $0x4b8] sm:$0xff] }
 0xa24   : > { %10591 = vmatprep.subr.bf16.mxu0 %v10590_v20  ;;  %v10628_v20 = vpack.c.bf16 %v6679_v39, %v6677_v57  ;;  %v10630_v46 = vpack.c.bf16 %v6684_v34, %v6682_v13  ;;  %v6717_v57 = vld [vmem:[%s16942_s4 + $0x5c0] sm:$0xff]  ;;  %v6719_v39 = vld [vmem:[%s16942_s4 + $0x5d0] sm:$0xff]  ;;  %v6722_v13 = vld [vmem:[%s16942_s4 + $0x5e8] sm:$0xff] }
 0xa25   : > { %v6724_v34 = vld [vmem:[%s16942_s4 + $0x5f8] sm:$0xff] }
 0xa27   : > { %10593 = vmatpush1.bf16.msra.mxu0 %v10592_v41  ;;  %v6688_v41 = vld [vmem:[%s16942_s4 + $0x4d8] sm:$0xff] }
 0xa28   : > { %10595 = vmatprep.subr.bf16.mxu0 %v10594_v15  ;;  %v10632_v15 = vpack.c.bf16 %v6683_v3, %v6681_v53  ;;  %v10634_v52 = vpack.c.bf16 %v6688_v41, %v6686_v21  ;;  %v6721_v53 = vld [vmem:[%s16942_s4 + $0x5e0] sm:$0xff]  ;;  %v6723_v3 = vld [vmem:[%s16942_s4 + $0x5f0] sm:$0xff]  ;;  %v6726_v21 = vld [vmem:[%s16942_s4 + $0x608] sm:$0xff] }
 0xa29   : > { %v6728_v41 = vld [vmem:[%s16942_s4 + $0x618] sm:$0xff] }
 0xa2b   : > { %10597 = vmatpush1.bf16.msra.mxu0 %v10596_v62  ;;  %v6692_v62 = vld [vmem:[%s16942_s4 + $0x4f8] sm:$0xff] }
 0xa2c   : > { %10599 = vmatprep.subr.bf16.mxu0 %v10598_v60  ;;  %v10636_v60 = vpack.c.bf16 %v6687_v63, %v6685_v50  ;;  %v10638_v2 = vpack.c.bf16 %v6692_v62, %v6690_v33  ;;  %v6725_v50 = vld [vmem:[%s16942_s4 + $0x600] sm:$0xff]  ;;  %v6727_v63 = vld [vmem:[%s16942_s4 + $0x610] sm:$0xff]  ;;  %v6730_v33 = vld [vmem:[%s16942_s4 + $0x628] sm:$0xff] }
 0xa2d   : > { %v6732_v62 = vld [vmem:[%s16942_s4 + $0x638] sm:$0xff] }
 0xa2f   : > { %10601 = vmatpush1.bf16.msra.mxu0 %v10600_v37  ;;  %v6696_v37 = vld [vmem:[%s16942_s4 + $0x518] sm:$0xff] }
 0xa30   : > { %10603 = vmatprep.subr.bf16.mxu0 %v10602_v7  ;;  %v10640_v7 = vpack.c.bf16 %v6691_v54, %v6689_v9  ;;  %v10642_v17 = vpack.c.bf16 %v6696_v37, %v6694_v45  ;;  %v10678_v9 = vpack.c.bf16 %v6732_v62, %v6730_v33  ;;  %v6729_v54 = vld [vmem:[%s16942_s4 + $0x620] sm:$0xff]  ;;  %v6731_v45 = vld [vmem:[%s16942_s4 + $0x630] sm:$0xff]  ;;  %v6734_v37 = vld [vmem:[%s16942_s4 + $0x648] sm:$0xff] }
 0xa31   : > { %v6765_v33 = vld [vmem:[%s16942_s4 + $0x740] sm:$0xff]  ;;  %v6767_v62 = vld [vmem:[%s16942_s4 + $0x750] sm:$0xff] }
 0xa33   : > { %10605 = vmatpush1.bf16.msra.mxu0 %v10604_v16  ;;  %v6700_v16 = vld [vmem:[%s16942_s4 + $0x538] sm:$0xff] }
 0xa34   : > { %10607 = vmatprep.subr.bf16.mxu0 %v10606_v6  ;;  %v10644_v6 = vpack.c.bf16 %v6695_v0, %v6693_v38  ;;  %v10646_v28 = vpack.c.bf16 %v6700_v16, %v6698_v61  ;;  %v10680_v38 = vpack.c.bf16 %v6731_v45, %v6729_v54  ;;  %v6733_v61 = vld [vmem:[%s16942_s4 + $0x640] sm:$0xff]  ;;  %v6735_v16 = vld [vmem:[%s16942_s4 + $0x650] sm:$0xff] }
 0xa35   : > { %v6769_v45 = vld [vmem:[%s16942_s4 + $0x760] sm:$0xff] }
 0xa37   : > { %10609 = vmatpush1.bf16.msra.mxu0 %v10608_v29  ;;  %v6704_v29 = vld [vmem:[%s16942_s4 + $0x558] sm:$0xff] }
 0xa38   : > { %10611 = vmatprep.subr.bf16.mxu0 %v10610_v22  ;;  %v10648_v22 = vpack.c.bf16 %v6699_v25, %v6697_v1  ;;  %v10650_v32 = vpack.c.bf16 %v6704_v29, %v6702_v8  ;;  %v10684_v1 = vpack.c.bf16 %v6735_v16, %v6733_v61  ;;  %v6737_v8 = vld [vmem:[%s16942_s4 + $0x660] sm:$0xff]  ;;  %v6739_v29 = vld [vmem:[%s16942_s4 + $0x670] sm:$0xff] }
 0xa39   : > { %v6773_v61 = vld [vmem:[%s16942_s4 + $0x780] sm:$0xff]  ;;  %v6775_v16 = vld [vmem:[%s16942_s4 + $0x790] sm:$0xff] }
 0xa3a   : > { %7193 = vmatmul.mubr.f32.vlgmr.msra.gmra.mrb[154].mxu0 %v15610_v14 }
 0xa3b   : > { %10613 = vmatpush1.bf16.msra.mxu0 %v10612_v40  ;;  %7263 = vmatprep.mubr.f32.mxu0 %v6510_v18  ;;  %v6708_v40 = vld [vmem:[%s16942_s4 + $0x578] sm:$0xff] }
 0xa3c   : > { %10615 = vmatprep.subr.bf16.mxu0 %v10614_v35  ;;  %v10652_v35 = vpack.c.bf16 %v6703_v26, %v6701_v36  ;;  %v10654_v56 = vpack.c.bf16 %v6708_v40, %v6706_v47  ;;  %v6712_v18 = vld [vmem:[%s16942_s4 + $0x598] sm:$0xff]  ;;  %v10688_v36 = vpack.c.bf16 %v6739_v29, %v6737_v8  ;;  %v6741_v47 = vld [vmem:[%s16942_s4 + $0x680] sm:$0xff]  ;;  %v6743_v40 = vld [vmem:[%s16942_s4 + $0x690] sm:$0xff] }
 0xa3d   : > { %v6777_v8 = vld [vmem:[%s16942_s4 + $0x7a0] sm:$0xff]  ;;  %v6779_v29 = vld [vmem:[%s16942_s4 + $0x7b0] sm:$0xff] }
 0xa3f   : > { %10617 = vmatpush1.bf16.msra.mxu0 %v10616_v10  ;;  %v10656_v10 = vpack.c.bf16 %v6707_v5, %v6705_v58  ;;  %v10692_v58 = vpack.c.bf16 %v6743_v40, %v6741_v47  ;;  %v6781_v47 = vld [vmem:[%s16942_s4 + $0x7c0] sm:$0xff]  ;;  %v6783_v40 = vld [vmem:[%s16942_s4 + $0x7d0] sm:$0xff] }
 0xa40   : > { %10619 = vmatprep.subr.bf16.mxu0 %v10618_v30  ;;  %v10658_v30 = vpack.c.bf16 %v6712_v18, %v6710_v44  ;;  %v6745_v44 = vld [vmem:[%s16942_s4 + $0x6a0] sm:$0xff]  ;;  %v6747_v18 = vld [vmem:[%s16942_s4 + $0x6b0] sm:$0xff] }
 0xa43   : > { %10621 = vmatpush1.bf16.msra.mxu0 %v10620_v55  ;;  %v10660_v55 = vpack.c.bf16 %v6711_v43, %v6709_v31  ;;  %v10696_v31 = vpack.c.bf16 %v6747_v18, %v6745_v44  ;;  %v6785_v44 = vld [vmem:[%s16942_s4 + $0x7e0] sm:$0xff]  ;;  %v6787_v18 = vld [vmem:[%s16942_s4 + $0x7f0] sm:$0xff] }
 0xa44   : > { %10623 = vmatprep.subr.bf16.mxu0 %v10622_v48  ;;  %v10662_v48 = vpack.c.bf16 %v6716_v24, %v6714_v42  ;;  %v6749_v42 = vld [vmem:[%s16942_s4 + $0x6c0] sm:$0xff]  ;;  %v6751_v24 = vld [vmem:[%s16942_s4 + $0x6d0] sm:$0xff] }
 0xa47   : > { %10625 = vmatpush1.bf16.msra.mxu0 %v10624_v12  ;;  %v10664_v12 = vpack.c.bf16 %v6715_v4, %v6713_v49  ;;  %v10700_v49 = vpack.c.bf16 %v6751_v24, %v6749_v42  ;;  %v6789_v42 = vld [vmem:[%s16942_s4 + $0x800] sm:$0xff]  ;;  %v6791_v24 = vld [vmem:[%s16942_s4 + $0x810] sm:$0xff] }
 0xa48   : > { %10627 = vmatprep.subr.bf16.mxu0 %v10626_v27  ;;  %v10666_v27 = vpack.c.bf16 %v6720_v51, %v6718_v23  ;;  %v6753_v23 = vld [vmem:[%s16942_s4 + $0x6e0] sm:$0xff]  ;;  %v6755_v51 = vld [vmem:[%s16942_s4 + $0x6f0] sm:$0xff] }
 0xa4b   : > { %10629 = vmatpush1.bf16.msra.mxu0 %v10628_v20  ;;  %v10668_v20 = vpack.c.bf16 %v6719_v39, %v6717_v57  ;;  %v10704_v57 = vpack.c.bf16 %v6755_v51, %v6753_v23  ;;  %v6793_v51 = vld [vmem:[%s16942_s4 + $0x820] sm:$0xff] }
 0xa4c   : > { %10631 = vmatprep.subr.bf16.mxu0 %v10630_v46  ;;  %v10670_v46 = vpack.c.bf16 %v6724_v34, %v6722_v13  ;;  %v6757_v13 = vld [vmem:[%s16942_s4 + $0x700] sm:$0xff]  ;;  %v6759_v34 = vld [vmem:[%s16942_s4 + $0x710] sm:$0xff] }
 0xa4f   : > { %10633 = vmatpush1.bf16.msra.mxu0 %v10632_v15  ;;  %v10672_v15 = vpack.c.bf16 %v6723_v3, %v6721_v53  ;;  %v10708_v53 = vpack.c.bf16 %v6759_v34, %v6757_v13 }
 0xa50   : > { %10635 = vmatprep.subr.bf16.mxu0 %v10634_v52  ;;  %v10674_v52 = vpack.c.bf16 %v6728_v41, %v6726_v21  ;;  %v6761_v21 = vld [vmem:[%s16942_s4 + $0x720] sm:$0xff]  ;;  %v6763_v41 = vld [vmem:[%s16942_s4 + $0x730] sm:$0xff] }
 0xa53   : > { %10637 = vmatpush1.bf16.msra.mxu0 %v10636_v60  ;;  %v10676_v60 = vpack.c.bf16 %v6727_v63, %v6725_v50  ;;  %v10712_v50 = vpack.c.bf16 %v6763_v41, %v6761_v21 }
 0xa54   : > { %10639 = vmatprep.subr.bf16.mxu0 %v10638_v2  ;;  %v6509_v2 = vrot.slane %v15580_v11, 1 }
 0xa57   : > { %10641 = vmatpush1.bf16.msra.mxu0 %v10640_v7  ;;  %v6736_v7 = vld [vmem:[%s16942_s4 + $0x658] sm:$0xff] }
 0xa58   : > { %10643 = vmatprep.subr.bf16.mxu0 %v10642_v17  ;;  %v6512_v17 = vrot.slane %v15608_v19, 1  ;;  %v10682_v0 = vpack.c.bf16 %v6736_v7, %v6734_v37  ;;  %v6771_v37 = vld [vmem:[%s16942_s4 + $0x770] sm:$0xff]  ;;  %v6774_v7 = vld [vmem:[%s16942_s4 + $0x788] sm:$0xff] }
 0xa5b   : > { %10645 = vmatpush1.bf16.msra.mxu0 %v10644_v6  ;;  %v6738_v6 = vld [vmem:[%s16942_s4 + $0x668] sm:$0xff] }
 0xa5c   : > { %10647 = vmatprep.subr.bf16.mxu0 %v10646_v28  ;;  %v6740_v28 = vld [vmem:[%s16942_s4 + $0x678] sm:$0xff] }
 0xa5d   : > { %v10686_v25 = vpack.c.bf16 %v6740_v28, %v6738_v6  ;;  %v6778_v6 = vld [vmem:[%s16942_s4 + $0x7a8] sm:$0xff]  ;;  %v6780_v28 = vld [vmem:[%s16942_s4 + $0x7b8] sm:$0xff] }
 0xa5f   : > { %10649 = vmatpush1.bf16.msra.mxu0 %v10648_v22  ;;  %v6742_v22 = vld [vmem:[%s16942_s4 + $0x688] sm:$0xff] }
 0xa60   : > { %10651 = vmatprep.subr.bf16.mxu0 %v10650_v32  ;;  %v6744_v32 = vld [vmem:[%s16942_s4 + $0x698] sm:$0xff] }
 0xa61   : > { %v10690_v26 = vpack.c.bf16 %v6744_v32, %v6742_v22  ;;  %v6782_v22 = vld [vmem:[%s16942_s4 + $0x7c8] sm:$0xff]  ;;  %v6784_v32 = vld [vmem:[%s16942_s4 + $0x7d8] sm:$0xff] }
 0xa63   : > { %10653 = vmatpush1.bf16.msra.mxu0 %v10652_v35  ;;  %v6746_v35 = vld [vmem:[%s16942_s4 + $0x6a8] sm:$0xff] }
 0xa64   : > { %10655 = vmatprep.subr.bf16.mxu0 %v10654_v56  ;;  %v6748_v56 = vld [vmem:[%s16942_s4 + $0x6b8] sm:$0xff] }
 0xa65   : > { %v10694_v5 = vpack.c.bf16 %v6748_v56, %v6746_v35  ;;  %v6786_v35 = vld [vmem:[%s16942_s4 + $0x7e8] sm:$0xff]  ;;  %v6788_v56 = vld [vmem:[%s16942_s4 + $0x7f8] sm:$0xff] }
 0xa67   : > { %10657 = vmatpush1.bf16.msra.mxu0 %v10656_v10  ;;  %v6750_v10 = vld [vmem:[%s16942_s4 + $0x6c8] sm:$0xff] }
 0xa68   : > { %10659 = vmatprep.subr.bf16.mxu0 %v10658_v30  ;;  %v6752_v30 = vld [vmem:[%s16942_s4 + $0x6d8] sm:$0xff] }
 0xa69   : > { %v10698_v43 = vpack.c.bf16 %v6752_v30, %v6750_v10  ;;  %v6790_v10 = vld [vmem:[%s16942_s4 + $0x808] sm:$0xff]  ;;  %v6792_v30 = vld [vmem:[%s16942_s4 + $0x818] sm:$0xff] }
 0xa6b   : > { %10661 = vmatpush1.bf16.msra.mxu0 %v10660_v55  ;;  %v6754_v55 = vld [vmem:[%s16942_s4 + $0x6e8] sm:$0xff] }
 0xa6c   : > { %10663 = vmatprep.subr.bf16.mxu0 %v10662_v48  ;;  %v6756_v48 = vld [vmem:[%s16942_s4 + $0x6f8] sm:$0xff] }
 0xa6d   : > { %v10702_v4 = vpack.c.bf16 %v6756_v48, %v6754_v55  ;;  %v6794_v55 = vld [vmem:[%s16942_s4 + $0x828] sm:$0xff]  ;;  %v6796_v48 = vld [vmem:[%s16942_s4 + $0x838] sm:$0xff] }
 0xa6e   : > { %v10742_v23 = vpack.c.bf16 %v6796_v48, %v6794_v55  ;;  %v6829_v55 = vld [vmem:[%s16942_s4 + $0x940] sm:$0xff]  ;;  %v6831_v48 = vld [vmem:[%s16942_s4 + $0x950] sm:$0xff] }
 0xa6f   : > { %10665 = vmatpush1.bf16.msra.mxu0 %v10664_v12  ;;  %v6758_v12 = vld [vmem:[%s16942_s4 + $0x708] sm:$0xff] }
 0xa70   : > { %10667 = vmatprep.subr.bf16.mxu0 %v10666_v27  ;;  %v6760_v27 = vld [vmem:[%s16942_s4 + $0x718] sm:$0xff] }
 0xa71   : > { %v10706_v39 = vpack.c.bf16 %v6760_v27, %v6758_v12  ;;  %v6795_v12 = vld [vmem:[%s16942_s4 + $0x830] sm:$0xff]  ;;  %v6518_v27 = vrot.slane %v15578_v59, 2 }
 0xa72   : > { %v10744_v13 = vpack.c.bf16 %v6795_v12, %v6793_v51  ;;  %v6833_v12 = vld [vmem:[%s16942_s4 + $0x960] sm:$0xff] }
 0xa73   : > { %10669 = vmatpush1.bf16.msra.mxu0 %v10668_v20  ;;  %v6762_v20 = vld [vmem:[%s16942_s4 + $0x728] sm:$0xff] }
 0xa74   : > { %10671 = vmatprep.subr.bf16.mxu0 %v10670_v46  ;;  %v6764_v46 = vld [vmem:[%s16942_s4 + $0x738] sm:$0xff] }
 0xa75   : > { %v10710_v3 = vpack.c.bf16 %v6764_v46, %v6762_v20  ;;  %v6797_v20 = vld [vmem:[%s16942_s4 + $0x840] sm:$0xff]  ;;  %v6799_v46 = vld [vmem:[%s16942_s4 + $0x850] sm:$0xff] }
 0xa76   : > { %v10748_v21 = vpack.c.bf16 %v6799_v46, %v6797_v20  ;;  %v6837_v20 = vld [vmem:[%s16942_s4 + $0x980] sm:$0xff]  ;;  %v6839_v46 = vld [vmem:[%s16942_s4 + $0x990] sm:$0xff] }
 0xa77   : > { %10673 = vmatpush1.bf16.msra.mxu0 %v10672_v15  ;;  %v6766_v15 = vld [vmem:[%s16942_s4 + $0x748] sm:$0xff] }
 0xa78   : > { %10675 = vmatprep.subr.bf16.mxu0 %v10674_v52  ;;  %v6768_v52 = vld [vmem:[%s16942_s4 + $0x758] sm:$0xff] }
 0xa79   : > { %v10714_v63 = vpack.c.bf16 %v6768_v52, %v6766_v15  ;;  %v6801_v15 = vld [vmem:[%s16942_s4 + $0x860] sm:$0xff]  ;;  %v6803_v52 = vld [vmem:[%s16942_s4 + $0x870] sm:$0xff] }
 0xa7a   : > { %7264 = vmatmul.mubr.f32.vlgmr.msra.gmra.mrb[154].mxu0 %v6509_v2  ;;  %v6772_v2 = vld [vmem:[%s16942_s4 + $0x778] sm:$0xff] }
 0xa7b   : > { %10677 = vmatpush1.bf16.msra.mxu0 %v10676_v60  ;;  %7334 = vmatprep.mubr.f32.mxu0 %v6512_v17  ;;  %v6770_v60 = vld [vmem:[%s16942_s4 + $0x768] sm:$0xff]  ;;  %v6776_v17 = vld [vmem:[%s16942_s4 + $0x798] sm:$0xff] }
 0xa7c   : > { %10679 = vmatprep.subr.bf16.mxu0 %v10678_v9  ;;  %v10716_v9 = vpack.c.bf16 %v6767_v62, %v6765_v33  ;;  %v10718_v54 = vpack.c.bf16 %v6772_v2, %v6770_v60  ;;  %v10752_v33 = vpack.c.bf16 %v6803_v52, %v6801_v15  ;;  %v6805_v60 = vld [vmem:[%s16942_s4 + $0x880] sm:$0xff]  ;;  %v6807_v2 = vld [vmem:[%s16942_s4 + $0x890] sm:$0xff] }
 0xa7d   : > { %v6841_v15 = vld [vmem:[%s16942_s4 + $0x9a0] sm:$0xff]  ;;  %v6843_v52 = vld [vmem:[%s16942_s4 + $0x9b0] sm:$0xff] }
 0xa7f   : > { %10681 = vmatpush1.bf16.msra.mxu0 %v10680_v38  ;;  %v10720_v38 = vpack.c.bf16 %v6771_v37, %v6769_v45  ;;  %v10756_v45 = vpack.c.bf16 %v6807_v2, %v6805_v60  ;;  %v6845_v60 = vld [vmem:[%s16942_s4 + $0x9c0] sm:$0xff]  ;;  %v6847_v2 = vld [vmem:[%s16942_s4 + $0x9d0] sm:$0xff] }
 0xa80   : > { %10683 = vmatprep.subr.bf16.mxu0 %v10682_v0  ;;  %v10722_v0 = vpack.c.bf16 %v6776_v17, %v6774_v7  ;;  %v6809_v7 = vld [vmem:[%s16942_s4 + $0x8a0] sm:$0xff]  ;;  %v6811_v17 = vld [vmem:[%s16942_s4 + $0x8b0] sm:$0xff] }
 0xa83   : > { %10685 = vmatpush1.bf16.msra.mxu0 %v10684_v1  ;;  %v10724_v1 = vpack.c.bf16 %v6775_v16, %v6773_v61  ;;  %v10760_v61 = vpack.c.bf16 %v6811_v17, %v6809_v7  ;;  %v6849_v7 = vld [vmem:[%s16942_s4 + $0x9e0] sm:$0xff]  ;;  %v6851_v17 = vld [vmem:[%s16942_s4 + $0x9f0] sm:$0xff] }
 0xa84   : > { %10687 = vmatprep.subr.bf16.mxu0 %v10686_v25  ;;  %v10726_v25 = vpack.c.bf16 %v6780_v28, %v6778_v6  ;;  %v6813_v6 = vld [vmem:[%s16942_s4 + $0x8c0] sm:$0xff]  ;;  %v6815_v28 = vld [vmem:[%s16942_s4 + $0x8d0] sm:$0xff] }
 0xa87   : > { %10689 = vmatpush1.bf16.msra.mxu0 %v10688_v36  ;;  %v10728_v36 = vpack.c.bf16 %v6779_v29, %v6777_v8  ;;  %v10764_v8 = vpack.c.bf16 %v6815_v28, %v6813_v6  ;;  %v6853_v6 = vld [vmem:[%s16942_s4 + $0xa00] sm:$0xff]  ;;  %v6855_v28 = vld [vmem:[%s16942_s4 + $0xa10] sm:$0xff] }
 0xa88   : > { %10691 = vmatprep.subr.bf16.mxu0 %v10690_v26  ;;  %v10730_v26 = vpack.c.bf16 %v6784_v32, %v6782_v22  ;;  %v6817_v22 = vld [vmem:[%s16942_s4 + $0x8e0] sm:$0xff]  ;;  %v6819_v32 = vld [vmem:[%s16942_s4 + $0x8f0] sm:$0xff] }
 0xa8b   : > { %10693 = vmatpush1.bf16.msra.mxu0 %v10692_v58  ;;  %v10732_v58 = vpack.c.bf16 %v6783_v40, %v6781_v47  ;;  %v10768_v47 = vpack.c.bf16 %v6819_v32, %v6817_v22  ;;  %v6857_v32 = vld [vmem:[%s16942_s4 + $0xa20] sm:$0xff] }
 0xa8c   : > { %10695 = vmatprep.subr.bf16.mxu0 %v10694_v5  ;;  %v10734_v5 = vpack.c.bf16 %v6788_v56, %v6786_v35  ;;  %v6821_v35 = vld [vmem:[%s16942_s4 + $0x900] sm:$0xff]  ;;  %v6823_v56 = vld [vmem:[%s16942_s4 + $0x910] sm:$0xff] }
 0xa8f   : > { %10697 = vmatpush1.bf16.msra.mxu0 %v10696_v31  ;;  %v10736_v31 = vpack.c.bf16 %v6787_v18, %v6785_v44  ;;  %v10772_v44 = vpack.c.bf16 %v6823_v56, %v6821_v35 }
 0xa90   : > { %10699 = vmatprep.subr.bf16.mxu0 %v10698_v43  ;;  %v10738_v43 = vpack.c.bf16 %v6792_v30, %v6790_v10  ;;  %v6825_v10 = vld [vmem:[%s16942_s4 + $0x920] sm:$0xff]  ;;  %v6827_v30 = vld [vmem:[%s16942_s4 + $0x930] sm:$0xff] }
 0xa93   : > { %10701 = vmatpush1.bf16.msra.mxu0 %v10700_v49  ;;  %v10740_v49 = vpack.c.bf16 %v6791_v24, %v6789_v42  ;;  %v10776_v42 = vpack.c.bf16 %v6827_v30, %v6825_v10 }
 0xa94   : > { %10703 = vmatprep.subr.bf16.mxu0 %v10702_v4  ;;  %v6511_v4 = vrot.slane %v15610_v14, 1 }
 0xa97   : > { %10705 = vmatpush1.bf16.msra.mxu0 %v10704_v57  ;;  %v6798_v57 = vld [vmem:[%s16942_s4 + $0x848] sm:$0xff] }
 0xa98   : > { %10707 = vmatprep.subr.bf16.mxu0 %v10706_v39  ;;  %v6800_v39 = vld [vmem:[%s16942_s4 + $0x858] sm:$0xff] }
 0xa99   : > { %v10746_v34 = vpack.c.bf16 %v6800_v39, %v6798_v57  ;;  %v6838_v57 = vld [vmem:[%s16942_s4 + $0x988] sm:$0xff]  ;;  %v6840_v39 = vld [vmem:[%s16942_s4 + $0x998] sm:$0xff] }
 0xa9b   : > { %10709 = vmatpush1.bf16.msra.mxu0 %v10708_v53  ;;  %v6802_v53 = vld [vmem:[%s16942_s4 + $0x868] sm:$0xff] }
 0xa9c   : > { %10711 = vmatprep.subr.bf16.mxu0 %v10710_v3  ;;  %v6804_v3 = vld [vmem:[%s16942_s4 + $0x878] sm:$0xff] }
 0xa9d   : > { %v10750_v41 = vpack.c.bf16 %v6804_v3, %v6802_v53  ;;  %v6842_v53 = vld [vmem:[%s16942_s4 + $0x9a8] sm:$0xff]  ;;  %v6844_v3 = vld [vmem:[%s16942_s4 + $0x9b8] sm:$0xff] }
 0xa9f   : > { %10713 = vmatpush1.bf16.msra.mxu0 %v10712_v50  ;;  %v6806_v50 = vld [vmem:[%s16942_s4 + $0x888] sm:$0xff] }
 0xaa0   : > { %10715 = vmatprep.subr.bf16.mxu0 %v10714_v63  ;;  %v6808_v63 = vld [vmem:[%s16942_s4 + $0x898] sm:$0xff] }
 0xaa1   : > { %v10754_v62 = vpack.c.bf16 %v6808_v63, %v6806_v50  ;;  %v6846_v50 = vld [vmem:[%s16942_s4 + $0x9c8] sm:$0xff]  ;;  %v6848_v63 = vld [vmem:[%s16942_s4 + $0x9d8] sm:$0xff] }
 0xaa3   : > { %10717 = vmatpush1.bf16.msra.mxu0 %v10716_v9  ;;  %v6810_v9 = vld [vmem:[%s16942_s4 + $0x8a8] sm:$0xff] }
 0xaa4   : > { %10719 = vmatprep.subr.bf16.mxu0 %v10718_v54  ;;  %v6812_v54 = vld [vmem:[%s16942_s4 + $0x8b8] sm:$0xff] }
 0xaa5   : > { %v10758_v37 = vpack.c.bf16 %v6812_v54, %v6810_v9  ;;  %v6850_v9 = vld [vmem:[%s16942_s4 + $0x9e8] sm:$0xff]  ;;  %v6852_v54 = vld [vmem:[%s16942_s4 + $0x9f8] sm:$0xff] }
 0xaa7   : > { %10721 = vmatpush1.bf16.msra.mxu0 %v10720_v38  ;;  %v6814_v38 = vld [vmem:[%s16942_s4 + $0x8c8] sm:$0xff] }
 0xaa8   : > { %10723 = vmatprep.subr.bf16.mxu0 %v10722_v0  ;;  %v6816_v0 = vld [vmem:[%s16942_s4 + $0x8d8] sm:$0xff] }
 0xaa9   : > { %v10762_v16 = vpack.c.bf16 %v6816_v0, %v6814_v38  ;;  %v6854_v38 = vld [vmem:[%s16942_s4 + $0xa08] sm:$0xff]  ;;  %v6856_v0 = vld [vmem:[%s16942_s4 + $0xa18] sm:$0xff] }
 0xaab   : > { %10725 = vmatpush1.bf16.msra.mxu0 %v10724_v1  ;;  %v6818_v1 = vld [vmem:[%s16942_s4 + $0x8e8] sm:$0xff] }
 0xaac   : > { %10727 = vmatprep.subr.bf16.mxu0 %v10726_v25  ;;  %v6820_v25 = vld [vmem:[%s16942_s4 + $0x8f8] sm:$0xff] }
 0xaad   : > { %v10766_v29 = vpack.c.bf16 %v6820_v25, %v6818_v1  ;;  %v6858_v1 = vld [vmem:[%s16942_s4 + $0xa28] sm:$0xff]  ;;  %v6860_v25 = vld [vmem:[%s16942_s4 + $0xa38] sm:$0xff] }
 0xaae   : > { %v10806_v22 = vpack.c.bf16 %v6860_v25, %v6858_v1  ;;  %v6893_v1 = vld [vmem:[%s16942_s4 + $0xb40] sm:$0xff]  ;;  %v6895_v25 = vld [vmem:[%s16942_s4 + $0xb50] sm:$0xff] }
 0xaaf   : > { %10729 = vmatpush1.bf16.msra.mxu0 %v10728_v36  ;;  %v6822_v36 = vld [vmem:[%s16942_s4 + $0x908] sm:$0xff] }
 0xab0   : > { %10731 = vmatprep.subr.bf16.mxu0 %v10730_v26  ;;  %v6824_v26 = vld [vmem:[%s16942_s4 + $0x918] sm:$0xff] }
 0xab1   : > { %v10770_v40 = vpack.c.bf16 %v6824_v26, %v6822_v36  ;;  %v6859_v36 = vld [vmem:[%s16942_s4 + $0xa30] sm:$0xff]  ;;  %v6520_v26 = vrot.slane %v15608_v19, 2 }
 0xab2   : > { %v10808_v35 = vpack.c.bf16 %v6859_v36, %v6857_v32  ;;  %v6897_v36 = vld [vmem:[%s16942_s4 + $0xb60] sm:$0xff] }
 0xab3   : > { %10733 = vmatpush1.bf16.msra.mxu0 %v10732_v58  ;;  %v6826_v58 = vld [vmem:[%s16942_s4 + $0x928] sm:$0xff] }
 0xab4   : > { %10735 = vmatprep.subr.bf16.mxu0 %v10734_v5  ;;  %v6828_v5 = vld [vmem:[%s16942_s4 + $0x938] sm:$0xff] }
 0xab5   : > { %v10774_v18 = vpack.c.bf16 %v6828_v5, %v6826_v58  ;;  %v6861_v58 = vld [vmem:[%s16942_s4 + $0xa40] sm:$0xff]  ;;  %v6863_v5 = vld [vmem:[%s16942_s4 + $0xa50] sm:$0xff] }
 0xab6   : > { %v10812_v10 = vpack.c.bf16 %v6863_v5, %v6861_v58  ;;  %v6901_v58 = vld [vmem:[%s16942_s4 + $0xb80] sm:$0xff]  ;;  %v6903_v5 = vld [vmem:[%s16942_s4 + $0xb90] sm:$0xff] }
 0xab7   : > { %10737 = vmatpush1.bf16.msra.mxu0 %v10736_v31  ;;  %v6830_v31 = vld [vmem:[%s16942_s4 + $0x948] sm:$0xff] }
 0xab8   : > { %10739 = vmatprep.subr.bf16.mxu0 %v10738_v43  ;;  %v6832_v43 = vld [vmem:[%s16942_s4 + $0x958] sm:$0xff] }
 0xab9   : > { %v10778_v24 = vpack.c.bf16 %v6832_v43, %v6830_v31  ;;  %v6865_v31 = vld [vmem:[%s16942_s4 + $0xa60] sm:$0xff]  ;;  %v6867_v43 = vld [vmem:[%s16942_s4 + $0xa70] sm:$0xff] }
 0xaba   : > { %7335 = vmatmul.mubr.f32.vlgmr.msra.gmra.mrb[154].mxu0 %v6511_v4  ;;  %v6836_v4 = vld [vmem:[%s16942_s4 + $0x978] sm:$0xff] }
 0xabb   : > { %10741 = vmatpush1.bf16.msra.mxu0 %v10740_v49  ;;  %7405 = vmatprep.mubr.f32.mxu0 %v6518_v27  ;;  %v6834_v49 = vld [vmem:[%s16942_s4 + $0x968] sm:$0xff]  ;;  %v6835_v27 = vld [vmem:[%s16942_s4 + $0x970] sm:$0xff] }
 0xabc   : > { %10743 = vmatprep.subr.bf16.mxu0 %v10742_v23  ;;  %v10780_v23 = vpack.c.bf16 %v6831_v48, %v6829_v55  ;;  %v10782_v51 = vpack.c.bf16 %v6836_v4, %v6834_v49  ;;  %v10816_v55 = vpack.c.bf16 %v6867_v43, %v6865_v31  ;;  %v6869_v49 = vld [vmem:[%s16942_s4 + $0xa80] sm:$0xff]  ;;  %v6871_v4 = vld [vmem:[%s16942_s4 + $0xa90] sm:$0xff] }
 0xabd   : > { %v6905_v31 = vld [vmem:[%s16942_s4 + $0xba0] sm:$0xff]  ;;  %v6907_v43 = vld [vmem:[%s16942_s4 + $0xbb0] sm:$0xff] }
 0xabf   : > { %10745 = vmatpush1.bf16.msra.mxu0 %v10744_v13  ;;  %v10784_v13 = vpack.c.bf16 %v6835_v27, %v6833_v12  ;;  %v10820_v12 = vpack.c.bf16 %v6871_v4, %v6869_v49  ;;  %v6909_v49 = vld [vmem:[%s16942_s4 + $0xbc0] sm:$0xff]  ;;  %v6911_v4 = vld [vmem:[%s16942_s4 + $0xbd0] sm:$0xff] }
 0xac0   : > { %10747 = vmatprep.subr.bf16.mxu0 %v10746_v34  ;;  %v10786_v34 = vpack.c.bf16 %v6840_v39, %v6838_v57  ;;  %v6873_v57 = vld [vmem:[%s16942_s4 + $0xaa0] sm:$0xff]  ;;  %v6875_v39 = vld [vmem:[%s16942_s4 + $0xab0] sm:$0xff] }
 0xac3   : > { %10749 = vmatpush1.bf16.msra.mxu0 %v10748_v21  ;;  %v10788_v21 = vpack.c.bf16 %v6839_v46, %v6837_v20  ;;  %v10824_v20 = vpack.c.bf16 %v6875_v39, %v6873_v57  ;;  %v6913_v57 = vld [vmem:[%s16942_s4 + $0xbe0] sm:$0xff]  ;;  %v6915_v39 = vld [vmem:[%s16942_s4 + $0xbf0] sm:$0xff] }
 0xac4   : > { %10751 = vmatprep.subr.bf16.mxu0 %v10750_v41  ;;  %v10790_v41 = vpack.c.bf16 %v6844_v3, %v6842_v53  ;;  %v6877_v53 = vld [vmem:[%s16942_s4 + $0xac0] sm:$0xff]  ;;  %v6879_v3 = vld [vmem:[%s16942_s4 + $0xad0] sm:$0xff] }
 0xac7   : > { %10753 = vmatpush1.bf16.msra.mxu0 %v10752_v33  ;;  %v10792_v33 = vpack.c.bf16 %v6843_v52, %v6841_v15  ;;  %v10828_v15 = vpack.c.bf16 %v6879_v3, %v6877_v53  ;;  %v6917_v53 = vld [vmem:[%s16942_s4 + $0xc00] sm:$0xff]  ;;  %v6919_v3 = vld [vmem:[%s16942_s4 + $0xc10] sm:$0xff] }
 0xac8   : > { %10755 = vmatprep.subr.bf16.mxu0 %v10754_v62  ;;  %v10794_v62 = vpack.c.bf16 %v6848_v63, %v6846_v50  ;;  %v6881_v50 = vld [vmem:[%s16942_s4 + $0xae0] sm:$0xff]  ;;  %v6883_v63 = vld [vmem:[%s16942_s4 + $0xaf0] sm:$0xff] }
 0xacb   : > { %10757 = vmatpush1.bf16.msra.mxu0 %v10756_v45  ;;  %v10796_v45 = vpack.c.bf16 %v6847_v2, %v6845_v60  ;;  %v10832_v60 = vpack.c.bf16 %v6883_v63, %v6881_v50  ;;  %v6921_v63 = vld [vmem:[%s16942_s4 + $0xc20] sm:$0xff] }
 0xacc   : > { %10759 = vmatprep.subr.bf16.mxu0 %v10758_v37  ;;  %v10798_v37 = vpack.c.bf16 %v6852_v54, %v6850_v9  ;;  %v6885_v9 = vld [vmem:[%s16942_s4 + $0xb00] sm:$0xff]  ;;  %v6887_v54 = vld [vmem:[%s16942_s4 + $0xb10] sm:$0xff] }
 0xacf   : > { %10761 = vmatpush1.bf16.msra.mxu0 %v10760_v61  ;;  %v10800_v61 = vpack.c.bf16 %v6851_v17, %v6849_v7  ;;  %v10836_v7 = vpack.c.bf16 %v6887_v54, %v6885_v9 }
 0xad0   : > { %10763 = vmatprep.subr.bf16.mxu0 %v10762_v16  ;;  %v10802_v16 = vpack.c.bf16 %v6856_v0, %v6854_v38  ;;  %v6889_v38 = vld [vmem:[%s16942_s4 + $0xb20] sm:$0xff]  ;;  %v6891_v0 = vld [vmem:[%s16942_s4 + $0xb30] sm:$0xff] }
 0xad3   : > { %10765 = vmatpush1.bf16.msra.mxu0 %v10764_v8  ;;  %v10804_v8 = vpack.c.bf16 %v6855_v28, %v6853_v6  ;;  %v10840_v6 = vpack.c.bf16 %v6891_v0, %v6889_v38  ;;  %v6929_v0 = vld [vmem:[%s16942_s4 + $0xc60] sm:$0xff] }
 0xad4   : > { %10767 = vmatprep.subr.bf16.mxu0 %v10766_v29  ;;  %v6517_v29 = vrot.slane %v15580_v11, 2 }
 0xad7   : > { %10769 = vmatpush1.bf16.msra.mxu0 %v10768_v47  ;;  %v6862_v47 = vld [vmem:[%s16942_s4 + $0xa48] sm:$0xff] }
 0xad8   : > { %10771 = vmatprep.subr.bf16.mxu0 %v10770_v40  ;;  %v6864_v40 = vld [vmem:[%s16942_s4 + $0xa58] sm:$0xff] }
 0xad9   : > { %v10810_v56 = vpack.c.bf16 %v6864_v40, %v6862_v47  ;;  %v6902_v47 = vld [vmem:[%s16942_s4 + $0xb88] sm:$0xff]  ;;  %v6904_v40 = vld [vmem:[%s16942_s4 + $0xb98] sm:$0xff] }
 0xadb   : > { %10773 = vmatpush1.bf16.msra.mxu0 %v10772_v44  ;;  %v6866_v44 = vld [vmem:[%s16942_s4 + $0xa68] sm:$0xff] }
 0xadc   : > { %10775 = vmatprep.subr.bf16.mxu0 %v10774_v18  ;;  %v6868_v18 = vld [vmem:[%s16942_s4 + $0xa78] sm:$0xff] }
 0xadd   : > { %v10814_v30 = vpack.c.bf16 %v6868_v18, %v6866_v44  ;;  %v6906_v44 = vld [vmem:[%s16942_s4 + $0xba8] sm:$0xff]  ;;  %v6908_v18 = vld [vmem:[%s16942_s4 + $0xbb8] sm:$0xff] }
 0xadf   : > { %10777 = vmatpush1.bf16.msra.mxu0 %v10776_v42  ;;  %v6870_v42 = vld [vmem:[%s16942_s4 + $0xa88] sm:$0xff] }
 0xae0   : > { %10779 = vmatprep.subr.bf16.mxu0 %v10778_v24  ;;  %v6872_v24 = vld [vmem:[%s16942_s4 + $0xa98] sm:$0xff] }
 0xae1   : > { %v10818_v48 = vpack.c.bf16 %v6872_v24, %v6870_v42  ;;  %v6910_v42 = vld [vmem:[%s16942_s4 + $0xbc8] sm:$0xff]  ;;  %v6912_v24 = vld [vmem:[%s16942_s4 + $0xbd8] sm:$0xff] }
 0xae3   : > { %10781 = vmatpush1.bf16.msra.mxu0 %v10780_v23  ;;  %v6874_v23 = vld [vmem:[%s16942_s4 + $0xaa8] sm:$0xff] }
 0xae4   : > { %10783 = vmatprep.subr.bf16.mxu0 %v10782_v51  ;;  %v6876_v51 = vld [vmem:[%s16942_s4 + $0xab8] sm:$0xff] }
 0xae5   : > { %v10822_v27 = vpack.c.bf16 %v6876_v51, %v6874_v23  ;;  %v6914_v23 = vld [vmem:[%s16942_s4 + $0xbe8] sm:$0xff]  ;;  %v6916_v51 = vld [vmem:[%s16942_s4 + $0xbf8] sm:$0xff] }
 0xae7   : > { %10785 = vmatpush1.bf16.msra.mxu0 %v10784_v13  ;;  %v6878_v13 = vld [vmem:[%s16942_s4 + $0xac8] sm:$0xff] }
 0xae8   : > { %10787 = vmatprep.subr.bf16.mxu0 %v10786_v34  ;;  %v6880_v34 = vld [vmem:[%s16942_s4 + $0xad8] sm:$0xff] }
 0xae9   : > { %v10826_v46 = vpack.c.bf16 %v6880_v34, %v6878_v13  ;;  %v6918_v13 = vld [vmem:[%s16942_s4 + $0xc08] sm:$0xff]  ;;  %v6920_v34 = vld [vmem:[%s16942_s4 + $0xc18] sm:$0xff] }
 0xaeb   : > { %10789 = vmatpush1.bf16.msra.mxu0 %v10788_v21  ;;  %v6882_v21 = vld [vmem:[%s16942_s4 + $0xae8] sm:$0xff] }
 0xaec   : > { %10791 = vmatprep.subr.bf16.mxu0 %v10790_v41  ;;  %v6884_v41 = vld [vmem:[%s16942_s4 + $0xaf8] sm:$0xff] }
 0xaed   : > { %v10830_v52 = vpack.c.bf16 %v6884_v41, %v6882_v21  ;;  %v6922_v21 = vld [vmem:[%s16942_s4 + $0xc28] sm:$0xff]  ;;  %v6924_v41 = vld [vmem:[%s16942_s4 + $0xc38] sm:$0xff] }
 0xaee   : > { %v10870_v50 = vpack.c.bf16 %v6924_v41, %v6922_v21  ;;  %v6959_v21 = vld [vmem:[%s16942_s4 + $0xd50] sm:$0xff]  ;;  %v6962_v41 = vld [vmem:[%s16942_s4 + $0xd68] sm:$0xff] }
 0xaef   : > { %10793 = vmatpush1.bf16.msra.mxu0 %v10792_v33  ;;  %v6886_v33 = vld [vmem:[%s16942_s4 + $0xb08] sm:$0xff] }
 0xaf0   : > { %10795 = vmatprep.subr.bf16.mxu0 %v10794_v62  ;;  %v6888_v62 = vld [vmem:[%s16942_s4 + $0xb18] sm:$0xff] }
 0xaf1   : > { %v10834_v2 = vpack.c.bf16 %v6888_v62, %v6886_v33  ;;  %v6923_v33 = vld [vmem:[%s16942_s4 + $0xc30] sm:$0xff]  ;;  %v6526_v62 = vrot.slane %v15578_v59, 3 }
 0xaf2   : > { %v10872_v9 = vpack.c.bf16 %v6923_v33, %v6921_v63  ;;  %v6927_v59 = vld [vmem:[%s16942_s4 + $0xc50] sm:$0xff]  ;;  %v6961_v63 = vld [vmem:[%s16942_s4 + $0xd60] sm:$0xff] }
 0xaf3   : > { %10797 = vmatpush1.bf16.msra.mxu0 %v10796_v45  ;;  %v6890_v45 = vld [vmem:[%s16942_s4 + $0xb28] sm:$0xff]  ;;  %v6963_v33 = vld [vmem:[%s16942_s4 + $0xd70] sm:$0xff] }
 0xaf4   : > { %10799 = vmatprep.subr.bf16.mxu0 %v10798_v37  ;;  %v6892_v37 = vld [vmem:[%s16942_s4 + $0xb38] sm:$0xff] }
 0xaf5   : > { %v10838_v17 = vpack.c.bf16 %v6892_v37, %v6890_v45  ;;  %v6925_v45 = vld [vmem:[%s16942_s4 + $0xc40] sm:$0xff]  ;;  %v6930_v37 = vld [vmem:[%s16942_s4 + $0xc68] sm:$0xff] }
 0xaf7   : > { %10801 = vmatpush1.bf16.msra.mxu0 %v10800_v61  ;;  %v6894_v61 = vld [vmem:[%s16942_s4 + $0xb48] sm:$0xff] }
 0xaf8   : > { %10803 = vmatprep.subr.bf16.mxu0 %v10802_v16  ;;  %v6896_v16 = vld [vmem:[%s16942_s4 + $0xb58] sm:$0xff] }
 0xaf9   : > { %v10842_v28 = vpack.c.bf16 %v6896_v16, %v6894_v61  ;;  %v6931_v61 = vld [vmem:[%s16942_s4 + $0xc70] sm:$0xff]  ;;  %v6934_v16 = vld [vmem:[%s16942_s4 + $0xc88] sm:$0xff] }
 0xafa   : > { %7406 = vmatmul.mubr.f32.vlgmr.msra.gmra.mrb[154].mxu0 %v6517_v29  ;;  %v6900_v29 = vld [vmem:[%s16942_s4 + $0xb78] sm:$0xff] }
 0xafb   : > { %10805 = vmatpush1.bf16.msra.mxu0 %v10804_v8  ;;  %7476 = vmatprep.mubr.f32.mxu0 %v6520_v26  ;;  %v6898_v8 = vld [vmem:[%s16942_s4 + $0xb68] sm:$0xff]  ;;  %v6899_v26 = vld [vmem:[%s16942_s4 + $0xb70] sm:$0xff] }
 0xafc   : > { %10807 = vmatprep.subr.bf16.mxu0 %v10806_v22  ;;  %v10844_v22 = vpack.c.bf16 %v6895_v25, %v6893_v1  ;;  %v10846_v32 = vpack.c.bf16 %v6900_v29, %v6898_v8  ;;  %v6933_v25 = vld [vmem:[%s16942_s4 + $0xc80] sm:$0xff]  ;;  %v6935_v8 = vld [vmem:[%s16942_s4 + $0xc90] sm:$0xff]  ;;  %v6938_v29 = vld [vmem:[%s16942_s4 + $0xca8] sm:$0xff] }
 0xaff   : > { %10809 = vmatpush1.bf16.msra.mxu0 %v10808_v35  ;;  %v10848_v35 = vpack.c.bf16 %v6899_v26, %v6897_v36  ;;  %v6937_v26 = vld [vmem:[%s16942_s4 + $0xca0] sm:$0xff] }
 0xb00   : > { %10811 = vmatprep.subr.bf16.mxu0 %v10810_v56  ;;  %v10850_v56 = vpack.c.bf16 %v6904_v40, %v6902_v47  ;;  %v6939_v47 = vld [vmem:[%s16942_s4 + $0xcb0] sm:$0xff]  ;;  %v6942_v40 = vld [vmem:[%s16942_s4 + $0xcc8] sm:$0xff] }
 0xb03   : > { %10813 = vmatpush1.bf16.msra.mxu0 %v10812_v10  ;;  %v10852_v10 = vpack.c.bf16 %v6903_v5, %v6901_v58  ;;  %v6941_v5 = vld [vmem:[%s16942_s4 + $0xcc0] sm:$0xff] }
 0xb04   : > { %10815 = vmatprep.subr.bf16.mxu0 %v10814_v30  ;;  %v10854_v30 = vpack.c.bf16 %v6908_v18, %v6906_v44  ;;  %v6943_v44 = vld [vmem:[%s16942_s4 + $0xcd0] sm:$0xff]  ;;  %v6946_v18 = vld [vmem:[%s16942_s4 + $0xce8] sm:$0xff] }
 0xb07   : > { %10817 = vmatpush1.bf16.msra.mxu0 %v10816_v55  ;;  %v10856_v55 = vpack.c.bf16 %v6907_v43, %v6905_v31  ;;  %v6945_v43 = vld [vmem:[%s16942_s4 + $0xce0] sm:$0xff] }
 0xb08   : > { %10819 = vmatprep.subr.bf16.mxu0 %v10818_v48  ;;  %v10858_v48 = vpack.c.bf16 %v6912_v24, %v6910_v42  ;;  %v6947_v42 = vld [vmem:[%s16942_s4 + $0xcf0] sm:$0xff]  ;;  %v6950_v24 = vld [vmem:[%s16942_s4 + $0xd08] sm:$0xff] }
 0xb0b   : > { %10821 = vmatpush1.bf16.msra.mxu0 %v10820_v12  ;;  %v10860_v12 = vpack.c.bf16 %v6911_v4, %v6909_v49  ;;  %v6949_v4 = vld [vmem:[%s16942_s4 + $0xd00] sm:$0xff] }
 0xb0c   : > { %10823 = vmatprep.subr.bf16.mxu0 %v10822_v27  ;;  %v10862_v27 = vpack.c.bf16 %v6916_v51, %v6914_v23  ;;  %v6951_v23 = vld [vmem:[%s16942_s4 + $0xd10] sm:$0xff]  ;;  %v6954_v51 = vld [vmem:[%s16942_s4 + $0xd28] sm:$0xff] }
 0xb0f   : > { %10825 = vmatpush1.bf16.msra.mxu0 %v10824_v20  ;;  %v10864_v20 = vpack.c.bf16 %v6915_v39, %v6913_v57  ;;  %v6953_v39 = vld [vmem:[%s16942_s4 + $0xd20] sm:$0xff] }
 0xb10   : > { %10827 = vmatprep.subr.bf16.mxu0 %v10826_v46  ;;  %v10866_v46 = vpack.c.bf16 %v6920_v34, %v6918_v13  ;;  %v6955_v13 = vld [vmem:[%s16942_s4 + $0xd30] sm:$0xff]  ;;  %v6958_v34 = vld [vmem:[%s16942_s4 + $0xd48] sm:$0xff] }
 0xb13   : > { %10829 = vmatpush1.bf16.msra.mxu0 %v10828_v15  ;;  %v10868_v15 = vpack.c.bf16 %v6919_v3, %v6917_v53  ;;  %v6957_v3 = vld [vmem:[%s16942_s4 + $0xd40] sm:$0xff] }
 0xb14   : > { %10831 = vmatprep.subr.bf16.mxu0 %v10830_v52  ;;  %v6519_v52 = vrot.slane %v15610_v14, 2 }
 0xb17   : > { %10833 = vmatpush1.bf16.msra.mxu0 %v10832_v60  ;;  %v6926_v60 = vld [vmem:[%s16942_s4 + $0xc48] sm:$0xff] }
 0xb18   : > { %10835 = vmatprep.subr.bf16.mxu0 %v10834_v2  ;;  %v6928_v2 = vld [vmem:[%s16942_s4 + $0xc58] sm:$0xff] }
 0xb19   : > { %v10874_v54 = vpack.c.bf16 %v6928_v2, %v6926_v60  ;;  %v6968_v60 = vld [vmem:[%s16942_s4 + $0xd98] sm:$0xff]  ;;  %v10912_v2 = vpack.c.bf16 %v6963_v33, %v6961_v63  ;;  %v7003_v63 = vld [vmem:[%s16942_s4 + $0xeb0] sm:$0xff]  ;;  %v7006_v33 = vld [vmem:[%s16942_s4 + $0xec8] sm:$0xff] }
 0xb1b   : > { %10837 = vmatpush1.bf16.msra.mxu0 %v10836_v7  ;;  %v6932_v7 = vld [vmem:[%s16942_s4 + $0xc78] sm:$0xff] }
 0xb1c   : > { %10839 = vmatprep.subr.bf16.mxu0 %v10838_v17  ;;  %v10876_v17 = vpack.c.bf16 %v6927_v59, %v6925_v45  ;;  %v10878_v38 = vpack.c.bf16 %v6932_v7, %v6930_v37  ;;  %v6967_v45 = vld [vmem:[%s16942_s4 + $0xd90] sm:$0xff]  ;;  %v6970_v59 = vld [vmem:[%s16942_s4 + $0xda8] sm:$0xff]  ;;  %v6972_v37 = vld [vmem:[%s16942_s4 + $0xdb8] sm:$0xff] }
 0xb1f   : > { %10841 = vmatpush1.bf16.msra.mxu0 %v10840_v6  ;;  %v6936_v6 = vld [vmem:[%s16942_s4 + $0xc98] sm:$0xff] }
 0xb20   : > { %10843 = vmatprep.subr.bf16.mxu0 %v10842_v28  ;;  %v10880_v28 = vpack.c.bf16 %v6931_v61, %v6929_v0  ;;  %v10882_v1 = vpack.c.bf16 %v6936_v6, %v6934_v16  ;;  %v6971_v0 = vld [vmem:[%s16942_s4 + $0xdb0] sm:$0xff]  ;;  %v6974_v61 = vld [vmem:[%s16942_s4 + $0xdc8] sm:$0xff]  ;;  %v6976_v16 = vld [vmem:[%s16942_s4 + $0xdd8] sm:$0xff] }
 0xb23   : > { %10845 = vmatpush1.bf16.msra.mxu0 %v10844_v22  ;;  %v6940_v22 = vld [vmem:[%s16942_s4 + $0xcb8] sm:$0xff] }
 0xb24   : > { %10847 = vmatprep.subr.bf16.mxu0 %v10846_v32  ;;  %v10884_v32 = vpack.c.bf16 %v6935_v8, %v6933_v25  ;;  %v10886_v36 = vpack.c.bf16 %v6940_v22, %v6938_v29  ;;  %v6975_v25 = vld [vmem:[%s16942_s4 + $0xdd0] sm:$0xff]  ;;  %v6978_v8 = vld [vmem:[%s16942_s4 + $0xde8] sm:$0xff]  ;;  %v6980_v29 = vld [vmem:[%s16942_s4 + $0xdf8] sm:$0xff] }
 0xb27   : > { %10849 = vmatpush1.bf16.msra.mxu0 %v10848_v35  ;;  %v6944_v35 = vld [vmem:[%s16942_s4 + $0xcd8] sm:$0xff] }
 0xb28   : > { %10851 = vmatprep.subr.bf16.mxu0 %v10850_v56  ;;  %v10888_v56 = vpack.c.bf16 %v6939_v47, %v6937_v26  ;;  %v10890_v58 = vpack.c.bf16 %v6944_v35, %v6942_v40  ;;  %v6979_v26 = vld [vmem:[%s16942_s4 + $0xdf0] sm:$0xff]  ;;  %v6982_v47 = vld [vmem:[%s16942_s4 + $0xe08] sm:$0xff]  ;;  %v6984_v40 = vld [vmem:[%s16942_s4 + $0xe18] sm:$0xff] }
 0xb2b   : > { %10853 = vmatpush1.bf16.msra.mxu0 %v10852_v10  ;;  %v6948_v10 = vld [vmem:[%s16942_s4 + $0xcf8] sm:$0xff] }
 0xb2c   : > { %10855 = vmatprep.subr.bf16.mxu0 %v10854_v30  ;;  %v10892_v30 = vpack.c.bf16 %v6943_v44, %v6941_v5  ;;  %v10894_v31 = vpack.c.bf16 %v6948_v10, %v6946_v18  ;;  %v6983_v5 = vld [vmem:[%s16942_s4 + $0xe10] sm:$0xff]  ;;  %v6986_v44 = vld [vmem:[%s16942_s4 + $0xe28] sm:$0xff]  ;;  %v6988_v18 = vld [vmem:[%s16942_s4 + $0xe38] sm:$0xff] }
 0xb2f   : > { %10857 = vmatpush1.bf16.msra.mxu0 %v10856_v55  ;;  %v6952_v55 = vld [vmem:[%s16942_s4 + $0xd18] sm:$0xff] }
 0xb30   : > { %10859 = vmatprep.subr.bf16.mxu0 %v10858_v48  ;;  %v10896_v48 = vpack.c.bf16 %v6947_v42, %v6945_v43  ;;  %v10898_v49 = vpack.c.bf16 %v6952_v55, %v6950_v24  ;;  %v6985_v43 = vld [vmem:[%s16942_s4 + $0xe20] sm:$0xff]  ;;  %v6987_v42 = vld [vmem:[%s16942_s4 + $0xe30] sm:$0xff]  ;;  %v6528_v24 = vrot.slane %v15608_v19, 3  ;;  %v6990_v55 = vld [vmem:[%s16942_s4 + $0xe48] sm:$0xff] }
 0xb31   : > { %v6991_v19 = vld [vmem:[%s16942_s4 + $0xe50] sm:$0xff] }
 0xb33   : > { %10861 = vmatpush1.bf16.msra.mxu0 %v10860_v12  ;;  %v6956_v12 = vld [vmem:[%s16942_s4 + $0xd38] sm:$0xff] }
 0xb34   : > { %10863 = vmatprep.subr.bf16.mxu0 %v10862_v27  ;;  %v10900_v27 = vpack.c.bf16 %v6951_v23, %v6949_v4  ;;  %v10902_v57 = vpack.c.bf16 %v6956_v12, %v6954_v51  ;;  %v6989_v4 = vld [vmem:[%s16942_s4 + $0xe40] sm:$0xff]  ;;  %v6994_v23 = vld [vmem:[%s16942_s4 + $0xe68] sm:$0xff]  ;;  %v6996_v51 = vld [vmem:[%s16942_s4 + $0xe78] sm:$0xff] }
 0xb35   : > { %v10940_v12 = vpack.c.bf16 %v6991_v19, %v6989_v4  ;;  %v7036_v4 = vld [vmem:[%s16942_s4 + $0xfb8] sm:$0xff] }
 0xb37   : > { %10865 = vmatpush1.bf16.msra.mxu0 %v10864_v20  ;;  %v6960_v20 = vld [vmem:[%s16942_s4 + $0xd58] sm:$0xff] }
 0xb38   : > { %10867 = vmatprep.subr.bf16.mxu0 %v10866_v46  ;;  %v10904_v46 = vpack.c.bf16 %v6955_v13, %v6953_v39  ;;  %v10906_v53 = vpack.c.bf16 %v6960_v20, %v6958_v34  ;;  %v6995_v39 = vld [vmem:[%s16942_s4 + $0xe70] sm:$0xff]  ;;  %v6998_v13 = vld [vmem:[%s16942_s4 + $0xe88] sm:$0xff]  ;;  %v7000_v34 = vld [vmem:[%s16942_s4 + $0xe98] sm:$0xff] }
 0xb3a   : > { %7477 = vmatmul.mubr.f32.vlgmr.msra.gmra.mrb[154].mxu0 %v6519_v52  ;;  %v10908_v52 = vpack.c.bf16 %v6959_v21, %v6957_v3  ;;  %v6999_v3 = vld [vmem:[%s16942_s4 + $0xe90] sm:$0xff]  ;;  %v7002_v21 = vld [vmem:[%s16942_s4 + $0xea8] sm:$0xff] }
 0xb3b   : > { %10869 = vmatpush1.bf16.msra.mxu0 %v10868_v15  ;;  %7547 = vmatprep.mubr.f32.mxu0 %v6526_v62  ;;  %v6964_v15 = vld [vmem:[%s16942_s4 + $0xd78] sm:$0xff]  ;;  %v6966_v62 = vld [vmem:[%s16942_s4 + $0xd88] sm:$0xff] }
 0xb3c   : > { %10871 = vmatprep.subr.bf16.mxu0 %v10870_v50  ;;  %v10910_v50 = vpack.c.bf16 %v6964_v15, %v6962_v41  ;;  %v7004_v41 = vld [vmem:[%s16942_s4 + $0xeb8] sm:$0xff] }
 0xb3f   : > { %10873 = vmatpush1.bf16.msra.mxu0 %v10872_v9  ;;  %v10914_v9 = vpack.c.bf16 %v6968_v60, %v6966_v62  ;;  %v7008_v62 = vld [vmem:[%s16942_s4 + $0xed8] sm:$0xff] }
 0xb40   : > { %10875 = vmatprep.subr.bf16.mxu0 %v10874_v54  ;;  %v6965_v54 = vld [vmem:[%s16942_s4 + $0xd80] sm:$0xff] }
 0xb41   : > { %v10916_v7 = vpack.c.bf16 %v6967_v45, %v6965_v54  ;;  %v7007_v54 = vld [vmem:[%s16942_s4 + $0xed0] sm:$0xff]  ;;  %v7010_v45 = vld [vmem:[%s16942_s4 + $0xee8] sm:$0xff] }
 0xb43   : > { %10877 = vmatpush1.bf16.msra.mxu0 %v10876_v17  ;;  %v10918_v17 = vpack.c.bf16 %v6972_v37, %v6970_v59  ;;  %v7012_v59 = vld [vmem:[%s16942_s4 + $0xef8] sm:$0xff] }
 0xb44   : > { %10879 = vmatprep.subr.bf16.mxu0 %v10878_v38  ;;  %v6969_v38 = vld [vmem:[%s16942_s4 + $0xda0] sm:$0xff] }
 0xb45   : > { %v10920_v6 = vpack.c.bf16 %v6971_v0, %v6969_v38  ;;  %v7011_v38 = vld [vmem:[%s16942_s4 + $0xef0] sm:$0xff]  ;;  %v7014_v0 = vld [vmem:[%s16942_s4 + $0xf08] sm:$0xff] }
 0xb47   : > { %10881 = vmatpush1.bf16.msra.mxu0 %v10880_v28  ;;  %v10922_v28 = vpack.c.bf16 %v6976_v16, %v6974_v61  ;;  %v7016_v61 = vld [vmem:[%s16942_s4 + $0xf18] sm:$0xff] }
 0xb48   : > { %10883 = vmatprep.subr.bf16.mxu0 %v10882_v1  ;;  %v6973_v1 = vld [vmem:[%s16942_s4 + $0xdc0] sm:$0xff] }
 0xb49   : > { %v10924_v22 = vpack.c.bf16 %v6975_v25, %v6973_v1  ;;  %v7015_v1 = vld [vmem:[%s16942_s4 + $0xf10] sm:$0xff]  ;;  %v7018_v25 = vld [vmem:[%s16942_s4 + $0xf28] sm:$0xff] }
 0xb4b   : > { %10885 = vmatpush1.bf16.msra.mxu0 %v10884_v32  ;;  %v10926_v32 = vpack.c.bf16 %v6980_v29, %v6978_v8  ;;  %v7020_v8 = vld [vmem:[%s16942_s4 + $0xf38] sm:$0xff] }
 0xb4c   : > { %10887 = vmatprep.subr.bf16.mxu0 %v10886_v36  ;;  %v6977_v36 = vld [vmem:[%s16942_s4 + $0xde0] sm:$0xff] }
 0xb4d   : > { %v10928_v35 = vpack.c.bf16 %v6979_v26, %v6977_v36  ;;  %v7019_v36 = vld [vmem:[%s16942_s4 + $0xf30] sm:$0xff]  ;;  %v7022_v26 = vld [vmem:[%s16942_s4 + $0xf48] sm:$0xff] }
 0xb4f   : > { %10889 = vmatpush1.bf16.msra.mxu0 %v10888_v56  ;;  %v10930_v56 = vpack.c.bf16 %v6984_v40, %v6982_v47  ;;  %v7024_v47 = vld [vmem:[%s16942_s4 + $0xf58] sm:$0xff] }
 0xb50   : > { %10891 = vmatprep.subr.bf16.mxu0 %v10890_v58  ;;  %v6981_v58 = vld [vmem:[%s16942_s4 + $0xe00] sm:$0xff] }
 0xb51   : > { %v10932_v10 = vpack.c.bf16 %v6983_v5, %v6981_v58  ;;  %v7023_v58 = vld [vmem:[%s16942_s4 + $0xf50] sm:$0xff]  ;;  %v7026_v5 = vld [vmem:[%s16942_s4 + $0xf68] sm:$0xff] }
 0xb53   : > { %10893 = vmatpush1.bf16.msra.mxu0 %v10892_v30  ;;  %v6525_v30 = vrot.slane %v15580_v11, 3  ;;  %v6992_v11 = vld [vmem:[%s16942_s4 + $0xe58] sm:$0xff] }
 0xb54   : > { %10895 = vmatprep.subr.bf16.mxu0 %v10894_v31  ;;  %v10934_v31 = vpack.c.bf16 %v6988_v18, %v6986_v44  ;;  %v7028_v44 = vld [vmem:[%s16942_s4 + $0xf78] sm:$0xff] }
 0xb57   : > { %10897 = vmatpush1.bf16.msra.mxu0 %v10896_v48  ;;  %v10936_v48 = vpack.c.bf16 %v6987_v42, %v6985_v43  ;;  %v7030_v43 = vld [vmem:[%s16942_s4 + $0xf88] sm:$0xff]  ;;  %v7032_v42 = vld [vmem:[%s16942_s4 + $0xf98] sm:$0xff] }
 0xb58   : > { %10899 = vmatprep.subr.bf16.mxu0 %v10898_v49  ;;  %v10938_v49 = vpack.c.bf16 %v6992_v11, %v6990_v55  ;;  %v10978_v55 = vpack.c.bf16 %v7032_v42, %v7030_v43  ;;  %v7029_v11 = vld [vmem:[%s16942_s4 + $0xf80] sm:$0xff] }
 0xb5b   : > { %10901 = vmatpush1.bf16.msra.mxu0 %v10900_v27  ;;  %v10942_v27 = vpack.c.bf16 %v6996_v51, %v6994_v23  ;;  %v7033_v51 = vld [vmem:[%s16942_s4 + $0xfa0] sm:$0xff] }
 0xb5c   : > { %10903 = vmatprep.subr.bf16.mxu0 %v10902_v57  ;;  %v6993_v57 = vld [vmem:[%s16942_s4 + $0xe60] sm:$0xff] }
 0xb5d   : > { %v10944_v20 = vpack.c.bf16 %v6995_v39, %v6993_v57  ;;  %v7040_v57 = vld [vmem:[%s16942_s4 + $0xfd8] sm:$0xff] }
 0xb5f   : > { %10905 = vmatpush1.bf16.msra.mxu0 %v10904_v46  ;;  %v10946_v46 = vpack.c.bf16 %v7000_v34, %v6998_v13  ;;  %v7037_v34 = vld [vmem:[%s16942_s4 + $0xfc0] sm:$0xff] }
 0xb60   : > { %10907 = vmatprep.subr.bf16.mxu0 %v10906_v53  ;;  %v6997_v53 = vld [vmem:[%s16942_s4 + $0xe80] sm:$0xff] }
 0xb61   : > { %v10948_v15 = vpack.c.bf16 %v6999_v3, %v6997_v53  ;;  %v7044_v53 = vld [vmem:[%s16942_s4 + $0xff8] sm:$0xff] }
 0xb63   : > { %10909 = vmatpush1.bf16.msra.mxu0 %v10908_v52  ;;  %v10950_v52 = vpack.c.bf16 %v7004_v41, %v7002_v21  ;;  %v7041_v41 = vld [vmem:[%s16942_s4 + $0xfe0] sm:$0xff] }
 0xb64   : > { %10911 = vmatprep.subr.bf16.mxu0 %v10910_v50  ;;  %v7001_v50 = vld [vmem:[%s16942_s4 + $0xea0] sm:$0xff] }
 0xb65   : > { %v10952_v60 = vpack.c.bf16 %v7003_v63, %v7001_v50  ;;  %v6527_v50 = vrot.slane %v15610_v14, 3  ;;  %v7047_v63 = vlaneseq }
 0xb67   : > { %10913 = vmatpush1.bf16.msra.mxu0 %v10912_v2  ;;  %v10954_v2 = vpack.c.bf16 %v7008_v62, %v7006_v33  ;;  %v7048_v33 = vshrl.u32 %v7047_v63, 7  ;;  %vm7647_vm0 = vcmp.lt.s32.totalorder %v7047_v63, 256 }
 0xb68   : > { %10915 = vmatprep.subr.bf16.mxu0 %v10914_v9  ;;  %v7005_v9 = vld [vmem:[%s16942_s4 + $0xec0] sm:$0xff] }
 0xb69   : > { %v10956_v37 = vpack.c.bf16 %v7007_v54, %v7005_v9  ;;  %v7049_v62 = vsub.s32 0, %v7048_v33  ;;  %v11180_v9 = vmov 1966171168  }
 0xb6a   : > { %v7631_v54 = vunpack.c.l.s4 %v11180_v9 }
 0xb6b   : > { %10917 = vmatpush1.bf16.msra.mxu0 %v10916_v7  ;;  %v10958_v7 = vpack.c.bf16 %v7012_v59, %v7010_v45 }
 0xb6c   : > { %10919 = vmatprep.subr.bf16.mxu0 %v10918_v17  ;;  %v7009_v17 = vld [vmem:[%s16942_s4 + $0xee0] sm:$0xff] }
 0xb6d   : > { %v10960_v16 = vpack.c.bf16 %v7011_v38, %v7009_v17 }
 0xb6f   : > { %10921 = vmatpush1.bf16.msra.mxu0 %v10920_v6  ;;  %v10962_v6 = vpack.c.bf16 %v7016_v61, %v7014_v0 }
 0xb70   : > { %10923 = vmatprep.subr.bf16.mxu0 %v10922_v28  ;;  %v7013_v28 = vld [vmem:[%s16942_s4 + $0xf00] sm:$0xff] }
 0xb71   : > { %v10964_v29 = vpack.c.bf16 %v7015_v1, %v7013_v28 }
 0xb73   : > { %10925 = vmatpush1.bf16.msra.mxu0 %v10924_v22  ;;  %v10966_v22 = vpack.c.bf16 %v7020_v8, %v7018_v25 }
 0xb74   : > { %10927 = vmatprep.subr.bf16.mxu0 %v10926_v32  ;;  %v7017_v32 = vld [vmem:[%s16942_s4 + $0xf20] sm:$0xff] }
 0xb75   : > { %v10968_v40 = vpack.c.bf16 %v7019_v36, %v7017_v32 }
 0xb77   : > { %10929 = vmatpush1.bf16.msra.mxu0 %v10928_v35  ;;  %v10970_v35 = vpack.c.bf16 %v7024_v47, %v7022_v26 }
 0xb78   : > { %10931 = vmatprep.subr.bf16.mxu0 %v10930_v56  ;;  %v7021_v56 = vld [vmem:[%s16942_s4 + $0xf40] sm:$0xff] }
 0xb79   : > { %v10972_v18 = vpack.c.bf16 %v7023_v58, %v7021_v56 }
 0xb7a   : > { %7548 = vmatmul.mubr.f32.vlgmr.msra.gmra.mrb[154].mxu0 %v6525_v30  ;;  %v7025_v30 = vld [vmem:[%s16942_s4 + $0xf60] sm:$0xff] }
 0xb7b   : > { %10933 = vmatpush1.bf16.msra.mxu0 %v10932_v10  ;;  %7618 = vmatprep.mubr.f32.mxu0 %v6528_v24  ;;  %v10974_v10 = vpack.c.bf16 %v7028_v44, %v7026_v5 }
 0xb7c   : > { %10935 = vmatprep.subr.bf16.mxu0 %v10934_v31  ;;  %v7027_v31 = vld [vmem:[%s16942_s4 + $0xf70] sm:$0xff] }
 0xb7d   : > { %v10976_v24 = vpack.c.bf16 %v7027_v31, %v7025_v30 }
 0xb7f   : > { %10937 = vmatpush1.bf16.msra.mxu0 %v10936_v48  ;;  %v7031_v48 = vld [vmem:[%s16942_s4 + $0xf90] sm:$0xff] }
 0xb80   : > { %10939 = vmatprep.subr.bf16.mxu0 %v10938_v49  ;;  %v7034_v49 = vld [vmem:[%s16942_s4 + $0xfa8] sm:$0xff]  ;;  %v10980_v19 = vpack.c.bf16 %v7031_v48, %v7029_v11 }
 0xb81   : > { %v10982_v23 = vpack.c.bf16 %v7036_v4, %v7034_v49 }
 0xb83   : > { %10941 = vmatpush1.bf16.msra.mxu0 %v10940_v12  ;;  %v7035_v12 = vld [vmem:[%s16942_s4 + $0xfb0] sm:$0xff] }
 0xb84   : > { %10943 = vmatprep.subr.bf16.mxu0 %v10942_v27  ;;  %v7038_v27 = vld [vmem:[%s16942_s4 + $0xfc8] sm:$0xff]  ;;  %v10984_v39 = vpack.c.bf16 %v7035_v12, %v7033_v51 }
 0xb85   : > { %v10986_v13 = vpack.c.bf16 %v7040_v57, %v7038_v27 }
 0xb87   : > { %10945 = vmatpush1.bf16.msra.mxu0 %v10944_v20  ;;  %v7039_v20 = vld [vmem:[%s16942_s4 + $0xfd0] sm:$0xff] }
 0xb88   : > { %10947 = vmatprep.subr.bf16.mxu0 %v10946_v46  ;;  %v7042_v46 = vld [vmem:[%s16942_s4 + $0xfe8] sm:$0xff]  ;;  %v10988_v3 = vpack.c.bf16 %v7039_v20, %v7037_v34 }
 0xb89   : > { %v10990_v21 = vpack.c.bf16 %v7044_v53, %v7042_v46 }
 0xb8b   : > { %10949 = vmatpush1.bf16.msra.mxu0 %v10948_v15  ;;  %v7043_v15 = vld [vmem:[%s16942_s4 + $0xff0] sm:$0xff] }
 0xb8c   : > { %10951 = vmatprep.subr.bf16.mxu0 %v10950_v52  ;;  %v10992_v52 = vpack.c.bf16 %v7043_v15, %v7041_v41 }
 0xb8f   : > { %10953 = vmatpush1.bf16.msra.mxu0 %v10952_v60  ;;  %v7045_v60 = vld [vmem:[%s16946_s8] sm:$0x3] }
 0xb90   : > { %10955 = vmatprep.subr.bf16.mxu0 %v10954_v2  ;;  %v7053_v2 = vsub.s32 1, %v7048_v33  ;;  %v7050_v45 = vrot.slane %v7045_v60, %v7049_v62 }
 0xb92   : > { %v7054_v59 = vrot.slane %v7045_v60, %v7053_v2 }
 0xb93   : > { %10957 = vmatpush1.bf16.msra.mxu0 %v10956_v37 }
 0xb94   : > { %10959 = vmatprep.subr.bf16.mxu0 %v10958_v7  ;;  %v7632_v7 = vunpack.c.0.s8 %v7631_v54 }
 0xb97   : > { %10961 = vmatpush1.bf16.msra.mxu0 %v10960_v16  ;;  %v7635_v16 = vsub.s32 %v7632_v7, %v7048_v33 }
 0xb98   : > { %10963 = vmatprep.subr.bf16.mxu0 %v10962_v6 }
 0xb9b   : > { %10965 = vmatpush1.bf16.msra.mxu0 %v10964_v29 }
 0xb9c   : > { %10967 = vmatprep.subr.bf16.mxu0 %v10966_v22 }
 0xb9f   : > { %10969 = vmatpush1.bf16.msra.mxu0 %v10968_v40 }
 0xba0   : > { %10971 = vmatprep.subr.bf16.mxu0 %v10970_v35 }
 0xba3   : > { %10973 = vmatpush1.bf16.msra.mxu0 %v10972_v18 }
 0xba4   : > { %10975 = vmatprep.subr.bf16.mxu0 %v10974_v10 }
 0xba7   : > { %10977 = vmatpush1.bf16.msra.mxu0 %v10976_v24 }
 0xba8   : > { %10979 = vmatprep.subr.bf16.mxu0 %v10978_v55 }
 0xbab   : > { %10981 = vmatpush1.bf16.msra.mxu0 %v10980_v19 }
 0xbac   : > { %10983 = vmatprep.subr.bf16.mxu0 %v10982_v23 }
 0xbaf   : > { %10985 = vmatpush1.bf16.msra.mxu0 %v10984_v39 }
 0xbb0   : > { %10987 = vmatprep.subr.bf16.mxu0 %v10986_v13 }
 0xbb3   : > { %10989 = vmatpush1.bf16.msra.mxu0 %v10988_v3 }
 0xbb4   : > { %10991 = vmatprep.subr.bf16.mxu0 %v10990_v21 }
 0xbb7   : > { %10993 = vmatpush1.bf16.msra.mxu0 %v10992_v52 }
 0xbba   : > { %7619 = vmatmul.mubr.f32.vlgmr.msra.gmra.mrb[154].mxu0 %v6527_v50 }
 0xc8d   : > { %v7620_v37 = vpop.f32.mrb[154].mxu0 }
 0xc8e   : > { %v11000_v17 = vadd.f32 %v7620_v37, %v7050_v45  ;;  %v7622_v38 = vpop.f32.mrb[155].mxu0 }
 0xc8f   : > { %v11001_v0 = vadd.f32 %v7622_v38, %v7054_v59 }
 0xc90   : > { %v7625_v14 = vmax.f32 %v11000_v17, 0.0 }
 0xc91   : > { %v7626_v61 = vmax.f32 %v11001_v0, 0.0 }
 0xc93   : > { %v7629_v6 = vcombine.low %v7625_v14, %v7626_v61 }
 0xc95   : > { %v7636_v28 = vrot.slane %v7629_v6, %v7635_v16 }
 0xc97   : > { %v7643_v1 = vrot.slane %v7636_v28, %v7635_v16 }
 0xc99   : > { %7649 = vst.msk [vmem:[%s411_s29] sm:$0x3] %vm7647_vm0, %v7643_v1 }
 0xc9a PF: > { %s22_s21 = sadd.s32 1, %s11168_s21  }
 0xc9b   : > { %p19_p4 = scmp.ge.s32.totalorder %s22_s21, 8  }
 0xc9d   :  { %21 = sbr.rel (!%p19_p4) target bundleno = 1 (0x1), region = 107 }

</bundles_post_ra>
